<compile_context>
chip_gen: v7x
topology: tpu7x:2x2x1
jax: 0.10.0
libtpu: 0.0.40
codegen_flags: <defaults>
</compile_context>

<pallas_src>
import functools

import jax
import jax.numpy as jnp
import numpy as np
from jax.experimental import pallas as pl
from jax.experimental.pallas import tpu as pltpu


def _cdiv(a, b):
    return -(-a // b)


def _round_up(a, b):
    return _cdiv(a, b) * b


def _prd_kernel(x_ref, w_ref, b_ref, o_ref, *, groups, n_chan, lane_tile,
                multi_tile):
    """One (batch, lane-chunk) step:  out = sum_g  W_g @ stack_g(x)  + b.

    x_ref: (1, C, Lin)    zero-padded, flattened input slab (whole image)
    w_ref: (C, T*C)       merged per-tap weights, concatenated in group order
    b_ref: (C, 1)         merged bias (f32)
    o_ref: (1, C, LT)     lane-aligned output chunk
    """
    if multi_tile:
        base = pl.multiple_of(pl.program_id(1) * lane_tile, 128)
    else:
        base = 0  # single chunk: keep every slice start static

    acc = jnp.zeros((n_chan, lane_tile), dtype=jnp.float32)
    col = 0
    # Statically unrolled loop over tap groups.  Each group stacks G shifted
    # patches along the sublane (C_in) axis -> one full-depth MXU matmul.
    for grp in groups:
        patches = [x_ref[0, :, pl.ds(base + s, lane_tile)] for s in grp]
        if len(patches) == 1:
            stacked = patches[0]                       # (C, LT)
        else:
            stacked = jnp.concatenate(patches, axis=0)  # (G*C, LT)
        w_grp = w_ref[:, col:col + len(grp) * n_chan]   # (C, G*C), static slice
        acc = acc + jnp.dot(w_grp, stacked,
                            preferred_element_type=jnp.float32)
        col += len(grp) * n_chan

    acc = acc + b_ref[...]                              # (C,1) broadcast over lanes
    o_ref[0] = acc.astype(o_ref.dtype)


def _default_group_size():
    # v5e MXU is 128 deep -> group of 2 taps already fills it; v6e/v7x are 256.
    try:
        kind = jax.devices()[0].device_kind.lower()
        if "v5" in kind:
            return 2
    except Exception:
        pass
    return 4


def prd_forward(x, w0, b0, dilated_convs, *, lane_tile_max=2048,
                group_size=None):
    """Fused PRD forward: con0(x) + con1(x) + con2(x) + con3(x) + con4(x).

    x: (N, C, H, W); w0: (C, C, 1, 1); b0: (C,)
    dilated_convs: sequence of (w, b, dilation) with w: (C, C, 3, 3), b: (C,)
    """
    N, C, H, W = x.shape
    if group_size is None:
        group_size = _default_group_size()

    P = max(d for _, _, d in dilated_convs)        # max dilation -> shared zero-pad
    Hp, Wp = H + 2 * P, W + 2 * P
    jstart = P * Wp + P                            # flat index of output pixel (0,0)
    lout = (H - 1) * Wp + W                        # useful output window length

    # Lane-aligned output chunking.
    lout_128 = _round_up(lout, 128)
    lane_tile = min(lout_128, _round_up(lane_tile_max, 128))
    num_j = _cdiv(lout_128, lane_tile)
    lout_al = num_j * lane_tile                    # multiple of lane_tile (and 128)

    # Input slab must cover the largest tap of the last output lane.
    l_need = 2 * jstart + lout_al
    extra_rows = max(0, _cdiv(l_need - Hp * Wp, Wp))
    Hp_ext = Hp + extra_rows
    l_in = Hp_ext * Wp

    # ---- merge the five convolutions into one sparse tap set -----------------
    taps = {}

    def _add_tap(oy, ox, w2d):
        key = (oy, ox)
        taps[key] = taps[key] + w2d if key in taps else w2d

    _add_tap(0, 0, w0[:, :, 0, 0])                 # 1x1 conv -> center tap
    for w, _, d in dilated_convs:                  # dilated 3x3 convs
        for ky in range(3):
            for kx in range(3):
                _add_tap((ky - 1) * d, (kx - 1) * d, w[:, :, ky, kx])

    offsets = sorted(taps.keys())                  # 33 distinct taps
    T = len(offsets)
    starts = [int(jstart + oy * Wp + ox) for oy, ox in offsets]   # static ints
    groups = tuple(tuple(starts[i:i + group_size])
                   for i in range(0, T, group_size))

    # Weights concatenated along C_in in the same (group) order as the patch
    # stack; cast to x.dtype so the MXU sees matching operands (no promotion).
    w_flat = jnp.concatenate([taps[o] for o in offsets], axis=1).astype(x.dtype)
    b_all = (b0 + sum(b for _, b, _ in dilated_convs)).astype(jnp.float32)
    b_all = b_all.reshape(C, 1)

    # ---- single zero-pad: spatial pad + a few alignment rows, then flatten ----
    xf = jnp.pad(x, ((0, 0), (0, 0), (P, P + extra_rows), (P, P)))
    xf = xf.reshape(N, C, l_in)

    kernel = functools.partial(_prd_kernel, groups=groups, n_chan=C,
                               lane_tile=lane_tile, multi_tile=(num_j > 1))

    # Explicit VMEM budget (capped at 56 MiB: v7x physical VMEM is 64 MiB).
    itemsize = jnp.dtype(x.dtype).itemsize
    vmem_bytes = (2 * C * l_in * itemsize              # resident input slab (x2 buf)
                  + 2 * C * lane_tile * itemsize       # output chunk (x2 buf)
                  + 2 * (T * C * C * itemsize + C * 4)  # tap weights + bias
                  + (group_size * C + C) * lane_tile * 4  # patch stack + f32 acc
                  + (8 << 20))                         # compiler headroom
    vmem_bytes = int(min(max(vmem_bytes, 32 << 20), 56 << 20))

    flops = 2 * N * T * C * C * lout_al
    bytes_accessed = (N * C * l_in + N * C * lout_al + T * C * C) * itemsize
    cost = pl.CostEstimate(flops=int(flops), transcendentals=0,
                           bytes_accessed=int(bytes_accessed))

    out_win = pl.pallas_call(
        kernel,
        out_shape=jax.ShapeDtypeStruct((N, C, lout_al), x.dtype),
        grid=(N, num_j),
        in_specs=[
            pl.BlockSpec((1, C, l_in), lambda n, j: (n, 0, 0)),
            pl.BlockSpec((C, T * C), lambda n, j: (0, 0)),
            pl.BlockSpec((C, 1), lambda n, j: (0, 0)),
        ],
        out_specs=pl.BlockSpec((1, C, lane_tile), lambda n, j: (n, 0, j)),
        compiler_params=pltpu.CompilerParams(
            dimension_semantics=("parallel", "parallel"),
            vmem_limit_bytes=vmem_bytes,
        ),
        cost_estimate=cost,
    )(xf, w_flat, b_all)

    # out_win[..., y * Wp + x] is output pixel (y, x); drop the alignment tail
    # and the width-padding columns (cheap slice + reshape, no extra pad in the
    # common case lout_al >= H*Wp).
    HWp = H * Wp
    if lout_al >= HWp:
        out_flat = out_win[..., :HWp]
    else:
        out_flat = jnp.pad(out_win, ((0, 0), (0, 0), (0, HWp - lout_al)))
    return out_flat.reshape(N, C, H, Wp)[..., :W]


def prd_reference(x, w0, b0, dilated_convs):
    """Pure-JAX/XLA reference matching the PyTorch forward."""
    def conv(w, b, dilation, padding):
        y = jax.lax.conv_general_dilated(
            x, w, window_strides=(1, 1),
            padding=((padding, padding), (padding, padding)),
            rhs_dilation=(dilation, dilation),
            dimension_numbers=("NCHW", "OIHW", "NCHW"),
            precision=jax.lax.Precision.HIGHEST)
        return y + b[None, :, None, None]

    out = conv(w0, b0, 1, 0)
    for w, b, d in dilated_convs:
        out = out + conv(w, b, d, d)
    return out


if __name__ == "__main__":
    # Conv2d(64, 64, ...) fixes C = 64; keep batch / spatial small.
    N, C, H, W = 2, 64, 16, 16

    key = jax.random.PRNGKey(0)
    ks = jax.random.split(key, 11)

    x = jax.random.normal(ks[0], (N, C, H, W), dtype=jnp.float32)
    w0 = jax.random.normal(ks[1], (C, C, 1, 1), dtype=jnp.float32) / jnp.sqrt(1.0 * C)
    b0 = 0.1 * jax.random.normal(ks[2], (C,), dtype=jnp.float32)

    dilated_convs = []
    for i, d in enumerate((1, 2, 3, 4)):
        w = jax.random.normal(ks[3 + 2 * i], (C, C, 3, 3),
                              dtype=jnp.float32) / jnp.sqrt(9.0 * C)
        b = 0.1 * jax.random.normal(ks[4 + 2 * i], (C,), dtype=jnp.float32)
        dilated_convs.append((w, b, d))

    out = jax.block_until_ready(prd_forward(x, w0, b0, dilated_convs))
    ref = jax.block_until_ready(prd_reference(x, w0, b0, dilated_convs))

    np.testing.assert_allclose(np.asarray(out), np.asarray(ref), rtol=2e-3, atol=2e-3)
    print("KERNEL_OK")
</pallas_src>

<mosaic_0001>
module attributes {stable_mosaic.version = 11 : i64} {
  func.func @_prd_kernel(%arg0: i32, %arg1: i32, %arg2: memref<1x64x600xf32, #tpu.memory_space<vmem>>, %arg3: memref<64x2112xf32, #tpu.memory_space<vmem>>, %arg4: memref<64x1xf32, #tpu.memory_space<vmem>>, %arg5: memref<1x64x384xf32, #tpu.memory_space<vmem>>) attributes {dimension_semantics = [#tpu.dimension_semantics<parallel>, #tpu.dimension_semantics<parallel>], iteration_bounds = array<i64: 2, 1>, scalar_prefetch = 0 : i64, scratch_operands = 0 : i64, tpu.core_type = #tpu.core_type<tc>, window_params = [{transform_indices = @transform_0, window_bounds = array<i64: 1, 64, 600>}, {pipeline_mode = #tpu.pipeline_mode<synchronous>, transform_indices = @transform_1, window_bounds = array<i64: 64, 2112>}, {pipeline_mode = #tpu.pipeline_mode<synchronous>, transform_indices = @transform_2, window_bounds = array<i64: 64, 1>}, {transform_indices = @transform_3, window_bounds = array<i64: 1, 64, 384>}]} {
    %cst = arith.constant 0.000000e+00 : f32
    %0 = vector.broadcast %cst : f32 to vector<64x384xf32>
    %c0 = arith.constant 0 : index
    %c0_0 = arith.constant 0 : index
    %c0_1 = arith.constant 0 : index
    %1 = vector.load %arg2[%c0, %c0_0, %c0_1] : memref<1x64x600xf32, #tpu.memory_space<vmem>>, vector<1x64x384xf32>
    %2 = vector.shape_cast %1 : vector<1x64x384xf32> to vector<64x384xf32>
    %c0_2 = arith.constant 0 : index
    %c0_3 = arith.constant 0 : index
    %c4 = arith.constant 4 : index
    %3 = vector.load %arg2[%c0_2, %c0_3, %c4] : memref<1x64x600xf32, #tpu.memory_space<vmem>>, vector<1x64x384xf32>
    %4 = vector.shape_cast %3 : vector<1x64x384xf32> to vector<64x384xf32>
    %c0_4 = arith.constant 0 : index
    %c0_5 = arith.constant 0 : index
    %c8 = arith.constant 8 : index
    %5 = vector.load %arg2[%c0_4, %c0_5, %c8] : memref<1x64x600xf32, #tpu.memory_space<vmem>>, vector<1x64x384xf32>
    %6 = vector.shape_cast %5 : vector<1x64x384xf32> to vector<64x384xf32>
    %c0_6 = arith.constant 0 : index
    %c0_7 = arith.constant 0 : index
    %c25 = arith.constant 25 : index
    %7 = vector.load %arg2[%c0_6, %c0_7, %c25] : memref<1x64x600xf32, #tpu.memory_space<vmem>>, vector<1x64x384xf32>
    %8 = vector.shape_cast %7 : vector<1x64x384xf32> to vector<64x384xf32>
    %9 = tpu.concatenate %2, %4, %6, %8 in 0 : vector<64x384xf32>, vector<64x384xf32>, vector<64x384xf32>, vector<64x384xf32> -> vector<256x384xf32>
    %c0_8 = arith.constant 0 : index
    %c0_9 = arith.constant 0 : index
    %10 = vector.load %arg3[%c0_8, %c0_9] : memref<64x2112xf32, #tpu.memory_space<vmem>>, vector<64x256xf32>
    %cst_10 = arith.constant dense<0.000000e+00> : vector<64x384xf32>
    %11 = tpu.matmul %10, %9, %cst_10 {dimension_numbers = #tpu.dot_dimension_numbers<[1], [0], [0], [1], [0, 0, 1, 1], [], []>} : vector<64x256xf32>, vector<256x384xf32>, vector<64x384xf32> -> vector<64x384xf32>
    %12 = arith.addf %0, %11 : vector<64x384xf32>
    %c0_11 = arith.constant 0 : index
    %c0_12 = arith.constant 0 : index
    %c28 = arith.constant 28 : index
    %13 = vector.load %arg2[%c0_11, %c0_12, %c28] : memref<1x64x600xf32, #tpu.memory_space<vmem>>, vector<1x64x384xf32>
    %14 = vector.shape_cast %13 : vector<1x64x384xf32> to vector<64x384xf32>
    %c0_13 = arith.constant 0 : index
    %c0_14 = arith.constant 0 : index
    %c31 = arith.constant 31 : index
    %15 = vector.load %arg2[%c0_13, %c0_14, %c31] : memref<1x64x600xf32, #tpu.memory_space<vmem>>, vector<1x64x384xf32>
    %16 = vector.shape_cast %15 : vector<1x64x384xf32> to vector<64x384xf32>
    %c0_15 = arith.constant 0 : index
    %c0_16 = arith.constant 0 : index
    %c50 = arith.constant 50 : index
    %17 = vector.load %arg2[%c0_15, %c0_16, %c50] : memref<1x64x600xf32, #tpu.memory_space<vmem>>, vector<1x64x384xf32>
    %18 = vector.shape_cast %17 : vector<1x64x384xf32> to vector<64x384xf32>
    %c0_17 = arith.constant 0 : index
    %c0_18 = arith.constant 0 : index
    %c52 = arith.constant 52 : index
    %19 = vector.load %arg2[%c0_17, %c0_18, %c52] : memref<1x64x600xf32, #tpu.memory_space<vmem>>, vector<1x64x384xf32>
    %20 = vector.shape_cast %19 : vector<1x64x384xf32> to vector<64x384xf32>
    %21 = tpu.concatenate %14, %16, %18, %20 in 0 : vector<64x384xf32>, vector<64x384xf32>, vector<64x384xf32>, vector<64x384xf32> -> vector<256x384xf32>
    %c0_19 = arith.constant 0 : index
    %c256 = arith.constant 256 : index
    %22 = vector.load %arg3[%c0_19, %c256] : memref<64x2112xf32, #tpu.memory_space<vmem>>, vector<64x256xf32>
    %cst_20 = arith.constant dense<0.000000e+00> : vector<64x384xf32>
    %23 = tpu.matmul %22, %21, %cst_20 {dimension_numbers = #tpu.dot_dimension_numbers<[1], [0], [0], [1], [0, 0, 1, 1], [], []>} : vector<64x256xf32>, vector<256x384xf32>, vector<64x384xf32> -> vector<64x384xf32>
    %24 = arith.addf %12, %23 : vector<64x384xf32>
    %c0_21 = arith.constant 0 : index
    %c0_22 = arith.constant 0 : index
    %c54 = arith.constant 54 : index
    %25 = vector.load %arg2[%c0_21, %c0_22, %c54] : memref<1x64x600xf32, #tpu.memory_space<vmem>>, vector<1x64x384xf32>
    %26 = vector.shape_cast %25 : vector<1x64x384xf32> to vector<64x384xf32>
    %c0_23 = arith.constant 0 : index
    %c0_24 = arith.constant 0 : index
    %c75 = arith.constant 75 : index
    %27 = vector.load %arg2[%c0_23, %c0_24, %c75] : memref<1x64x600xf32, #tpu.memory_space<vmem>>, vector<1x64x384xf32>
    %28 = vector.shape_cast %27 : vector<1x64x384xf32> to vector<64x384xf32>
    %c0_25 = arith.constant 0 : index
    %c0_26 = arith.constant 0 : index
    %c76 = arith.constant 76 : index
    %29 = vector.load %arg2[%c0_25, %c0_26, %c76] : memref<1x64x600xf32, #tpu.memory_space<vmem>>, vector<1x64x384xf32>
    %30 = vector.shape_cast %29 : vector<1x64x384xf32> to vector<64x384xf32>
    %c0_27 = arith.constant 0 : index
    %c0_28 = arith.constant 0 : index
    %c77 = arith.constant 77 : index
    %31 = vector.load %arg2[%c0_27, %c0_28, %c77] : memref<1x64x600xf32, #tpu.memory_space<vmem>>, vector<1x64x384xf32>
    %32 = vector.shape_cast %31 : vector<1x64x384xf32> to vector<64x384xf32>
    %33 = tpu.concatenate %26, %28, %30, %32 in 0 : vector<64x384xf32>, vector<64x384xf32>, vector<64x384xf32>, vector<64x384xf32> -> vector<256x384xf32>
    %c0_29 = arith.constant 0 : index
    %c512 = arith.constant 512 : index
    %34 = vector.load %arg3[%c0_29, %c512] : memref<64x2112xf32, #tpu.memory_space<vmem>>, vector<64x256xf32>
    %cst_30 = arith.constant dense<0.000000e+00> : vector<64x384xf32>
    %35 = tpu.matmul %34, %33, %cst_30 {dimension_numbers = #tpu.dot_dimension_numbers<[1], [0], [0], [1], [0, 0, 1, 1], [], []>} : vector<64x256xf32>, vector<256x384xf32>, vector<64x384xf32> -> vector<64x384xf32>
    %36 = arith.addf %24, %35 : vector<64x384xf32>
    %c0_31 = arith.constant 0 : index
    %c0_32 = arith.constant 0 : index
    %c96 = arith.constant 96 : index
    %37 = vector.load %arg2[%c0_31, %c0_32, %c96] : memref<1x64x600xf32, #tpu.memory_space<vmem>>, vector<1x64x384xf32>
    %38 = vector.shape_cast %37 : vector<1x64x384xf32> to vector<64x384xf32>
    %c0_33 = arith.constant 0 : index
    %c0_34 = arith.constant 0 : index
    %c97 = arith.constant 97 : index
    %39 = vector.load %arg2[%c0_33, %c0_34, %c97] : memref<1x64x600xf32, #tpu.memory_space<vmem>>, vector<1x64x384xf32>
    %40 = vector.shape_cast %39 : vector<1x64x384xf32> to vector<64x384xf32>
    %c0_35 = arith.constant 0 : index
    %c0_36 = arith.constant 0 : index
    %c98 = arith.constant 98 : index
    %41 = vector.load %arg2[%c0_35, %c0_36, %c98] : memref<1x64x600xf32, #tpu.memory_space<vmem>>, vector<1x64x384xf32>
    %42 = vector.shape_cast %41 : vector<1x64x384xf32> to vector<64x384xf32>
    %c0_37 = arith.constant 0 : index
    %c0_38 = arith.constant 0 : index
    %c99 = arith.constant 99 : index
    %43 = vector.load %arg2[%c0_37, %c0_38, %c99] : memref<1x64x600xf32, #tpu.memory_space<vmem>>, vector<1x64x384xf32>
    %44 = vector.shape_cast %43 : vector<1x64x384xf32> to vector<64x384xf32>
    %45 = tpu.concatenate %38, %40, %42, %44 in 0 : vector<64x384xf32>, vector<64x384xf32>, vector<64x384xf32>, vector<64x384xf32> -> vector<256x384xf32>
    %c0_39 = arith.constant 0 : index
    %c768 = arith.constant 768 : index
    %46 = vector.load %arg3[%c0_39, %c768] : memref<64x2112xf32, #tpu.memory_space<vmem>>, vector<64x256xf32>
    %cst_40 = arith.constant dense<0.000000e+00> : vector<64x384xf32>
    %47 = tpu.matmul %46, %45, %cst_40 {dimension_numbers = #tpu.dot_dimension_numbers<[1], [0], [0], [1], [0, 0, 1, 1], [], []>} : vector<64x256xf32>, vector<256x384xf32>, vector<64x384xf32> -> vector<64x384xf32>
    %48 = arith.addf %36, %47 : vector<64x384xf32>
    %c0_41 = arith.constant 0 : index
    %c0_42 = arith.constant 0 : index
    %c100 = arith.constant 100 : index
    %49 = vector.load %arg2[%c0_41, %c0_42, %c100] : memref<1x64x600xf32, #tpu.memory_space<vmem>>, vector<1x64x384xf32>
    %50 = vector.shape_cast %49 : vector<1x64x384xf32> to vector<64x384xf32>
    %c0_43 = arith.constant 0 : index
    %c0_44 = arith.constant 0 : index
    %c101 = arith.constant 101 : index
    %51 = vector.load %arg2[%c0_43, %c0_44, %c101] : memref<1x64x600xf32, #tpu.memory_space<vmem>>, vector<1x64x384xf32>
    %52 = vector.shape_cast %51 : vector<1x64x384xf32> to vector<64x384xf32>
    %c0_45 = arith.constant 0 : index
    %c0_46 = arith.constant 0 : index
    %c102 = arith.constant 102 : index
    %53 = vector.load %arg2[%c0_45, %c0_46, %c102] : memref<1x64x600xf32, #tpu.memory_space<vmem>>, vector<1x64x384xf32>
    %54 = vector.shape_cast %53 : vector<1x64x384xf32> to vector<64x384xf32>
    %c0_47 = arith.constant 0 : index
    %c0_48 = arith.constant 0 : index
    %c103 = arith.constant 103 : index
    %55 = vector.load %arg2[%c0_47, %c0_48, %c103] : memref<1x64x600xf32, #tpu.memory_space<vmem>>, vector<1x64x384xf32>
    %56 = vector.shape_cast %55 : vector<1x64x384xf32> to vector<64x384xf32>
    %57 = tpu.concatenate %50, %52, %54, %56 in 0 : vector<64x384xf32>, vector<64x384xf32>, vector<64x384xf32>, vector<64x384xf32> -> vector<256x384xf32>
    %c0_49 = arith.constant 0 : index
    %c1024 = arith.constant 1024 : index
    %58 = vector.load %arg3[%c0_49, %c1024] : memref<64x2112xf32, #tpu.memory_space<vmem>>, vector<64x256xf32>
    %cst_50 = arith.constant dense<0.000000e+00> : vector<64x384xf32>
    %59 = tpu.matmul %58, %57, %cst_50 {dimension_numbers = #tpu.dot_dimension_numbers<[1], [0], [0], [1], [0, 0, 1, 1], [], []>} : vector<64x256xf32>, vector<256x384xf32>, vector<64x384xf32> -> vector<64x384xf32>
    %60 = arith.addf %48, %59 : vector<64x384xf32>
    %c0_51 = arith.constant 0 : index
    %c0_52 = arith.constant 0 : index
    %c104 = arith.constant 104 : index
    %61 = vector.load %arg2[%c0_51, %c0_52, %c104] : memref<1x64x600xf32, #tpu.memory_space<vmem>>, vector<1x64x384xf32>
    %62 = vector.shape_cast %61 : vector<1x64x384xf32> to vector<64x384xf32>
    %c0_53 = arith.constant 0 : index
    %c0_54 = arith.constant 0 : index
    %c123 = arith.constant 123 : index
    %63 = vector.load %arg2[%c0_53, %c0_54, %c123] : memref<1x64x600xf32, #tpu.memory_space<vmem>>, vector<1x64x384xf32>
    %64 = vector.shape_cast %63 : vector<1x64x384xf32> to vector<64x384xf32>
    %c0_55 = arith.constant 0 : index
    %c0_56 = arith.constant 0 : index
    %c124 = arith.constant 124 : index
    %65 = vector.load %arg2[%c0_55, %c0_56, %c124] : memref<1x64x600xf32, #tpu.memory_space<vmem>>, vector<1x64x384xf32>
    %66 = vector.shape_cast %65 : vector<1x64x384xf32> to vector<64x384xf32>
    %c0_57 = arith.constant 0 : index
    %c0_58 = arith.constant 0 : index
    %c125 = arith.constant 125 : index
    %67 = vector.load %arg2[%c0_57, %c0_58, %c125] : memref<1x64x600xf32, #tpu.memory_space<vmem>>, vector<1x64x384xf32>
    %68 = vector.shape_cast %67 : vector<1x64x384xf32> to vector<64x384xf32>
    %69 = tpu.concatenate %62, %64, %66, %68 in 0 : vector<64x384xf32>, vector<64x384xf32>, vector<64x384xf32>, vector<64x384xf32> -> vector<256x384xf32>
    %c0_59 = arith.constant 0 : index
    %c1280 = arith.constant 1280 : index
    %70 = vector.load %arg3[%c0_59, %c1280] : memref<64x2112xf32, #tpu.memory_space<vmem>>, vector<64x256xf32>
    %cst_60 = arith.constant dense<0.000000e+00> : vector<64x384xf32>
    %71 = tpu.matmul %70, %69, %cst_60 {dimension_numbers = #tpu.dot_dimension_numbers<[1], [0], [0], [1], [0, 0, 1, 1], [], []>} : vector<64x256xf32>, vector<256x384xf32>, vector<64x384xf32> -> vector<64x384xf32>
    %72 = arith.addf %60, %71 : vector<64x384xf32>
    %c0_61 = arith.constant 0 : index
    %c0_62 = arith.constant 0 : index
    %c146 = arith.constant 146 : index
    %73 = vector.load %arg2[%c0_61, %c0_62, %c146] : memref<1x64x600xf32, #tpu.memory_space<vmem>>, vector<1x64x384xf32>
    %74 = vector.shape_cast %73 : vector<1x64x384xf32> to vector<64x384xf32>
    %c0_63 = arith.constant 0 : index
    %c0_64 = arith.constant 0 : index
    %c148 = arith.constant 148 : index
    %75 = vector.load %arg2[%c0_63, %c0_64, %c148] : memref<1x64x600xf32, #tpu.memory_space<vmem>>, vector<1x64x384xf32>
    %76 = vector.shape_cast %75 : vector<1x64x384xf32> to vector<64x384xf32>
    %c0_65 = arith.constant 0 : index
    %c0_66 = arith.constant 0 : index
    %c150 = arith.constant 150 : index
    %77 = vector.load %arg2[%c0_65, %c0_66, %c150] : memref<1x64x600xf32, #tpu.memory_space<vmem>>, vector<1x64x384xf32>
    %78 = vector.shape_cast %77 : vector<1x64x384xf32> to vector<64x384xf32>
    %c0_67 = arith.constant 0 : index
    %c0_68 = arith.constant 0 : index
    %c169 = arith.constant 169 : index
    %79 = vector.load %arg2[%c0_67, %c0_68, %c169] : memref<1x64x600xf32, #tpu.memory_space<vmem>>, vector<1x64x384xf32>
    %80 = vector.shape_cast %79 : vector<1x64x384xf32> to vector<64x384xf32>
    %81 = tpu.concatenate %74, %76, %78, %80 in 0 : vector<64x384xf32>, vector<64x384xf32>, vector<64x384xf32>, vector<64x384xf32> -> vector<256x384xf32>
    %c0_69 = arith.constant 0 : index
    %c1536 = arith.constant 1536 : index
    %82 = vector.load %arg3[%c0_69, %c1536] : memref<64x2112xf32, #tpu.memory_space<vmem>>, vector<64x256xf32>
    %cst_70 = arith.constant dense<0.000000e+00> : vector<64x384xf32>
    %83 = tpu.matmul %82, %81, %cst_70 {dimension_numbers = #tpu.dot_dimension_numbers<[1], [0], [0], [1], [0, 0, 1, 1], [], []>} : vector<64x256xf32>, vector<256x384xf32>, vector<64x384xf32> -> vector<64x384xf32>
    %84 = arith.addf %72, %83 : vector<64x384xf32>
    %c0_71 = arith.constant 0 : index
    %c0_72 = arith.constant 0 : index
    %c172 = arith.constant 172 : index
    %85 = vector.load %arg2[%c0_71, %c0_72, %c172] : memref<1x64x600xf32, #tpu.memory_space<vmem>>, vector<1x64x384xf32>
    %86 = vector.shape_cast %85 : vector<1x64x384xf32> to vector<64x384xf32>
    %c0_73 = arith.constant 0 : index
    %c0_74 = arith.constant 0 : index
    %c175 = arith.constant 175 : index
    %87 = vector.load %arg2[%c0_73, %c0_74, %c175] : memref<1x64x600xf32, #tpu.memory_space<vmem>>, vector<1x64x384xf32>
    %88 = vector.shape_cast %87 : vector<1x64x384xf32> to vector<64x384xf32>
    %c0_75 = arith.constant 0 : index
    %c0_76 = arith.constant 0 : index
    %c192 = arith.constant 192 : index
    %89 = vector.load %arg2[%c0_75, %c0_76, %c192] : memref<1x64x600xf32, #tpu.memory_space<vmem>>, vector<1x64x384xf32>
    %90 = vector.shape_cast %89 : vector<1x64x384xf32> to vector<64x384xf32>
    %c0_77 = arith.constant 0 : index
    %c0_78 = arith.constant 0 : index
    %c196 = arith.constant 196 : index
    %91 = vector.load %arg2[%c0_77, %c0_78, %c196] : memref<1x64x600xf32, #tpu.memory_space<vmem>>, vector<1x64x384xf32>
    %92 = vector.shape_cast %91 : vector<1x64x384xf32> to vector<64x384xf32>
    %93 = tpu.concatenate %86, %88, %90, %92 in 0 : vector<64x384xf32>, vector<64x384xf32>, vector<64x384xf32>, vector<64x384xf32> -> vector<256x384xf32>
    %c0_79 = arith.constant 0 : index
    %c1792 = arith.constant 1792 : index
    %94 = vector.load %arg3[%c0_79, %c1792] : memref<64x2112xf32, #tpu.memory_space<vmem>>, vector<64x256xf32>
    %cst_80 = arith.constant dense<0.000000e+00> : vector<64x384xf32>
    %95 = tpu.matmul %94, %93, %cst_80 {dimension_numbers = #tpu.dot_dimension_numbers<[1], [0], [0], [1], [0, 0, 1, 1], [], []>} : vector<64x256xf32>, vector<256x384xf32>, vector<64x384xf32> -> vector<64x384xf32>
    %96 = arith.addf %84, %95 : vector<64x384xf32>
    %c0_81 = arith.constant 0 : index
    %c0_82 = arith.constant 0 : index
    %c200 = arith.constant 200 : index
    %97 = vector.load %arg2[%c0_81, %c0_82, %c200] : memref<1x64x600xf32, #tpu.memory_space<vmem>>, vector<1x64x384xf32>
    %98 = vector.shape_cast %97 : vector<1x64x384xf32> to vector<64x384xf32>
    %c0_83 = arith.constant 0 : index
    %c2048 = arith.constant 2048 : index
    %99 = vector.load %arg3[%c0_83, %c2048] : memref<64x2112xf32, #tpu.memory_space<vmem>>, vector<64x64xf32>
    %cst_84 = arith.constant dense<0.000000e+00> : vector<64x384xf32>
    %100 = tpu.matmul %99, %98, %cst_84 {dimension_numbers = #tpu.dot_dimension_numbers<[1], [0], [0], [1], [0, 0, 1, 1], [], []>} : vector<64x64xf32>, vector<64x384xf32>, vector<64x384xf32> -> vector<64x384xf32>
    %101 = arith.addf %96, %100 : vector<64x384xf32>
    %c0_85 = arith.constant 0 : index
    %c0_86 = arith.constant 0 : index
    %102 = vector.load %arg4[%c0_85, %c0_86] : memref<64x1xf32, #tpu.memory_space<vmem>>, vector<64x1xf32>
    %103 = vector.broadcast %102 : vector<64x1xf32> to vector<64x384xf32>
    %104 = arith.addf %101, %103 : vector<64x384xf32>
    %c0_87 = arith.constant 0 : index
    %c0_88 = arith.constant 0 : index
    %c0_89 = arith.constant 0 : index
    %105 = vector.load %arg5[%c0_87, %c0_88, %c0_89] : memref<1x64x384xf32, #tpu.memory_space<vmem>>, vector<1x64x384xf32>
    %106 = vector.shape_cast %105 : vector<1x64x384xf32> to vector<64x384xf32>
    %107 = vector.shape_cast %104 : vector<64x384xf32> to vector<1x64x384xf32>
    tpu.vector_store %arg5[%c0_87, %c0_88, %c0_89], %107 {strides = array<i32>} : memref<1x64x384xf32, #tpu.memory_space<vmem>>, vector<1x64x384xf32>,
    return
  }
  func.func @transform_0(%arg0: i32, %arg1: i32) -> (i32, i32, i32) {
    %c0_i32 = arith.constant 0 : i32
    %c0_i32_0 = arith.constant 0 : i32
    %c0_i32_1 = arith.constant 0 : i32
    return %arg0, %c0_i32, %c0_i32_0 : i32, i32, i32
  }
  func.func @transform_1(%arg0: i32, %arg1: i32) -> (i32, i32) {
    %c0_i32 = arith.constant 0 : i32
    %c0_i32_0 = arith.constant 0 : i32
    %c0_i32_1 = arith.constant 0 : i32
    return %c0_i32, %c0_i32_0 : i32, i32
  }
  func.func @transform_2(%arg0: i32, %arg1: i32) -> (i32, i32) {
    %c0_i32 = arith.constant 0 : i32
    %c0_i32_0 = arith.constant 0 : i32
    %c0_i32_1 = arith.constant 0 : i32
    return %c0_i32, %c0_i32_0 : i32, i32
  }
  func.func @transform_3(%arg0: i32, %arg1: i32) -> (i32, i32, i32) {
    %c0_i32 = arith.constant 0 : i32
    %c0_i32_0 = arith.constant 0 : i32
    return %arg0, %c0_i32, %arg1 : i32, i32, i32
  }
}

</mosaic_0001>

<bundles_post_ra>
// kernel: tpu_custom_call.1
= control target key start
LH: loop header
LB: loop body
LE: loop exit
PB: predicated region body
PF: predicated region fallthrough
CT: control target
= control target key end

     0   :  { %8 = vsyncpa [#allocation3], 0  ;;  %s19375_s0 = inlined_call_operand.hbm [shape: f32[2,64,600], index: 0, kind: input, shape index: {}]   ;;  %s19376_s1 = inlined_call_operand.hbm [shape: f32[64,2112], index: 1, kind: input, shape index: {}]   ;;  %s19377_s2 = inlined_call_operand.vmem [shape: f32[64,1], index: 2, kind: input, shape index: {}]   ;;  %s19378_s3 = inlined_call_operand.hbm [shape: f32[2,64,384], index: 3, kind: output, shape index: {}]  }
   0x1   :  { %10 = vsyncpa [#allocation3 + $0x1], 0 }
   0x2   :  { %11 = vsyncpa [#allocation6], 0 }
   0x3   :  { %12 = vsyncpa [#allocation4], 0 }
   0x4   :  { %14 = vsyncpa [#allocation4 + $0x1], 0  ;;  %s13487_s12 = smov 0   ;;  %s13489_s13 = smov 0  }
   0x5   :  { %s13491_s14 = smov 0   ;;  %s13493_s15 = smov 0  }
   0x6   :  { %s13495_s16 = smov 0   ;;  %s13497_s17 = smov 0  }
   0x7 LB: > { %s7768_s18 = sadd.s32 4294967295, %s13435_s17   ;;  %s7769_s19 = sadd.s32 4294967294, %s13435_s17   ;;  %s13435_s17 = sphi %s13497_s17, %s20_s17   ;;  %s13431_s16 = sphi %s13495_s16, %s20081_s16   ;;  %s13427_s15 = sphi %s13493_s15, %s20080_s15   ;;  %s13423_s14 = sphi %s13491_s14, %s20079_s14   ;;  %s13419_s13 = sphi %s13489_s13, %s20078_s13   ;;  %s13415_s12 = sphi %s13487_s12, %s20077_s12  }
   0x8   : > { %p52_p0 = scmp.ne.s32.totalorder %s13419_s13, %s13415_s12  ;;  %p13521_p1 = scmp.eq.s32.totalorder %s7768_s18, 0 }
   0x9   : > { %p13525_p2 = scmp.eq.s32.totalorder %s7768_s18, 1  ;;  %p126_p3 = scmp.eq.s32.totalorder %s7769_s19, 1 }
   0xa   : > { %s19612_s20 = scalar_select %p13521_p1, 1, 0 }
   0xb   : > { %s19613_s21 = scalar_select %p13525_p2, 1, 0 }
   0xc   : > { %p13531_p4 = por %p13521_p1, %p52_p0  ;;  %p7770_p5 = scmp.ge.s32.totalorder %s13435_s17, 1 }
   0xd   : > { %p13536_p6 = por %p126_p3, %p52_p0  ;;  %p133_p7 = scmp.lt.s32.totalorder %s13435_s17, 3 }
   0xe   : > { %s19614_s22 = scalar_select %p13531_p4, 1, 0 }
   0xf   : > { %s19615_s23 = scalar_select %p13536_p6, 1, 0 }
  0x10   : > { %p13541_p8 = pnand %p7770_p5, %p133_p7  ;;  %s13437_s25 = smov [#allocation5]  }
  0x11   : > { %s145_s26 = sshll.u32 %s13437_s25, 4  ;;  %s32_s28 = sadd.s32 1, %s13431_s16  ;;  %s146_s26 = int_to_ptr.vmem [resolvable:$true] %s145_s26 }
  0x12   : > { %s19616_s24 = scalar_select %p13541_p8, 1, 0 }
  0x13   : > { %p9228_p9 = pneg %p13541_p8  ;;  %s13291_s4 = scalar_lea.hbm %s19376_s1, 17408 }
  0x14   : > { %p13292_p12 = scmp.ne.s32.totalorder %s19376_s1, %s13291_s4  ;;  %p13298_p5 = scmp.lt.u32.totalorder %s13291_s4, %s19376_s1 }
  0x15   : > { %p13550_p11 = pnand %p9228_p9, %p13521_p1 }
  0x17   : > { %p13293_p13 = pneg %p13550_p11 }
  0x19   : > { %p13294_p0 = pnand %p13293_p13, %p13292_p12 }
  0x1b   : > { %p13295_p3 = pneg %p13294_p0 }
  0x1d   : > { %p13300_p7 = pnand %p13298_p5, %p13295_p3 }
  0x1f   : > { %13303 = shalt.err (!%p13300_p7)
}
  0x20   : > { %s13304_s9 = scalar_lea.vmem %s146_s26, 17408  ;;  %p13312_p1 = scmp.lt.s32.totalorder %s146_s26, %s146_s26 }
  0x21   : > { %p13305_p9 = scmp.ne.s32.totalorder %s146_s26, %s13304_s9  ;;  %p13313_p4 = scmp.lt.s32.totalorder %s13304_s9, %s13304_s9 }
  0x23   : > { %p13307_p10 = pnand %p13305_p9, %p13293_p13  ;;  %p13314_p8 = por %p13313_p4, %p13312_p1 }
  0x25   : > { %p13308_p6 = pneg %p13307_p10 }
  0x27   : > { %p13315_p2 = pnand %p13314_p8, %p13308_p6 }
  0x29   : > { %13318 = shalt.err (!%p13315_p2)
}
  0x2a   : > { %s13438_s10 = smov 2176   ;;  %s13439_s11 = smov 136  }
  0x2b   : > { %9231 = dma.hbm_to_vmem [thread:$0]  (!%p13550_p11), %s19376_s1, 17408, %s146_s26, [#allocation6], %s13438_s10, %s13438_s10, %s13439_s11  }
  0x2c   : > { %p34_p1 = scmp.ge.s32.totalorder %s32_s28, 2  ;;  %s39_s25 = sadd.s32 1, %s13423_s14 }
  0x2d   : > { %p46_p2 = scmp.ne.s32.totalorder %s13423_s14, %s13419_s13  ;;  %p47_p4 = scmp.eq.s32.totalorder %s13435_s17, 0 }
  0x2e   : > { %s20083_s28 = smov (%p34_p1, %s32_s28), 0  ;;  %p19618_p8 = scmp.ne.s32.totalorder %s19613_s21, 0 }
  0x2f   : > { %p48_p6 = por %p47_p4, %p46_p2  ;;  %s36_s30 = ssub.s32 %s13431_s16, %s20083_s28 }
  0x30   : > { %p13579_p10 = por %p19618_p8, %p46_p2  ;;  %p9241_p12 = scmp.lt.s32.totalorder %s13435_s17, 2 }
  0x31   : > { %p37_p13 = scmp.eq.s32.totalorder %s36_s30, 0  ;;  %s162_s27 = sand.u32 1, %s13423_s14  }
  0x32   : > { %s9215_s4 = smul.u32 320, %s162_s27  ;;  %p13591_p11 = pnand %p9241_p12, %p48_p6 }
  0x33   : > { %s13588_s5 = scalar_select %p37_p13, %s13423_s14, %s39_s25  }
  0x34   : > { %s9216_s26 = smul.u32 5120, %s13431_s16  ;;  %s166_s6 = scalar_lea.vmem [#allocation2], %s9215_s4 }
  0x35   : > { %s173_s7 = sshll.u32 %s166_s6, 4  ;;  %s13602_s11 = scalar_lea.sflag [#allocation3], %s162_s27  ;;  %s13600_s7 = int_to_ptr.vmem [resolvable:$true] %s173_s7 }
  0x36   : > { %s13598_s10 = scalar_lea.hbm %s19375_s0, %s9216_s26  ;;  %p13321_p3 = pneg %p13591_p11 }
  0x37   : > { %s13319_s18 = scalar_lea.hbm %s13598_s10, 5120  ;;  %s13324_s30 = scalar_lea.hbm %s19375_s0, 10240 }
  0x38   : > { %p13320_p0 = scmp.ne.s32.totalorder %s13598_s10, %s13319_s18  ;;  %p13325_p9 = scmp.lt.u32.totalorder %s13598_s10, %s19375_s0 }
  0x39   : > { %p13326_p1 = scmp.lt.u32.totalorder %s13324_s30, %s13319_s18  ;;  %p13328_p4 = scmp.lt.u32.totalorder %s13319_s18, %s13598_s10 }
  0x3a   : > { %p13322_p5 = pnand %p13321_p3, %p13320_p0 }
  0x3b   : > { %p13327_p2 = por %p13326_p1, %p13325_p9 }
  0x3c   : > { %p13323_p7 = pneg %p13322_p5 }
  0x3d   : > { %p13329_p6 = por %p13328_p4, %p13327_p2 }
  0x3f   : > { %p13330_p8 = pnand %p13329_p6, %p13323_p7 }
  0x41   : > { %13333 = shalt.err (!%p13330_p8)
}
  0x42   : > { %s13334_s27 = scalar_lea.vmem %s13600_s7, 5120  ;;  %s13440_s6 = smov [#allocation2]  }
  0x43   : > { %p13335_p12 = scmp.ne.s32.totalorder %s13600_s7, %s13334_s27  ;;  %s13339_s9 = sshll.u32 %s13440_s6, 4  ;;  %s13340_s9 = int_to_ptr.vmem [resolvable:$false] %s13339_s9 }
  0x44   : > { %s13341_s21 = scalar_lea.vmem %s13340_s9, 10240  ;;  %p13342_p5 = scmp.lt.s32.totalorder %s13600_s7, %s13340_s9 }
  0x45   : > { %p13337_p13 = pnand %p13335_p12, %p13321_p3  ;;  %p13343_p9 = scmp.lt.s32.totalorder %s13341_s21, %s13334_s27 }
  0x47   : > { %p13338_p0 = pneg %p13337_p13  ;;  %p13344_p1 = por %p13343_p9, %p13342_p5 }
  0x49   : > { %p13345_p2 = pnand %p13344_p1, %p13338_p0 }
  0x4b   : > { %13348 = shalt.err (!%p13345_p2)
}
  0x4c   : > { %s13441_s18 = smov 640   ;;  %s13442_s19 = smov 40  }
  0x4d   : > { %9235 = dma.hbm_to_vmem [thread:$0]  (!%p13591_p11), %s13598_s10, 5120, %s13600_s7, %s13602_s11, %s13441_s18, %s13441_s18, %s13442_s19  }
  0x4e   : > { %p19621_p3 = scmp.ne.s32.totalorder %s19616_s24, 0 }
  0x50   : > { %185 = sbr.rel (%p19621_p3) target bundleno = 2067 (0x813), region = 32 }
  0x57   : > { %s13633_s25 = sand.u32 1, %s13419_s13   ;;  %p19622_p7 = scmp.ne.s32.totalorder %s19614_s22, 0 }
  0x58   : > { %s9217_s30 = smul.u32 320, %s13633_s25  ;;  %s188_s4 = scalar_lea.sflag [#allocation3], %s13633_s25 }
  0x5a   : > { %s13637_s26 = scalar_lea.vmem [#allocation2], %s9217_s30 }
  0x5b   : > { %13402 = dma.done.wait (%p19622_p7), %s188_s4, 5120  }
  0x5c   : > { %13404 = vsyncadd (%p19622_p7), %s188_s4, 4294962176  ;;  %p19623_p11 = scmp.ne.s32.totalorder %s19612_s20, 0 }
  0x5e   : > { %13406 = dma.done.wait (%p19623_p11), [#allocation6], 17408  }
  0x5f   : > { %13408 = vsyncadd (%p19623_p11), [#allocation6], 4294949888  ;;  %v222_v0 = vld [vmem:[%s13637_s26 + $0x28] sm:$0xff]  ;;  %v223_v1 = vld [vmem:[%s13637_s26 + $0x30] sm:$0xff]  ;;  %s13443_s20 = smov 124   ;;  %s13444_s22 = smov 120  }
  0x60   : > { %v219_v2 = vld [vmem:[%s13637_s26] sm:$0xff]  ;;  %v13650_v3 = vpack.i.bf16 %v223_v1, %v222_v0  ;;  %v220_v4 = vld [vmem:[%s13637_s26 + $0x8] sm:$0xff]  ;;  %v224_v5 = vld [vmem:[%s13637_s26 + $0x38] sm:$0xff]  ;;  %s13445_s24 = smov 103   ;;  %s13446_s7 = smov 125   ;;  %vm347_vm0 = vcmask 1014784  }
  0x61   : > { %v244_v6 = vld [vmem:[%s13637_s26 + $0x40] sm:$0xff]  ;;  %v13655_v7 = vpack.i.bf16 %v220_v4, %v219_v2  ;;  %v221_v8 = vld [vmem:[%s13637_s26 + $0x10] sm:$0xff]  ;;  %v243_v9 = vld [vmem:[%s13637_s26 + $0x18] sm:$0xff]  ;;  %s13447_s8 = smov 106   ;;  %s13448_s10 = smov 104   ;;  %vm702_vm1 = vcmask 1022976  }
  0x62   : > { %9331 = vrot.lane.b32.xlu1 %v13650_v3, %s13443_s20  ;;  %v13661_v10 = vpack.i.bf16 %v244_v6, %v224_v5  ;;  %v13665_v11 = vpack.i.bf16 %v243_v9, %v221_v8  ;;  %v227_v12 = vld [vmem:[%s13637_s26 + $0x60] sm:$0xff]  ;;  %v245_v13 = vld [vmem:[%s13637_s26 + $0x68] sm:$0xff]  ;;  %v225_v14 = vld [vmem:[%s13637_s26 + $0x50] sm:$0xff]  ;;  %s13449_s11 = smov 100   ;;  %vm791_vm2 = vcmask 867328   ;;  %vm880_vm3 = vcmask 850944  }
  0x63   : > { %9321 = vrot.lane.b32.xlu0 %v13655_v7, %s13443_s20  ;;  %v226_v15 = vld [vmem:[%s13637_s26 + $0x58] sm:$0xff]  ;;  %v13673_v16 = vpack.i.bf16 %v245_v13, %v227_v12  ;;  %v230_v18 = vld [vmem:[%s13637_s26 + $0x88] sm:$0xff]  ;;  %v246_v19 = vld [vmem:[%s13637_s26 + $0x90] sm:$0xff]  ;;  %vm1177_vm4 = vcmask 818176   ;;  %s13450_s27 = smov 107   ;;  %s13451_s6 = smov 105  }
  0x64   : > { %v13677_v17 = vpack.i.bf16 %v226_v15, %v225_v14  ;;  %v228_v20 = vld [vmem:[%s13637_s26 + $0x78] sm:$0xff]  ;;  %v229_v21 = vld [vmem:[%s13637_s26 + $0x80] sm:$0xff]  ;;  %v13685_v22 = vpack.i.bf16 %v246_v19, %v230_v18  ;;  %v233_v24 = vld [vmem:[%s13637_s26 + $0xb0] sm:$0xff]  ;;  %s13452_s9 = smov 74   ;;  %vm1870_vm5 = vcmask 875520   ;;  %vm460_vm6 = vcmask 982016  }
  0x65   : > { %v13689_v23 = vpack.i.bf16 %v229_v21, %v228_v20  ;;  %v247_v25 = vld [vmem:[%s13637_s26 + $0xb8] sm:$0xff]  ;;  %v231_v26 = vld [vmem:[%s13637_s26 + $0xa0] sm:$0xff]  ;;  %v232_v27 = vld [vmem:[%s13637_s26 + $0xa8] sm:$0xff]  ;;  %vm573_vm7 = vcmask 842752   ;;  %vm1959_vm8 = vcmask 859136   ;;  %vm2256_vm9 = vcmask 605184  }
  0x66   : > { %9336 = vrot.lane.b32.xlu1 %v13661_v10, %s13443_s20  ;;  %v13697_v28 = vpack.i.bf16 %v247_v25, %v233_v24  ;;  %v13701_v29 = vpack.i.bf16 %v232_v27, %v231_v26  ;;  %v236_v30 = vld [vmem:[%s13637_s26 + $0xd8] sm:$0xff]  ;;  %v248_v31 = vld [vmem:[%s13637_s26 + $0xe0] sm:$0xff]  ;;  %v234_v32 = vld [vmem:[%s13637_s26 + $0xc8] sm:$0xff]  ;;  %s13453_s21 = smov 127   ;;  %s13454_s18 = smov 126   ;;  %vm2755_vm10 = vcmask 1039360  }
  0x67   : > { %9326 = vrot.lane.b32.xlu0 %v13665_v11, %s13443_s20  ;;  %v235_v33 = vld [vmem:[%s13637_s26 + $0xd0] sm:$0xff]  ;;  %v13709_v34 = vpack.i.bf16 %v248_v31, %v236_v30  ;;  %v239_v36 = vld [vmem:[%s13637_s26 + $0x100] sm:$0xff]  ;;  %v249_v37 = vld [vmem:[%s13637_s26 + $0x108] sm:$0xff]  ;;  %s13455_s19 = smov 32   ;;  %vm2844_vm11 = vcmask 1031168   ;;  %vm3141_vm12 = vcmask 261120  }
  0x68   : > { %v13713_v35 = vpack.i.bf16 %v235_v33, %v234_v32  ;;  %v237_v38 = vld [vmem:[%s13637_s26 + $0xf0] sm:$0xff]  ;;  %v238_v39 = vld [vmem:[%s13637_s26 + $0xf8] sm:$0xff]  ;;  %v13721_v40 = vpack.i.bf16 %v249_v37, %v239_v36  ;;  %v242_v42 = vld [vmem:[%s13637_s26 + $0x128] sm:$0xff]  ;;  %s13456_s30 = smov 28   ;;  %vm3848_vm13 = vcmask 228352   ;;  %s13457_s4 = smov 109  }
  0x69   : > { %v13725_v41 = vpack.i.bf16 %v238_v39, %v237_v38  ;;  %v250_v43 = vld [vmem:[%s13637_s26 + $0x130] sm:$0xff]  ;;  %v240_v44 = vld [vmem:[%s13637_s26 + $0x118] sm:$0xff]  ;;  %v241_v45 = vld [vmem:[%s13637_s26 + $0x120] sm:$0xff]  ;;  %vm4347_vm14 = vcmask 891904   ;;  %vm4436_vm15 = vcmask 883712  }
  0x6a   : > { %9346 = vrot.lane.b32.xlu1 %v13673_v16, %s13443_s20  ;;  %v13733_v46 = vpack.i.bf16 %v250_v43, %v242_v42  ;;  %v13737_v47 = vpack.i.bf16 %v241_v45, %v240_v44 }
  0x6b   : > { %9341 = vrot.lane.b32.xlu0 %v13677_v17, %s13443_s20 }
  0x6e   : > { %9356 = vrot.lane.b32.xlu1 %v13685_v22, %s13443_s20 }
  0x6f   : > { %9351 = vrot.lane.b32.xlu0 %v13689_v23, %s13443_s20 }
  0x72   : > { %9366 = vrot.lane.b32.xlu1 %v13697_v28, %s13443_s20 }
  0x73   : > { %9361 = vrot.lane.b32.xlu0 %v13701_v29, %s13443_s20 }
  0x76   : > { %9376 = vrot.lane.b32.xlu1 %v13709_v34, %s13443_s20 }
  0x77   : > { %9371 = vrot.lane.b32.xlu0 %v13713_v35, %s13443_s20 }
  0x7a   : > { %9386 = vrot.lane.b32.xlu1 %v13721_v40, %s13443_s20 }
  0x7b   : > { %9381 = vrot.lane.b32.xlu0 %v13725_v41, %s13443_s20 }
  0x7e   : > { %9396 = vrot.lane.b32.xlu1 %v13733_v46, %s13443_s20 }
  0x7f   : > { %9391 = vrot.lane.b32.xlu0 %v13737_v47, %s13443_s20 }
  0x82   : > { %9406 = vrot.lane.b32.xlu1 %v13665_v11, %s13444_s22 }
  0x83   : > { %9401 = vrot.lane.b32.xlu0 %v13655_v7, %s13444_s22 }
  0x86   : > { %9416 = vrot.lane.b32.xlu1 %v13661_v10, %s13444_s22 }
  0x87   : > { %9411 = vrot.lane.b32.xlu0 %v13650_v3, %s13444_s22 }
  0x8a   : > { %9426 = vrot.lane.b32.xlu1 %v13673_v16, %s13444_s22 }
  0x8b   : > { %9421 = vrot.lane.b32.xlu0 %v13677_v17, %s13444_s22 }
  0x8e   : > { %9436 = vrot.lane.b32.xlu1 %v13685_v22, %s13444_s22 }
  0x8f   : > { %9431 = vrot.lane.b32.xlu0 %v13689_v23, %s13444_s22 }
  0x92   : > { %9446 = vrot.lane.b32.xlu1 %v13697_v28, %s13444_s22 }
  0x93   : > { %9441 = vrot.lane.b32.xlu0 %v13701_v29, %s13444_s22 }
  0x96   : > { %9456 = vrot.lane.b32.xlu1 %v13709_v34, %s13444_s22 }
  0x97   : > { %9451 = vrot.lane.b32.xlu0 %v13713_v35, %s13444_s22 }
  0x9a   : > { %9466 = vrot.lane.b32.xlu1 %v13721_v40, %s13444_s22 }
  0x9b   : > { %9461 = vrot.lane.b32.xlu0 %v13725_v41, %s13444_s22 }
  0x9e   : > { %9476 = vrot.lane.b32.xlu1 %v13733_v46, %s13444_s22 }
  0x9f   : > { %9471 = vrot.lane.b32.xlu0 %v13737_v47, %s13444_s22  ;;  %s13458_s22 = smov 108  }
  0xa2   : > { %9486 = vrot.lane.b32.xlu1 %v13665_v11, %s13445_s24 }
  0xa3   : > { %9481 = vrot.lane.b32.xlu0 %v13655_v7, %s13445_s24 }
  0xa6   : > { %9496 = vrot.lane.b32.xlu1 %v13661_v10, %s13445_s24 }
  0xa7   : > { %9491 = vrot.lane.b32.xlu0 %v13650_v3, %s13445_s24 }
  0xaa   : > { %9506 = vrot.lane.b32.xlu1 %v13673_v16, %s13445_s24 }
  0xab   : > { %9501 = vrot.lane.b32.xlu0 %v13677_v17, %s13445_s24 }
  0xae   : > { %9516 = vrot.lane.b32.xlu1 %v13685_v22, %s13445_s24 }
  0xaf   : > { %9511 = vrot.lane.b32.xlu0 %v13689_v23, %s13445_s24 }
  0xb2   : > { %9526 = vrot.lane.b32.xlu1 %v13697_v28, %s13445_s24 }
  0xb3   : > { %9521 = vrot.lane.b32.xlu0 %v13701_v29, %s13445_s24 }
  0xb6   : > { %9536 = vrot.lane.b32.xlu1 %v13709_v34, %s13445_s24 }
  0xb7   : > { %9531 = vrot.lane.b32.xlu0 %v13713_v35, %s13445_s24 }
  0xba   : > { %9546 = vrot.lane.b32.xlu1 %v13721_v40, %s13445_s24 }
  0xbb   : > { %9541 = vrot.lane.b32.xlu0 %v13725_v41, %s13445_s24 }
  0xbe   : > { %9556 = vrot.lane.b32.xlu1 %v13733_v46, %s13445_s24 }
  0xbf   : > { %9551 = vrot.lane.b32.xlu0 %v13737_v47, %s13445_s24  ;;  %s13459_s24 = smov 24  }
  0xc2   : > { %9566 = vrot.lane.b32.xlu1 %v13665_v11, %s13446_s7 }
  0xc3   : > { %9561 = vrot.lane.b32.xlu0 %v13655_v7, %s13446_s7 }
  0xc6   : > { %9576 = vrot.lane.b32.xlu1 %v13661_v10, %s13446_s7 }
  0xc7   : > { %9571 = vrot.lane.b32.xlu0 %v13650_v3, %s13446_s7 }
  0xca   : > { %9586 = vrot.lane.b32.xlu1 %v13673_v16, %s13446_s7 }
  0xcb   : > { %9581 = vrot.lane.b32.xlu0 %v13677_v17, %s13446_s7 }
  0xce   : > { %9596 = vrot.lane.b32.xlu1 %v13685_v22, %s13446_s7 }
  0xcf   : > { %9591 = vrot.lane.b32.xlu0 %v13689_v23, %s13446_s7 }
  0xd2   : > { %9606 = vrot.lane.b32.xlu1 %v13697_v28, %s13446_s7 }
  0xd3   : > { %9601 = vrot.lane.b32.xlu0 %v13701_v29, %s13446_s7 }
  0xd4   : > { %v13795_v48 = vpop.permute.xlu1 %9331 }
  0xd5   : > { %v13797_v49 = vpop.permute.xlu0 %9321 }
  0xd6   : > { %9616 = vrot.lane.b32.xlu1 %v13709_v34, %s13446_s7 }
  0xd7   : > { %9611 = vrot.lane.b32.xlu0 %v13713_v35, %s13446_s7 }
  0xd8   : > { %v13803_v50 = vpop.permute.xlu1 %9336 }
  0xd9   : > { %v9339_v51 = vunpack.i.h.bf16 %v13803_v50  ;;  %v19389_v52 = vunpack.i.l.bf16 %v13803_v50  ;;  %v13807_v53 = vpop.permute.xlu0 %9326 }
  0xda   : > { %v9329_v54 = vunpack.i.h.bf16 %v13807_v53  ;;  %v19390_v55 = vunpack.i.l.bf16 %v13807_v53  ;;  %9626 = vrot.lane.b32.xlu1 %v13721_v40, %s13446_s7 }
  0xdb   : > { %v13816_v56 = vsel %vm347_vm0, %v19389_v52, %v9339_v51  ;;  %9621 = vrot.lane.b32.xlu0 %v13725_v41, %s13446_s7 }
  0xdc   : > { %19624 = vst [vmem:[#allocation11_spill] sm:$0xff] %v13816_v56  ;;  %v13823_v57 = vsel %vm347_vm0, %v19390_v55, %v9329_v54  ;;  %v13825_v58 = vpop.permute.xlu1 %9346 }
  0xdd   : > { %19625 = vst [vmem:[#allocation12_spill] sm:$0xff] %v13823_v57  ;;  %v13827_v59 = vpop.permute.xlu0 %9341  ;;  %v9349_v61 = vunpack.i.h.bf16 %v13825_v58  ;;  %v19388_v62 = vunpack.i.l.bf16 %v13825_v58 }
  0xde   : > { %9636 = vrot.lane.b32.xlu1 %v13733_v46, %s13446_s7 }
  0xdf   : > { %9631 = vrot.lane.b32.xlu0 %v13737_v47, %s13446_s7  ;;  %v13848_v4 = vsel %vm347_vm0, %v19388_v62, %v9349_v61 }
  0xe0   : > { %v13837_v63 = vpop.permute.xlu1 %9356  ;;  %19626 = vst [vmem:[#allocation13_spill] sm:$0xff] %v13848_v4 }
  0xe1   : > { %v9359_v0 = vunpack.i.h.bf16 %v13837_v63  ;;  %v19387_v1 = vunpack.i.l.bf16 %v13837_v63  ;;  %v13841_v2 = vpop.permute.xlu0 %9351 }
  0xe2   : > { %9646 = vrot.lane.b32.xlu1 %v13665_v11, %s13447_s8 }
  0xe3   : > { %v13853_v5 = vsel %vm347_vm0, %v19387_v1, %v9359_v0  ;;  %9641 = vrot.lane.b32.xlu0 %v13655_v7, %s13447_s8 }
  0xe4   : > { %19627 = vst [vmem:[#allocation14_spill] sm:$0xff] %v13853_v5  ;;  %v13857_v6 = vpop.permute.xlu1 %9366 }
  0xe5   : > { %v13861_v9 = vpop.permute.xlu0 %9361  ;;  %v9369_v12 = vunpack.i.h.bf16 %v13857_v6  ;;  %v19385_v13 = vunpack.i.l.bf16 %v13857_v6 }
  0xe6   : > { %9656 = vrot.lane.b32.xlu1 %v13661_v10, %s13447_s8 }
  0xe7   : > { %9651 = vrot.lane.b32.xlu0 %v13650_v3, %s13447_s8  ;;  %v13880_v20 = vsel %vm347_vm0, %v19385_v13, %v9369_v12 }
  0xe8   : > { %v13869_v14 = vpop.permute.xlu1 %9376  ;;  %19628 = vst [vmem:[#allocation15_spill] sm:$0xff] %v13880_v20 }
  0xe9   : > { %v9379_v15 = vunpack.i.h.bf16 %v13869_v14  ;;  %v19386_v18 = vunpack.i.l.bf16 %v13869_v14  ;;  %v13873_v19 = vpop.permute.xlu0 %9371 }
  0xea   : > { %9666 = vrot.lane.b32.xlu1 %v13673_v16, %s13447_s8 }
  0xeb   : > { %v13885_v21 = vsel %vm347_vm0, %v19386_v18, %v9379_v15  ;;  %9661 = vrot.lane.b32.xlu0 %v13677_v17, %s13447_s8 }
  0xec   : > { %19629 = vst [vmem:[#allocation16_spill] sm:$0xff] %v13885_v21  ;;  %v13889_v24 = vpop.permute.xlu1 %9386 }
  0xed   : > { %v13893_v26 = vpop.permute.xlu0 %9381  ;;  %v9389_v27 = vunpack.i.h.bf16 %v13889_v24  ;;  %v19384_v30 = vunpack.i.l.bf16 %v13889_v24 }
  0xee   : > { %9676 = vrot.lane.b32.xlu1 %v13685_v22, %s13447_s8 }
  0xef   : > { %9671 = vrot.lane.b32.xlu0 %v13689_v23, %s13447_s8  ;;  %v13912_v37 = vsel %vm347_vm0, %v19384_v30, %v9389_v27 }
  0xf0   : > { %v13901_v31 = vpop.permute.xlu1 %9396  ;;  %19631 = vst [vmem:[#allocation18_spill] sm:$0xff] %v13912_v37 }
  0xf1   : > { %19630 = vst [vmem:[#allocation17_spill] sm:$0xff] %v13901_v31  ;;  %v9399_v32 = vunpack.i.h.bf16 %v13901_v31  ;;  %v19383_v33 = vunpack.i.l.bf16 %v13901_v31  ;;  %v13905_v36 = vpop.permute.xlu0 %9391 }
  0xf2   : > { %9686 = vrot.lane.b32.xlu1 %v13697_v28, %s13447_s8 }
  0xf3   : > { %v13917_v38 = vsel %vm347_vm0, %v19383_v33, %v9399_v32  ;;  %9681 = vrot.lane.b32.xlu0 %v13701_v29, %s13447_s8 }
  0xf4   : > { %19632 = vst [vmem:[#allocation19_spill] sm:$0xff] %v13917_v38  ;;  %v13921_v39 = vpop.permute.xlu1 %9406 }
  0xf5   : > { %19633 = vst [vmem:[#allocation20_spill] sm:$0xff] %v13921_v39  ;;  %v13925_v43 = vpop.permute.xlu0 %9401 }
  0xf6   : > { %19634 = vst [vmem:[#allocation21_spill] sm:$0xff] %v13925_v43  ;;  %9696 = vrot.lane.b32.xlu1 %v13709_v34, %s13447_s8 }
  0xf7   : > { %9691 = vrot.lane.b32.xlu0 %v13713_v35, %s13447_s8 }
  0xf8   : > { %v13931_v44 = vpop.permute.xlu1 %9416 }
  0xf9   : > { %v13933_v45 = vpop.permute.xlu0 %9411 }
  0xfa   : > { %9706 = vrot.lane.b32.xlu1 %v13721_v40, %s13447_s8 }
  0xfb   : > { %9701 = vrot.lane.b32.xlu0 %v13725_v41, %s13447_s8 }
  0xfc   : > { %v13939_v51 = vpop.permute.xlu1 %9426 }
  0xfd   : > { %19635 = vst [vmem:[#allocation22_spill] sm:$0xff] %v13939_v51  ;;  %v13941_v54 = vpop.permute.xlu0 %9421 }
  0xfe   : > { %19636 = vst [vmem:[#allocation23_spill] sm:$0xff] %v13941_v54  ;;  %9716 = vrot.lane.b32.xlu1 %v13733_v46, %s13447_s8 }
  0xff   : > { %9711 = vrot.lane.b32.xlu0 %v13737_v47, %s13447_s8  ;;  %s13462_s8 = smov 56  }
 0x100   : > { %v13947_v61 = vpop.permute.xlu1 %9436 }
 0x101   : > { %19637 = vst [vmem:[#allocation24_spill] sm:$0xff] %v13947_v61  ;;  %v13949_v0 = vpop.permute.xlu0 %9431 }
 0x102   : > { %19638 = vst [vmem:[#allocation25_spill] sm:$0xff] %v13949_v0  ;;  %9726 = vrot.lane.b32.xlu1 %v13665_v11, %s13448_s10 }
 0x103   : > { %9721 = vrot.lane.b32.xlu0 %v13655_v7, %s13448_s10 }
 0x104   : > { %v13955_v12 = vpop.permute.xlu1 %9446 }
 0x105   : > { %19639 = vst [vmem:[#allocation26_spill] sm:$0xff] %v13955_v12  ;;  %v13957_v15 = vpop.permute.xlu0 %9441 }
 0x106   : > { %19640 = vst [vmem:[#allocation27_spill] sm:$0xff] %v13957_v15  ;;  %9736 = vrot.lane.b32.xlu1 %v13661_v10, %s13448_s10 }
 0x107   : > { %9731 = vrot.lane.b32.xlu0 %v13650_v3, %s13448_s10 }
 0x108   : > { %v13963_v27 = vpop.permute.xlu1 %9456 }
 0x109   : > { %19641 = vst [vmem:[#allocation28_spill] sm:$0xff] %v13963_v27  ;;  %v13965_v32 = vpop.permute.xlu0 %9451 }
 0x10a   : > { %19642 = vst [vmem:[#allocation29_spill] sm:$0xff] %v13965_v32  ;;  %9746 = vrot.lane.b32.xlu1 %v13673_v16, %s13448_s10 }
 0x10b   : > { %9741 = vrot.lane.b32.xlu0 %v13677_v17, %s13448_s10 }
 0x10c   : > { %v13971_v42 = vpop.permute.xlu1 %9466 }
 0x10d   : > { %19643 = vst [vmem:[#allocation30_spill] sm:$0xff] %v13971_v42  ;;  %v13973_v25 = vpop.permute.xlu0 %9461 }
 0x10e   : > { %19644 = vst [vmem:[#allocation31_spill] sm:$0xff] %v13973_v25  ;;  %9756 = vrot.lane.b32.xlu1 %v13685_v22, %s13448_s10 }
 0x10f   : > { %9751 = vrot.lane.b32.xlu0 %v13689_v23, %s13448_s10 }
 0x110   : > { %v13979_v8 = vpop.permute.xlu1 %9476 }
 0x111   : > { %19645 = vst [vmem:[#allocation32_spill] sm:$0xff] %v13979_v8  ;;  %v13981_v60 = vpop.permute.xlu0 %9471 }
 0x112   : > { %19646 = vst [vmem:[#allocation33_spill] sm:$0xff] %v13981_v60  ;;  %9766 = vrot.lane.b32.xlu1 %v13697_v28, %s13448_s10 }
 0x113   : > { %9761 = vrot.lane.b32.xlu0 %v13701_v29, %s13448_s10 }
 0x114   : > { %v13987_v33 = vpop.permute.xlu1 %9486 }
 0x115   : > { %19647 = vst [vmem:[#allocation34_spill] sm:$0xff] %v13987_v33  ;;  %v13989_v30 = vpop.permute.xlu0 %9481 }
 0x116   : > { %19648 = vst [vmem:[#allocation35_spill] sm:$0xff] %v13989_v30  ;;  %9776 = vrot.lane.b32.xlu1 %v13709_v34, %s13448_s10 }
 0x117   : > { %9771 = vrot.lane.b32.xlu0 %v13713_v35, %s13448_s10 }
 0x118   : > { %v13995_v13 = vpop.permute.xlu1 %9496 }
 0x119   : > { %19649 = vst [vmem:[#allocation36_spill] sm:$0xff] %v13995_v13  ;;  %v13997_v18 = vpop.permute.xlu0 %9491 }
 0x11a   : > { %19650 = vst [vmem:[#allocation37_spill] sm:$0xff] %v13997_v18  ;;  %9786 = vrot.lane.b32.xlu1 %v13721_v40, %s13448_s10 }
 0x11b   : > { %9781 = vrot.lane.b32.xlu0 %v13725_v41, %s13448_s10 }
 0x11c   : > { %v14003_v1 = vpop.permute.xlu1 %9506 }
 0x11d   : > { %19651 = vst [vmem:[#allocation38_spill] sm:$0xff] %v14003_v1  ;;  %v14005_v62 = vpop.permute.xlu0 %9501 }
 0x11e   : > { %19652 = vst [vmem:[#allocation39_spill] sm:$0xff] %v14005_v62  ;;  %9796 = vrot.lane.b32.xlu1 %v13733_v46, %s13448_s10 }
 0x11f   : > { %9791 = vrot.lane.b32.xlu0 %v13737_v47, %s13448_s10 }
 0x120   : > { %v14011_v52 = vpop.permute.xlu1 %9516 }
 0x121   : > { %19653 = vst [vmem:[#allocation40_spill] sm:$0xff] %v14011_v52  ;;  %v14013_v55 = vpop.permute.xlu0 %9511 }
 0x122   : > { %19654 = vst [vmem:[#allocation41_spill] sm:$0xff] %v14013_v55  ;;  %9806 = vrot.lane.b32.xlu1 %v13665_v11, %s13449_s11 }
 0x123   : > { %9801 = vrot.lane.b32.xlu0 %v13655_v7, %s13449_s11 }
 0x124   : > { %v14019_v37 = vpop.permute.xlu1 %9526 }
 0x125   : > { %19655 = vst [vmem:[#allocation42_spill] sm:$0xff] %v14019_v37  ;;  %v14021_v38 = vpop.permute.xlu0 %9521 }
 0x126   : > { %19656 = vst [vmem:[#allocation43_spill] sm:$0xff] %v14021_v38  ;;  %9816 = vrot.lane.b32.xlu1 %v13661_v10, %s13449_s11 }
 0x127   : > { %9811 = vrot.lane.b32.xlu0 %v13650_v3, %s13449_s11 }
 0x128   : > { %v14027_v20 = vpop.permute.xlu1 %9536 }
 0x129   : > { %19657 = vst [vmem:[#allocation44_spill] sm:$0xff] %v14027_v20  ;;  %v14029_v21 = vpop.permute.xlu0 %9531 }
 0x12a   : > { %19658 = vst [vmem:[#allocation45_spill] sm:$0xff] %v14029_v21  ;;  %9826 = vrot.lane.b32.xlu1 %v13673_v16, %s13449_s11 }
 0x12b   : > { %9821 = vrot.lane.b32.xlu0 %v13677_v17, %s13449_s11 }
 0x12c   : > { %v14035_v7 = vpop.permute.xlu1 %9546 }
 0x12d   : > { %19659 = vst [vmem:[#allocation46_spill] sm:$0xff] %v14035_v7  ;;  %v14037_v11 = vpop.permute.xlu0 %9541 }
 0x12e   : > { %19660 = vst [vmem:[#allocation47_spill] sm:$0xff] %v14037_v11  ;;  %9836 = vrot.lane.b32.xlu1 %v13685_v22, %s13449_s11 }
 0x12f   : > { %9831 = vrot.lane.b32.xlu0 %v13689_v23, %s13449_s11 }
 0x130   : > { %v14043_v3 = vpop.permute.xlu1 %9556 }
 0x131   : > { %19661 = vst [vmem:[#allocation48_spill] sm:$0xff] %v14043_v3  ;;  %v14045_v10 = vpop.permute.xlu0 %9551 }
 0x132   : > { %19662 = vst [vmem:[#allocation49_spill] sm:$0xff] %v14045_v10  ;;  %9846 = vrot.lane.b32.xlu1 %v13697_v28, %s13449_s11 }
 0x133   : > { %9841 = vrot.lane.b32.xlu0 %v13701_v29, %s13449_s11 }
 0x134   : > { %v9567_v16 = vpop.permute.xlu1 %9566 }
 0x135   : > { %v9569_v17 = vunpack.i.h.bf16 %v9567_v16  ;;  %v9568_v4 = vunpack.i.l.bf16 %v9567_v16  ;;  %v9562_v5 = vpop.permute.xlu0 %9561 }
 0x136   : > { %v9564_v57 = vunpack.i.h.bf16 %v9562_v5  ;;  %v9563_v22 = vunpack.i.l.bf16 %v9562_v5  ;;  %9856 = vrot.lane.b32.xlu1 %v13709_v34, %s13449_s11 }
 0x137   : > { %v705_v23 = vsel %vm702_vm1, %v9568_v4, %v9569_v17  ;;  %9851 = vrot.lane.b32.xlu0 %v13713_v35, %s13449_s11 }
 0x138   : > { %v704_v28 = vsel %vm702_vm1, %v9564_v57, %v9568_v4  ;;  %v703_v56 = vsel %vm702_vm1, %v9563_v22, %v9564_v57  ;;  %v9577_v29 = vpop.permute.xlu1 %9576  ;;  %v14058_v10 = vpack.i.bf16 %v9569_v17, %v705_v23 }
 0x139   : > { %v9579_v3 = vunpack.i.h.bf16 %v9577_v29  ;;  %v9578_v16 = vunpack.i.l.bf16 %v9577_v29  ;;  %v9572_v11 = vpop.permute.xlu0 %9571  ;;  %v14062_v34 = vpack.i.bf16 %v704_v28, %v703_v56 }
 0x13a   : > { %19663 = vst [vmem:[#allocation50_spill] sm:$0xff] %v14058_v10  ;;  %v9574_v7 = vunpack.i.h.bf16 %v9572_v11  ;;  %v9573_v5 = vunpack.i.l.bf16 %v9572_v11  ;;  %9866 = vrot.lane.b32.xlu1 %v13721_v40, %s13449_s11 }
 0x13b   : > { %19664 = vst [vmem:[#allocation51_spill] sm:$0xff] %v14062_v34  ;;  %v708_v21 = vsel %vm702_vm1, %v9578_v16, %v9579_v3  ;;  %9861 = vrot.lane.b32.xlu0 %v13725_v41, %s13449_s11 }
 0x13c   : > { %v707_v35 = vsel %vm702_vm1, %v9574_v7, %v9578_v16  ;;  %v706_v57 = vsel %vm702_vm1, %v9573_v5, %v9574_v7  ;;  %v9587_v4 = vpop.permute.xlu1 %9586  ;;  %v14069_v17 = vpack.i.bf16 %v9579_v3, %v708_v21 }
 0x13d   : > { %v9589_v22 = vunpack.i.h.bf16 %v9587_v4  ;;  %v9588_v23 = vunpack.i.l.bf16 %v9587_v4  ;;  %v9582_v11 = vpop.permute.xlu0 %9581  ;;  %v14073_v40 = vpack.i.bf16 %v707_v35, %v706_v57 }
 0x13e   : > { %19665 = vst [vmem:[#allocation52_spill] sm:$0xff] %v14069_v17  ;;  %v9584_v29 = vunpack.i.h.bf16 %v9582_v11  ;;  %v9583_v20 = vunpack.i.l.bf16 %v9582_v11  ;;  %9876 = vrot.lane.b32.xlu1 %v13733_v46, %s13449_s11 }
 0x13f   : > { %19666 = vst [vmem:[#allocation53_spill] sm:$0xff] %v14073_v40  ;;  %v711_v56 = vsel %vm702_vm1, %v9588_v23, %v9589_v22  ;;  %9871 = vrot.lane.b32.xlu0 %v13737_v47, %s13449_s11 }
 0x140   : > { %v710_v41 = vsel %vm702_vm1, %v9584_v29, %v9588_v23  ;;  %v709_v21 = vsel %vm702_vm1, %v9583_v20, %v9584_v29  ;;  %v9597_v7 = vpop.permute.xlu1 %9596  ;;  %v14080_v3 = vpack.i.bf16 %v9589_v22, %v711_v56 }
 0x141   : > { %v9599_v28 = vunpack.i.h.bf16 %v9597_v7  ;;  %v9598_v16 = vunpack.i.l.bf16 %v9597_v7  ;;  %v9592_v5 = vpop.permute.xlu0 %9591  ;;  %v14082_v4 = vpack.i.bf16 %v710_v41, %v709_v21 }
 0x142   : > { %19667 = vst [vmem:[#allocation54_spill] sm:$0xff] %v14080_v3  ;;  %v9594_v46 = vunpack.i.h.bf16 %v9592_v5  ;;  %v9593_v35 = vunpack.i.l.bf16 %v9592_v5  ;;  %9886 = vrot.lane.b32.xlu1 %v14058_v10, %s13449_s11 }
 0x143   : > { %19668 = vst [vmem:[#allocation55_spill] sm:$0xff] %v14082_v4  ;;  %v714_v57 = vsel %vm702_vm1, %v9598_v16, %v9599_v28  ;;  %9881 = vrot.lane.b32.xlu0 %v14062_v34, %s13449_s11 }
 0x144   : > { %v713_v47 = vsel %vm702_vm1, %v9594_v46, %v9598_v16  ;;  %v712_v20 = vsel %vm702_vm1, %v9593_v35, %v9594_v46  ;;  %v9607_v22 = vpop.permute.xlu1 %9606  ;;  %v14091_v23 = vpack.i.bf16 %v9599_v28, %v714_v57 }
 0x145   : > { %v9609_v11 = vunpack.i.h.bf16 %v9607_v22  ;;  %v9608_v29 = vunpack.i.l.bf16 %v9607_v22  ;;  %v9602_v56 = vpop.permute.xlu0 %9601  ;;  %v14093_v41 = vpack.i.bf16 %v713_v47, %v712_v20 }
 0x146   : > { %19669 = vst [vmem:[#allocation56_spill] sm:$0xff] %v14091_v23  ;;  %v9604_v21 = vunpack.i.h.bf16 %v9602_v56  ;;  %v9603_v7 = vunpack.i.l.bf16 %v9602_v56  ;;  %9896 = vrot.lane.b32.xlu1 %v14069_v17, %s13449_s11 }
 0x147   : > { %19670 = vst [vmem:[#allocation57_spill] sm:$0xff] %v14093_v41  ;;  %v717_v5 = vsel %vm702_vm1, %v9608_v29, %v9609_v11  ;;  %9891 = vrot.lane.b32.xlu0 %v14073_v40, %s13449_s11 }
 0x148   : > { %v716_v16 = vsel %vm702_vm1, %v9604_v21, %v9608_v29  ;;  %v715_v28 = vsel %vm702_vm1, %v9603_v7, %v9604_v21  ;;  %v9617_v46 = vpop.permute.xlu1 %9616  ;;  %v14102_v35 = vpack.i.bf16 %v9609_v11, %v717_v5 }
 0x149   : > { %v9619_v57 = vunpack.i.h.bf16 %v9617_v46  ;;  %v9618_v47 = vunpack.i.l.bf16 %v9617_v46  ;;  %v9612_v20 = vpop.permute.xlu0 %9611  ;;  %v14104_v22 = vpack.i.bf16 %v716_v16, %v715_v28 }
 0x14a   : > { %19671 = vst [vmem:[#allocation58_spill] sm:$0xff] %v14102_v35  ;;  %v9614_v56 = vunpack.i.h.bf16 %v9612_v20  ;;  %v9613_v34 = vunpack.i.l.bf16 %v9612_v20  ;;  %9906 = vrot.lane.b32.xlu1 %v14080_v3, %s13449_s11 }
 0x14b   : > { %19672 = vst [vmem:[#allocation59_spill] sm:$0xff] %v14104_v22  ;;  %v720_v17 = vsel %vm702_vm1, %v9618_v47, %v9619_v57  ;;  %9901 = vrot.lane.b32.xlu0 %v14082_v4, %s13449_s11 }
 0x14c   : > { %v719_v29 = vsel %vm702_vm1, %v9614_v56, %v9618_v47  ;;  %v718_v11 = vsel %vm702_vm1, %v9613_v34, %v9614_v56  ;;  %v9627_v21 = vpop.permute.xlu1 %9626  ;;  %v14113_v7 = vpack.i.bf16 %v9619_v57, %v720_v17 }
 0x14d   : > { %v9629_v5 = vunpack.i.h.bf16 %v9627_v21  ;;  %v9628_v16 = vunpack.i.l.bf16 %v9627_v21  ;;  %v9622_v28 = vpop.permute.xlu0 %9621  ;;  %v14115_v46 = vpack.i.bf16 %v719_v29, %v718_v11 }
 0x14e   : > { %19673 = vst [vmem:[#allocation60_spill] sm:$0xff] %v14113_v7  ;;  %v9624_v20 = vunpack.i.h.bf16 %v9622_v28  ;;  %v9623_v40 = vunpack.i.l.bf16 %v9622_v28  ;;  %9916 = vrot.lane.b32.xlu1 %v14091_v23, %s13449_s11 }
 0x14f   : > { %19674 = vst [vmem:[#allocation61_spill] sm:$0xff] %v14115_v46  ;;  %v723_v3 = vsel %vm702_vm1, %v9628_v16, %v9629_v5  ;;  %9911 = vrot.lane.b32.xlu0 %v14093_v41, %s13449_s11 }
 0x150   : > { %v722_v34 = vsel %vm702_vm1, %v9624_v20, %v9628_v16  ;;  %v721_v17 = vsel %vm702_vm1, %v9623_v40, %v9624_v20  ;;  %v9637_v57 = vpop.permute.xlu1 %9636  ;;  %v14124_v47 = vpack.i.bf16 %v9629_v5, %v723_v3 }
 0x151   : > { %v9639_v56 = vunpack.i.h.bf16 %v9637_v57  ;;  %v9638_v29 = vunpack.i.l.bf16 %v9637_v57  ;;  %v9632_v11 = vpop.permute.xlu0 %9631  ;;  %v14126_v21 = vpack.i.bf16 %v722_v34, %v721_v17 }
 0x152   : > { %19675 = vst [vmem:[#allocation62_spill] sm:$0xff] %v14124_v47  ;;  %v9634_v28 = vunpack.i.h.bf16 %v9632_v11  ;;  %v9633_v4 = vunpack.i.l.bf16 %v9632_v11  ;;  %9926 = vrot.lane.b32.xlu1 %v14102_v35, %s13449_s11 }
 0x153   : > { %19676 = vst [vmem:[#allocation63_spill] sm:$0xff] %v14126_v21  ;;  %v726_v23 = vsel %vm702_vm1, %v9638_v29, %v9639_v56  ;;  %9921 = vrot.lane.b32.xlu0 %v14104_v22, %s13449_s11 }
 0x154   : > { %v725_v40 = vsel %vm702_vm1, %v9634_v28, %v9638_v29  ;;  %v724_v3 = vsel %vm702_vm1, %v9633_v4, %v9634_v28  ;;  %v9647_v5 = vpop.permute.xlu1 %9646  ;;  %v14137_v11 = vpack.i.bf16 %v9639_v56, %v726_v23 }
 0x155   : > { %v9649_v16 = vunpack.i.h.bf16 %v9647_v5  ;;  %v9648_v20 = vunpack.i.l.bf16 %v9647_v5  ;;  %v9642_v34 = vpop.permute.xlu0 %9641  ;;  %v14139_v35 = vpack.i.bf16 %v725_v40, %v724_v3 }
 0x156   : > { %v9644_v17 = vunpack.i.h.bf16 %v9642_v34  ;;  %v9643_v57 = vunpack.i.l.bf16 %v9642_v34  ;;  %9936 = vrot.lane.b32.xlu1 %v14113_v7, %s13449_s11  ;;  %19677 = vst [vmem:[#allocation64_spill] sm:$0xff] %v14137_v11 }
 0x157   : > { %19678 = vst [vmem:[#allocation65_spill] sm:$0xff] %v14139_v35  ;;  %v794_v22 = vsel %vm791_vm2, %v9648_v20, %v9649_v16  ;;  %9931 = vrot.lane.b32.xlu0 %v14115_v46, %s13449_s11 }
 0x158   : > { %v793_v4 = vsel %vm791_vm2, %v9644_v17, %v9648_v20  ;;  %v792_v29 = vsel %vm791_vm2, %v9643_v57, %v9644_v17  ;;  %v9657_v28 = vpop.permute.xlu1 %9656  ;;  %v14148_v23 = vpack.i.bf16 %v9649_v16, %v794_v22 }
 0x159   : > { %v9659_v5 = vunpack.i.h.bf16 %v9657_v28  ;;  %v9658_v41 = vunpack.i.l.bf16 %v9657_v28  ;;  %v9652_v34 = vpop.permute.xlu0 %9651  ;;  %v14150_v56 = vpack.i.bf16 %v793_v4, %v792_v29 }
 0x15a   : > { %v9654_v10 = vunpack.i.h.bf16 %v9652_v34  ;;  %v9653_v38 = vunpack.i.l.bf16 %v9652_v34  ;;  %9946 = vrot.lane.b32.xlu1 %v14124_v47, %s13449_s11  ;;  %19679 = vst [vmem:[#allocation66_spill] sm:$0xff] %v14148_v23 }
 0x15b   : > { %19680 = vst [vmem:[#allocation67_spill] sm:$0xff] %v14150_v56  ;;  %v797_v40 = vsel %vm791_vm2, %v9658_v41, %v9659_v5  ;;  %9941 = vrot.lane.b32.xlu0 %v14126_v21, %s13449_s11 }
 0x15c   : > { %v796_v3 = vsel %vm791_vm2, %v9654_v10, %v9658_v41  ;;  %v795_v20 = vsel %vm791_vm2, %v9653_v38, %v9654_v10  ;;  %v9667_v17 = vpop.permute.xlu1 %9666  ;;  %v14159_v22 = vpack.i.bf16 %v9659_v5, %v797_v40 }
 0x15d   : > { %v9669_v57 = vunpack.i.h.bf16 %v9667_v17  ;;  %v9668_v28 = vunpack.i.l.bf16 %v9667_v17  ;;  %v9662_v34 = vpop.permute.xlu0 %9661  ;;  %v14161_v16 = vpack.i.bf16 %v796_v3, %v795_v20 }
 0x15e   : > { %v9664_v46 = vunpack.i.h.bf16 %v9662_v34  ;;  %v9663_v7 = vunpack.i.l.bf16 %v9662_v34  ;;  %9956 = vrot.lane.b32.xlu1 %v14137_v11, %s13449_s11  ;;  %19681 = vst [vmem:[#allocation68_spill] sm:$0xff] %v14159_v22 }
 0x15f   : > { %19682 = vst [vmem:[#allocation69_spill] sm:$0xff] %v14161_v16  ;;  %v800_v4 = vsel %vm791_vm2, %v9668_v28, %v9669_v57  ;;  %9951 = vrot.lane.b32.xlu0 %v14139_v35, %s13449_s11 }
 0x160   : > { %v799_v38 = vsel %vm791_vm2, %v9664_v46, %v9668_v28  ;;  %v798_v10 = vsel %vm791_vm2, %v9663_v7, %v9664_v46  ;;  %v9677_v41 = vpop.permute.xlu1 %9676  ;;  %v14170_v5 = vpack.i.bf16 %v9669_v57, %v800_v4 }
 0x161   : > { %v9679_v29 = vunpack.i.h.bf16 %v9677_v41  ;;  %v9678_v17 = vunpack.i.l.bf16 %v9677_v41  ;;  %v9672_v34 = vpop.permute.xlu0 %9671  ;;  %v14172_v40 = vpack.i.bf16 %v799_v38, %v798_v10 }
 0x162   : > { %v9674_v21 = vunpack.i.h.bf16 %v9672_v34  ;;  %v9673_v47 = vunpack.i.l.bf16 %v9672_v34  ;;  %9966 = vrot.lane.b32.xlu1 %v14148_v23, %s13449_s11  ;;  %19683 = vst [vmem:[#allocation70_spill] sm:$0xff] %v14170_v5 }
 0x163   : > { %19684 = vst [vmem:[#allocation71_spill] sm:$0xff] %v14172_v40  ;;  %v803_v3 = vsel %vm791_vm2, %v9678_v17, %v9679_v29  ;;  %9961 = vrot.lane.b32.xlu0 %v14150_v56, %s13449_s11 }
 0x164   : > { %v802_v7 = vsel %vm791_vm2, %v9674_v21, %v9678_v17  ;;  %v801_v46 = vsel %vm791_vm2, %v9673_v47, %v9674_v21  ;;  %v9687_v20 = vpop.permute.xlu1 %9686  ;;  %v14181_v57 = vpack.i.bf16 %v9679_v29, %v803_v3 }
 0x165   : > { %v9689_v28 = vunpack.i.h.bf16 %v9687_v20  ;;  %v9688_v41 = vunpack.i.l.bf16 %v9687_v20  ;;  %v9682_v34 = vpop.permute.xlu0 %9681  ;;  %v14183_v4 = vpack.i.bf16 %v802_v7, %v801_v46 }
 0x166   : > { %v9684_v35 = vunpack.i.h.bf16 %v9682_v34  ;;  %v9683_v11 = vunpack.i.l.bf16 %v9682_v34  ;;  %9976 = vrot.lane.b32.xlu1 %v14159_v22, %s13449_s11  ;;  %19685 = vst [vmem:[#allocation72_spill] sm:$0xff] %v14181_v57 }
 0x167   : > { %19686 = vst [vmem:[#allocation73_spill] sm:$0xff] %v14183_v4  ;;  %v806_v38 = vsel %vm791_vm2, %v9688_v41, %v9689_v28  ;;  %9971 = vrot.lane.b32.xlu0 %v14161_v16, %s13449_s11 }
 0x168   : > { %v805_v47 = vsel %vm791_vm2, %v9684_v35, %v9688_v41  ;;  %v804_v21 = vsel %vm791_vm2, %v9683_v11, %v9684_v35  ;;  %v9697_v10 = vpop.permute.xlu1 %9696  ;;  %v14192_v29 = vpack.i.bf16 %v9689_v28, %v806_v38 }
 0x169   : > { %v9699_v17 = vunpack.i.h.bf16 %v9697_v10  ;;  %v9698_v20 = vunpack.i.l.bf16 %v9697_v10  ;;  %v9692_v34 = vpop.permute.xlu0 %9691  ;;  %v14194_v3 = vpack.i.bf16 %v805_v47, %v804_v21 }
 0x16a   : > { %v9694_v37 = vunpack.i.h.bf16 %v9692_v34  ;;  %v9693_v55 = vunpack.i.l.bf16 %v9692_v34  ;;  %9986 = vrot.lane.b32.xlu1 %v14170_v5, %s13449_s11  ;;  %19687 = vst [vmem:[#allocation74_spill] sm:$0xff] %v14192_v29 }
 0x16b   : > { %19688 = vst [vmem:[#allocation75_spill] sm:$0xff] %v14194_v3  ;;  %v809_v7 = vsel %vm791_vm2, %v9698_v20, %v9699_v17  ;;  %9981 = vrot.lane.b32.xlu0 %v14172_v40, %s13449_s11 }
 0x16c   : > { %v808_v35 = vsel %vm791_vm2, %v9694_v37, %v9698_v20  ;;  %v807_v11 = vsel %vm791_vm2, %v9693_v55, %v9694_v37  ;;  %v9707_v46 = vpop.permute.xlu1 %9706  ;;  %v14203_v28 = vpack.i.bf16 %v9699_v17, %v809_v7 }
 0x16d   : > { %v9709_v41 = vunpack.i.h.bf16 %v9707_v46  ;;  %v9708_v10 = vunpack.i.l.bf16 %v9707_v46  ;;  %v9702_v34 = vpop.permute.xlu0 %9701  ;;  %v14205_v38 = vpack.i.bf16 %v808_v35, %v807_v11 }
 0x16e   : > { %v9704_v52 = vunpack.i.h.bf16 %v9702_v34  ;;  %v9703_v62 = vunpack.i.l.bf16 %v9702_v34  ;;  %9996 = vrot.lane.b32.xlu1 %v14181_v57, %s13449_s11  ;;  %19689 = vst [vmem:[#allocation76_spill] sm:$0xff] %v14203_v28 }
 0x16f   : > { %19690 = vst [vmem:[#allocation77_spill] sm:$0xff] %v14205_v38  ;;  %v812_v47 = vsel %vm791_vm2, %v9708_v10, %v9709_v41  ;;  %9991 = vrot.lane.b32.xlu0 %v14183_v4, %s13449_s11 }
 0x170   : > { %v811_v55 = vsel %vm791_vm2, %v9704_v52, %v9708_v10  ;;  %v810_v37 = vsel %vm791_vm2, %v9703_v62, %v9704_v52  ;;  %v9717_v21 = vpop.permute.xlu1 %9716  ;;  %v14214_v17 = vpack.i.bf16 %v9709_v41, %v812_v47 }
 0x171   : > { %v9719_v20 = vunpack.i.h.bf16 %v9717_v21  ;;  %v9718_v46 = vunpack.i.l.bf16 %v9717_v21  ;;  %v9712_v34 = vpop.permute.xlu0 %9711  ;;  %v14216_v7 = vpack.i.bf16 %v811_v55, %v810_v37 }
 0x172   : > { %v9714_v1 = vunpack.i.h.bf16 %v9712_v34  ;;  %v9713_v30 = vunpack.i.l.bf16 %v9712_v34  ;;  %10006 = vrot.lane.b32.xlu1 %v14192_v29, %s13449_s11  ;;  %19691 = vst [vmem:[#allocation78_spill] sm:$0xff] %v14214_v17 }
 0x173   : > { %19692 = vst [vmem:[#allocation79_spill] sm:$0xff] %v14216_v7  ;;  %v815_v35 = vsel %vm791_vm2, %v9718_v46, %v9719_v20  ;;  %10001 = vrot.lane.b32.xlu0 %v14194_v3, %s13449_s11 }
 0x174   : > { %v814_v52 = vsel %vm791_vm2, %v9714_v1, %v9718_v46  ;;  %v813_v62 = vsel %vm791_vm2, %v9713_v30, %v9714_v1  ;;  %v9727_v11 = vpop.permute.xlu1 %9726  ;;  %v14225_v21 = vpack.i.bf16 %v9719_v20, %v815_v35  ;;  %vm4733_vm2 = vcmask 195584  }
 0x175   : > { %v9722_v10 = vpop.permute.xlu0 %9721  ;;  %v14227_v41 = vpack.i.bf16 %v814_v52, %v813_v62  ;;  %v9729_v55 = vunpack.i.h.bf16 %v9727_v11  ;;  %v9728_v37 = vunpack.i.l.bf16 %v9727_v11 }
 0x176   : > { %10016 = vrot.lane.b32.xlu1 %v14203_v28, %s13449_s11  ;;  %19693 = vst [vmem:[#allocation80_spill] sm:$0xff] %v14225_v21  ;;  %v9724_v46 = vunpack.i.h.bf16 %v9722_v10  ;;  %v9723_v3 = vunpack.i.l.bf16 %v9722_v10 }
 0x177   : > { %19694 = vst [vmem:[#allocation81_spill] sm:$0xff] %v14227_v41  ;;  %10011 = vrot.lane.b32.xlu0 %v14205_v38, %s13449_s11  ;;  %v883_v35 = vsel %vm880_vm3, %v9728_v37, %v9729_v55 }
 0x178   : > { %v9737_v47 = vpop.permute.xlu1 %9736  ;;  %v882_v62 = vsel %vm880_vm3, %v9724_v46, %v9728_v37  ;;  %v881_v11 = vsel %vm880_vm3, %v9723_v3, %v9724_v46 }
 0x179   : > { %v9732_v34 = vpop.permute.xlu0 %9731  ;;  %v9739_v1 = vunpack.i.h.bf16 %v9737_v47  ;;  %v9738_v30 = vunpack.i.l.bf16 %v9737_v47  ;;  %v10040_v37 = vpack.i.bf16 %v882_v62, %v881_v11 }
 0x17a   : > { %10026 = vrot.lane.b32.xlu1 %v14214_v17, %s13449_s11  ;;  %v9734_v38 = vunpack.i.h.bf16 %v9732_v34  ;;  %v9733_v28 = vunpack.i.l.bf16 %v9732_v34 }
 0x17b   : > { %10021 = vrot.lane.b32.xlu0 %v14216_v7, %s13449_s11  ;;  %v10045_v7 = vpack.i.bf16 %v9729_v55, %v883_v35  ;;  %v886_v47 = vsel %vm880_vm3, %v9738_v30, %v9739_v1 }
 0x17c   : > { %v9747_v20 = vpop.permute.xlu1 %9746  ;;  %v885_v3 = vsel %vm880_vm3, %v9734_v38, %v9738_v30  ;;  %v884_v34 = vsel %vm880_vm3, %v9733_v28, %v9734_v38  ;;  %v10055_v46 = vpack.i.bf16 %v9739_v1, %v886_v47 }
 0x17d   : > { %v9742_v52 = vpop.permute.xlu0 %9741  ;;  %v9749_v10 = vunpack.i.h.bf16 %v9747_v20  ;;  %v9748_v17 = vunpack.i.l.bf16 %v9747_v20  ;;  %v10050_v30 = vpack.i.bf16 %v885_v3, %v884_v34 }
 0x17e   : > { %10036 = vrot.lane.b32.xlu1 %v14225_v21, %s13449_s11  ;;  %v9744_v4 = vunpack.i.h.bf16 %v9742_v52  ;;  %v9743_v57 = vunpack.i.l.bf16 %v9742_v52 }
 0x17f   : > { %10031 = vrot.lane.b32.xlu0 %v14227_v41, %s13449_s11  ;;  %v889_v20 = vsel %vm880_vm3, %v9748_v17, %v9749_v10 }
 0x180   : > { %v9757_v29 = vpop.permute.xlu1 %9756  ;;  %v888_v52 = vsel %vm880_vm3, %v9744_v4, %v9748_v17  ;;  %v887_v62 = vsel %vm880_vm3, %v9743_v57, %v9744_v4  ;;  %v10065_v28 = vpack.i.bf16 %v9749_v10, %v889_v20 }
 0x181   : > { %v9752_v33 = vpop.permute.xlu0 %9751  ;;  %v9759_v41 = vunpack.i.h.bf16 %v9757_v29  ;;  %v9758_v55 = vunpack.i.l.bf16 %v9757_v29 }
 0x182   : > { %10046 = vrot.lane.b32.xlu1 %v10045_v7, %s13449_s11  ;;  %v9754_v35 = vunpack.i.h.bf16 %v9752_v33  ;;  %v9753_v21 = vunpack.i.l.bf16 %v9752_v33  ;;  %v10060_v33 = vpack.i.bf16 %v888_v52, %v887_v62 }
 0x183   : > { %10041 = vrot.lane.b32.xlu0 %v10040_v37, %s13449_s11  ;;  %v892_v38 = vsel %vm880_vm3, %v9758_v55, %v9759_v41 }
 0x184   : > { %v9767_v40 = vpop.permute.xlu1 %9766  ;;  %v891_v7 = vsel %vm880_vm3, %v9754_v35, %v9758_v55  ;;  %v890_v29 = vsel %vm880_vm3, %v9753_v21, %v9754_v35  ;;  %v10075_v4 = vpack.i.bf16 %v9759_v41, %v892_v38 }
 0x185   : > { %v9762_v11 = vpop.permute.xlu0 %9761  ;;  %v9769_v47 = vunpack.i.h.bf16 %v9767_v40  ;;  %v9768_v37 = vunpack.i.l.bf16 %v9767_v40 }
 0x186   : > { %10056 = vrot.lane.b32.xlu1 %v10055_v46, %s13449_s11  ;;  %v9764_v17 = vunpack.i.h.bf16 %v9762_v11  ;;  %v9763_v25 = vunpack.i.l.bf16 %v9762_v11  ;;  %v10070_v46 = vpack.i.bf16 %v891_v7, %v890_v29 }
 0x187   : > { %10051 = vrot.lane.b32.xlu0 %v10050_v30, %s13449_s11  ;;  %v895_v20 = vsel %vm880_vm3, %v9768_v37, %v9769_v47 }
 0x188   : > { %v9777_v1 = vpop.permute.xlu1 %9776  ;;  %v894_v21 = vsel %vm880_vm3, %v9764_v17, %v9768_v37  ;;  %v893_v55 = vsel %vm880_vm3, %v9763_v25, %v9764_v17  ;;  %v10085_v62 = vpack.i.bf16 %v9769_v47, %v895_v20 }
 0x189   : > { %v9772_v57 = vpop.permute.xlu0 %9771  ;;  %v9779_v10 = vunpack.i.h.bf16 %v9777_v1  ;;  %v9778_v3 = vunpack.i.l.bf16 %v9777_v1  ;;  %v10080_v30 = vpack.i.bf16 %v894_v21, %v893_v55 }
 0x18a   : > { %10066 = vrot.lane.b32.xlu1 %v10065_v28, %s13449_s11  ;;  %v9774_v35 = vunpack.i.h.bf16 %v9772_v57  ;;  %v9773_v52 = vunpack.i.l.bf16 %v9772_v57 }
 0x18b   : > { %10061 = vrot.lane.b32.xlu0 %v10060_v33, %s13449_s11  ;;  %v898_v41 = vsel %vm880_vm3, %v9778_v3, %v9779_v10 }
 0x18c   : > { %v9787_v34 = vpop.permute.xlu1 %9786  ;;  %v897_v28 = vsel %vm880_vm3, %v9774_v35, %v9778_v3  ;;  %v896_v25 = vsel %vm880_vm3, %v9773_v52, %v9774_v35  ;;  %v10095_v47 = vpack.i.bf16 %v9779_v10, %v898_v41 }
 0x18d   : > { %v9782_v40 = vpop.permute.xlu0 %9781  ;;  %v9789_v38 = vunpack.i.h.bf16 %v9787_v34  ;;  %v9788_v7 = vunpack.i.l.bf16 %v9787_v34  ;;  %v10090_v20 = vpack.i.bf16 %v897_v28, %v896_v25 }
 0x18e   : > { %10076 = vrot.lane.b32.xlu1 %v10075_v4, %s13449_s11  ;;  %v9784_v29 = vunpack.i.h.bf16 %v9782_v40  ;;  %v9783_v33 = vunpack.i.l.bf16 %v9782_v40 }
 0x18f   : > { %10071 = vrot.lane.b32.xlu0 %v10070_v46, %s13449_s11  ;;  %v901_v4 = vsel %vm880_vm3, %v9788_v7, %v9789_v38 }
 0x190   : > { %v9797_v11 = vpop.permute.xlu1 %9796  ;;  %v900_v46 = vsel %vm880_vm3, %v9784_v29, %v9788_v7  ;;  %v899_v34 = vsel %vm880_vm3, %v9783_v33, %v9784_v29  ;;  %v10105_v10 = vpack.i.bf16 %v9789_v38, %v901_v4 }
 0x191   : > { %v9792_v1 = vpop.permute.xlu0 %9791  ;;  %v9799_v37 = vunpack.i.h.bf16 %v9797_v11  ;;  %v9798_v17 = vunpack.i.l.bf16 %v9797_v11  ;;  %v10100_v29 = vpack.i.bf16 %v900_v46, %v899_v34 }
 0x192   : > { %10086 = vrot.lane.b32.xlu1 %v10085_v62, %s13449_s11  ;;  %v9794_v55 = vunpack.i.h.bf16 %v9792_v1  ;;  %v9793_v35 = vunpack.i.l.bf16 %v9792_v1 }
 0x193   : > { %10081 = vrot.lane.b32.xlu0 %v10080_v30, %s13449_s11  ;;  %v904_v21 = vsel %vm880_vm3, %v9798_v17, %v9799_v37 }
 0x194   : > { %v9807_v57 = vpop.permute.xlu1 %9806  ;;  %v10115_v30 = vpack.i.bf16 %v9799_v37, %v904_v21  ;;  %v903_v33 = vsel %vm880_vm3, %v9794_v55, %v9798_v17  ;;  %v902_v1 = vsel %vm880_vm3, %v9793_v35, %v9794_v55 }
 0x195   : > { %v9802_v3 = vpop.permute.xlu0 %9801  ;;  %v9809_v40 = vunpack.i.h.bf16 %v9807_v57  ;;  %v9808_v52 = vunpack.i.l.bf16 %v9807_v57  ;;  %v906_v57 = vld [vmem:[#allocation5 + $0x18] sm:$0xff]  ;;  %v10110_v35 = vpack.i.bf16 %v903_v33, %v902_v1 }
 0x196   : > { %10096 = vrot.lane.b32.xlu1 %v10095_v47, %s13449_s11  ;;  %v9804_v62 = vunpack.i.h.bf16 %v9802_v3  ;;  %v9803_v41 = vunpack.i.l.bf16 %v9802_v3  ;;  %1434 = vmatprep.mubr.f32.mxu1 %v906_v57 }
 0x197   : > { %10091 = vrot.lane.b32.xlu0 %v10090_v20, %s13449_s11  ;;  %v14277_v38 = vsel %vm1177_vm4, %v9808_v52, %v9809_v40 }
 0x198   : > { %v9817_v11 = vpop.permute.xlu1 %9816  ;;  %v1179_v4 = vsel %vm1177_vm4, %v9804_v62, %v9808_v52  ;;  %v1178_v3 = vsel %vm1177_vm4, %v9803_v41, %v9804_v62  ;;  %v13082_v52 = vld [vmem:[%s13637_s26 + $0x10] sm:$0xff]  ;;  %v13085_v41 = vld [vmem:[%s13637_s26 + $0x8] sm:$0xff] }
 0x199   : > { %v9819_v7 = vunpack.i.h.bf16 %v9817_v11  ;;  %v9818_v28 = vunpack.i.l.bf16 %v9817_v11  ;;  %v9812_v25 = vpop.permute.xlu0 %9811 }
 0x19a   : > { %v9814_v5 = vunpack.i.h.bf16 %v9812_v25  ;;  %v9813_v47 = vunpack.i.l.bf16 %v9812_v25  ;;  %10106 = vrot.lane.b32.xlu1 %v10105_v10, %s13449_s11  ;;  %v13083_v10 = vld [vmem:[%s13637_s26 + $0x18] sm:$0xff] }
 0x19b   : > { %v14280_v37 = vsel %vm1177_vm4, %v9818_v28, %v9819_v7  ;;  %10101 = vrot.lane.b32.xlu0 %v10100_v29, %s13449_s11  ;;  %v14292_v11 = vpack.i.bf16 %v13083_v10, %v13082_v52 }
 0x19c   : > { %v9827_v17 = vpop.permute.xlu1 %9826  ;;  %v1182_v46 = vsel %vm1177_vm4, %v9814_v5, %v9818_v28  ;;  %v1181_v20 = vsel %vm1177_vm4, %v9813_v47, %v9814_v5  ;;  %v13084_v5 = vld [vmem:[%s13637_s26] sm:$0xff] }
 0x19d   : > { %v9822_v21 = vpop.permute.xlu0 %9821  ;;  %v8287_v55 = vpack.c.bf16 %v1182_v46, %v1179_v4  ;;  %v8289_v40 = vpack.c.bf16 %v1181_v20, %v1178_v3  ;;  %v9829_v7 = vunpack.i.h.bf16 %v9827_v17  ;;  %v9828_v28 = vunpack.i.l.bf16 %v9827_v17  ;;  %v13086_v17 = vld [vmem:[%s13637_s26 + $0x38] sm:$0xff]  ;;  %v13087_v46 = vld [vmem:[%s13637_s26 + $0x40] sm:$0xff] }
 0x19e   : > { %10116 = vrot.lane.b32.xlu1 %v10115_v30, %s13449_s11  ;;  %v9824_v62 = vunpack.i.h.bf16 %v9822_v21  ;;  %v14297_v25 = vpack.i.bf16 %v13085_v41, %v13084_v5  ;;  %v9823_v29 = vunpack.i.l.bf16 %v9822_v21  ;;  %v14303_v3 = vpack.i.bf16 %v13087_v46, %v13086_v17  ;;  %v13091_v46 = vld [vmem:[%s13637_s26 + $0x68] sm:$0xff] }
 0x19f   : > { %8288 = vmatprep.subr.bf16.mxu1 %v8287_v55  ;;  %10111 = vrot.lane.b32.xlu0 %v10110_v35, %s13449_s11  ;;  %v14306_v20 = vsel %vm1177_vm4, %v9828_v28, %v9829_v7  ;;  %v13088_v35 = vld [vmem:[%s13637_s26 + $0x28] sm:$0xff] }
 0x1a0   : > { %8290 = vmatpush1.bf16.msra.mxu1 %v8289_v40  ;;  %v9837_v30 = vpop.permute.xlu1 %9836  ;;  %v1185_v55 = vsel %vm1177_vm4, %v9824_v62, %v9828_v28  ;;  %v13089_v40 = vld [vmem:[%s13637_s26 + $0x30] sm:$0xff]  ;;  %v1184_v7 = vsel %vm1177_vm4, %v9823_v29, %v9824_v62  ;;  %v13090_v28 = vld [vmem:[%s13637_s26 + $0x60] sm:$0xff] }
 0x1a1   : > { %v9839_v33 = vunpack.i.h.bf16 %v9837_v30  ;;  %v9838_v1 = vunpack.i.l.bf16 %v9837_v30  ;;  %v9832_v47 = vpop.permute.xlu0 %9831  ;;  %v14316_v52 = vpack.i.bf16 %v13089_v40, %v13088_v35  ;;  %v14327_v35 = vpack.i.bf16 %v13091_v46, %v13090_v28  ;;  %v13092_v29 = vld [vmem:[%s13637_s26 + $0x50] sm:$0xff] }
 0x1a2   : > { %v9834_v57 = vunpack.i.h.bf16 %v9832_v47  ;;  %v9833_v4 = vunpack.i.l.bf16 %v9832_v47  ;;  %10126 = vrot.lane.b32.xlu1 %v14292_v11, %s13450_s27  ;;  %v13095_v30 = vld [vmem:[%s13637_s26 + $0x90] sm:$0xff] }
 0x1a3   : > { %v14309_v21 = vsel %vm1177_vm4, %v9838_v1, %v9839_v33  ;;  %10121 = vrot.lane.b32.xlu0 %v14297_v25, %s13450_s27 }
 0x1a4   : > { %v9847_v10 = vpop.permute.xlu1 %9846  ;;  %v1188_v5 = vsel %vm1177_vm4, %v9834_v57, %v9838_v1  ;;  %v1187_v41 = vsel %vm1177_vm4, %v9833_v4, %v9834_v57  ;;  %v13093_v57 = vld [vmem:[%s13637_s26 + $0x58] sm:$0xff] }
 0x1a5   : > { %v9842_v33 = vpop.permute.xlu0 %9841  ;;  %v8291_v47 = vpack.c.bf16 %v1188_v5, %v1185_v55  ;;  %v8293_v17 = vpack.c.bf16 %v1187_v41, %v1184_v7  ;;  %v9849_v1 = vunpack.i.h.bf16 %v9847_v10  ;;  %v9848_v40 = vunpack.i.l.bf16 %v9847_v10 }
 0x1a6   : > { %10136 = vrot.lane.b32.xlu1 %v14303_v3, %s13450_s27  ;;  %v9844_v62 = vunpack.i.h.bf16 %v9842_v33  ;;  %v14333_v4 = vpack.i.bf16 %v13093_v57, %v13092_v29  ;;  %v9843_v55 = vunpack.i.l.bf16 %v9842_v33  ;;  %v13096_v57 = vld [vmem:[%s13637_s26 + $0x78] sm:$0xff] }
 0x1a7   : > { %8292 = vmatprep.subr.bf16.mxu1 %v8291_v47  ;;  %10131 = vrot.lane.b32.xlu0 %v14316_v52, %s13450_s27  ;;  %v13094_v47 = vld [vmem:[%s13637_s26 + $0x88] sm:$0xff]  ;;  %v14342_v29 = vsel %vm1177_vm4, %v9848_v40, %v9849_v1 }
 0x1a8   : > { %8294 = vmatpush1.bf16.msra.mxu1 %v8293_v17  ;;  %v9857_v5 = vpop.permute.xlu1 %9856  ;;  %v14339_v34 = vpack.i.bf16 %v13095_v30, %v13094_v47  ;;  %v1191_v17 = vsel %vm1177_vm4, %v9844_v62, %v9848_v40  ;;  %v1190_v1 = vsel %vm1177_vm4, %v9843_v55, %v9844_v62  ;;  %v13098_v40 = vld [vmem:[%s13637_s26 + $0xb0] sm:$0xff]  ;;  %v13100_v55 = vld [vmem:[%s13637_s26 + $0xa0] sm:$0xff] }
 0x1a9   : > { %v9859_v7 = vunpack.i.h.bf16 %v9857_v5  ;;  %v9858_v41 = vunpack.i.l.bf16 %v9857_v5  ;;  %v9852_v28 = vpop.permute.xlu0 %9851  ;;  %v13097_v5 = vld [vmem:[%s13637_s26 + $0x80] sm:$0xff] }
 0x1aa   : > { %v9854_v10 = vunpack.i.h.bf16 %v9852_v28  ;;  %v9853_v46 = vunpack.i.l.bf16 %v9852_v28  ;;  %10146 = vrot.lane.b32.xlu1 %v14327_v35, %s13450_s27  ;;  %v14352_v28 = vpack.i.bf16 %v13097_v5, %v13096_v57  ;;  %v13099_v57 = vld [vmem:[%s13637_s26 + $0xb8] sm:$0xff]  ;;  %v13103_v47 = vld [vmem:[%s13637_s26 + $0xe0] sm:$0xff] }
 0x1ab   : > { %v14345_v33 = vsel %vm1177_vm4, %v9858_v41, %v9859_v7  ;;  %10141 = vrot.lane.b32.xlu0 %v14333_v4, %s13450_s27  ;;  %v14363_v5 = vpack.i.bf16 %v13099_v57, %v13098_v40 }
 0x1ac   : > { %v9867_v42 = vpop.permute.xlu1 %9866  ;;  %v1194_v30 = vsel %vm1177_vm4, %v9854_v10, %v9858_v41  ;;  %v1193_v7 = vsel %vm1177_vm4, %v9853_v46, %v9854_v10  ;;  %v13101_v10 = vld [vmem:[%s13637_s26 + $0xa8] sm:$0xff] }
 0x1ad   : > { %v9862_v18 = vpop.permute.xlu0 %9861  ;;  %v8295_v13 = vpack.c.bf16 %v1194_v30, %v1191_v17  ;;  %v8297_v16 = vpack.c.bf16 %v1193_v7, %v1190_v1  ;;  %v9869_v41 = vunpack.i.h.bf16 %v9867_v42  ;;  %v9868_v60 = vunpack.i.l.bf16 %v9867_v42 }
 0x1ae   : > { %10156 = vrot.lane.b32.xlu1 %v14339_v34, %s13450_s27  ;;  %v9864_v62 = vunpack.i.h.bf16 %v9862_v18  ;;  %v14369_v46 = vpack.i.bf16 %v13101_v10, %v13100_v55  ;;  %v9863_v17 = vunpack.i.l.bf16 %v9862_v18  ;;  %v13104_v10 = vld [vmem:[%s13637_s26 + $0xc8] sm:$0xff] }
 0x1af   : > { %8296 = vmatprep.subr.bf16.mxu1 %v8295_v13  ;;  %10151 = vrot.lane.b32.xlu0 %v14352_v28, %s13450_s27  ;;  %v13102_v13 = vld [vmem:[%s13637_s26 + $0xd8] sm:$0xff]  ;;  %v14378_v55 = vsel %vm1177_vm4, %v9868_v60, %v9869_v41 }
 0x1b0   : > { %8298 = vmatpush1.bf16.msra.mxu1 %v8297_v16  ;;  %v9877_v30 = vpop.permute.xlu1 %9876  ;;  %v14375_v8 = vpack.i.bf16 %v13103_v47, %v13102_v13  ;;  %v1197_v16 = vsel %vm1177_vm4, %v9864_v62, %v9868_v60  ;;  %v1196_v41 = vsel %vm1177_vm4, %v9863_v17, %v9864_v62  ;;  %v13106_v60 = vld [vmem:[%s13637_s26 + $0x100] sm:$0xff]  ;;  %v13108_v17 = vld [vmem:[%s13637_s26 + $0xf0] sm:$0xff] }
 0x1b1   : > { %v9879_v1 = vunpack.i.h.bf16 %v9877_v30  ;;  %v9878_v7 = vunpack.i.l.bf16 %v9877_v30  ;;  %v9872_v40 = vpop.permute.xlu0 %9871  ;;  %v13105_v30 = vld [vmem:[%s13637_s26 + $0xd0] sm:$0xff] }
 0x1b2   : > { %v9874_v42 = vunpack.i.h.bf16 %v9872_v40  ;;  %v9873_v57 = vunpack.i.l.bf16 %v9872_v40  ;;  %10166 = vrot.lane.b32.xlu1 %v14363_v5, %s13450_s27  ;;  %v14388_v40 = vpack.i.bf16 %v13105_v30, %v13104_v10  ;;  %v13107_v10 = vld [vmem:[%s13637_s26 + $0x108] sm:$0xff]  ;;  %v13111_v13 = vld [vmem:[%s13637_s26 + $0x130] sm:$0xff] }
 0x1b3   : > { %v14381_v18 = vsel %vm1177_vm4, %v9878_v7, %v9879_v1  ;;  %10161 = vrot.lane.b32.xlu0 %v14369_v46, %s13450_s27  ;;  %v14399_v30 = vpack.i.bf16 %v13107_v10, %v13106_v60 }
 0x1b4   : > { %v9887_v22 = vpop.permute.xlu1 %9886  ;;  %v1200_v47 = vsel %vm1177_vm4, %v9874_v42, %v9878_v7  ;;  %v1199_v1 = vsel %vm1177_vm4, %v9873_v57, %v9874_v42  ;;  %v13109_v42 = vld [vmem:[%s13637_s26 + $0xf8] sm:$0xff] }
 0x1b5   : > { %v9882_v32 = vpop.permute.xlu0 %9881  ;;  %v8299_v27 = vpack.c.bf16 %v1200_v47, %v1197_v16  ;;  %v8301_v12 = vpack.c.bf16 %v1199_v1, %v1196_v41  ;;  %v9889_v7 = vunpack.i.h.bf16 %v9887_v22  ;;  %v9888_v15 = vunpack.i.l.bf16 %v9887_v22 }
 0x1b6   : > { %10176 = vrot.lane.b32.xlu1 %v14375_v8, %s13450_s27  ;;  %v9884_v62 = vunpack.i.h.bf16 %v9882_v32  ;;  %v14405_v57 = vpack.i.bf16 %v13109_v42, %v13108_v17  ;;  %v9883_v16 = vunpack.i.l.bf16 %v9882_v32  ;;  %v13113_v42 = vld [vmem:[%s13637_s26 + $0x120] sm:$0xff] }
 0x1b7   : > { %8300 = vmatprep.subr.bf16.mxu1 %v8299_v27  ;;  %10171 = vrot.lane.b32.xlu0 %v14388_v40, %s13450_s27  ;;  %v13110_v27 = vld [vmem:[%s13637_s26 + $0x128] sm:$0xff]  ;;  %v14414_v17 = vsel %vm1177_vm4, %v9888_v15, %v9889_v7 }
 0x1b8   : > { %8302 = vmatpush1.bf16.msra.mxu1 %v8301_v12  ;;  %v9897_v47 = vpop.permute.xlu1 %9896  ;;  %v14411_v56 = vpack.i.bf16 %v13111_v13, %v13110_v27  ;;  %v13112_v12 = vld [vmem:[%s13637_s26 + $0x118] sm:$0xff]  ;;  %v1202_v13 = vsel %vm1177_vm4, %v9883_v16, %v9884_v62 }
 0x1b9   : > { %v9899_v41 = vunpack.i.h.bf16 %v9897_v47  ;;  %v9898_v1 = vunpack.i.l.bf16 %v9897_v47  ;;  %v9892_v60 = vpop.permute.xlu0 %9891  ;;  %v14423_v47 = vpack.i.bf16 %v13113_v42, %v13112_v12 }
 0x1ba   : > { %v9894_v22 = vunpack.i.h.bf16 %v9892_v60  ;;  %v9893_v10 = vunpack.i.l.bf16 %v9892_v60  ;;  %10186 = vrot.lane.b32.xlu1 %v14399_v30, %s13450_s27  ;;  %v1203_v60 = vsel %vm1177_vm4, %v9884_v62, %v9888_v15 }
 0x1bb   : > { %v14417_v32 = vsel %vm1177_vm4, %v9898_v1, %v9899_v41  ;;  %10181 = vrot.lane.b32.xlu0 %v14405_v57, %s13450_s27 }
 0x1bc   : > { %v9907_v23 = vpop.permute.xlu1 %9906  ;;  %v1206_v54 = vsel %vm1177_vm4, %v9894_v22, %v9898_v1  ;;  %v1205_v7 = vsel %vm1177_vm4, %v9893_v10, %v9894_v22 }
 0x1bd   : > { %v9902_v27 = vpop.permute.xlu0 %9901  ;;  %v8303_v0 = vpack.c.bf16 %v1206_v54, %v1203_v60  ;;  %v8305_v61 = vpack.c.bf16 %v1205_v7, %v1202_v13  ;;  %v9909_v12 = vunpack.i.h.bf16 %v9907_v23  ;;  %v9908_v42 = vunpack.i.l.bf16 %v9907_v23 }
 0x1be   : > { %10196 = vrot.lane.b32.xlu1 %v14411_v56, %s13450_s27  ;;  %v9904_v51 = vunpack.i.h.bf16 %v9902_v27  ;;  %v9903_v15 = vunpack.i.l.bf16 %v9902_v27 }
 0x1bf   : > { %10191 = vrot.lane.b32.xlu0 %v14423_v47, %s13450_s27  ;;  %8304 = vmatprep.subr.bf16.mxu1 %v8303_v0  ;;  %v14438_v54 = vsel %vm1177_vm4, %v9908_v42, %v9909_v12  ;;  %s9219_s27 = smul.u32 3072, %s13427_s15 }
 0x1c0   : > { %8306 = vmatpush1.bf16.msra.mxu1 %v8305_v61  ;;  %v9917_v62 = vpop.permute.xlu1 %9916  ;;  %v1209_v0 = vsel %vm1177_vm4, %v9904_v51, %v9908_v42  ;;  %v1208_v13 = vsel %vm1177_vm4, %v9903_v15, %v9904_v51 }
 0x1c1   : > { %v9919_v16 = vunpack.i.h.bf16 %v9917_v62  ;;  %v9918_v1 = vunpack.i.l.bf16 %v9917_v62  ;;  %v9912_v22 = vpop.permute.xlu0 %9911 }
 0x1c2   : > { %v9914_v10 = vunpack.i.h.bf16 %v9912_v22  ;;  %v9913_v41 = vunpack.i.l.bf16 %v9912_v22  ;;  %10206 = vrot.lane.b32.xlu1 %v14292_v11, %s13451_s6 }
 0x1c3   : > { %v14441_v23 = vsel %vm1177_vm4, %v9918_v1, %v9919_v16  ;;  %10201 = vrot.lane.b32.xlu0 %v14297_v25, %s13451_s6 }
 0x1c4   : > { %v9927_v61 = vpop.permute.xlu1 %9926  ;;  %v1212_v60 = vsel %vm1177_vm4, %v9914_v10, %v9918_v1  ;;  %v1211_v7 = vsel %vm1177_vm4, %v9913_v41, %v9914_v10 }
 0x1c5   : > { %v9922_v12 = vpop.permute.xlu0 %9921  ;;  %v8307_v62 = vpack.c.bf16 %v1212_v60, %v1209_v0  ;;  %v8309_v22 = vpack.c.bf16 %v1211_v7, %v1208_v13  ;;  %v9929_v42 = vunpack.i.h.bf16 %v9927_v61  ;;  %v9928_v16 = vunpack.i.l.bf16 %v9927_v61 }
 0x1c6   : > { %10216 = vrot.lane.b32.xlu1 %v14303_v3, %s13451_s6  ;;  %v9924_v31 = vunpack.i.h.bf16 %v9922_v12  ;;  %v9923_v1 = vunpack.i.l.bf16 %v9922_v12 }
 0x1c7   : > { %8308 = vmatprep.subr.bf16.mxu1 %v8307_v62  ;;  %10211 = vrot.lane.b32.xlu0 %v14316_v52, %s13451_s6  ;;  %v14458_v0 = vsel %vm1177_vm4, %v9928_v16, %v9929_v42 }
 0x1c8   : > { %8310 = vmatpush1.bf16.msra.mxu1 %v8309_v22  ;;  %v9937_v51 = vpop.permute.xlu1 %9936  ;;  %19695 = vst [vmem:[#allocation82_spill] sm:$0xff] %v14458_v0  ;;  %v1215_v60 = vsel %vm1177_vm4, %v9924_v31, %v9928_v16  ;;  %v1214_v12 = vsel %vm1177_vm4, %v9923_v1, %v9924_v31 }
 0x1c9   : > { %v9939_v41 = vunpack.i.h.bf16 %v9937_v51  ;;  %v9938_v15 = vunpack.i.l.bf16 %v9937_v51  ;;  %v9932_v10 = vpop.permute.xlu0 %9931 }
 0x1ca   : > { %v9934_v27 = vunpack.i.h.bf16 %v9932_v10  ;;  %v9933_v43 = vunpack.i.l.bf16 %v9932_v10  ;;  %10226 = vrot.lane.b32.xlu1 %v14327_v35, %s13451_s6 }
 0x1cb   : > { %v14461_v61 = vsel %vm1177_vm4, %v9938_v15, %v9939_v41  ;;  %10221 = vrot.lane.b32.xlu0 %v14333_v4, %s13451_s6 }
 0x1cc   : > { %v9947_v13 = vpop.permute.xlu1 %9946  ;;  %v1218_v7 = vsel %vm1177_vm4, %v9934_v27, %v9938_v15  ;;  %v1217_v62 = vsel %vm1177_vm4, %v9933_v43, %v9934_v27 }
 0x1cd   : > { %v9942_v42 = vpop.permute.xlu0 %9941  ;;  %v8311_v51 = vpack.c.bf16 %v1218_v7, %v1215_v60  ;;  %v8313_v10 = vpack.c.bf16 %v1217_v62, %v1214_v12  ;;  %v9949_v16 = vunpack.i.h.bf16 %v9947_v13  ;;  %v9948_v41 = vunpack.i.l.bf16 %v9947_v13 }
 0x1ce   : > { %10236 = vrot.lane.b32.xlu1 %v14339_v34, %s13451_s6  ;;  %v9944_v39 = vunpack.i.h.bf16 %v9942_v42  ;;  %v9943_v15 = vunpack.i.l.bf16 %v9942_v42 }
 0x1cf   : > { %8312 = vmatprep.subr.bf16.mxu1 %v8311_v51  ;;  %10231 = vrot.lane.b32.xlu0 %v14352_v28, %s13451_s6  ;;  %v14478_v60 = vsel %vm1177_vm4, %v9948_v41, %v9949_v16 }
 0x1d0   : > { %8314 = vmatpush1.bf16.msra.mxu1 %v8313_v10  ;;  %v9957_v31 = vpop.permute.xlu1 %9956  ;;  %19696 = vst [vmem:[#allocation83_spill] sm:$0xff] %v14478_v60  ;;  %v1221_v7 = vsel %vm1177_vm4, %v9944_v39, %v9948_v41  ;;  %v1220_v42 = vsel %vm1177_vm4, %v9943_v15, %v9944_v39 }
 0x1d1   : > { %v9959_v43 = vunpack.i.h.bf16 %v9957_v31  ;;  %v9958_v27 = vunpack.i.l.bf16 %v9957_v31  ;;  %v9952_v1 = vpop.permute.xlu0 %9951 }
 0x1d2   : > { %v9954_v22 = vunpack.i.h.bf16 %v9952_v1  ;;  %v9953_v0 = vunpack.i.l.bf16 %v9952_v1  ;;  %10246 = vrot.lane.b32.xlu1 %v14363_v5, %s13451_s6 }
 0x1d3   : > { %v14481_v13 = vsel %vm1177_vm4, %v9958_v27, %v9959_v43  ;;  %10241 = vrot.lane.b32.xlu0 %v14369_v46, %s13451_s6 }
 0x1d4   : > { %19697 = vst [vmem:[#allocation84_spill] sm:$0xff] %v14481_v13  ;;  %v14486_v12 = vpop.permute.xlu1 %9966  ;;  %v1224_v62 = vsel %vm1177_vm4, %v9954_v22, %v9958_v27  ;;  %v1223_v51 = vsel %vm1177_vm4, %v9953_v0, %v9954_v22 }
 0x1d5   : > { %v9962_v16 = vpop.permute.xlu0 %9961  ;;  %v8315_v31 = vpack.c.bf16 %v1224_v62, %v1221_v7  ;;  %v8317_v43 = vpack.c.bf16 %v1223_v51, %v1220_v42  ;;  %v19479_v41 = vunpack.i.l.bf16 %v14486_v12 }
 0x1d6   : > { %10256 = vrot.lane.b32.xlu1 %v14375_v8, %s13451_s6  ;;  %v9964_v27 = vunpack.i.h.bf16 %v9962_v16  ;;  %v9963_v1 = vunpack.i.l.bf16 %v9962_v16 }
 0x1d7   : > { %8316 = vmatprep.subr.bf16.mxu1 %v8315_v31  ;;  %10251 = vrot.lane.b32.xlu0 %v14388_v40, %s13451_s6 }
 0x1d8   : > { %8318 = vmatpush1.bf16.msra.mxu1 %v8317_v43  ;;  %v14498_v39 = vpop.permute.xlu1 %9976  ;;  %v1227_v42 = vsel %vm1177_vm4, %v9964_v27, %v19479_v41  ;;  %v1226_v16 = vsel %vm1177_vm4, %v9963_v1, %v9964_v27 }
 0x1d9   : > { %v19482_v0 = vunpack.i.l.bf16 %v14498_v39  ;;  %v9972_v22 = vpop.permute.xlu0 %9971 }
 0x1da   : > { %v9974_v15 = vunpack.i.h.bf16 %v9972_v22  ;;  %v9973_v7 = vunpack.i.l.bf16 %v9972_v22  ;;  %10266 = vrot.lane.b32.xlu1 %v14399_v30, %s13451_s6 }
 0x1db   : > { %10261 = vrot.lane.b32.xlu0 %v14405_v57, %s13451_s6 }
 0x1dc   : > { %v14505_v62 = vpop.permute.xlu1 %9986  ;;  %v1230_v51 = vsel %vm1177_vm4, %v9974_v15, %v19482_v0  ;;  %v1229_v31 = vsel %vm1177_vm4, %v9973_v7, %v9974_v15 }
 0x1dd   : > { %v9982_v43 = vpop.permute.xlu0 %9981  ;;  %v8319_v22 = vpack.c.bf16 %v1230_v51, %v1227_v42  ;;  %v8321_v10 = vpack.c.bf16 %v1229_v31, %v1226_v16  ;;  %v19483_v41 = vunpack.i.l.bf16 %v14505_v62 }
 0x1de   : > { %10276 = vrot.lane.b32.xlu1 %v14411_v56, %s13451_s6  ;;  %v9984_v60 = vunpack.i.h.bf16 %v9982_v43  ;;  %v9983_v13 = vunpack.i.l.bf16 %v9982_v43 }
 0x1df   : > { %8320 = vmatprep.subr.bf16.mxu1 %v8319_v22  ;;  %10271 = vrot.lane.b32.xlu0 %v14423_v47, %s13451_s6 }
 0x1e0   : > { %8322 = vmatpush1.bf16.msra.mxu1 %v8321_v10  ;;  %v14520_v0 = vpop.permute.xlu1 %9996  ;;  %v1233_v10 = vsel %vm1177_vm4, %v9984_v60, %v19483_v41  ;;  %v1232_v16 = vsel %vm1177_vm4, %v9983_v13, %v9984_v60 }
 0x1e1   : > { %v19484_v27 = vunpack.i.l.bf16 %v14520_v0  ;;  %v9992_v1 = vpop.permute.xlu0 %9991 }
 0x1e2   : > { %v9994_v15 = vunpack.i.h.bf16 %v9992_v1  ;;  %v9993_v7 = vunpack.i.l.bf16 %v9992_v1  ;;  %10286 = vrot.lane.b32.xlu1 %v14292_v11, %s13452_s9 }
 0x1e3   : > { %10281 = vrot.lane.b32.xlu0 %v14297_v25, %s13452_s9 }
 0x1e4   : > { %v14527_v42 = vpop.permute.xlu1 %10006  ;;  %v1236_v51 = vsel %vm1177_vm4, %v9994_v15, %v19484_v27  ;;  %v1235_v31 = vsel %vm1177_vm4, %v9993_v7, %v9994_v15 }
 0x1e5   : > { %v10002_v43 = vpop.permute.xlu0 %10001  ;;  %v8323_v22 = vpack.c.bf16 %v1236_v51, %v1233_v10  ;;  %v8325_v11 = vpack.c.bf16 %v1235_v31, %v1232_v16  ;;  %v19492_v25 = vunpack.i.l.bf16 %v14527_v42 }
 0x1e6   : > { %10296 = vrot.lane.b32.xlu1 %v14303_v3, %s13452_s9  ;;  %v10004_v1 = vunpack.i.h.bf16 %v10002_v43  ;;  %v10003_v41 = vunpack.i.l.bf16 %v10002_v43 }
 0x1e7   : > { %8324 = vmatprep.subr.bf16.mxu1 %v8323_v22  ;;  %10291 = vrot.lane.b32.xlu0 %v14316_v52, %s13452_s9 }
 0x1e8   : > { %8326 = vmatpush1.bf16.msra.mxu1 %v8325_v11  ;;  %v14542_v27 = vpop.permute.xlu1 %10016  ;;  %v1239_v52 = vsel %vm1177_vm4, %v10004_v1, %v19492_v25  ;;  %v1238_v51 = vsel %vm1177_vm4, %v10003_v41, %v10004_v1 }
 0x1e9   : > { %v19491_v60 = vunpack.i.l.bf16 %v14542_v27  ;;  %v10012_v13 = vpop.permute.xlu0 %10011 }
 0x1ea   : > { %v10014_v15 = vunpack.i.h.bf16 %v10012_v13  ;;  %v10013_v7 = vunpack.i.l.bf16 %v10012_v13  ;;  %10306 = vrot.lane.b32.xlu1 %v14327_v35, %s13452_s9 }
 0x1eb   : > { %10301 = vrot.lane.b32.xlu0 %v14333_v4, %s13452_s9 }
 0x1ec   : > { %v14549_v3 = vpop.permute.xlu1 %10026  ;;  %v1242_v10 = vsel %vm1177_vm4, %v10014_v15, %v19491_v60  ;;  %v1241_v16 = vsel %vm1177_vm4, %v10013_v7, %v10014_v15  ;;  %v9383_v60 = vunpack.i.l.bf16 %v13893_v26 }
 0x1ed   : > { %v10022_v31 = vpop.permute.xlu0 %10021  ;;  %v8327_v43 = vpack.c.bf16 %v1242_v10, %v1239_v52  ;;  %v8329_v35 = vpack.c.bf16 %v1241_v16, %v1238_v51  ;;  %v19490_v4 = vunpack.i.l.bf16 %v14549_v3 }
 0x1ee   : > { %10316 = vrot.lane.b32.xlu1 %v14339_v34, %s13452_s9  ;;  %v10024_v22 = vunpack.i.h.bf16 %v10022_v31  ;;  %v10023_v11 = vunpack.i.l.bf16 %v10022_v31 }
 0x1ef   : > { %8328 = vmatprep.subr.bf16.mxu1 %v8327_v43  ;;  %10311 = vrot.lane.b32.xlu0 %v14352_v28, %s13452_s9 }
 0x1f0   : > { %8330 = vmatpush1.bf16.msra.mxu1 %v8329_v35  ;;  %v14564_v13 = vpop.permute.xlu1 %10036  ;;  %v1245_v28 = vsel %vm1177_vm4, %v10024_v22, %v19490_v4  ;;  %v1244_v10 = vsel %vm1177_vm4, %v10023_v11, %v10024_v22  ;;  %v9384_v4 = vunpack.i.h.bf16 %v13893_v26  ;;  %v9989_v26 = vunpack.i.h.bf16 %v14505_v62 }
 0x1f1   : > { %v19487_v41 = vunpack.i.l.bf16 %v14564_v13  ;;  %v10032_v1 = vpop.permute.xlu0 %10031 }
 0x1f2   : > { %v10034_v15 = vunpack.i.h.bf16 %v10032_v1  ;;  %v10033_v7 = vunpack.i.l.bf16 %v10032_v1  ;;  %10326 = vrot.lane.b32.xlu1 %v14363_v5, %s13452_s9 }
 0x1f3   : > { %10321 = vrot.lane.b32.xlu0 %v14369_v46, %s13452_s9 }
 0x1f4   : > { %v14571_v34 = vpop.permute.xlu1 %10046  ;;  %v1248_v52 = vsel %vm1177_vm4, %v10034_v15, %v19487_v41  ;;  %v1247_v51 = vsel %vm1177_vm4, %v10033_v7, %v10034_v15  ;;  %v9373_v41 = vunpack.i.l.bf16 %v13873_v19 }
 0x1f5   : > { %v10042_v16 = vpop.permute.xlu0 %10041  ;;  %v8331_v31 = vpack.c.bf16 %v1248_v52, %v1245_v28  ;;  %v8333_v5 = vpack.c.bf16 %v1247_v51, %v1244_v10  ;;  %v19485_v46 = vunpack.i.l.bf16 %v14571_v34 }
 0x1f6   : > { %10336 = vrot.lane.b32.xlu1 %v14375_v8, %s13452_s9  ;;  %v10044_v43 = vunpack.i.h.bf16 %v10042_v16  ;;  %v10043_v35 = vunpack.i.l.bf16 %v10042_v16 }
 0x1f7   : > { %8332 = vmatprep.subr.bf16.mxu1 %v8331_v31  ;;  %10331 = vrot.lane.b32.xlu0 %v14388_v40, %s13452_s9  ;;  %v9334_v31 = vunpack.i.h.bf16 %v13795_v48 }
 0x1f8   : > { %8334 = vmatpush1.bf16.msra.mxu1 %v8333_v5  ;;  %v14586_v1 = vpop.permute.xlu1 %10056  ;;  %v1251_v40 = vsel %vm1177_vm4, %v10044_v43, %v19485_v46  ;;  %v1250_v52 = vsel %vm1177_vm4, %v10043_v35, %v10044_v43  ;;  %v9324_v5 = vunpack.i.h.bf16 %v13797_v49 }
 0x1f9   : > { %v19486_v22 = vunpack.i.l.bf16 %v14586_v1  ;;  %v10052_v11 = vpop.permute.xlu0 %10051 }
 0x1fa   : > { %v10054_v15 = vunpack.i.h.bf16 %v10052_v11  ;;  %v10053_v7 = vunpack.i.l.bf16 %v10052_v11  ;;  %10346 = vrot.lane.b32.xlu1 %v14399_v30, %s13452_s9  ;;  %v9323_v11 = vunpack.i.l.bf16 %v13797_v49 }
 0x1fb   : > { %10341 = vrot.lane.b32.xlu0 %v14405_v57, %s13452_s9  ;;  %v9333_v57 = vunpack.i.l.bf16 %v13795_v48 }
 0x1fc   : > { %v14593_v8 = vpop.permute.xlu1 %10066  ;;  %v1254_v28 = vsel %vm1177_vm4, %v10054_v15, %v19486_v22  ;;  %v1253_v10 = vsel %vm1177_vm4, %v10053_v7, %v10054_v15  ;;  %v14619_v49 = vsel %vm347_vm0, %v9323_v11, %v9324_v5  ;;  %v9374_v22 = vunpack.i.h.bf16 %v13873_v19 }
 0x1fd   : > { %v10062_v51 = vpop.permute.xlu0 %10061  ;;  %v8335_v16 = vpack.c.bf16 %v1254_v28, %v1251_v40  ;;  %v8337_v30 = vpack.c.bf16 %v1253_v10, %v1250_v52  ;;  %v19488_v43 = vunpack.i.l.bf16 %v14593_v8  ;;  %19698 = vst [vmem:[#allocation85_spill] sm:$0xff] %v14619_v49  ;;  %v19699_v10 = vunpack.i.l.bf16 %v13807_v53 }
 0x1fe   : > { %10356 = vrot.lane.b32.xlu1 %v14411_v56, %s13452_s9  ;;  %v10064_v35 = vunpack.i.h.bf16 %v10062_v51  ;;  %v10063_v15 = vunpack.i.l.bf16 %v10062_v51  ;;  %v14616_v56 = vsel %vm347_vm0, %v9333_v57, %v9334_v31 }
 0x1ff   : > { %8336 = vmatprep.subr.bf16.mxu1 %v8335_v16  ;;  %10351 = vrot.lane.b32.xlu0 %v14423_v47, %s13452_s9  ;;  %v9344_v47 = vunpack.i.h.bf16 %v13827_v59  ;;  %v14625_v51 = vsel %vm347_vm0, %v9324_v5, %v19699_v10  ;;  %v19700_v16 = vunpack.i.l.bf16 %v13803_v50  ;;  %v9353_v50 = vunpack.i.l.bf16 %v13841_v2 }
 0x200   : > { %8338 = vmatpush1.bf16.msra.mxu1 %v8337_v30  ;;  %v14612_v7 = vpop.permute.xlu1 %10076  ;;  %v1257_v57 = vsel %vm1177_vm4, %v10064_v35, %v19488_v43  ;;  %v1256_v53 = vsel %vm1177_vm4, %v10063_v15, %v10064_v35  ;;  %v9343_v15 = vunpack.i.l.bf16 %v13827_v59  ;;  %v19702_v59 = vunpack.i.l.bf16 %v13837_v63 }
 0x201   : > { %v19489_v48 = vunpack.i.l.bf16 %v14612_v7  ;;  %v10072_v40 = vpop.permute.xlu0 %10071  ;;  %v14630_v30 = vsel %vm347_vm0, %v9334_v31, %v19700_v16 }
 0x202   : > { %v10074_v28 = vunpack.i.h.bf16 %v10072_v40  ;;  %v10073_v52 = vunpack.i.l.bf16 %v10072_v40  ;;  %v9354_v40 = vunpack.i.h.bf16 %v13841_v2  ;;  %v14693_v49 = vsel %vm347_vm0, %v9343_v15, %v9344_v47 }
 0x204   : > { %v14632_v46 = vpop.permute.xlu1 %10086  ;;  %v1260_v11 = vsel %vm1177_vm4, %v10074_v28, %v19489_v48  ;;  %v1259_v5 = vsel %vm1177_vm4, %v10073_v52, %v10074_v28  ;;  %v14666_v35 = vsel %vm347_vm0, %v9354_v40, %v19702_v59  ;;  %v14671_v48 = vsel %vm347_vm0, %v9373_v41, %v9374_v22 }
 0x205   : > { %v10082_v31 = vpop.permute.xlu0 %10081  ;;  %v8339_v10 = vpack.c.bf16 %v1260_v11, %v1257_v57  ;;  %v8341_v16 = vpack.c.bf16 %v1259_v5, %v1256_v53  ;;  %v19494_v28 = vunpack.i.l.bf16 %v14632_v46  ;;  %v14655_v11 = vsel %vm347_vm0, %v9353_v50, %v9354_v40  ;;  %19703 = vst [vmem:[#allocation86_spill] sm:$0xff] %v14671_v48 }
 0x206   : > { %v10084_v52 = vunpack.i.h.bf16 %v10082_v31  ;;  %v10083_v2 = vunpack.i.l.bf16 %v10082_v31  ;;  %v19701_v5 = vunpack.i.l.bf16 %v13825_v58  ;;  %v9364_v31 = vunpack.i.h.bf16 %v13861_v9 }
 0x207   : > { %8340 = vmatprep.subr.bf16.mxu1 %v8339_v10  ;;  %v9979_v58 = vunpack.i.h.bf16 %v14498_v39 }
 0x208   : > { %8342 = vmatpush1.bf16.msra.mxu1 %v8341_v16  ;;  %v14652_v57 = vpop.permute.xlu1 %10096  ;;  %v14661_v10 = vsel %vm347_vm0, %v9344_v47, %v19701_v5  ;;  %v9363_v16 = vunpack.i.l.bf16 %v13861_v9  ;;  %v19704_v5 = vunpack.i.l.bf16 %v13869_v14  ;;  %v1263_v9 = vsel %vm1177_vm4, %v10084_v52, %v19494_v28 }
 0x209   : > { %v19495_v19 = vunpack.i.l.bf16 %v14652_v57  ;;  %v10092_v53 = vpop.permute.xlu0 %10091  ;;  %v9969_v14 = vunpack.i.h.bf16 %v14486_v12  ;;  %v19711_v47 = vunpack.i.l.bf16 %v13889_v24 }
 0x20a   : > { %v10094_v43 = vunpack.i.h.bf16 %v10092_v53  ;;  %v10093_v50 = vunpack.i.l.bf16 %v10092_v53  ;;  %v14678_v63 = vsel %vm347_vm0, %v9374_v22, %v19704_v5  ;;  %v1262_v53 = vsel %vm1177_vm4, %v10083_v2, %v10084_v52 }
 0x20b   : > { %19705 = vst [vmem:[#allocation87_spill] sm:$0xff] %v14678_v63  ;;  %v14696_v28 = vsel %vm347_vm0, %v9363_v16, %v9364_v31  ;;  %v19707_v52 = vunpack.i.l.bf16 %v13857_v6 }
 0x20c   : > { %v14680_v40 = vpop.permute.xlu1 %10106  ;;  %v1266_v41 = vsel %vm1177_vm4, %v10094_v43, %v19495_v19  ;;  %v1265_v59 = vsel %vm1177_vm4, %v10093_v50, %v10094_v43  ;;  %19706 = vst [vmem:[#allocation88_spill] sm:$0xff] %v14696_v28  ;;  %v19712_v19 = vunpack.i.l.bf16 %v14505_v62 }
 0x20d   : > { %v10102_v22 = vpop.permute.xlu0 %10101  ;;  %v8343_v5 = vpack.c.bf16 %v1266_v41, %v1263_v9  ;;  %v8345_v25 = vpack.c.bf16 %v1265_v59, %v1262_v53  ;;  %v14703_v43 = vsel %vm347_vm0, %v9364_v31, %v19707_v52  ;;  %v19499_v16 = vunpack.i.l.bf16 %v14680_v40 }
 0x20e   : > { %19708 = vst [vmem:[#allocation89_spill] sm:$0xff] %v14703_v43  ;;  %v10104_v50 = vunpack.i.h.bf16 %v10102_v22  ;;  %v10103_v9 = vunpack.i.l.bf16 %v10102_v22  ;;  %v19709_v31 = vunpack.i.l.bf16 %v14498_v39  ;;  %v14719_v53 = vsel %vm347_vm0, %v9383_v60, %v9384_v4 }
 0x20f   : > { %8344 = vmatprep.subr.bf16.mxu1 %v8343_v5  ;;  %v19710_v52 = vunpack.i.l.bf16 %v14486_v12  ;;  %v9999_v22 = vunpack.i.h.bf16 %v14520_v0  ;;  %v10009_v39 = vunpack.i.h.bf16 %v14527_v42  ;;  %v10019_v60 = vunpack.i.h.bf16 %v14542_v27 }
 0x210   : > { %8346 = vmatpush1.bf16.msra.mxu1 %v8345_v25  ;;  %v14713_v6 = vpop.permute.xlu1 %10116  ;;  %v1231_v41 = vsel %vm1177_vm4, %v19709_v31, %v9979_v58  ;;  %v14728_v25 = vsel %vm347_vm0, %v9384_v4, %v19711_v47  ;;  %v1234_v12 = vsel %vm1177_vm4, %v19712_v19, %v9989_v26  ;;  %v1269_v24 = vsel %vm1177_vm4, %v10104_v50, %v19499_v16 }
 0x211   : > { %v19501_v59 = vunpack.i.l.bf16 %v14713_v6  ;;  %v10112_v5 = vpop.permute.xlu0 %10111  ;;  %v1228_v15 = vsel %vm1177_vm4, %v19710_v52, %v9969_v14  ;;  %v1268_v47 = vsel %vm1177_vm4, %v10103_v9, %v10104_v50  ;;  %v19713_v26 = vunpack.i.l.bf16 %v14520_v0 }
 0x212   : > { %v10114_v58 = vunpack.i.h.bf16 %v10112_v5  ;;  %v10113_v31 = vunpack.i.l.bf16 %v10112_v5  ;;  %v8351_v2 = vpack.c.bf16 %v1231_v41, %v1228_v15  ;;  %v19714_v16 = vunpack.i.l.bf16 %v14527_v42 }
 0x213   : > { %v1237_v43 = vsel %vm1177_vm4, %v19713_v26, %v9999_v22  ;;  %v10039_v50 = vunpack.i.h.bf16 %v14564_v13 }
 0x214   : > { %v10127_v14 = vpop.permute.xlu1 %10126  ;;  %v1272_v4 = vsel %vm1177_vm4, %v10114_v58, %v19501_v59  ;;  %v1271_v5 = vsel %vm1177_vm4, %v10113_v31, %v10114_v58  ;;  %v1240_v63 = vsel %vm1177_vm4, %v19714_v16, %v10009_v39  ;;  %v10029_v59 = vunpack.i.h.bf16 %v14549_v3  ;;  %v14760_v16 = vld [vmem:[#allocation5 + $0x10] sm:$0xff] }
 0x215   : > { %v10129_v52 = vunpack.i.h.bf16 %v10127_v14  ;;  %v10128_v28 = vunpack.i.l.bf16 %v10127_v14  ;;  %v10122_v15 = vpop.permute.xlu0 %10121  ;;  %v8347_v41 = vpack.c.bf16 %v1272_v4, %v1269_v24  ;;  %v8349_v62 = vpack.c.bf16 %v1271_v5, %v1268_v47  ;;  %v14764_v5 = vld [vmem:[#allocation5 + $0xa0] sm:$0xff] }
 0x216   : > { %v10124_v48 = vunpack.i.h.bf16 %v10122_v15  ;;  %v10123_v19 = vunpack.i.l.bf16 %v10122_v15  ;;  %v19715_v58 = vunpack.i.l.bf16 %v14542_v27 }
 0x217   : > { %v1873_v9 = vsel %vm1870_vm5, %v10128_v28, %v10129_v52  ;;  %8348 = vmatprep.subr.bf16.mxu1 %v8347_v41 }
 0x218   : > { %v1243_v31 = vsel %vm1177_vm4, %v19715_v58, %v10019_v60  ;;  %v1872_v14 = vsel %vm1870_vm5, %v10124_v48, %v10128_v28  ;;  %v1871_v0 = vsel %vm1870_vm5, %v10123_v19, %v10124_v48  ;;  %8350 = vmatpush1.bf16.msra.mxu1 %v8349_v62  ;;  %v10137_v22 = vpop.permute.xlu1 %10136  ;;  %v14758_v42 = vpack.i.bf16 %v10129_v52, %v1873_v9 }
 0x219   : > { %v10139_v39 = vunpack.i.h.bf16 %v10137_v22  ;;  %v10138_v24 = vunpack.i.l.bf16 %v10137_v22  ;;  %v10132_v4 = vpop.permute.xlu0 %10131  ;;  %8352 = vmatprep.subr.bf16.mxu1 %v8351_v2  ;;  %v14762_v47 = vpack.i.bf16 %v1872_v14, %v1871_v0  ;;  %v8355_v48 = vpack.c.bf16 %v1237_v43, %v1234_v12 }
 0x21a   : > { %19716 = vst [vmem:[#allocation90_spill] sm:$0xff] %v14758_v42  ;;  %v10134_v27 = vunpack.i.h.bf16 %v10132_v4  ;;  %v10133_v60 = vunpack.i.l.bf16 %v10132_v4  ;;  %10366 = vrot.lane.b32.xlu1 %v14758_v42, %s13452_s9  ;;  %v8359_v28 = vpack.c.bf16 %v1243_v31, %v1240_v63  ;;  %v10059_v52 = vunpack.i.h.bf16 %v14586_v1  ;;  %v14791_v31 = vld [vmem:[#allocation5 + $0x128] sm:$0xff] }
 0x21b   : > { %19717 = vst [vmem:[#allocation91_spill] sm:$0xff] %v14762_v47  ;;  %v1876_v15 = vsel %vm1870_vm5, %v10138_v24, %v10139_v39  ;;  %10361 = vrot.lane.b32.xlu0 %v14762_v47, %s13452_s9  ;;  %1435 = vmatmul.mubr.f32.vlgmr.msra.gmra.mrb[0].mxu1 %v14760_v16  ;;  %v19718_v2 = vunpack.i.l.bf16 %v14549_v3  ;;  %v19719_v62 = vunpack.i.l.bf16 %v14564_v13  ;;  %v19720_v12 = vpack.c.bf16 %v14280_v37, %v14277_v38  ;;  %v14787_v3 = vld [vmem:[#allocation5 + $0x98] sm:$0xff]  ;;  %v19785_v47 = vld [vmem:[#allocation29_spill] sm:$0xff] }
 0x21c   : > { %v1875_v43 = vsel %vm1870_vm5, %v10134_v27, %v10138_v24  ;;  %v1874_v63 = vsel %vm1870_vm5, %v10133_v60, %v10134_v27  ;;  %v10147_v26 = vpop.permute.xlu1 %10146  ;;  %v14784_v9 = vpack.i.bf16 %v10139_v39, %v1876_v15  ;;  %1440 = vmatprep.mubr.f32.mxu1 %v14764_v5  ;;  %v10049_v14 = vunpack.i.h.bf16 %v14571_v34 }
 0x21d   : > { %v1246_v41 = vsel %vm1177_vm4, %v19718_v2, %v10029_v59  ;;  %v1249_v19 = vsel %vm1177_vm4, %v19719_v62, %v10039_v50  ;;  %8354 = vmatpush3.bf16.msra.mxu1 %v19720_v12  ;;  %v10149_v59 = vunpack.i.h.bf16 %v10147_v26  ;;  %v10148_v58 = vunpack.i.l.bf16 %v10147_v26  ;;  %v10142_v13 = vpop.permute.xlu0 %10141  ;;  %v14811_v2 = vld [vmem:[#allocation5 + $0x120] sm:$0xff] }
 0x21e   : > { %19721 = vst [vmem:[#allocation92_spill] sm:$0xff] %v14784_v9  ;;  %8356 = vmatprep.subr.bf16.mxu1 %v8355_v48  ;;  %v14789_v50 = vpack.i.bf16 %v1875_v43, %v1874_v63  ;;  %v10144_v0 = vunpack.i.h.bf16 %v10142_v13  ;;  %v10143_v38 = vunpack.i.l.bf16 %v10142_v13  ;;  %10376 = vrot.lane.b32.xlu1 %v14784_v9, %s13452_s9  ;;  %v8363_v37 = vpack.c.bf16 %v1249_v19, %v1246_v41  ;;  %v14815_v19 = vld [vmem:[#allocation5 + $0x1b0] sm:$0xff] }
 0x21f   : > { %v1879_v22 = vsel %vm1870_vm5, %v10148_v58, %v10149_v59  ;;  %1441 = vmatmul.mubr.f32.gmra.mrb[2].mxu1 %v14787_v3  ;;  %v19723_v39 = vunpack.i.l.bf16 %v14586_v1  ;;  %v19724_v60 = vpack.c.bf16 %v14309_v21, %v14306_v20  ;;  %v10069_v43 = vunpack.i.h.bf16 %v14593_v8 }
 0x220   : > { %19722 = vst [vmem:[#allocation93_spill] sm:$0xff] %v14789_v50  ;;  %10371 = vrot.lane.b32.xlu0 %v14789_v50, %s13452_s9  ;;  %v1878_v4 = vsel %vm1870_vm5, %v10144_v0, %v10148_v58  ;;  %v1877_v27 = vsel %vm1870_vm5, %v10143_v38, %v10144_v0  ;;  %v10157_v48 = vpop.permute.xlu1 %10156  ;;  %v14808_v15 = vpack.i.bf16 %v10149_v59, %v1879_v22  ;;  %v19727_v21 = vunpack.i.l.bf16 %v14571_v34  ;;  %v14836_v38 = vld [vmem:[#allocation5 + $0x1a8] sm:$0xff] }
 0x221   : > { %v1255_v24 = vsel %vm1177_vm4, %v19723_v39, %v10059_v52  ;;  %8358 = vmatpush3.bf16.msra.mxu1 %v19724_v60  ;;  %1446 = vmatprep.mubr.f32.mxu1 %v14791_v31  ;;  %v10159_v41 = vunpack.i.h.bf16 %v10157_v48  ;;  %v10158_v62 = vunpack.i.l.bf16 %v10157_v48  ;;  %v10152_v1 = vpop.permute.xlu0 %10151  ;;  %v14813_v52 = vpack.i.bf16 %v1878_v4, %v1877_v27  ;;  %v14840_v27 = vld [vmem:[#allocation5 + $0x238] sm:$0xff] }
 0x222   : > { %19725 = vst [vmem:[#allocation94_spill] sm:$0xff] %v14808_v15  ;;  %8360 = vmatprep.subr.bf16.mxu1 %v8359_v28  ;;  %v10154_v63 = vunpack.i.h.bf16 %v10152_v1  ;;  %v10153_v20 = vunpack.i.l.bf16 %v10152_v1  ;;  %10386 = vrot.lane.b32.xlu1 %v14808_v15, %s13452_s9  ;;  %v1252_v12 = vsel %vm1177_vm4, %v19727_v21, %v10049_v14  ;;  %v10079_v26 = vunpack.i.h.bf16 %v14612_v7 }
 0x223   : > { %19726 = vst [vmem:[#allocation95_spill] sm:$0xff] %v14813_v52  ;;  %v1882_v59 = vsel %vm1870_vm5, %v10158_v62, %v10159_v41  ;;  %1447 = vmatmul.mubr.f32.gmra.mrb[4].mxu1 %v14811_v2  ;;  %v8367_v28 = vpack.c.bf16 %v1255_v24, %v1252_v12  ;;  %v19728_v0 = vpack.c.bf16 %v14345_v33, %v14342_v29  ;;  %v10089_v60 = vunpack.i.h.bf16 %v14632_v46 }
 0x224   : > { %10381 = vrot.lane.b32.xlu0 %v14813_v52, %s13452_s9  ;;  %v1881_v58 = vsel %vm1870_vm5, %v10154_v63, %v10158_v62  ;;  %v1880_v13 = vsel %vm1870_vm5, %v10153_v20, %v10154_v63  ;;  %v10167_v34 = vpop.permute.xlu1 %10166  ;;  %v14833_v14 = vpack.i.bf16 %v10159_v41, %v1882_v59  ;;  %1452 = vmatprep.mubr.f32.mxu1 %v14815_v19  ;;  %v19731_v33 = vunpack.i.l.bf16 %v14593_v8  ;;  %v14864_v59 = vld [vmem:[#allocation5 + $0x230] sm:$0xff] }
 0x225   : > { %8362 = vmatpush3.bf16.msra.mxu1 %v19728_v0  ;;  %v10169_v22 = vunpack.i.h.bf16 %v10167_v34  ;;  %v10168_v39 = vunpack.i.l.bf16 %v10167_v34  ;;  %v10162_v4 = vpop.permute.xlu0 %10161  ;;  %v14838_v24 = vpack.i.bf16 %v1881_v58, %v1880_v13  ;;  %v10099_v62 = vunpack.i.h.bf16 %v14652_v57  ;;  %v14868_v0 = vld [vmem:[#allocation5 + $0x2c0] sm:$0xff] }
 0x226   : > { %19729 = vst [vmem:[#allocation96_spill] sm:$0xff] %v14833_v14  ;;  %8364 = vmatprep.subr.bf16.mxu1 %v8363_v37  ;;  %v10164_v48 = vunpack.i.h.bf16 %v10162_v4  ;;  %v10163_v29 = vunpack.i.l.bf16 %v10162_v4  ;;  %10396 = vrot.lane.b32.xlu1 %v14833_v14, %s13452_s9  ;;  %v1258_v41 = vsel %vm1177_vm4, %v19731_v33, %v10069_v43  ;;  %v19732_v37 = vunpack.i.l.bf16 %v14612_v7  ;;  %v19769_v14 = vld [vmem:[#allocation67_spill] sm:$0xff] }
 0x227   : > { %19730 = vst [vmem:[#allocation97_spill] sm:$0xff] %v14838_v24  ;;  %v1885_v1 = vsel %vm1870_vm5, %v10168_v39, %v10169_v22  ;;  %1453 = vmatmul.mubr.f32.gmra.mrb[6].mxu1 %v14836_v38  ;;  %v19733_v8 = vpack.c.bf16 %v14381_v18, %v14378_v55  ;;  %v19736_v18 = vunpack.i.l.bf16 %v14632_v46  ;;  %v10119_v4 = vunpack.i.h.bf16 %v14713_v6 }
 0x228   : > { %10391 = vrot.lane.b32.xlu0 %v14838_v24, %s13452_s9  ;;  %v1261_v63 = vsel %vm1177_vm4, %v19732_v37, %v10079_v26  ;;  %v1884_v20 = vsel %vm1870_vm5, %v10164_v48, %v10168_v39  ;;  %v1883_v21 = vsel %vm1870_vm5, %v10163_v29, %v10164_v48  ;;  %v10177_v43 = vpop.permute.xlu1 %10176  ;;  %v14861_v12 = vpack.i.bf16 %v10169_v22, %v1885_v1 }
 0x229   : > { %8366 = vmatpush3.bf16.msra.mxu1 %v19733_v8  ;;  %1458 = vmatprep.mubr.f32.mxu1 %v14840_v27  ;;  %v10179_v58 = vunpack.i.h.bf16 %v10177_v43  ;;  %v10178_v13 = vunpack.i.l.bf16 %v10177_v43  ;;  %v10172_v7 = vpop.permute.xlu0 %10171  ;;  %v14866_v26 = vpack.i.bf16 %v1884_v20, %v1883_v21  ;;  %v8371_v55 = vpack.c.bf16 %v1261_v63, %v1258_v41  ;;  %v14892_v63 = vld [vmem:[#allocation5 + $0x2b8] sm:$0xff]  ;;  %v14896_v8 = vld [vmem:[#allocation5 + $0x348] sm:$0xff] }
 0x22a   : > { %19734 = vst [vmem:[#allocation98_spill] sm:$0xff] %v14861_v12  ;;  %8368 = vmatprep.subr.bf16.mxu1 %v8367_v28  ;;  %v10174_v34 = vunpack.i.h.bf16 %v10172_v7  ;;  %v10173_v39 = vunpack.i.l.bf16 %v10172_v7  ;;  %10406 = vrot.lane.b32.xlu1 %v14861_v12, %s13452_s9  ;;  %v1264_v22 = vsel %vm1177_vm4, %v19736_v18, %v10089_v60  ;;  %v19737_v28 = vunpack.i.l.bf16 %v14652_v57  ;;  %v19767_v12 = vld [vmem:[#allocation66_spill] sm:$0xff] }
 0x22b   : > { %19735 = vst [vmem:[#allocation99_spill] sm:$0xff] %v14866_v26  ;;  %v1888_v48 = vsel %vm1870_vm5, %v10178_v13, %v10179_v58  ;;  %1459 = vmatmul.mubr.f32.gmra.mrb[8].mxu1 %v14864_v59  ;;  %v9394_v33 = vunpack.i.h.bf16 %v13905_v36  ;;  %v19738_v60 = vpack.c.bf16 %v14417_v32, %v14414_v17  ;;  %v10109_v43 = vunpack.i.h.bf16 %v14680_v40 }
 0x22c   : > { %10401 = vrot.lane.b32.xlu0 %v14866_v26, %s13452_s9  ;;  %v1267_v29 = vsel %vm1177_vm4, %v19737_v28, %v10099_v62  ;;  %v1887_v41 = vsel %vm1870_vm5, %v10174_v34, %v10178_v13  ;;  %v1886_v46 = vsel %vm1870_vm5, %v10173_v39, %v10174_v34  ;;  %v10187_v1 = vpop.permute.xlu1 %10186  ;;  %v14889_v37 = vpack.i.bf16 %v10179_v58, %v1888_v48 }
 0x22d   : > { %8370 = vmatpush3.bf16.msra.mxu1 %v19738_v60  ;;  %1464 = vmatprep.mubr.f32.mxu1 %v14868_v0  ;;  %v10189_v57 = vunpack.i.h.bf16 %v10187_v1  ;;  %v10188_v20 = vunpack.i.l.bf16 %v10187_v1  ;;  %v10182_v62 = vpop.permute.xlu0 %10181  ;;  %v14894_v21 = vpack.i.bf16 %v1887_v41, %v1886_v46  ;;  %v8375_v32 = vpack.c.bf16 %v1267_v29, %v1264_v22  ;;  %v14918_v41 = vld [vmem:[#allocation5 + $0x340] sm:$0xff]  ;;  %v14922_v1 = vld [vmem:[#allocation5 + $0x3d0] sm:$0xff] }
 0x22e   : > { %19739 = vst [vmem:[#allocation100_spill] sm:$0xff] %v14889_v37  ;;  %8372 = vmatprep.subr.bf16.mxu1 %v8371_v55  ;;  %v10184_v13 = vunpack.i.h.bf16 %v10182_v62  ;;  %v10183_v17 = vunpack.i.l.bf16 %v10182_v62  ;;  %10416 = vrot.lane.b32.xlu1 %v14889_v37, %s13452_s9  ;;  %v9393_v58 = vunpack.i.l.bf16 %v13905_v36  ;;  %v19741_v34 = vunpack.i.l.bf16 %v14713_v6  ;;  %v19756_v36 = vld [vmem:[#allocation22_spill] sm:$0xff] }
 0x22f   : > { %19740 = vst [vmem:[#allocation101_spill] sm:$0xff] %v14894_v21  ;;  %v1891_v7 = vsel %vm1870_vm5, %v10188_v20, %v10189_v57  ;;  %1465 = vmatmul.mubr.f32.gmra.mrb[10].mxu1 %v14892_v63  ;;  %v19506_v55 = vunpack.i.l.bf16 %v13931_v44  ;;  %v19742_v22 = vpack.c.bf16 %v14441_v23, %v14438_v54  ;;  %v19745_v23 = vunpack.i.l.bf16 %v14680_v40  ;;  %v19746_v40 = vld [vmem:[#allocation82_spill] sm:$0xff] }
 0x230   : > { %10411 = vrot.lane.b32.xlu0 %v14894_v21, %s13452_s9  ;;  %v1273_v39 = vsel %vm1177_vm4, %v19741_v34, %v10119_v4  ;;  %v1890_v18 = vsel %vm1870_vm5, %v10184_v13, %v10188_v20  ;;  %v1889_v48 = vsel %vm1870_vm5, %v10183_v17, %v10184_v13  ;;  %v10197_v28 = vpop.permute.xlu1 %10196  ;;  %v14915_v29 = vpack.i.bf16 %v10189_v57, %v1891_v7 }
 0x231   : > { %8374 = vmatpush3.bf16.msra.mxu1 %v19742_v22  ;;  %1470 = vmatprep.mubr.f32.mxu1 %v14896_v8  ;;  %v10199_v6 = vunpack.i.h.bf16 %v10197_v28  ;;  %v10198_v46 = vunpack.i.l.bf16 %v10197_v28  ;;  %v10192_v4 = vpop.permute.xlu0 %10191  ;;  %v14920_v60 = vpack.i.bf16 %v1890_v18, %v1889_v48  ;;  %v9414_v20 = vunpack.i.h.bf16 %v13933_v45  ;;  %v14943_v18 = vld [vmem:[#allocation5 + $0x3c8] sm:$0xff]  ;;  %v14955_v28 = vld [vmem:[%s13637_s26 + $0x30] sm:$0xff] }
 0x232   : > { %19743 = vst [vmem:[#allocation102_spill] sm:$0xff] %v14915_v29  ;;  %8376 = vmatprep.subr.bf16.mxu1 %v8375_v32  ;;  %v10194_v62 = vunpack.i.h.bf16 %v10192_v4  ;;  %v10193_v54 = vunpack.i.l.bf16 %v10192_v4  ;;  %10426 = vrot.lane.b32.xlu1 %v14915_v29, %s13452_s9  ;;  %v1270_v57 = vsel %vm1177_vm4, %v19745_v23, %v10109_v43  ;;  %v9413_v13 = vunpack.i.l.bf16 %v13933_v45  ;;  %19750 = vst [vmem:[#allocation105_spill] sm:$0xff] %v14955_v28  ;;  %v19752_v4 = vld [vmem:[#allocation20_spill] sm:$0xff]  ;;  %v14998_v29 = vld [vmem:[%s13637_s26] sm:$0xff] }
 0x233   : > { %19744 = vst [vmem:[#allocation103_spill] sm:$0xff] %v14920_v60  ;;  %v1894_v17 = vsel %vm1870_vm5, %v10198_v46, %v10199_v6  ;;  %1471 = vmatmul.mubr.f32.gmra.mrb[12].mxu1 %v14918_v41  ;;  %v8379_v32 = vpack.c.bf16 %v1273_v39, %v1270_v57  ;;  %v19747_v43 = vpack.c.bf16 %v14461_v61, %v19746_v40  ;;  %v14958_v61 = vld [vmem:[%s13637_s26 + $0x8] sm:$0xff]  ;;  %v19754_v57 = vld [vmem:[#allocation17_spill] sm:$0xff]  ;;  %v9454_v42 = vunpack.i.h.bf16 %v19785_v47 }
 0x234   : > { %10421 = vrot.lane.b32.xlu0 %v14920_v60, %s13452_s9  ;;  %v1893_v7 = vsel %vm1870_vm5, %v10194_v62, %v10198_v46  ;;  %v1892_v34 = vsel %vm1870_vm5, %v10193_v54, %v10194_v62  ;;  %v14940_v45 = vpack.i.bf16 %v10199_v6, %v1894_v17  ;;  %1476 = vmatprep.mubr.f32.mxu1 %v14922_v1  ;;  %v14945_v48 = vpop.permute.xlu1 %10206  ;;  %v19753_v54 = vld [vmem:[#allocation21_spill] sm:$0xff]  ;;  %v19755_v17 = vunpack.i.l.bf16 %v19754_v57  ;;  %v19760_v62 = vld [vmem:[#allocation83_spill] sm:$0xff]  ;;  %v14995_v60 = vld [vmem:[%s13637_s26 + $0x28] sm:$0xff] }
 0x235   : > { %8378 = vmatpush3.bf16.msra.mxu1 %v19747_v43  ;;  %v14950_v39 = vsel %vm347_vm0, %v9393_v58, %v9394_v33  ;;  %v14952_v22 = vpack.i.bf16 %v1893_v7, %v1892_v34  ;;  %19751 = vst [vmem:[#allocation106_spill] sm:$0xff] %v14958_v61  ;;  %v8383_v6 = vpack.c.bf16 %v14955_v28, %v14958_v61  ;;  %v14962_v46 = vpop.permute.xlu0 %10201  ;;  %v9404_v23 = vunpack.i.h.bf16 %v19753_v54  ;;  %v19757_v43 = vld [vmem:[#allocation24_spill] sm:$0xff]  ;;  %v19758_v57 = vld [vmem:[#allocation25_spill] sm:$0xff]  ;;  %v15119_v61 = vld [vmem:[%s13637_s26 + $0x120] sm:$0xff] }
 0x236   : > { %19748 = vst [vmem:[#allocation82_spill] sm:$0xff] %v14940_v45  ;;  %8380 = vmatprep.subr.bf16.mxu1 %v8379_v32  ;;  %v9403_v58 = vunpack.i.l.bf16 %v19753_v54  ;;  %10436 = vrot.lane.b32.xlu1 %v14940_v45, %s13452_s9  ;;  %v14974_v32 = vsel %vm347_vm0, %v9394_v33, %v19755_v17  ;;  %v9419_v7 = vunpack.i.h.bf16 %v13931_v44  ;;  %v14978_v34 = vsel %vm460_vm6, %v9413_v13, %v9414_v20  ;;  %v19759_v13 = vld [vmem:[#allocation84_spill] sm:$0xff]  ;;  %v19764_v33 = vld [vmem:[#allocation23_spill] sm:$0xff] }
 0x237   : > { %19749 = vst [vmem:[#allocation104_spill] sm:$0xff] %v14952_v22  ;;  %1477 = vmatmul.mubr.f32.gmra.mrb[14].mxu1 %v14943_v18  ;;  %v14986_v40 = vsel %vm460_vm6, %v9414_v20, %v19506_v55  ;;  %v9434_v17 = vunpack.i.h.bf16 %v19758_v57  ;;  %v19761_v45 = vpack.c.bf16 %v19759_v13, %v19760_v62  ;;  %19762 = vst [vmem:[#allocation21_spill] sm:$0xff] %v14995_v60  ;;  %v9424_v21 = vunpack.i.h.bf16 %v19764_v33  ;;  %v15008_v62 = vld [vmem:[%s13637_s26 + $0x58] sm:$0xff] }
 0x238   : > { %10431 = vrot.lane.b32.xlu0 %v14952_v22, %s13452_s9  ;;  %v13116_v22 = vld [vmem:[#allocation5 + $0x18] sm:$0xff]  ;;  %19763 = vst [vmem:[#allocation17_spill] sm:$0xff] %v14998_v29  ;;  %v8385_v20 = vpack.c.bf16 %v14995_v60, %v14998_v29  ;;  %v15002_v55 = vpop.permute.xlu1 %10216  ;;  %v9423_v54 = vunpack.i.l.bf16 %v19764_v33  ;;  %v9433_v37 = vunpack.i.l.bf16 %v19758_v57  ;;  %19765 = vst [vmem:[#allocation25_spill] sm:$0xff] %v15008_v62  ;;  %v15018_v26 = vsel %vm460_vm6, %v9403_v58, %v9404_v23 }
 0x239   : > { %8382 = vmatpush3.bf16.msra.mxu1 %v19761_v45  ;;  %1547 = vmatprep.mubr.f32.mxu1 %v13116_v22  ;;  %v15011_v45 = vld [vmem:[%s13637_s26 + $0x80] sm:$0xff]  ;;  %v15015_v13 = vpop.permute.xlu0 %10211  ;;  %v19768_v57 = vunpack.i.l.bf16 %v19752_v4  ;;  %v19770_v33 = vunpack.i.l.bf16 %v13931_v44  ;;  %v19775_v58 = vunpack.i.l.bf16 %v19757_v43  ;;  %v15116_v60 = vld [vmem:[%s13637_s26 + $0xf8] sm:$0xff]  ;;  %vm7295_vm4 = vcmask 523264  }
 0x23a   : > { %8384 = vmatprep.subr.bf16.mxu1 %v8383_v6  ;;  %19766 = vst [vmem:[#allocation84_spill] sm:$0xff] %v15011_v45  ;;  %v8387_v22 = vpack.c.bf16 %v15011_v45, %v15008_v62  ;;  %10446 = vrot.lane.b32.xlu1 %v19767_v12, %s13452_s9  ;;  %v9453_v45 = vunpack.i.l.bf16 %v19785_v47  ;;  %v19788_v62 = vld [vmem:[#allocation33_spill] sm:$0xff]  ;;  %v19797_v29 = vld [vmem:[#allocation70_spill] sm:$0xff] }
 0x23b   : > { %v15029_v24 = vsel %vm460_vm6, %v9404_v23, %v19768_v57  ;;  %v15041_v6 = vsel %vm460_vm6, %v19770_v33, %v9419_v7  ;;  %v19772_v23 = vld [vmem:[#allocation27_spill] sm:$0xff]  ;;  %v15058_v44 = vsel %vm460_vm6, %v9434_v17, %v19775_v58  ;;  %v15062_v7 = vsel %vm460_vm6, %v9423_v54, %v9424_v21  ;;  %v15068_v33 = vld [vmem:[%s13637_s26 + $0xa8] sm:$0xff]  ;;  %v19783_v54 = vld [vmem:[#allocation26_spill] sm:$0xff]  ;;  %19794 = vst [vmem:[#allocation33_spill] sm:$0xff] %v15116_v60 }
 0x23c   : > { %10441 = vrot.lane.b32.xlu0 %v19769_v14, %s13452_s9  ;;  %1548 = vmatmul.mubr.f32.vlgmr.msra.gmra.mrb[16].mxu1 %v14760_v16  ;;  %19771 = vst [vmem:[#allocation83_spill] sm:$0xff] %v15041_v6  ;;  %v9444_v57 = vunpack.i.h.bf16 %v19772_v23  ;;  %v9443_v52 = vunpack.i.l.bf16 %v19772_v23  ;;  %v15046_v14 = vld [vmem:[%s13637_s26 + $0x50] sm:$0xff]  ;;  %v15049_v16 = vld [vmem:[%s13637_s26 + $0x78] sm:$0xff]  ;;  %v15053_v15 = vpop.permute.xlu1 %10226  ;;  %19776 = vst [vmem:[#allocation67_spill] sm:$0xff] %v15058_v44  ;;  %v19781_v58 = vunpack.i.l.bf16 %v19756_v36  ;;  %v9473_v28 = vunpack.i.l.bf16 %v19788_v62 }
 0x23d   : > { %8386 = vmatpush1.bf16.msra.mxu1 %v8385_v20  ;;  %19773 = vst [vmem:[#allocation23_spill] sm:$0xff] %v15046_v14  ;;  %19774 = vst [vmem:[#allocation66_spill] sm:$0xff] %v15049_v16  ;;  %v8389_v12 = vpack.c.bf16 %v15049_v16, %v15046_v14  ;;  %1552 = vmatprep.mubr.f32.mxu1 %v14764_v5  ;;  %v15065_v20 = vsel %vm460_vm6, %v9433_v37, %v9434_v17  ;;  %v15071_v23 = vld [vmem:[%s13637_s26 + $0xd0] sm:$0xff]  ;;  %v15075_v9 = vpop.permute.xlu0 %10221  ;;  %v19784_v17 = vld [vmem:[#allocation28_spill] sm:$0xff]  ;;  %v9474_v14 = vunpack.i.h.bf16 %v19788_v62 }
 0x23e   : > { %19777 = vst [vmem:[#allocation27_spill] sm:$0xff] %v15062_v7  ;;  %19778 = vst [vmem:[#allocation107_spill] sm:$0xff] %v15065_v20  ;;  %8388 = vmatprep.subr.bf16.mxu1 %v8387_v22  ;;  %v8391_v50 = vpack.c.bf16 %v15071_v23, %v15068_v33  ;;  %v15080_v5 = vsel %vm460_vm6, %v9424_v21, %v19781_v58  ;;  %v19786_v16 = vld [vmem:[#allocation68_spill] sm:$0xff]  ;;  %v19789_v21 = vld [vmem:[#allocation69_spill] sm:$0xff]  ;;  %v15097_v47 = vsel %vm460_vm6, %v9443_v52, %v9444_v57 }
 0x23f   : > { %19779 = vst [vmem:[#allocation108_spill] sm:$0xff] %v15068_v33  ;;  %19780 = vst [vmem:[#allocation109_spill] sm:$0xff] %v15071_v23  ;;  %10456 = vrot.lane.b32.xlu1 %v19786_v16, %s13452_s9  ;;  %v19787_v23 = vld [vmem:[#allocation32_spill] sm:$0xff]  ;;  %v15100_v16 = vld [vmem:[%s13637_s26 + $0xa0] sm:$0xff]  ;;  %v15126_v58 = vsel %vm460_vm6, %v9453_v45, %v9454_v42  ;;  %v19799_v6 = vunpack.i.l.bf16 %v19784_v17  ;;  %v15144_v43 = vsel %vm460_vm6, %v9473_v28, %v9474_v14 }
 0x240   : > { %19782 = vst [vmem:[#allocation110_spill] sm:$0xff] %v15080_v5  ;;  %10451 = vrot.lane.b32.xlu0 %v19789_v21, %s13452_s9  ;;  %1553 = vmatmul.mubr.f32.gmra.mrb[18].mxu1 %v14787_v3  ;;  %19790 = vst [vmem:[#allocation29_spill] sm:$0xff] %v15100_v16  ;;  %v15103_v33 = vld [vmem:[%s13637_s26 + $0xc8] sm:$0xff]  ;;  %v15107_v21 = vpop.permute.xlu1 %10236  ;;  %v19793_v52 = vld [vmem:[#allocation37_spill] sm:$0xff] }
 0x241   : > { %8390 = vmatpush1.bf16.msra.mxu1 %v8389_v12  ;;  %19791 = vst [vmem:[#allocation68_spill] sm:$0xff] %v15103_v33  ;;  %v8393_v62 = vpack.c.bf16 %v15103_v33, %v15100_v16  ;;  %1557 = vmatprep.mubr.f32.mxu1 %v14791_v31  ;;  %v19792_v3 = vld [vmem:[#allocation36_spill] sm:$0xff]  ;;  %v9494_v37 = vunpack.i.h.bf16 %v19793_v52  ;;  %v9493_v12 = vunpack.i.l.bf16 %v19793_v52  ;;  %19795 = vst [vmem:[#allocation69_spill] sm:$0xff] %v15119_v61  ;;  %v15123_v16 = vpop.permute.xlu0 %10231  ;;  %v19796_v31 = vld [vmem:[#allocation30_spill] sm:$0xff] }
 0x242   : > { %8392 = vmatprep.subr.bf16.mxu1 %v8391_v50  ;;  %v8395_v33 = vpack.c.bf16 %v15119_v61, %v15116_v60  ;;  %v19798_v50 = vunpack.i.l.bf16 %v19783_v54  ;;  %v15139_v61 = vsel %vm460_vm6, %v9454_v42, %v19799_v6  ;;  %v19800_v60 = vld [vmem:[#allocation31_spill] sm:$0xff]  ;;  %v15161_v28 = vld [vmem:[%s13637_s26 + $0x118] sm:$0xff]  ;;  %v19812_v42 = vld [vmem:[#allocation72_spill] sm:$0xff] }
 0x243   : > { %10466 = vrot.lane.b32.xlu1 %v19797_v29, %s13452_s9  ;;  %v9464_v36 = vunpack.i.h.bf16 %v19800_v60  ;;  %v9463_v45 = vunpack.i.l.bf16 %v19800_v60  ;;  %v19801_v22 = vld [vmem:[#allocation71_spill] sm:$0xff]  ;;  %v19802_v29 = vunpack.i.l.bf16 %v19787_v23  ;;  %v15158_v60 = vld [vmem:[%s13637_s26 + $0xf0] sm:$0xff]  ;;  %19806 = vst [vmem:[#allocation70_spill] sm:$0xff] %v15161_v28 }
 0x244   : > { %v15134_v52 = vsel %vm460_vm6, %v9444_v57, %v19798_v50  ;;  %10461 = vrot.lane.b32.xlu0 %v19801_v22, %s13452_s9  ;;  %1558 = vmatmul.mubr.f32.gmra.mrb[20].mxu1 %v14811_v2  ;;  %v19803_v50 = vld [vmem:[#allocation34_spill] sm:$0xff]  ;;  %v19804_v6 = vld [vmem:[#allocation35_spill] sm:$0xff]  ;;  %19805 = vst [vmem:[#allocation37_spill] sm:$0xff] %v15158_v60  ;;  %v8397_v22 = vpack.c.bf16 %v15161_v28, %v15158_v60  ;;  %v15165_v2 = vpop.permute.xlu1 %10246  ;;  %v19810_v60 = vld [vmem:[#allocation40_spill] sm:$0xff] }
 0x245   : > { %v15152_v57 = vsel %vm460_vm6, %v9474_v14, %v19802_v29  ;;  %v9484_v54 = vunpack.i.h.bf16 %v19804_v6  ;;  %v9483_v17 = vunpack.i.l.bf16 %v19804_v6  ;;  %8394 = vmatpush1.bf16.msra.mxu1 %v8393_v62  ;;  %1562 = vmatprep.mubr.f32.mxu1 %v14815_v19  ;;  %v15169_v14 = vsel %vm573_vm7, %v9493_v12, %v9494_v37  ;;  %v19807_v29 = vld [vmem:[#allocation38_spill] sm:$0xff]  ;;  %v19808_v23 = vld [vmem:[#allocation39_spill] sm:$0xff]  ;;  %v15173_v62 = vpop.permute.xlu0 %10241  ;;  %v19811_v19 = vld [vmem:[#allocation41_spill] sm:$0xff] }
 0x246   : > { %v9504_v7 = vunpack.i.h.bf16 %v19808_v23  ;;  %8396 = vmatprep.subr.bf16.mxu1 %v8395_v33  ;;  %v19809_v6 = vunpack.i.l.bf16 %v19792_v3  ;;  %v9503_v28 = vunpack.i.l.bf16 %v19808_v23  ;;  %v19548_v4 = vunpack.i.l.bf16 %v19810_v60  ;;  %v19813_v44 = vld [vmem:[#allocation73_spill] sm:$0xff]  ;;  %v19823_v23 = vld [vmem:[#allocation44_spill] sm:$0xff] }
 0x247   : > { %v9514_v5 = vunpack.i.h.bf16 %v19811_v19  ;;  %v9513_v12 = vunpack.i.l.bf16 %v19811_v19  ;;  %10476 = vrot.lane.b32.xlu1 %v19812_v42, %s13452_s9  ;;  %v15187_v33 = vsel %vm460_vm6, %v9463_v45, %v9464_v36  ;;  %v19814_v45 = vunpack.i.l.bf16 %v19796_v31 }
 0x248   : > { %v15178_v20 = vsel %vm573_vm7, %v9494_v37, %v19809_v6  ;;  %10471 = vrot.lane.b32.xlu0 %v19813_v44, %s13452_s9  ;;  %1563 = vmatmul.mubr.f32.gmra.mrb[22].mxu1 %v14836_v38  ;;  %v15197_v6 = vsel %vm573_vm7, %v9483_v17, %v9484_v54  ;;  %v15199_v19 = vpop.permute.xlu1 %10256  ;;  %v19815_v44 = vunpack.i.l.bf16 %v19803_v50  ;;  %v19816_v38 = vpack.c.bf16 %v14630_v30, %v14625_v51  ;;  %v19819_v30 = vld [vmem:[#allocation74_spill] sm:$0xff] }
 0x249   : > { %8398 = vmatpush1.bf16.msra.mxu1 %v8397_v22  ;;  %v15204_v42 = vsel %vm460_vm6, %v9464_v36, %v19814_v45  ;;  %1567 = vmatprep.mubr.f32.mxu1 %v14840_v27  ;;  %v15215_v17 = vpop.permute.xlu0 %10251  ;;  %v15226_v27 = vsel %vm573_vm7, %v9503_v28, %v9504_v7  ;;  %v15229_v51 = vsel %vm573_vm7, %v9513_v12, %v9514_v5  ;;  %v19822_v28 = vld [vmem:[#allocation43_spill] sm:$0xff]  ;;  %v19826_v36 = vld [vmem:[#allocation85_spill] sm:$0xff]  ;;  %v10219_v50 = vunpack.i.h.bf16 %v15002_v55 }
 0x24a   : > { %v15209_v37 = vsel %vm573_vm7, %v9484_v54, %v19815_v44  ;;  %8400 = vmatprep.subr.bf16.mxu1 %v19816_v38  ;;  %19817 = vst [vmem:[#allocation31_spill] sm:$0xff] %v15226_v27  ;;  %19818 = vst [vmem:[#allocation71_spill] sm:$0xff] %v15229_v51  ;;  %v19820_v44 = vunpack.i.l.bf16 %v19807_v29  ;;  %v15241_v45 = vsel %vm573_vm7, %v9514_v5, %v19548_v4  ;;  %v19821_v54 = vld [vmem:[#allocation42_spill] sm:$0xff]  ;;  %v9524_v22 = vunpack.i.h.bf16 %v19822_v28  ;;  %v15340_v51 = vld [vmem:[#allocation5 + $0x8] sm:$0xff] }
 0x24b   : > { %10486 = vrot.lane.b32.xlu1 %v19819_v30, %s13452_s9  ;;  %v9523_v12 = vunpack.i.l.bf16 %v19822_v28  ;;  %v19824_v30 = vld [vmem:[#allocation75_spill] sm:$0xff]  ;;  %v10209_v5 = vunpack.i.h.bf16 %v14945_v48  ;;  %v10208_v4 = vunpack.i.l.bf16 %v14945_v48  ;;  %v19827_v60 = vpack.c.bf16 %v14616_v56, %v19826_v36 }
 0x24c   : > { %v15236_v38 = vsel %vm573_vm7, %v9504_v7, %v19820_v44  ;;  %10481 = vrot.lane.b32.xlu0 %v19824_v30, %s13452_s9  ;;  %1568 = vmatmul.mubr.f32.gmra.mrb[24].mxu1 %v14864_v59  ;;  %v19825_v7 = vld [vmem:[#allocation45_spill] sm:$0xff]  ;;  %v15257_v28 = vpop.permute.xlu1 %10266  ;;  %v10204_v30 = vunpack.i.h.bf16 %v14962_v46  ;;  %v10203_v59 = vunpack.i.l.bf16 %v14962_v46  ;;  %v19828_v3 = vpack.c.bf16 %v14666_v35, %v14661_v10 }
 0x24d   : > { %v9534_v44 = vunpack.i.h.bf16 %v19825_v7  ;;  %v9533_v29 = vunpack.i.l.bf16 %v19825_v7  ;;  %8402 = vmatpush1.bf16.msra.mxu1 %v19827_v60  ;;  %1572 = vmatprep.mubr.f32.mxu1 %v14868_v0  ;;  %v10218_v7 = vunpack.i.l.bf16 %v15002_v55  ;;  %v15267_v48 = vpop.permute.xlu0 %10261  ;;  %v10214_v56 = vunpack.i.h.bf16 %v15015_v13  ;;  %v19829_v0 = vld [vmem:[#allocation76_spill] sm:$0xff]  ;;  %v19830_v55 = vld [vmem:[#allocation77_spill] sm:$0xff] }
 0x24e   : > { %8404 = vmatprep.subr.bf16.mxu1 %v19828_v3  ;;  %v10213_v60 = vunpack.i.l.bf16 %v15015_v13  ;;  %v15276_v36 = vsel %vm573_vm7, %v9523_v12, %v9524_v22  ;;  %v10229_v35 = vunpack.i.h.bf16 %v15053_v15  ;;  %v10228_v10 = vunpack.i.l.bf16 %v15053_v15 }
 0x24f   : > { %10496 = vrot.lane.b32.xlu1 %v19829_v0, %s13452_s9  ;;  %v15286_v3 = vsel %vm573_vm7, %v9533_v29, %v9534_v44  ;;  %v19831_v0 = vpack.c.bf16 %v14655_v11, %v14693_v49  ;;  %v19833_v15 = vunpack.i.l.bf16 %v19823_v23  ;;  %v1962_v29 = vsel %vm1959_vm8, %v10208_v4, %v10209_v5 }
 0x250   : > { %10491 = vrot.lane.b32.xlu0 %v19830_v55, %s13452_s9  ;;  %1573 = vmatmul.mubr.f32.gmra.mrb[26].mxu1 %v14892_v63  ;;  %v15291_v12 = vpop.permute.xlu1 %10276  ;;  %v19832_v55 = vunpack.i.l.bf16 %v19821_v54  ;;  %v1961_v13 = vsel %vm1959_vm8, %v10204_v30, %v10208_v4  ;;  %v1960_v49 = vsel %vm1959_vm8, %v10203_v59, %v10204_v30  ;;  %v1965_v11 = vsel %vm1959_vm8, %v10218_v7, %v10219_v50  ;;  %v19835_v54 = vld [vmem:[#allocation89_spill] sm:$0xff]  ;;  %v19837_v30 = vld [vmem:[#allocation78_spill] sm:$0xff] }
 0x251   : > { %8406 = vmatpush1.bf16.msra.mxu1 %v19831_v0  ;;  %v15301_v63 = vsel %vm573_vm7, %v9534_v44, %v19833_v15  ;;  %1577 = vmatprep.mubr.f32.mxu1 %v14896_v8  ;;  %v19834_v0 = vld [vmem:[#allocation87_spill] sm:$0xff]  ;;  %v15317_v44 = vsel %vm1959_vm8, %v10213_v60, %v10214_v56  ;;  %v10224_v8 = vunpack.i.h.bf16 %v15075_v9  ;;  %v10223_v4 = vunpack.i.l.bf16 %v15075_v9  ;;  %v19839_v9 = vld [vmem:[#allocation86_spill] sm:$0xff] }
 0x252   : > { %v15296_v46 = vsel %vm573_vm7, %v9524_v22, %v19832_v55  ;;  %v19836_v31 = vpack.c.bf16 %v19834_v0, %v19835_v54  ;;  %v15311_v22 = vpop.permute.xlu0 %10271  ;;  %v15314_v55 = vsel %vm1959_vm8, %v10214_v56, %v10218_v7  ;;  %v1968_v59 = vsel %vm1959_vm8, %v10228_v10, %v10229_v35  ;;  %v19838_v54 = vld [vmem:[#allocation79_spill] sm:$0xff]  ;;  %v19840_v0 = vld [vmem:[#allocation88_spill] sm:$0xff] }
 0x253   : > { %10506 = vrot.lane.b32.xlu1 %v19837_v30, %s13452_s9  ;;  %v10238_v7 = vunpack.i.l.bf16 %v15107_v21  ;;  %v10234_v15 = vunpack.i.h.bf16 %v15123_v16  ;;  %v10525_v56 = vpack.i.bf16 %v10209_v5, %v1962_v29  ;;  %v10233_v60 = vunpack.i.l.bf16 %v15123_v16 }
 0x254   : > { %8408 = vmatprep.subr.bf16.mxu1 %v19836_v31  ;;  %10501 = vrot.lane.b32.xlu0 %v19838_v54, %s13452_s9  ;;  %v19841_v23 = vpack.c.bf16 %v19839_v9, %v19840_v0  ;;  %v10520_v30 = vpack.i.bf16 %v1961_v13, %v1960_v49  ;;  %v10287_v27 = vpop.permute.xlu1 %10286  ;;  %v10535_v54 = vpack.i.bf16 %v10219_v50, %v1965_v11  ;;  %v10249_v11 = vunpack.i.h.bf16 %v15165_v2 }
 0x255   : > { %1578 = vmatmul.mubr.f32.gmra.mrb[28].mxu1 %v14918_v41  ;;  %v19842_v31 = vpack.c.bf16 %v14974_v32, %v14728_v25  ;;  %v10530_v41 = vpack.i.bf16 %v15314_v55, %v15317_v44  ;;  %v10289_v5 = vunpack.i.h.bf16 %v10287_v27  ;;  %v10288_v29 = vunpack.i.l.bf16 %v10287_v27 }
 0x256   : > { %8410 = vmatpush1.bf16.msra.mxu1 %v19841_v23  ;;  %1582 = vmatprep.mubr.f32.mxu1 %v14922_v1  ;;  %v10282_v16 = vpop.permute.xlu0 %10281  ;;  %v15342_v9 = vpack.i.bf16 %v10229_v35, %v1968_v59  ;;  %v15345_v23 = vsel %vm1959_vm8, %v10224_v8, %v10228_v10  ;;  %v19843_v1 = vld [vmem:[#allocation80_spill] sm:$0xff]  ;;  %v15350_v25 = vsel %vm1959_vm8, %v10223_v4, %v10224_v8  ;;  %v19844_v32 = vunpack.i.h.bf16 %v15107_v21  ;;  %v19845_v35 = vld [vmem:[#allocation81_spill] sm:$0xff] }
 0x257   : > { %8412 = vmatprep.subr.bf16.mxu1 %v19842_v31  ;;  %10516 = vrot.lane.b32.xlu1 %v19843_v1, %s13452_s9  ;;  %v10284_v50 = vunpack.i.h.bf16 %v10282_v16  ;;  %v10283_v13 = vunpack.i.l.bf16 %v10282_v16  ;;  %v15356_v49 = vsel %vm1959_vm8, %v10234_v15, %v10238_v7  ;;  %v15362_v10 = vsel %vm1959_vm8, %v10233_v60, %v10234_v15 }
 0x258   : > { %v1971_v27 = vsel %vm1959_vm8, %v10238_v7, %v19844_v32  ;;  %10511 = vrot.lane.b32.xlu0 %v19845_v35, %s13452_s9  ;;  %v10248_v55 = vunpack.i.l.bf16 %v15165_v2  ;;  %v10244_v44 = vunpack.i.h.bf16 %v15173_v62  ;;  %v19846_v8 = vpack.c.bf16 %v14950_v39, %v14719_v53  ;;  %v10297_v4 = vpop.permute.xlu1 %10296  ;;  %v19849_v32 = vld [vmem:[#allocation67_spill] sm:$0xff]  ;;  %v19850_v35 = vld [vmem:[#allocation110_spill] sm:$0xff] }
 0x259   : > { %1583 = vmatmul.mubr.f32.gmra.mrb[30].mxu1 %v14943_v18  ;;  %v10243_v59 = vunpack.i.l.bf16 %v15173_v62  ;;  %v19847_v18 = vpack.c.bf16 %v14986_v40, %v15029_v24  ;;  %v15376_v31 = vsel %vm2256_vm9, %v10288_v29, %v10289_v5  ;;  %v10299_v7 = vunpack.i.h.bf16 %v10297_v4 }
 0x25a   : > { %8414 = vmatpush1.bf16.msra.mxu1 %v19846_v8  ;;  %1652 = vmatprep.mubr.f32.mxu1 %v15340_v51  ;;  %v10298_v15 = vunpack.i.l.bf16 %v10297_v4  ;;  %v10292_v60 = vpop.permute.xlu0 %10291  ;;  %v2258_v39 = vsel %vm2256_vm9, %v10284_v50, %v10288_v29  ;;  %v2257_v16 = vsel %vm2256_vm9, %v10283_v13, %v10284_v50  ;;  %v10259_v62 = vunpack.i.h.bf16 %v15199_v19 }
 0x25b   : > { %8416 = vmatprep.subr.bf16.mxu1 %v19847_v18  ;;  %10526 = vrot.lane.b32.xlu1 %v10525_v56, %s13452_s9  ;;  %v10294_v0 = vunpack.i.h.bf16 %v10292_v60  ;;  %v10293_v53 = vunpack.i.l.bf16 %v10292_v60  ;;  %v10258_v24 = vunpack.i.l.bf16 %v15199_v19  ;;  %v10254_v40 = vunpack.i.h.bf16 %v15215_v17 }
 0x25c   : > { %10521 = vrot.lane.b32.xlu0 %v10520_v30, %s13452_s9  ;;  %v15386_v5 = vsel %vm2256_vm9, %v10298_v15, %v10299_v7  ;;  %v10253_v1 = vunpack.i.l.bf16 %v15215_v17  ;;  %v19848_v56 = vpack.c.bf16 %v14978_v34, %v15018_v26  ;;  %v10307_v29 = vpop.permute.xlu1 %10306  ;;  %v19851_v8 = vpack.c.bf16 %v19849_v32, %v19850_v35 }
 0x25d   : > { %v2261_v50 = vsel %vm2256_vm9, %v10294_v0, %v10298_v15  ;;  %v2260_v30 = vsel %vm2256_vm9, %v10293_v53, %v10294_v0  ;;  %v8545_v13 = vpack.c.bf16 %v15386_v5, %v15376_v31  ;;  %v10309_v4 = vunpack.i.h.bf16 %v10307_v29 }
 0x25e   : > { %8418 = vmatpush1.bf16.msra.mxu1 %v19848_v56  ;;  %v10308_v18 = vunpack.i.l.bf16 %v10307_v29  ;;  %v10302_v7 = vpop.permute.xlu0 %10301  ;;  %v8479_v17 = vpack.c.bf16 %v2261_v50, %v2258_v39  ;;  %v8481_v60 = vpack.c.bf16 %v2260_v30, %v2257_v16  ;;  %v19852_v26 = vunpack.i.h.bf16 %v15107_v21  ;;  %v19855_v16 = vld [vmem:[#allocation27_spill] sm:$0xff] }
 0x25f   : > { %8420 = vmatprep.subr.bf16.mxu1 %v19851_v8  ;;  %10536 = vrot.lane.b32.xlu1 %v10535_v54, %s13452_s9  ;;  %v10540_v15 = vpack.i.bf16 %v15345_v23, %v15350_v25  ;;  %v10304_v0 = vunpack.i.h.bf16 %v10302_v7  ;;  %v10303_v53 = vunpack.i.l.bf16 %v10302_v7  ;;  %v1974_v56 = vsel %vm1959_vm8, %v10248_v55, %v10249_v11 }
 0x260   : > { %v10555_v34 = vpack.i.bf16 %v19852_v26, %v1971_v27  ;;  %v15408_v32 = vsel %vm1959_vm8, %v10244_v44, %v10248_v55  ;;  %10531 = vrot.lane.b32.xlu0 %v10530_v41, %s13452_s9  ;;  %v10550_v21 = vpack.i.bf16 %v15356_v49, %v15362_v10  ;;  %8480 = vmatprep.subr.bf16.mxu0 %v8479_v17  ;;  %v19853_v27 = vld [vmem:[#allocation20_spill] sm:$0xff]  ;;  %v19854_v55 = vld [vmem:[#allocation107_spill] sm:$0xff]  ;;  %v10317_v41 = vpop.permute.xlu1 %10316  ;;  %v10263_v7 = vunpack.i.l.bf16 %v15267_v48 }
 0x261   : > { %v9409_v54 = vunpack.i.h.bf16 %v19853_v27  ;;  %v15415_v39 = vsel %vm1959_vm8, %v10243_v59, %v10244_v44  ;;  %v1977_v23 = vsel %vm1959_vm8, %v10258_v24, %v10259_v62  ;;  %v15421_v25 = vsel %vm1959_vm8, %v10254_v40, %v10258_v24  ;;  %8482 = vmatpush1.bf16.msra.mxu0 %v8481_v60 }
 0x262   : > { %v19856_v29 = vpack.c.bf16 %v19854_v55, %v19855_v16  ;;  %v15427_v49 = vsel %vm1959_vm8, %v10253_v1, %v10254_v40  ;;  %v19857_v10 = vpack.c.bf16 %v15139_v61, %v15134_v52  ;;  %v15433_v44 = vsel %vm2256_vm9, %v10308_v18, %v10309_v4  ;;  %v10312_v24 = vpop.permute.xlu0 %10311 }
 0x263   : > { %v10319_v59 = vunpack.i.h.bf16 %v10317_v41  ;;  %v10318_v50 = vunpack.i.l.bf16 %v10317_v41  ;;  %10546 = vrot.lane.b32.xlu1 %v15342_v9, %s13452_s9  ;;  %v10314_v30 = vunpack.i.h.bf16 %v10312_v24  ;;  %v10313_v35 = vunpack.i.l.bf16 %v10312_v24 }
 0x264   : > { %8422 = vmatpush1.bf16.msra.mxu1 %v19856_v29  ;;  %v2264_v8 = vsel %vm2256_vm9, %v10304_v0, %v10308_v18  ;;  %v2263_v40 = vsel %vm2256_vm9, %v10303_v53, %v10304_v0  ;;  %v10269_v1 = vunpack.i.h.bf16 %v15257_v28  ;;  %v10268_v61 = vunpack.i.l.bf16 %v15257_v28  ;;  %10541 = vrot.lane.b32.xlu0 %v10540_v15, %s13452_s9  ;;  %v10327_v18 = vpop.permute.xlu1 %10326  ;;  %v19860_v29 = vld [vmem:[#allocation46_spill] sm:$0xff] }
 0x265   : > { %8424 = vmatprep.subr.bf16.mxu1 %v19857_v10  ;;  %v10264_v52 = vunpack.i.h.bf16 %v15267_v48  ;;  %v15444_v4 = vsel %vm2256_vm9, %v10318_v50, %v10319_v59  ;;  %v19858_v9 = vpack.c.bf16 %v15126_v58, %v15097_v47  ;;  %v2267_v17 = vsel %vm2256_vm9, %v10314_v30, %v10318_v50  ;;  %v19861_v47 = vld [vmem:[#allocation47_spill] sm:$0xff]  ;;  %v19862_v50 = vld [vmem:[#allocation48_spill] sm:$0xff] }
 0x266   : > { %v2266_v60 = vsel %vm2256_vm9, %v10313_v35, %v10314_v30  ;;  %v8549_v26 = vpack.c.bf16 %v15444_v4, %v15433_v44  ;;  %v19859_v15 = vpack.c.bf16 %v15152_v57, %v15204_v42  ;;  %v10329_v0 = vunpack.i.h.bf16 %v10327_v18  ;;  %v10322_v55 = vpop.permute.xlu0 %10321  ;;  %v19863_v35 = vld [vmem:[#allocation49_spill] sm:$0xff] }
 0x267   : > { %v10328_v53 = vunpack.i.l.bf16 %v10327_v18  ;;  %v8483_v48 = vpack.c.bf16 %v2267_v17, %v2264_v8  ;;  %v8485_v16 = vpack.c.bf16 %v2266_v60, %v2263_v40  ;;  %v9548_v58 = vunpack.i.l.bf16 %v19860_v29  ;;  %10556 = vrot.lane.b32.xlu1 %v10555_v34, %s13452_s9 }
 0x268   : > { %8426 = vmatpush1.bf16.msra.mxu1 %v19858_v9  ;;  %v9544_v41 = vunpack.i.h.bf16 %v19861_v47  ;;  %v10324_v10 = vunpack.i.h.bf16 %v10322_v55  ;;  %v10323_v59 = vunpack.i.l.bf16 %v10322_v55  ;;  %v9558_v24 = vunpack.i.l.bf16 %v19862_v50  ;;  %10551 = vrot.lane.b32.xlu0 %v10550_v21, %s13452_s9 }
 0x269   : > { %8428 = vmatprep.subr.bf16.mxu1 %v19859_v15  ;;  %v10565_v30 = vpack.i.bf16 %v10249_v11, %v1974_v56  ;;  %v10575_v57 = vpack.i.bf16 %v10259_v62, %v1977_v23  ;;  %v10560_v42 = vpack.i.bf16 %v15408_v32, %v15415_v39  ;;  %8484 = vmatprep.subr.bf16.mxu0 %v8483_v48  ;;  %v9554_v8 = vunpack.i.h.bf16 %v19863_v35  ;;  %v10337_v11 = vpop.permute.xlu1 %10336 }
 0x26a   : > { %v1980_v34 = vsel %vm1959_vm8, %v10268_v61, %v10269_v1  ;;  %v15473_v40 = vsel %vm1959_vm8, %v10264_v52, %v10268_v61  ;;  %v19864_v2 = vpack.c.bf16 %v15144_v43, %v15187_v33  ;;  %v10570_v19 = vpack.i.bf16 %v15421_v25, %v15427_v49  ;;  %8486 = vmatpush1.bf16.msra.mxu0 %v8485_v16  ;;  %v10332_v23 = vpop.permute.xlu0 %10331 }
 0x26b   : > { %v1978_v62 = vsel %vm1959_vm8, %v10263_v7, %v10264_v52  ;;  %v19865_v56 = vpack.c.bf16 %v15178_v20, %v15209_v37  ;;  %v15485_v32 = vsel %vm2256_vm9, %v10328_v53, %v10329_v0  ;;  %v10339_v21 = vunpack.i.h.bf16 %v10337_v11  ;;  %10566 = vrot.lane.b32.xlu1 %v10565_v30, %s13452_s9 }
 0x26c   : > { %8430 = vmatpush1.bf16.msra.mxu1 %v19864_v2  ;;  %v10338_v39 = vunpack.i.l.bf16 %v10337_v11  ;;  %v10334_v43 = vunpack.i.h.bf16 %v10332_v23  ;;  %v10333_v33 = vunpack.i.l.bf16 %v10332_v23  ;;  %v2270_v25 = vsel %vm2256_vm9, %v10324_v10, %v10328_v53  ;;  %10561 = vrot.lane.b32.xlu0 %v10560_v42, %s13452_s9 }
 0x26d   : > { %8432 = vmatprep.subr.bf16.mxu1 %v19865_v56  ;;  %v2269_v49 = vsel %vm2256_vm9, %v10323_v59, %v10324_v10  ;;  %v10279_v61 = vunpack.i.h.bf16 %v15291_v12  ;;  %v10278_v52 = vunpack.i.l.bf16 %v15291_v12  ;;  %v10274_v20 = vunpack.i.h.bf16 %v15311_v22  ;;  %v10347_v18 = vpop.permute.xlu1 %10346 }
 0x26e   : > { %v15495_v37 = vsel %vm2256_vm9, %v10338_v39, %v10339_v21  ;;  %v10273_v7 = vunpack.i.l.bf16 %v15311_v22  ;;  %v19866_v9 = vpack.c.bf16 %v15169_v14, %v15197_v6  ;;  %v2273_v17 = vsel %vm2256_vm9, %v10334_v43, %v10338_v39  ;;  %v10342_v55 = vpop.permute.xlu0 %10341 }
 0x26f   : > { %v2272_v60 = vsel %vm2256_vm9, %v10333_v33, %v10334_v43  ;;  %v8553_v12 = vpack.c.bf16 %v15495_v37, %v15485_v32  ;;  %v19867_v15 = vpack.c.bf16 %v15241_v45, %v15236_v38  ;;  %v10349_v0 = vunpack.i.h.bf16 %v10347_v18  ;;  %10576 = vrot.lane.b32.xlu1 %v10575_v57, %s13452_s9 }
 0x270   : > { %8434 = vmatpush1.bf16.msra.mxu1 %v19866_v9  ;;  %v10348_v53 = vunpack.i.l.bf16 %v10347_v18  ;;  %v8487_v22 = vpack.c.bf16 %v2273_v17, %v2270_v25  ;;  %v8489_v48 = vpack.c.bf16 %v2272_v60, %v2269_v49  ;;  %v8439_v14 = vpack.c.bf16 %v15301_v63, %v15296_v46  ;;  %10571 = vrot.lane.b32.xlu0 %v10570_v19, %s13452_s9  ;;  %v19868_v63 = vld [vmem:[#allocation71_spill] sm:$0xff]  ;;  %v19872_v60 = vld [vmem:[#allocation22_spill] sm:$0xff] }
 0x271   : > { %8436 = vmatprep.subr.bf16.mxu1 %v19867_v15  ;;  %v8441_v6 = vpack.c.bf16 %v15286_v3, %v15276_v36  ;;  %v10344_v16 = vunpack.i.h.bf16 %v10342_v55  ;;  %v10343_v10 = vunpack.i.l.bf16 %v10342_v55  ;;  %v9553_v59 = vunpack.i.l.bf16 %v19863_v35  ;;  %v10357_v42 = vpop.permute.xlu1 %10356  ;;  %v13131_v55 = vld [vmem:[%s13637_s26 + $0x10] sm:$0xff] }
 0x272   : > { %v10585_v45 = vpack.i.bf16 %v10269_v1, %v1980_v34  ;;  %v593_v38 = vsel %vm573_vm7, %v9544_v41, %v9548_v58  ;;  %v596_v46 = vsel %vm573_vm7, %v9554_v8, %v9558_v24  ;;  %8488 = vmatprep.subr.bf16.mxu0 %v8487_v22  ;;  %v9543_v36 = vunpack.i.l.bf16 %v19861_v47  ;;  %v19869_v1 = vld [vmem:[#allocation31_spill] sm:$0xff]  ;;  %v10352_v56 = vpop.permute.xlu0 %10351  ;;  %v13132_v47 = vld [vmem:[%s13637_s26 + $0x18] sm:$0xff] }
 0x273   : > { %v1983_v28 = vsel %vm1959_vm8, %v10278_v52, %v10279_v61  ;;  %v1982_v3 = vsel %vm1959_vm8, %v10274_v20, %v10278_v52  ;;  %v19870_v30 = vpack.c.bf16 %v19868_v63, %v19869_v1  ;;  %v10580_v57 = vpack.i.bf16 %v15473_v40, %v1978_v62  ;;  %8490 = vmatpush1.bf16.msra.mxu0 %v8489_v48  ;;  %v19871_v40 = vld [vmem:[#allocation24_spill] sm:$0xff] }
 0x274   : > { %v1981_v34 = vsel %vm1959_vm8, %v10273_v7, %v10274_v20  ;;  %v15536_v2 = vsel %vm2256_vm9, %v10348_v53, %v10349_v0  ;;  %v10359_v19 = vunpack.i.h.bf16 %v10357_v42  ;;  %v10358_v11 = vunpack.i.l.bf16 %v10357_v42  ;;  %10586 = vrot.lane.b32.xlu1 %v10585_v45, %s13452_s9  ;;  %v15572_v45 = vld [vmem:[#allocation5] sm:$0xff] }
 0x275   : > { %8438 = vmatpush1.bf16.msra.mxu1 %v19870_v30  ;;  %v10354_v21 = vunpack.i.h.bf16 %v10352_v56  ;;  %v10353_v39 = vunpack.i.l.bf16 %v10352_v56  ;;  %v2276_v23 = vsel %vm2256_vm9, %v10344_v16, %v10348_v53  ;;  %v2275_v43 = vsel %vm2256_vm9, %v10343_v10, %v10344_v16  ;;  %10581 = vrot.lane.b32.xlu0 %v10580_v57, %s13452_s9  ;;  %v19877_v10 = vld [vmem:[#allocation28_spill] sm:$0xff]  ;;  %v13134_v30 = vld [vmem:[%s13637_s26 + $0x40] sm:$0xff] }
 0x276   : > { %8440 = vmatprep.subr.bf16.mxu1 %v8439_v14  ;;  %v9439_v62 = vunpack.i.h.bf16 %v19871_v40  ;;  %v595_v33 = vsel %vm573_vm7, %v9553_v59, %v9554_v8  ;;  %v8443_v25 = vpack.c.bf16 %v596_v46, %v593_v38  ;;  %v15547_v49 = vsel %vm2256_vm9, %v10358_v11, %v10359_v19  ;;  %v19875_v14 = vld [vmem:[#allocation17_spill] sm:$0xff]  ;;  %v19883_v56 = vld [vmem:[#allocation32_spill] sm:$0xff] }
 0x277   : > { %v10595_v52 = vpack.i.bf16 %v10279_v61, %v1983_v28  ;;  %v2279_v20 = vsel %vm2256_vm9, %v10354_v21, %v10358_v11  ;;  %v2278_v7 = vsel %vm2256_vm9, %v10353_v39, %v10354_v21  ;;  %v8557_v9 = vpack.c.bf16 %v15547_v49, %v15536_v2  ;;  %v19879_v28 = vld [vmem:[#allocation26_spill] sm:$0xff]  ;;  %v19882_v19 = vld [vmem:[#allocation105_spill] sm:$0xff]  ;;  %v13135_v39 = vld [vmem:[%s13637_s26 + $0x60] sm:$0xff] }
 0x278   : > { %v592_v35 = vsel %vm573_vm7, %v9543_v36, %v9544_v41  ;;  %v10590_v8 = vpack.i.bf16 %v1982_v3, %v1981_v34  ;;  %v8491_v18 = vpack.c.bf16 %v2279_v20, %v2276_v23  ;;  %v8493_v17 = vpack.c.bf16 %v2278_v7, %v2275_v43  ;;  %v19874_v41 = vld [vmem:[#allocation83_spill] sm:$0xff]  ;;  %v15578_v36 = vld [vmem:[#allocation5 + $0x90] sm:$0xff]  ;;  %v13136_v23 = vld [vmem:[%s13637_s26 + $0x88] sm:$0xff] }
 0x279   : > { %8442 = vmatpush1.bf16.msra.mxu1 %v8441_v6  ;;  %v9429_v15 = vunpack.i.h.bf16 %v19872_v60  ;;  %10596 = vrot.lane.b32.xlu1 %v10595_v52, %s13452_s9  ;;  %v8445_v61 = vpack.c.bf16 %v595_v33, %v592_v35  ;;  %v19873_v0 = vunpack.i.l.bf16 %v19853_v27  ;;  %v15565_v22 = vpack.i.bf16 %v13132_v47, %v13131_v55  ;;  %v19876_v6 = vld [vmem:[#allocation106_spill] sm:$0xff]  ;;  %v19881_v34 = vld [vmem:[#allocation21_spill] sm:$0xff]  ;;  %v15600_v33 = vld [vmem:[#allocation5 + $0x88] sm:$0xff] }
 0x27a   : > { %8444 = vmatprep.subr.bf16.mxu1 %v8443_v25  ;;  %10591 = vrot.lane.b32.xlu0 %v10590_v8, %s13452_s9  ;;  %v10600_v16 = vpack.i.bf16 %v19876_v6, %v19875_v14  ;;  %v9459_v59 = vunpack.i.h.bf16 %v19877_v10  ;;  %v13133_v27 = vld [vmem:[%s13637_s26 + $0x38] sm:$0xff]  ;;  %v19878_v38 = vunpack.i.l.bf16 %v19871_v40  ;;  %v9449_v3 = vunpack.i.h.bf16 %v19879_v28  ;;  %v13137_v8 = vld [vmem:[%s13637_s26 + $0x68] sm:$0xff] }
 0x27b   : > { %v463_v53 = vsel %vm460_vm6, %v19873_v0, %v9409_v54  ;;  %8492 = vmatprep.subr.bf16.mxu0 %v8491_v18  ;;  %v8449_v54 = vpack.c.bf16 %v13133_v27, %v13131_v55  ;;  %v19880_v63 = vunpack.i.l.bf16 %v19872_v60  ;;  %v15587_v57 = vpack.i.bf16 %v13134_v30, %v13133_v27  ;;  %v15602_v25 = vld [vmem:[#allocation5 + $0x118] sm:$0xff]  ;;  %v19887_v60 = vld [vmem:[#allocation23_spill] sm:$0xff]  ;;  %v19889_v0 = vld [vmem:[#allocation36_spill] sm:$0xff] }
 0x27c   : > { %v8447_v48 = vpack.c.bf16 %v19874_v41, %v463_v53  ;;  %v472_v46 = vsel %vm460_vm6, %v19878_v38, %v9439_v62  ;;  %8494 = vmatpush1.bf16.msra.mxu0 %v8493_v17  ;;  %v10610_v11 = vpack.i.bf16 %v19882_v19, %v19881_v34  ;;  %v9479_v21 = vunpack.i.h.bf16 %v19883_v56  ;;  %v19885_v52 = vld [vmem:[#allocation30_spill] sm:$0xff]  ;;  %v13138_v55 = vld [vmem:[%s13637_s26 + $0xb0] sm:$0xff]  ;;  %v13141_v19 = vld [vmem:[%s13637_s26 + $0x100] sm:$0xff] }
 0x27d   : > { %8446 = vmatpush1.bf16.msra.mxu1 %v8445_v61  ;;  %10606 = vrot.lane.b32.xlu1 %v15565_v22, %s13453_s21  ;;  %v469_v1 = vsel %vm460_vm6, %v19880_v63, %v9429_v15  ;;  %v8453_v43 = vpack.c.bf16 %v13136_v23, %v13135_v39  ;;  %v19884_v40 = vunpack.i.l.bf16 %v19877_v10  ;;  %v9469_v20 = vunpack.i.h.bf16 %v19885_v52  ;;  %v19888_v15 = vld [vmem:[#allocation25_spill] sm:$0xff]  ;;  %v13139_v47 = vld [vmem:[%s13637_s26 + $0xd8] sm:$0xff]  ;;  %v15626_v10 = vld [vmem:[#allocation5 + $0x1a0] sm:$0xff] }
 0x27e   : > { %8448 = vmatprep.subr.bf16.mxu1 %v8447_v48  ;;  %10601 = vrot.lane.b32.xlu0 %v10600_v16, %s13453_s21  ;;  %v8451_v42 = vpack.c.bf16 %v472_v46, %v469_v1  ;;  %v19886_v7 = vunpack.i.l.bf16 %v19879_v28  ;;  %v15611_v18 = vpack.i.bf16 %v13137_v8, %v13135_v39  ;;  %v10620_v61 = vpack.i.bf16 %v19888_v15, %v19887_v60  ;;  %v15624_v16 = vld [vmem:[#allocation5 + $0x110] sm:$0xff]  ;;  %v19893_v63 = vld [vmem:[#allocation66_spill] sm:$0xff]  ;;  %v19894_v1 = vld [vmem:[#allocation84_spill] sm:$0xff] }
 0x27f   : > { %v478_v62 = vsel %vm460_vm6, %v19884_v40, %v9459_v59  ;;  %v9499_v53 = vunpack.i.h.bf16 %v19889_v0  ;;  %v8457_v41 = vpack.c.bf16 %v13139_v47, %v13138_v55  ;;  %v19890_v48 = vunpack.i.l.bf16 %v19883_v56  ;;  %v19891_v59 = vld [vmem:[#allocation34_spill] sm:$0xff]  ;;  %v13140_v46 = vld [vmem:[%s13637_s26 + $0x90] sm:$0xff]  ;;  %v19900_v60 = vld [vmem:[#allocation108_spill] sm:$0xff] }
 0x280   : > { %1653 = vmatmul.mubr.f32.vlgmr.msra.gmra.mrb[0].mxu1 %v15572_v45  ;;  %v475_v35 = vsel %vm460_vm6, %v19886_v7, %v9449_v3  ;;  %v9489_v27 = vunpack.i.h.bf16 %v19891_v59  ;;  %v15635_v28 = vpack.i.bf16 %v13140_v46, %v13136_v23  ;;  %v10630_v30 = vpack.i.bf16 %v19894_v1, %v19893_v63  ;;  %v15651_v23 = vld [vmem:[#allocation5 + $0x198] sm:$0xff]  ;;  %v13144_v46 = vld [vmem:[%s13637_s26 + $0xe0] sm:$0xff]  ;;  %v19905_v1 = vld [vmem:[#allocation68_spill] sm:$0xff] }
 0x281   : > { %8450 = vmatpush3.bf16.msra.mxu1 %v8449_v54  ;;  %1658 = vmatprep.mubr.f32.mxu1 %v15578_v36  ;;  %v8455_v17 = vpack.c.bf16 %v478_v62, %v475_v35  ;;  %v484_v6 = vsel %vm460_vm6, %v19890_v48, %v9479_v21  ;;  %v19892_v54 = vunpack.i.l.bf16 %v19885_v52  ;;  %v19896_v21 = vunpack.i.l.bf16 %v19889_v0  ;;  %v19897_v40 = vld [vmem:[#allocation38_spill] sm:$0xff] }
 0x282   : > { %8452 = vmatprep.subr.bf16.mxu1 %v8451_v42  ;;  %10616 = vrot.lane.b32.xlu1 %v15587_v57, %s13453_s21  ;;  %v19895_v42 = vld [vmem:[#allocation40_spill] sm:$0xff]  ;;  %v9509_v62 = vunpack.i.h.bf16 %v19897_v40  ;;  %v19898_v52 = vunpack.i.l.bf16 %v19891_v59  ;;  %v13143_v7 = vld [vmem:[%s13637_s26 + $0xb8] sm:$0xff]  ;;  %v15676_v59 = vld [vmem:[#allocation5 + $0x2b0] sm:$0xff] }
 0x283   : > { %10611 = vrot.lane.b32.xlu0 %v10610_v11, %s13453_s21  ;;  %v481_v38 = vsel %vm460_vm6, %v19892_v54, %v9469_v20  ;;  %v9519_v34 = vunpack.i.h.bf16 %v19895_v42  ;;  %v15644_v11 = vld [vmem:[%s13637_s26 + $0x128] sm:$0xff]  ;;  %v579_v39 = vsel %vm573_vm7, %v19896_v21, %v9499_v53  ;;  %v15662_v35 = vpack.i.bf16 %v13143_v7, %v13138_v55  ;;  %v15673_v55 = vld [vmem:[#allocation5 + $0x220] sm:$0xff]  ;;  %v19903_v48 = vld [vmem:[#allocation42_spill] sm:$0xff] }
 0x284   : > { %1659 = vmatmul.mubr.f32.gmra.mrb[2].mxu1 %v15600_v33  ;;  %v8459_v3 = vpack.c.bf16 %v484_v6, %v481_v38  ;;  %v8461_v56 = vpack.c.bf16 %v15644_v11, %v13141_v19  ;;  %v576_v20 = vsel %vm573_vm7, %v19898_v52, %v9489_v27  ;;  %v19902_v53 = vunpack.i.l.bf16 %v19895_v42  ;;  %v19908_v21 = vld [vmem:[#allocation12_spill] sm:$0xff] }
 0x285   : > { %8454 = vmatpush3.bf16.msra.mxu1 %v8453_v43  ;;  %1664 = vmatprep.mubr.f32.mxu1 %v15602_v25  ;;  %v15653_v43 = vld [vmem:[#allocation5 + $0x228] sm:$0xff]  ;;  %v8463_v8 = vpack.c.bf16 %v579_v39, %v576_v20  ;;  %v9529_v6 = vunpack.i.h.bf16 %v19903_v48  ;;  %v9559_v27 = vunpack.i.h.bf16 %v19862_v50  ;;  %v19904_v54 = vunpack.i.l.bf16 %v19897_v40 }
 0x286   : > { %8456 = vmatprep.subr.bf16.mxu1 %v8455_v17  ;;  %10626 = vrot.lane.b32.xlu1 %v15611_v18, %s13453_s21  ;;  %v19899_v17 = vld [vmem:[#allocation29_spill] sm:$0xff]  ;;  %v15699_v52 = vld [vmem:[#allocation5 + $0x2a8] sm:$0xff]  ;;  %v19911_v7 = vunpack.i.l.bf16 %v19903_v48 }
 0x287   : > { %10621 = vrot.lane.b32.xlu0 %v10620_v61, %s13453_s21  ;;  %v10640_v15 = vpack.i.bf16 %v19900_v60, %v19899_v17  ;;  %v19901_v61 = vld [vmem:[#allocation44_spill] sm:$0xff]  ;;  %v582_v38 = vsel %vm573_vm7, %v19904_v54, %v9509_v62  ;;  %v15704_v17 = vld [vmem:[#allocation5 + $0x338] sm:$0xff] }
 0x288   : > { %1665 = vmatmul.mubr.f32.gmra.mrb[4].mxu1 %v15624_v16  ;;  %v9539_v0 = vunpack.i.h.bf16 %v19901_v61  ;;  %v19910_v62 = vunpack.i.l.bf16 %v19901_v61  ;;  %v13145_v61 = vld [vmem:[%s13637_s26 + $0x108] sm:$0xff] }
 0x289   : > { %8458 = vmatpush3.bf16.msra.mxu1 %v8457_v41  ;;  %1670 = vmatprep.mubr.f32.mxu1 %v15626_v10  ;;  %v585_v41 = vsel %vm573_vm7, %v19902_v53, %v9519_v34  ;;  %v9549_v34 = vunpack.i.h.bf16 %v19860_v29  ;;  %v15709_v53 = vpack.i.bf16 %v13145_v61, %v13141_v19 }
 0x28a   : > { %8460 = vmatprep.subr.bf16.mxu1 %v8459_v3  ;;  %10636 = vrot.lane.b32.xlu1 %v15635_v28, %s13453_s21  ;;  %v15685_v3 = vpack.i.bf16 %v13144_v46, %v13139_v47  ;;  %v8467_v63 = vpack.c.bf16 %v585_v41, %v582_v38  ;;  %v591_v47 = vsel %vm573_vm7, %v19910_v62, %v9539_v0  ;;  %v19913_v38 = vld [vmem:[#allocation33_spill] sm:$0xff]  ;;  %v15731_v62 = vld [vmem:[#allocation5 + $0x3c0] sm:$0xff] }
 0x28b   : > { %10631 = vrot.lane.b32.xlu0 %v10630_v30, %s13453_s21  ;;  %v19906_v30 = vld [vmem:[#allocation109_spill] sm:$0xff]  ;;  %v597_v0 = vsel %vm573_vm7, %v9558_v24, %v9559_v27  ;;  %v594_v50 = vsel %vm573_vm7, %v9548_v58, %v9549_v34  ;;  %v19917_v34 = vld [vmem:[#allocation70_spill] sm:$0xff] }
 0x28c   : > { %1671 = vmatmul.mubr.f32.gmra.mrb[6].mxu1 %v15651_v23  ;;  %v10650_v42 = vpack.i.bf16 %v19906_v30, %v19905_v1  ;;  %v10367_v40 = vpop.permute.xlu1 %10366  ;;  %v19915_v1 = vld [vmem:[#allocation13_spill] sm:$0xff] }
 0x28d   : > { %8462 = vmatpush3.bf16.msra.mxu1 %v8461_v56  ;;  %1676 = vmatprep.mubr.f32.mxu1 %v15653_v43  ;;  %v19907_v56 = vld [vmem:[#allocation11_spill] sm:$0xff]  ;;  %v10362_v20 = vpop.permute.xlu0 %10361  ;;  %v10369_v60 = vunpack.i.h.bf16 %v10367_v40  ;;  %v15725_v24 = vld [vmem:[#allocation5 + $0x330] sm:$0xff] }
 0x28e   : > { %8464 = vmatprep.subr.bf16.mxu1 %v8463_v8  ;;  %10646 = vrot.lane.b32.xlu1 %v15662_v35, %s13453_s21  ;;  %v19909_v39 = vpack.c.bf16 %v19907_v56, %v19908_v21  ;;  %v588_v8 = vsel %vm573_vm7, %v19911_v7, %v9529_v6  ;;  %v10364_v41 = vunpack.i.h.bf16 %v10362_v20  ;;  %v10363_v54 = vunpack.i.l.bf16 %v10362_v20  ;;  %v19912_v6 = vld [vmem:[#allocation37_spill] sm:$0xff] }
 0x28f   : > { %10641 = vrot.lane.b32.xlu0 %v10640_v15, %s13453_s21  ;;  %v10368_v15 = vunpack.i.l.bf16 %v10367_v40  ;;  %v8471_v48 = vpack.c.bf16 %v591_v47, %v588_v8  ;;  %v10660_v46 = vpack.i.bf16 %v19913_v38, %v19912_v6  ;;  %v8475_v21 = vpack.c.bf16 %v597_v0, %v594_v50  ;;  %v19918_v20 = vld [vmem:[#allocation69_spill] sm:$0xff]  ;;  %v19920_v0 = vld [vmem:[#allocation15_spill] sm:$0xff] }
 0x290   : > { %1677 = vmatmul.mubr.f32.gmra.mrb[8].mxu1 %v15673_v55  ;;  %v10377_v19 = vpop.permute.xlu1 %10376  ;;  %v10670_v7 = vpack.i.bf16 %v19918_v20, %v19917_v34  ;;  %v2281_v61 = vsel %vm2256_vm9, %v10363_v54, %v10364_v41 }
 0x291   : > { %8466 = vmatpush3.bf16.msra.mxu1 %v19909_v39  ;;  %1682 = vmatprep.mubr.f32.mxu1 %v15676_v59  ;;  %v10379_v27 = vunpack.i.h.bf16 %v10377_v19  ;;  %v13146_v39 = vld [vmem:[%s13637_s26 + $0x130] sm:$0xff]  ;;  %v15734_v47 = vsel %vm2256_vm9, %v10368_v15, %v10369_v60  ;;  %v19919_v60 = vld [vmem:[#allocation16_spill] sm:$0xff] }
 0x292   : > { %8468 = vmatprep.subr.bf16.mxu1 %v8467_v63  ;;  %10656 = vrot.lane.b32.xlu1 %v15685_v3, %s13453_s21  ;;  %v19914_v63 = vld [vmem:[#allocation14_spill] sm:$0xff]  ;;  %v10372_v56 = vpop.permute.xlu0 %10371  ;;  %v15729_v40 = vpack.i.bf16 %v13146_v39, %v15644_v11  ;;  %v2282_v11 = vsel %vm2256_vm9, %v10364_v41, %v10368_v15 }
 0x293   : > { %10651 = vrot.lane.b32.xlu0 %v10650_v42, %s13453_s21  ;;  %v19916_v30 = vpack.c.bf16 %v19914_v63, %v19915_v1  ;;  %v10378_v42 = vunpack.i.l.bf16 %v10377_v19  ;;  %v10374_v29 = vunpack.i.h.bf16 %v10372_v56  ;;  %v10373_v58 = vunpack.i.l.bf16 %v10372_v56  ;;  %v15757_v1 = vld [vmem:[#allocation5 + $0x3b8] sm:$0xff] }
 0x294   : > { %1683 = vmatmul.mubr.f32.gmra.mrb[10].mxu1 %v15699_v52  ;;  %v10387_v6 = vpop.permute.xlu1 %10386  ;;  %v19923_v39 = vld [vmem:[#allocation18_spill] sm:$0xff] }
 0x295   : > { %8470 = vmatpush3.bf16.msra.mxu1 %v19916_v30  ;;  %1688 = vmatprep.mubr.f32.mxu1 %v15704_v17  ;;  %v15741_v8 = vsel %vm2256_vm9, %v10378_v42, %v10379_v27  ;;  %v2285_v38 = vsel %vm2256_vm9, %v10374_v29, %v10378_v42  ;;  %v2284_v63 = vsel %vm2256_vm9, %v10373_v58, %v10374_v29  ;;  %v10389_v30 = vunpack.i.h.bf16 %v10387_v6  ;;  %v15761_v27 = vld [vmem:[%s13637_s26 + $0x8] sm:$0xff] }
 0x296   : > { %8472 = vmatprep.subr.bf16.mxu1 %v8471_v48  ;;  %10666 = vrot.lane.b32.xlu1 %v15709_v53, %s13453_s21  ;;  %v19921_v48 = vpack.c.bf16 %v19919_v60, %v19920_v0  ;;  %v10382_v15 = vpop.permute.xlu0 %10381  ;;  %v8495_v41 = vpack.c.bf16 %v2285_v38, %v2282_v11  ;;  %v8497_v54 = vpack.c.bf16 %v2284_v63, %v2281_v61  ;;  %v10388_v19 = vunpack.i.l.bf16 %v10387_v6  ;;  %v13148_v0 = vld [vmem:[%s13637_s26 + $0x28] sm:$0xff] }
 0x297   : > { %10661 = vrot.lane.b32.xlu0 %v10660_v46, %s13453_s21  ;;  %v8561_v46 = vpack.c.bf16 %v15741_v8, %v15734_v47  ;;  %v10384_v50 = vunpack.i.h.bf16 %v10382_v15  ;;  %v10680_v42 = vpack.i.bf16 %v15761_v27, %v19875_v14  ;;  %v10383_v56 = vunpack.i.l.bf16 %v10382_v15 }
 0x298   : > { %1689 = vmatmul.mubr.f32.gmra.mrb[12].mxu1 %v15725_v24  ;;  %8496 = vmatprep.subr.bf16.mxu0 %v8495_v41  ;;  %v10397_v58 = vpop.permute.xlu1 %10396  ;;  %v15773_v14 = vsel %vm2256_vm9, %v10388_v19, %v10389_v30 }
 0x299   : > { %8474 = vmatpush3.bf16.msra.mxu1 %v19921_v48  ;;  %1694 = vmatprep.mubr.f32.mxu1 %v15731_v62  ;;  %v10399_v34 = vunpack.i.h.bf16 %v10397_v58  ;;  %v10398_v20 = vunpack.i.l.bf16 %v10397_v58  ;;  %v13149_v48 = vld [vmem:[%s13637_s26 + $0x30] sm:$0xff]  ;;  %v2288_v38 = vsel %vm2256_vm9, %v10384_v50, %v10388_v19 }
 0x29a   : > { %8476 = vmatprep.subr.bf16.mxu1 %v8475_v21  ;;  %10676 = vrot.lane.b32.xlu1 %v15729_v40, %s13453_s21  ;;  %v19922_v21 = vld [vmem:[#allocation19_spill] sm:$0xff]  ;;  %v10392_v11 = vpop.permute.xlu0 %10391  ;;  %v15781_v6 = vpack.i.bf16 %v13149_v48, %v13148_v0 }
 0x29b   : > { %10671 = vrot.lane.b32.xlu0 %v10670_v7, %s13453_s21  ;;  %v19924_v29 = vpack.c.bf16 %v19922_v21, %v19923_v39  ;;  %8498 = vmatpush1.bf16.msra.mxu0 %v8497_v54  ;;  %v10394_v7 = vunpack.i.h.bf16 %v10392_v11  ;;  %v10393_v61 = vunpack.i.l.bf16 %v10392_v11  ;;  %v15776_v60 = vsel %vm2256_vm9, %v10398_v20, %v10399_v34  ;;  %s19319_s21 = scalar_lea.hbm %s19378_s3, %s9219_s27 }
 0x29c   : > { %1695 = vmatmul.mubr.f32.gmra.mrb[14].mxu1 %v15757_v1  ;;  %v10407_v63 = vpop.permute.xlu1 %10406  ;;  %v8565_v54 = vpack.c.bf16 %v15776_v60, %v15773_v14 }
 0x29d   : > { %8478 = vmatpush3.bf16.msra.mxu1 %v19924_v29  ;;  %1765 = vmatprep.mubr.f32.mxu1 %v15340_v51  ;;  %v2291_v15 = vsel %vm2256_vm9, %v10394_v7, %v10398_v20  ;;  %v2287_v51 = vsel %vm2256_vm9, %v10383_v56, %v10384_v50  ;;  %v2290_v41 = vsel %vm2256_vm9, %v10393_v61, %v10394_v7  ;;  %v10409_v19 = vunpack.i.h.bf16 %v10407_v63  ;;  %v13150_v50 = vld [vmem:[%s13637_s26 + $0x50] sm:$0xff]  ;;  %v13151_v56 = vld [vmem:[%s13637_s26 + $0x58] sm:$0xff] }
 0x29e   : > { %10686 = vrot.lane.b32.xlu1 %v15565_v22, %s13454_s18  ;;  %v10402_v30 = vpop.permute.xlu0 %10401  ;;  %v8501_v21 = vpack.c.bf16 %v2290_v41, %v2287_v51  ;;  %v10408_v39 = vunpack.i.l.bf16 %v10407_v63  ;;  %v15797_v58 = vpack.i.bf16 %v13151_v56, %v13150_v50  ;;  %v13153_v63 = vld [vmem:[%s13637_s26 + $0x80] sm:$0xff] }
 0x29f   : > { %10681 = vrot.lane.b32.xlu0 %v10680_v42, %s13454_s18  ;;  %v8499_v42 = vpack.c.bf16 %v2291_v15, %v2288_v38  ;;  %v10404_v29 = vunpack.i.h.bf16 %v10402_v30  ;;  %v10403_v34 = vunpack.i.l.bf16 %v10402_v30  ;;  %v13152_v38 = vld [vmem:[%s13637_s26 + $0x78] sm:$0xff] }
 0x2a0   : > { %1766 = vmatmul.mubr.f32.vlgmr.msra.gmra.mrb[32].mxu1 %v15572_v45  ;;  %v10417_v45 = vpop.permute.xlu1 %10416  ;;  %v15804_v0 = vsel %vm2256_vm9, %v10408_v39, %v10409_v19  ;;  %v15813_v15 = vpack.i.bf16 %v13153_v63, %v13152_v38 }
 0x2a1   : > { %1770 = vmatprep.mubr.f32.mxu1 %v15578_v36  ;;  %8500 = vmatprep.subr.bf16.mxu0 %v8499_v42  ;;  %v10419_v20 = vunpack.i.h.bf16 %v10417_v45  ;;  %v10418_v11 = vunpack.i.l.bf16 %v10417_v45 }
 0x2a2   : > { %10696 = vrot.lane.b32.xlu1 %v15587_v57, %s13454_s18  ;;  %8502 = vmatpush1.bf16.msra.mxu0 %v8501_v21  ;;  %v10412_v7 = vpop.permute.xlu0 %10411 }
 0x2a3   : > { %10691 = vrot.lane.b32.xlu0 %v15781_v6, %s13454_s18  ;;  %v10414_v36 = vunpack.i.h.bf16 %v10412_v7  ;;  %v10413_v61 = vunpack.i.l.bf16 %v10412_v7  ;;  %v15807_v48 = vsel %vm2256_vm9, %v10418_v11, %v10419_v20 }
 0x2a4   : > { %1771 = vmatmul.mubr.f32.gmra.mrb[34].mxu1 %v15600_v33  ;;  %v2294_v33 = vsel %vm2256_vm9, %v10404_v29, %v10408_v39  ;;  %v10427_v51 = vpop.permute.xlu1 %10426  ;;  %v8569_v42 = vpack.c.bf16 %v15807_v48, %v15804_v0 }
 0x2a5   : > { %1775 = vmatprep.mubr.f32.mxu1 %v15602_v25  ;;  %v2297_v41 = vsel %vm2256_vm9, %v10414_v36, %v10418_v11  ;;  %v2293_v25 = vsel %vm2256_vm9, %v10403_v34, %v10404_v29  ;;  %v2296_v30 = vsel %vm2256_vm9, %v10413_v61, %v10414_v36  ;;  %v10429_v39 = vunpack.i.h.bf16 %v10427_v51  ;;  %v13154_v29 = vld [vmem:[%s13637_s26 + $0xa0] sm:$0xff]  ;;  %v13155_v34 = vld [vmem:[%s13637_s26 + $0xa8] sm:$0xff] }
 0x2a6   : > { %10706 = vrot.lane.b32.xlu1 %v15611_v18, %s13454_s18  ;;  %v10422_v21 = vpop.permute.xlu0 %10421  ;;  %v8503_v19 = vpack.c.bf16 %v2297_v41, %v2294_v33  ;;  %v8505_v50 = vpack.c.bf16 %v2296_v30, %v2293_v25  ;;  %v10428_v56 = vunpack.i.l.bf16 %v10427_v51  ;;  %v15829_v20 = vpack.i.bf16 %v13155_v34, %v13154_v29  ;;  %v13156_v51 = vld [vmem:[%s13637_s26 + $0xc8] sm:$0xff]  ;;  %v13157_v41 = vld [vmem:[%s13637_s26 + $0xd0] sm:$0xff] }
 0x2a7   : > { %10701 = vrot.lane.b32.xlu0 %v15797_v58, %s13454_s18  ;;  %v10424_v45 = vunpack.i.h.bf16 %v10422_v21  ;;  %v10423_v11 = vunpack.i.l.bf16 %v10422_v21  ;;  %v15845_v25 = vpack.i.bf16 %v13157_v41, %v13156_v51 }
 0x2a8   : > { %1776 = vmatmul.mubr.f32.gmra.mrb[36].mxu1 %v15624_v16  ;;  %8504 = vmatprep.subr.bf16.mxu0 %v8503_v19  ;;  %v10437_v16 = vpop.permute.xlu1 %10436  ;;  %v15836_v63 = vsel %vm2256_vm9, %v10428_v56, %v10429_v39 }
 0x2a9   : > { %1780 = vmatprep.mubr.f32.mxu1 %v15626_v10  ;;  %8506 = vmatpush1.bf16.msra.mxu0 %v8505_v50  ;;  %v10439_v7 = vunpack.i.h.bf16 %v10437_v16  ;;  %v10438_v36 = vunpack.i.l.bf16 %v10437_v16 }
 0x2aa   : > { %10716 = vrot.lane.b32.xlu1 %v15635_v28, %s13454_s18  ;;  %v10432_v61 = vpop.permute.xlu0 %10431 }
 0x2ab   : > { %10711 = vrot.lane.b32.xlu0 %v15813_v15, %s13454_s18  ;;  %v10434_v10 = vunpack.i.h.bf16 %v10432_v61  ;;  %v10433_v38 = vunpack.i.l.bf16 %v10432_v61  ;;  %v15839_v33 = vsel %vm2256_vm9, %v10438_v36, %v10439_v7 }
 0x2ac   : > { %1781 = vmatmul.mubr.f32.gmra.mrb[38].mxu1 %v15651_v23  ;;  %v2300_v23 = vsel %vm2256_vm9, %v10424_v45, %v10428_v56  ;;  %v10447_v30 = vpop.permute.xlu1 %10446  ;;  %v8573_v50 = vpack.c.bf16 %v15839_v33, %v15836_v63 }
 0x2ad   : > { %1785 = vmatprep.mubr.f32.mxu1 %v15653_v43  ;;  %v2303_v21 = vsel %vm2256_vm9, %v10434_v10, %v10438_v36  ;;  %v2299_v43 = vsel %vm2256_vm9, %v10423_v11, %v10424_v45  ;;  %v2302_v19 = vsel %vm2256_vm9, %v10433_v38, %v10434_v10  ;;  %v10449_v56 = vunpack.i.h.bf16 %v10447_v30  ;;  %v13158_v45 = vld [vmem:[%s13637_s26 + $0xf0] sm:$0xff]  ;;  %v13159_v11 = vld [vmem:[%s13637_s26 + $0xf8] sm:$0xff] }
 0x2ae   : > { %10726 = vrot.lane.b32.xlu1 %v15662_v35, %s13454_s18  ;;  %v10442_v39 = vpop.permute.xlu0 %10441  ;;  %v8507_v29 = vpack.c.bf16 %v2303_v21, %v2300_v23  ;;  %v8509_v34 = vpack.c.bf16 %v2302_v19, %v2299_v43  ;;  %v10448_v16 = vunpack.i.l.bf16 %v10447_v30  ;;  %v15861_v36 = vpack.i.bf16 %v13159_v11, %v13158_v45  ;;  %v13160_v23 = vld [vmem:[%s13637_s26 + $0x118] sm:$0xff]  ;;  %v13161_v30 = vld [vmem:[%s13637_s26 + $0x120] sm:$0xff] }
 0x2af   : > { %10721 = vrot.lane.b32.xlu0 %v15829_v20, %s13454_s18  ;;  %v10444_v7 = vunpack.i.h.bf16 %v10442_v39  ;;  %v10443_v61 = vunpack.i.l.bf16 %v10442_v39  ;;  %v15871_v21 = vpack.i.bf16 %v13161_v30, %v13160_v23 }
 0x2b0   : > { %1786 = vmatmul.mubr.f32.gmra.mrb[40].mxu1 %v15673_v55  ;;  %8508 = vmatprep.subr.bf16.mxu0 %v8507_v29  ;;  %v2307_v19 = vsel %vm2256_vm9, %v10448_v16, %v10449_v56 }
 0x2b1   : > { %1790 = vmatprep.mubr.f32.mxu1 %v15676_v59  ;;  %8510 = vmatpush1.bf16.msra.mxu0 %v8509_v34  ;;  %v10457_v55 = vpop.permute.xlu1 %10456  ;;  %v2306_v43 = vsel %vm2256_vm9, %v10444_v7, %v10448_v16 }
 0x2b2   : > { %10736 = vrot.lane.b32.xlu1 %v15685_v3, %s13454_s18  ;;  %v10459_v10 = vunpack.i.h.bf16 %v10457_v55  ;;  %v10458_v38 = vunpack.i.l.bf16 %v10457_v55  ;;  %v10452_v51 = vpop.permute.xlu0 %10451 }
 0x2b3   : > { %10731 = vrot.lane.b32.xlu0 %v15845_v25, %s13454_s18  ;;  %v10454_v59 = vunpack.i.h.bf16 %v10452_v51  ;;  %v10453_v41 = vunpack.i.l.bf16 %v10452_v51 }
 0x2b4   : > { %1791 = vmatmul.mubr.f32.gmra.mrb[42].mxu1 %v15699_v52  ;;  %v2310_v52 = vsel %vm2256_vm9, %v10458_v38, %v10459_v10 }
 0x2b5   : > { %1795 = vmatprep.mubr.f32.mxu1 %v15704_v17  ;;  %v10467_v39 = vpop.permute.xlu1 %10466  ;;  %v2309_v29 = vsel %vm2256_vm9, %v10454_v59, %v10458_v38  ;;  %v8543_v34 = vpack.c.bf16 %v2310_v52, %v2307_v19  ;;  %v2305_v17 = vsel %vm2256_vm9, %v10443_v61, %v10444_v7  ;;  %v2308_v45 = vsel %vm2256_vm9, %v10453_v41, %v10454_v59  ;;  %v13162_v38 = vld [vmem:[%s13637_s26] sm:$0xff] }
 0x2b6   : > { %10746 = vrot.lane.b32.xlu1 %v15709_v53, %s13454_s18  ;;  %v10462_v11 = vpop.permute.xlu0 %10461  ;;  %v8511_v55 = vpack.c.bf16 %v2309_v29, %v2306_v43  ;;  %v8513_v51 = vpack.c.bf16 %v2308_v45, %v2305_v17  ;;  %v10469_v56 = vunpack.i.h.bf16 %v10467_v39  ;;  %v10468_v16 = vunpack.i.l.bf16 %v10467_v39 }
 0x2b7   : > { %10741 = vrot.lane.b32.xlu0 %v15861_v36, %s13454_s18  ;;  %8544 = vmatprep.subr.bf16.mxu1 %v8543_v34  ;;  %v10464_v10 = vunpack.i.h.bf16 %v10462_v11  ;;  %v10760_v7 = vpack.i.bf16 %v15761_v27, %v13162_v38  ;;  %v10463_v61 = vunpack.i.l.bf16 %v10462_v11 }
 0x2b8   : > { %1796 = vmatmul.mubr.f32.gmra.mrb[44].mxu1 %v15725_v24  ;;  %8512 = vmatprep.subr.bf16.mxu0 %v8511_v55  ;;  %v2313_v19 = vsel %vm2256_vm9, %v10468_v16, %v10469_v56 }
 0x2b9   : > { %8514 = vmatpush1.bf16.msra.mxu0 %v8513_v51  ;;  %8546 = vmatpush3.bf16.msra.mxu1 %v8545_v13  ;;  %v10477_v24 = vpop.permute.xlu1 %10476  ;;  %v2312_v27 = vsel %vm2256_vm9, %v10464_v10, %v10468_v16  ;;  %v2311_v52 = vsel %vm2256_vm9, %v10463_v61, %v10464_v10 }
 0x2ba   : > { %10756 = vrot.lane.b32.xlu1 %v15729_v40, %s13454_s18  ;;  %v10479_v59 = vunpack.i.h.bf16 %v10477_v24  ;;  %v10478_v41 = vunpack.i.l.bf16 %v10477_v24  ;;  %v10472_v23 = vpop.permute.xlu0 %10471  ;;  %1800 = vmatprep.mubr.f32.mxu1 %v15731_v62 }
 0x2bb   : > { %10751 = vrot.lane.b32.xlu0 %v15871_v21, %s13454_s18  ;;  %v10474_v30 = vunpack.i.h.bf16 %v10472_v23  ;;  %v10473_v43 = vunpack.i.l.bf16 %v10472_v23 }
 0x2bc   : > { %1801 = vmatmul.mubr.f32.gmra.mrb[46].mxu1 %v15757_v1  ;;  %v2316_v31 = vsel %vm2256_vm9, %v10478_v41, %v10479_v59 }
 0x2bd   : > { %v10487_v5 = vpop.permute.xlu1 %10486  ;;  %v2315_v13 = vsel %vm2256_vm9, %v10474_v30, %v10478_v41  ;;  %v8547_v62 = vpack.c.bf16 %v2316_v31, %v2313_v19  ;;  %v2314_v39 = vsel %vm2256_vm9, %v10473_v43, %v10474_v30 }
 0x2be   : > { %10766 = vrot.lane.b32.xlu1 %v15565_v22, %s13455_s19  ;;  %v10482_v29 = vpop.permute.xlu0 %10481  ;;  %v8515_v22 = vpack.c.bf16 %v2315_v13, %v2312_v27  ;;  %v8517_v34 = vpack.c.bf16 %v2314_v39, %v2311_v52  ;;  %v10489_v1 = vunpack.i.h.bf16 %v10487_v5  ;;  %v10488_v17 = vunpack.i.l.bf16 %v10487_v5  ;;  %v1985_v27 = vld [vmem:[#allocation5 + $0x28] sm:$0xff] }
 0x2bf   : > { %10761 = vrot.lane.b32.xlu0 %v10760_v7, %s13455_s19  ;;  %8548 = vmatprep.subr.bf16.mxu1 %v8547_v62  ;;  %v10484_v45 = vunpack.i.h.bf16 %v10482_v29  ;;  %v10483_v11 = vunpack.i.l.bf16 %v10482_v29 }
 0x2c0   : > { %8516 = vmatprep.subr.bf16.mxu0 %v8515_v22  ;;  %8550 = vmatpush3.bf16.msra.mxu1 %v8549_v26  ;;  %v2319_v7 = vsel %vm2256_vm9, %v10488_v17, %v10489_v1 }
 0x2c1   : > { %8518 = vmatpush1.bf16.msra.mxu0 %v8517_v34  ;;  %v10497_v55 = vpop.permute.xlu1 %10496  ;;  %2513 = vmatprep.mubr.f32.mxu0 %v1985_v27 }
 0x2c2   : > { %10776 = vrot.lane.b32.xlu1 %v15587_v57, %s13455_s19  ;;  %v10499_v51 = vunpack.i.h.bf16 %v10497_v55  ;;  %v10498_v56 = vunpack.i.l.bf16 %v10497_v55  ;;  %v10492_v16 = vpop.permute.xlu0 %10491  ;;  %v2318_v57 = vsel %vm2256_vm9, %v10484_v45, %v10488_v17  ;;  %2626 = vmatprep.mubr.f32.mxu1 %v1985_v27 }
 0x2c3   : > { %10771 = vrot.lane.b32.xlu0 %v15781_v6, %s13455_s19  ;;  %v10494_v10 = vunpack.i.h.bf16 %v10492_v16  ;;  %v10493_v38 = vunpack.i.l.bf16 %v10492_v16  ;;  %v2317_v6 = vsel %vm2256_vm9, %v10483_v11, %v10484_v45 }
 0x2c4   : > { %v2322_v44 = vsel %vm2256_vm9, %v10498_v56, %v10499_v51 }
 0x2c5   : > { %v10507_v4 = vpop.permute.xlu1 %10506  ;;  %v2321_v26 = vsel %vm2256_vm9, %v10494_v10, %v10498_v56  ;;  %v8551_v61 = vpack.c.bf16 %v2322_v44, %v2319_v7  ;;  %v2320_v24 = vsel %vm2256_vm9, %v10493_v38, %v10494_v10 }
 0x2c6   : > { %10786 = vrot.lane.b32.xlu1 %v15611_v18, %s13455_s19  ;;  %v10502_v59 = vpop.permute.xlu0 %10501  ;;  %v8519_v41 = vpack.c.bf16 %v2321_v26, %v2318_v57  ;;  %v8521_v18 = vpack.c.bf16 %v2320_v24, %v2317_v6  ;;  %v10509_v23 = vunpack.i.h.bf16 %v10507_v4  ;;  %v10508_v30 = vunpack.i.l.bf16 %v10507_v4 }
 0x2c7   : > { %10781 = vrot.lane.b32.xlu0 %v15797_v58, %s13455_s19  ;;  %8552 = vmatprep.subr.bf16.mxu1 %v8551_v61  ;;  %v10504_v43 = vunpack.i.h.bf16 %v10502_v59  ;;  %v10503_v19 = vunpack.i.l.bf16 %v10502_v59 }
 0x2c8   : > { %8520 = vmatprep.subr.bf16.mxu0 %v8519_v41  ;;  %8554 = vmatpush3.bf16.msra.mxu1 %v8553_v12  ;;  %v2325_v37 = vsel %vm2256_vm9, %v10508_v30, %v10509_v23 }
 0x2c9   : > { %8522 = vmatpush1.bf16.msra.mxu0 %v8521_v18  ;;  %v10517_v31 = vpop.permute.xlu1 %10516  ;;  %v2324_v32 = vsel %vm2256_vm9, %v10504_v43, %v10508_v30  ;;  %v2323_v29 = vsel %vm2256_vm9, %v10503_v19, %v10504_v43 }
 0x2ca   : > { %10796 = vrot.lane.b32.xlu1 %v15635_v28, %s13455_s19  ;;  %v10519_v58 = vunpack.i.h.bf16 %v10517_v31  ;;  %v10518_v5 = vunpack.i.l.bf16 %v10517_v31  ;;  %v10512_v13 = vpop.permute.xlu0 %10511 }
 0x2cb   : > { %10791 = vrot.lane.b32.xlu0 %v15813_v15, %s13455_s19  ;;  %v10514_v28 = vunpack.i.h.bf16 %v10512_v13  ;;  %v10513_v62 = vunpack.i.l.bf16 %v10512_v13 }
 0x2cc   : > { %v2328_v12 = vsel %vm2256_vm9, %v10518_v5, %v10519_v58 }
 0x2cd   : > { %v10527_v52 = vpop.permute.xlu1 %10526  ;;  %v2327_v39 = vsel %vm2256_vm9, %v10514_v28, %v10518_v5  ;;  %v8555_v15 = vpack.c.bf16 %v2328_v12, %v2325_v37  ;;  %v2326_v22 = vsel %vm2256_vm9, %v10513_v62, %v10514_v28 }
 0x2ce   : > { %10806 = vrot.lane.b32.xlu1 %v15662_v35, %s13455_s19  ;;  %v10522_v34 = vpop.permute.xlu0 %10521  ;;  %v8523_v1 = vpack.c.bf16 %v2327_v39, %v2324_v32  ;;  %v8525_v35 = vpack.c.bf16 %v2326_v22, %v2323_v29  ;;  %v10529_v17 = vunpack.i.h.bf16 %v10527_v52  ;;  %v10528_v45 = vunpack.i.l.bf16 %v10527_v52 }
 0x2cf   : > { %10801 = vrot.lane.b32.xlu0 %v15829_v20, %s13455_s19  ;;  %8556 = vmatprep.subr.bf16.mxu1 %v8555_v15  ;;  %v10524_v11 = vunpack.i.h.bf16 %v10522_v34  ;;  %v10523_v55 = vunpack.i.l.bf16 %v10522_v34 }
 0x2d0   : > { %8524 = vmatprep.subr.bf16.mxu0 %v8523_v1  ;;  %8558 = vmatpush3.bf16.msra.mxu1 %v8557_v9  ;;  %v2331_v57 = vsel %vm2256_vm9, %v10528_v45, %v10529_v17 }
 0x2d1   : > { %8526 = vmatpush1.bf16.msra.mxu0 %v8525_v35  ;;  %v10537_v51 = vpop.permute.xlu1 %10536 }
 0x2d2   : > { %10816 = vrot.lane.b32.xlu1 %v15685_v3, %s13455_s19  ;;  %v10539_v20 = vunpack.i.h.bf16 %v10537_v51  ;;  %v10538_v56 = vunpack.i.l.bf16 %v10537_v51  ;;  %v10532_v16 = vpop.permute.xlu0 %10531  ;;  %v2330_v3 = vsel %vm2256_vm9, %v10524_v11, %v10528_v45 }
 0x2d3   : > { %10811 = vrot.lane.b32.xlu0 %v15845_v25, %s13455_s19  ;;  %v10534_v10 = vunpack.i.h.bf16 %v10532_v16  ;;  %v10533_v38 = vunpack.i.l.bf16 %v10532_v16  ;;  %v2329_v25 = vsel %vm2256_vm9, %v10523_v55, %v10524_v11 }
 0x2d4   : > { %v2334_v2 = vsel %vm2256_vm9, %v10538_v56, %v10539_v20 }
 0x2d5   : > { %v10547_v49 = vpop.permute.xlu1 %10546  ;;  %v2333_v9 = vsel %vm2256_vm9, %v10534_v10, %v10538_v56  ;;  %v8559_v7 = vpack.c.bf16 %v2334_v2, %v2331_v57  ;;  %v2332_v44 = vsel %vm2256_vm9, %v10533_v38, %v10534_v10 }
 0x2d6   : > { %10826 = vrot.lane.b32.xlu1 %v15709_v53, %s13455_s19  ;;  %v10542_v4 = vpop.permute.xlu0 %10541  ;;  %v8527_v26 = vpack.c.bf16 %v2333_v9, %v2330_v3  ;;  %v8529_v53 = vpack.c.bf16 %v2332_v44, %v2329_v25  ;;  %v10549_v61 = vunpack.i.h.bf16 %v10547_v49  ;;  %v10548_v6 = vunpack.i.l.bf16 %v10547_v49 }
 0x2d7   : > { %10821 = vrot.lane.b32.xlu0 %v15861_v36, %s13455_s19  ;;  %8560 = vmatprep.subr.bf16.mxu1 %v8559_v7  ;;  %v10544_v24 = vunpack.i.h.bf16 %v10542_v4  ;;  %v10543_v59 = vunpack.i.l.bf16 %v10542_v4 }
 0x2d8   : > { %8528 = vmatprep.subr.bf16.mxu0 %v8527_v26  ;;  %8562 = vmatpush3.bf16.msra.mxu1 %v8561_v46  ;;  %v2337_v27 = vsel %vm2256_vm9, %v10548_v6, %v10549_v61 }
 0x2d9   : > { %8530 = vmatpush1.bf16.msra.mxu0 %v8529_v53  ;;  %v10557_v41 = vpop.permute.xlu1 %10556  ;;  %v2335_v46 = vsel %vm2256_vm9, %v10543_v59, %v10544_v24 }
 0x2da   : > { %10836 = vrot.lane.b32.xlu1 %v15729_v40, %s13455_s19  ;;  %v10559_v36 = vunpack.i.h.bf16 %v10557_v41  ;;  %v10558_v18 = vunpack.i.l.bf16 %v10557_v41  ;;  %v10552_v23 = vpop.permute.xlu0 %10551  ;;  %v2336_v40 = vsel %vm2256_vm9, %v10544_v24, %v10548_v6 }
 0x2db   : > { %10831 = vrot.lane.b32.xlu0 %v15871_v21, %s13455_s19  ;;  %v10554_v30 = vunpack.i.h.bf16 %v10552_v23  ;;  %v10553_v43 = vunpack.i.l.bf16 %v10552_v23 }
 0x2dc   : > { %v2340_v19 = vsel %vm2256_vm9, %v10558_v18, %v10559_v36 }
 0x2dd   : > { %v10567_v31 = vpop.permute.xlu1 %10566  ;;  %v2339_v47 = vsel %vm2256_vm9, %v10554_v30, %v10558_v18  ;;  %v8563_v8 = vpack.c.bf16 %v2340_v19, %v2337_v27  ;;  %v2338_v58 = vsel %vm2256_vm9, %v10553_v43, %v10554_v30  ;;  %v1984_v27 = vld [vmem:[#allocation5 + $0x20] sm:$0xff] }
 0x2de   : > { %v10562_v21 = vpop.permute.xlu0 %10561  ;;  %v8531_v5 = vpack.c.bf16 %v2339_v47, %v2336_v40  ;;  %v8533_v13 = vpack.c.bf16 %v2338_v58, %v2335_v46  ;;  %v10569_v28 = vunpack.i.h.bf16 %v10567_v31  ;;  %v10568_v62 = vunpack.i.l.bf16 %v10567_v31 }
 0x2df   : > { %8564 = vmatprep.subr.bf16.mxu1 %v8563_v8  ;;  %v10564_v32 = vunpack.i.h.bf16 %v10562_v21  ;;  %v10563_v37 = vunpack.i.l.bf16 %v10562_v21 }
 0x2e0   : > { %8532 = vmatprep.subr.bf16.mxu0 %v8531_v5  ;;  %8566 = vmatpush3.bf16.msra.mxu1 %v8565_v54  ;;  %v2343_v1 = vsel %vm2256_vm9, %v10568_v62, %v10569_v28 }
 0x2e1   : > { %8534 = vmatpush1.bf16.msra.mxu0 %v8533_v13  ;;  %v10577_v12 = vpop.permute.xlu1 %10576  ;;  %v2342_v34 = vsel %vm2256_vm9, %v10564_v32, %v10568_v62  ;;  %v2341_v14 = vsel %vm2256_vm9, %v10563_v37, %v10564_v32 }
 0x2e2   : > { %v10579_v52 = vunpack.i.h.bf16 %v10577_v12  ;;  %v10578_v39 = vunpack.i.l.bf16 %v10577_v12  ;;  %v10572_v15 = vpop.permute.xlu0 %10571 }
 0x2e3   : > { %v10574_v29 = vunpack.i.h.bf16 %v10572_v15  ;;  %v10573_v22 = vunpack.i.l.bf16 %v10572_v15 }
 0x2e4   : > { %v2346_v35 = vsel %vm2256_vm9, %v10578_v39, %v10579_v52 }
 0x2e5   : > { %v2345_v45 = vsel %vm2256_vm9, %v10574_v29, %v10578_v39  ;;  %v8567_v11 = vpack.c.bf16 %v2346_v35, %v2343_v1  ;;  %v2344_v60 = vsel %vm2256_vm9, %v10573_v22, %v10574_v29 }
 0x2e6   : > { %v10587_v17 = vpop.permute.xlu1 %10586  ;;  %v8535_v55 = vpack.c.bf16 %v2345_v45, %v2342_v34  ;;  %v8537_v51 = vpack.c.bf16 %v2344_v60, %v2341_v14 }
 0x2e7   : > { %v10582_v54 = vpop.permute.xlu0 %10581  ;;  %8568 = vmatprep.subr.bf16.mxu1 %v8567_v11  ;;  %v10589_v20 = vunpack.i.h.bf16 %v10587_v17  ;;  %v10588_v56 = vunpack.i.l.bf16 %v10587_v17 }
 0x2e8   : > { %v10584_v16 = vunpack.i.h.bf16 %v10582_v54  ;;  %8536 = vmatprep.subr.bf16.mxu0 %v8535_v55  ;;  %8570 = vmatpush3.bf16.msra.mxu1 %v8569_v42  ;;  %v10583_v10 = vunpack.i.l.bf16 %v10582_v54 }
 0x2e9   : > { %8538 = vmatpush1.bf16.msra.mxu0 %v8537_v51  ;;  %v2349_v25 = vsel %vm2256_vm9, %v10588_v56, %v10589_v20 }
 0x2ea   : > { %v2348_v7 = vsel %vm2256_vm9, %v10584_v16, %v10588_v56  ;;  %v2347_v48 = vsel %vm2256_vm9, %v10583_v10, %v10584_v16 }
 0x2eb   : > { %v10597_v38 = vpop.permute.xlu1 %10596 }
 0x2ec   : > { %v10599_v3 = vunpack.i.h.bf16 %v10597_v38  ;;  %v10598_v57 = vunpack.i.l.bf16 %v10597_v38  ;;  %v10592_v2 = vpop.permute.xlu0 %10591 }
 0x2ed   : > { %v10594_v49 = vunpack.i.h.bf16 %v10592_v2  ;;  %v10593_v9 = vunpack.i.l.bf16 %v10592_v2 }
 0x2ee   : > { %v2352_v44 = vsel %vm2256_vm9, %v10598_v57, %v10599_v3 }
 0x2ef   : > { %v10607_v4 = vpop.permute.xlu1 %10606  ;;  %v2351_v26 = vsel %vm2256_vm9, %v10594_v49, %v10598_v57  ;;  %v8571_v0 = vpack.c.bf16 %v2352_v44, %v2349_v25  ;;  %v2350_v42 = vsel %vm2256_vm9, %v10593_v9, %v10594_v49 }
 0x2f0   : > { %v10609_v53 = vunpack.i.h.bf16 %v10607_v4  ;;  %v10608_v61 = vunpack.i.l.bf16 %v10607_v4  ;;  %v10602_v6 = vpop.permute.xlu0 %10601  ;;  %v8539_v24 = vpack.c.bf16 %v2351_v26, %v2348_v7  ;;  %v8541_v59 = vpack.c.bf16 %v2350_v42, %v2347_v48 }
 0x2f1   : > { %v10604_v41 = vunpack.i.h.bf16 %v10602_v6  ;;  %v10603_v36 = vunpack.i.l.bf16 %v10602_v6  ;;  %8572 = vmatprep.subr.bf16.mxu1 %v8571_v0 }
 0x2f2   : > { %v2758_v18 = vsel %vm2755_vm10, %v10608_v61, %v10609_v53  ;;  %8540 = vmatprep.subr.bf16.mxu0 %v8539_v24  ;;  %8574 = vmatpush3.bf16.msra.mxu1 %v8573_v50 }
 0x2f3   : > { %v2757_v23 = vsel %vm2755_vm10, %v10604_v41, %v10608_v61  ;;  %v2756_v30 = vsel %vm2755_vm10, %v10603_v36, %v10604_v41  ;;  %8542 = vmatpush1.bf16.msra.mxu0 %v8541_v59  ;;  %v15988_v40 = vpack.i.bf16 %v10609_v53, %v2758_v18 }
 0x2f4   : > { %v10617_v43 = vpop.permute.xlu1 %10616  ;;  %v15990_v8 = vpack.i.bf16 %v2757_v23, %v2756_v30 }
 0x2f5   : > { %v10619_v19 = vunpack.i.h.bf16 %v10617_v43  ;;  %v10618_v31 = vunpack.i.l.bf16 %v10617_v43  ;;  %v10612_v47 = vpop.permute.xlu0 %10611  ;;  %10846 = vrot.lane.b32.xlu1 %v15988_v40, %s13455_s19  ;;  %2627 = vmatmul.mubr.f32.vlgmr.msra.gmra.mrb[48].mxu1 %v1984_v27 }
 0x2f6   : > { %v10614_v46 = vunpack.i.h.bf16 %v10612_v47  ;;  %v10613_v58 = vunpack.i.l.bf16 %v10612_v47  ;;  %10841 = vrot.lane.b32.xlu0 %v15990_v8, %s13455_s19  ;;  %2514 = vmatmul.mubr.f32.vlgmr.msra.gmra.mrb[0].mxu0 %v1984_v27 }
 0x2f7   : > { %v2761_v63 = vsel %vm2755_vm10, %v10618_v31, %v10619_v19 }
 0x2f8   : > { %v2760_v33 = vsel %vm2755_vm10, %v10614_v46, %v10618_v31  ;;  %v2759_v50 = vsel %vm2755_vm10, %v10613_v58, %v10614_v46  ;;  %v10627_v21 = vpop.permute.xlu1 %10626  ;;  %v15999_v5 = vpack.i.bf16 %v10619_v19, %v2761_v63 }
 0x2f9   : > { %v10629_v13 = vunpack.i.h.bf16 %v10627_v21  ;;  %v10628_v28 = vunpack.i.l.bf16 %v10627_v21  ;;  %v10622_v62 = vpop.permute.xlu0 %10621  ;;  %v16001_v32 = vpack.i.bf16 %v2760_v33, %v2759_v50 }
 0x2fa   : > { %v10624_v37 = vunpack.i.h.bf16 %v10622_v62  ;;  %v10623_v12 = vunpack.i.l.bf16 %v10622_v62  ;;  %10856 = vrot.lane.b32.xlu1 %v15999_v5, %s13455_s19 }
 0x2fb   : > { %v2764_v52 = vsel %vm2755_vm10, %v10628_v28, %v10629_v13  ;;  %10851 = vrot.lane.b32.xlu0 %v16001_v32, %s13455_s19 }
 0x2fc   : > { %v2763_v39 = vsel %vm2755_vm10, %v10624_v37, %v10628_v28  ;;  %v2762_v15 = vsel %vm2755_vm10, %v10623_v12, %v10624_v37  ;;  %v10637_v29 = vpop.permute.xlu1 %10636  ;;  %v16010_v22 = vpack.i.bf16 %v10629_v13, %v2764_v52 }
 0x2fd   : > { %v10639_v34 = vunpack.i.h.bf16 %v10637_v29  ;;  %v10638_v1 = vunpack.i.l.bf16 %v10637_v29  ;;  %v10632_v35 = vpop.permute.xlu0 %10631  ;;  %v16012_v17 = vpack.i.bf16 %v2763_v39, %v2762_v15 }
 0x2fe   : > { %v10634_v45 = vunpack.i.h.bf16 %v10632_v35  ;;  %v10633_v11 = vunpack.i.l.bf16 %v10632_v35  ;;  %10866 = vrot.lane.b32.xlu1 %v16010_v22, %s13455_s19 }
 0x2ff   : > { %v2767_v14 = vsel %vm2755_vm10, %v10638_v1, %v10639_v34  ;;  %10861 = vrot.lane.b32.xlu0 %v16012_v17, %s13455_s19 }
 0x300   : > { %v2766_v60 = vsel %vm2755_vm10, %v10634_v45, %v10638_v1  ;;  %v2765_v54 = vsel %vm2755_vm10, %v10633_v11, %v10634_v45  ;;  %v10647_v55 = vpop.permute.xlu1 %10646  ;;  %v16021_v51 = vpack.i.bf16 %v10639_v34, %v2767_v14 }
 0x301   : > { %v10649_v20 = vunpack.i.h.bf16 %v10647_v55  ;;  %v10648_v56 = vunpack.i.l.bf16 %v10647_v55  ;;  %v10642_v16 = vpop.permute.xlu0 %10641  ;;  %v16023_v10 = vpack.i.bf16 %v2766_v60, %v2765_v54 }
 0x302   : > { %v10644_v38 = vunpack.i.h.bf16 %v10642_v16  ;;  %v10643_v3 = vunpack.i.l.bf16 %v10642_v16  ;;  %10876 = vrot.lane.b32.xlu1 %v16021_v51, %s13455_s19 }
 0x303   : > { %v2770_v57 = vsel %vm2755_vm10, %v10648_v56, %v10649_v20  ;;  %10871 = vrot.lane.b32.xlu0 %v16023_v10, %s13455_s19 }
 0x304   : > { %v2769_v2 = vsel %vm2755_vm10, %v10644_v38, %v10648_v56  ;;  %v2768_v49 = vsel %vm2755_vm10, %v10643_v3, %v10644_v38  ;;  %v10657_v9 = vpop.permute.xlu1 %10656  ;;  %v16032_v7 = vpack.i.bf16 %v10649_v20, %v2770_v57 }
 0x305   : > { %v10659_v25 = vunpack.i.h.bf16 %v10657_v9  ;;  %v10658_v44 = vunpack.i.l.bf16 %v10657_v9  ;;  %v10652_v4 = vpop.permute.xlu0 %10651  ;;  %v16034_v26 = vpack.i.bf16 %v2769_v2, %v2768_v49 }
 0x306   : > { %v10654_v0 = vunpack.i.h.bf16 %v10652_v4  ;;  %v10653_v48 = vunpack.i.l.bf16 %v10652_v4  ;;  %10886 = vrot.lane.b32.xlu1 %v16032_v7, %s13455_s19 }
 0x307   : > { %v2773_v42 = vsel %vm2755_vm10, %v10658_v44, %v10659_v25  ;;  %10881 = vrot.lane.b32.xlu0 %v16034_v26, %s13455_s19 }
 0x308   : > { %v2772_v53 = vsel %vm2755_vm10, %v10654_v0, %v10658_v44  ;;  %v2771_v61 = vsel %vm2755_vm10, %v10653_v48, %v10654_v0  ;;  %v10667_v6 = vpop.permute.xlu1 %10666  ;;  %v16043_v24 = vpack.i.bf16 %v10659_v25, %v2773_v42 }
 0x309   : > { %v10669_v59 = vunpack.i.h.bf16 %v10667_v6  ;;  %v10668_v41 = vunpack.i.l.bf16 %v10667_v6  ;;  %v10662_v36 = vpop.permute.xlu0 %10661  ;;  %v16045_v18 = vpack.i.bf16 %v2772_v53, %v2771_v61 }
 0x30a   : > { %v10664_v23 = vunpack.i.h.bf16 %v10662_v36  ;;  %v10663_v30 = vunpack.i.l.bf16 %v10662_v36  ;;  %10896 = vrot.lane.b32.xlu1 %v16043_v24, %s13455_s19 }
 0x30b   : > { %v2776_v43 = vsel %vm2755_vm10, %v10668_v41, %v10669_v59  ;;  %10891 = vrot.lane.b32.xlu0 %v16045_v18, %s13455_s19 }
 0x30c   : > { %v2775_v27 = vsel %vm2755_vm10, %v10664_v23, %v10668_v41  ;;  %v2774_v19 = vsel %vm2755_vm10, %v10663_v30, %v10664_v23  ;;  %v10677_v31 = vpop.permute.xlu1 %10676  ;;  %v16054_v47 = vpack.i.bf16 %v10669_v59, %v2776_v43 }
 0x30d   : > { %v10679_v46 = vunpack.i.h.bf16 %v10677_v31  ;;  %v10678_v58 = vunpack.i.l.bf16 %v10677_v31  ;;  %v10672_v63 = vpop.permute.xlu0 %10671  ;;  %v16056_v33 = vpack.i.bf16 %v2775_v27, %v2774_v19 }
 0x30e   : > { %v10674_v50 = vunpack.i.h.bf16 %v10672_v63  ;;  %v10673_v21 = vunpack.i.l.bf16 %v10672_v63  ;;  %10906 = vrot.lane.b32.xlu1 %v16054_v47, %s13455_s19 }
 0x30f   : > { %v2779_v13 = vsel %vm2755_vm10, %v10678_v58, %v10679_v46  ;;  %10901 = vrot.lane.b32.xlu0 %v16056_v33, %s13455_s19 }
 0x310   : > { %v2778_v28 = vsel %vm2755_vm10, %v10674_v50, %v10678_v58  ;;  %v2777_v62 = vsel %vm2755_vm10, %v10673_v21, %v10674_v50  ;;  %v10687_v37 = vpop.permute.xlu1 %10686  ;;  %v16065_v12 = vpack.i.bf16 %v10679_v46, %v2779_v13 }
 0x311   : > { %v10689_v52 = vunpack.i.h.bf16 %v10687_v37  ;;  %v10688_v39 = vunpack.i.l.bf16 %v10687_v37  ;;  %v10682_v15 = vpop.permute.xlu0 %10681  ;;  %v16067_v29 = vpack.i.bf16 %v2778_v28, %v2777_v62 }
 0x312   : > { %v10684_v34 = vunpack.i.h.bf16 %v10682_v15  ;;  %v10683_v1 = vunpack.i.l.bf16 %v10682_v15  ;;  %10916 = vrot.lane.b32.xlu1 %v16065_v12, %s13455_s19 }
 0x313   : > { %v2847_v35 = vsel %vm2844_vm11, %v10688_v39, %v10689_v52  ;;  %10911 = vrot.lane.b32.xlu0 %v16067_v29, %s13455_s19 }
 0x314   : > { %v2846_v45 = vsel %vm2844_vm11, %v10684_v34, %v10688_v39  ;;  %v2845_v11 = vsel %vm2844_vm11, %v10683_v1, %v10684_v34  ;;  %v10697_v14 = vpop.permute.xlu1 %10696  ;;  %v16076_v60 = vpack.i.bf16 %v10689_v52, %v2847_v35 }
 0x315   : > { %v10699_v54 = vunpack.i.h.bf16 %v10697_v14  ;;  %v10698_v55 = vunpack.i.l.bf16 %v10697_v14  ;;  %v10692_v20 = vpop.permute.xlu0 %10691  ;;  %v16078_v56 = vpack.i.bf16 %v2846_v45, %v2845_v11 }
 0x316   : > { %v10694_v16 = vunpack.i.h.bf16 %v10692_v20  ;;  %v10693_v38 = vunpack.i.l.bf16 %v10692_v20  ;;  %10926 = vrot.lane.b32.xlu1 %v16076_v60, %s13455_s19 }
 0x317   : > { %v2850_v3 = vsel %vm2844_vm11, %v10698_v55, %v10699_v54  ;;  %10921 = vrot.lane.b32.xlu0 %v16078_v56, %s13455_s19 }
 0x318   : > { %v2849_v57 = vsel %vm2844_vm11, %v10694_v16, %v10698_v55  ;;  %v2848_v2 = vsel %vm2844_vm11, %v10693_v38, %v10694_v16  ;;  %v10707_v49 = vpop.permute.xlu1 %10706  ;;  %v16087_v9 = vpack.i.bf16 %v10699_v54, %v2850_v3 }
 0x319   : > { %v10709_v25 = vunpack.i.h.bf16 %v10707_v49  ;;  %v10708_v44 = vunpack.i.l.bf16 %v10707_v49  ;;  %v10702_v4 = vpop.permute.xlu0 %10701  ;;  %v16089_v0 = vpack.i.bf16 %v2849_v57, %v2848_v2 }
 0x31a   : > { %v10704_v48 = vunpack.i.h.bf16 %v10702_v4  ;;  %v10703_v42 = vunpack.i.l.bf16 %v10702_v4  ;;  %10936 = vrot.lane.b32.xlu1 %v16087_v9, %s13455_s19 }
 0x31b   : > { %v2853_v53 = vsel %vm2844_vm11, %v10708_v44, %v10709_v25  ;;  %10931 = vrot.lane.b32.xlu0 %v16089_v0, %s13455_s19 }
 0x31c   : > { %v2852_v61 = vsel %vm2844_vm11, %v10704_v48, %v10708_v44  ;;  %v2851_v6 = vsel %vm2844_vm11, %v10703_v42, %v10704_v48  ;;  %v10717_v59 = vpop.permute.xlu1 %10716  ;;  %v16098_v41 = vpack.i.bf16 %v10709_v25, %v2853_v53 }
 0x31d   : > { %v10719_v36 = vunpack.i.h.bf16 %v10717_v59  ;;  %v10718_v23 = vunpack.i.l.bf16 %v10717_v59  ;;  %v10712_v30 = vpop.permute.xlu0 %10711  ;;  %v16100_v43 = vpack.i.bf16 %v2852_v61, %v2851_v6 }
 0x31e   : > { %v10714_v27 = vunpack.i.h.bf16 %v10712_v30  ;;  %v10713_v19 = vunpack.i.l.bf16 %v10712_v30  ;;  %10946 = vrot.lane.b32.xlu1 %v16098_v41, %s13455_s19 }
 0x31f   : > { %v2856_v31 = vsel %vm2844_vm11, %v10718_v23, %v10719_v36  ;;  %10941 = vrot.lane.b32.xlu0 %v16100_v43, %s13455_s19 }
 0x320   : > { %v2855_v46 = vsel %vm2844_vm11, %v10714_v27, %v10718_v23  ;;  %v2854_v58 = vsel %vm2844_vm11, %v10713_v19, %v10714_v27  ;;  %v10727_v63 = vpop.permute.xlu1 %10726  ;;  %v16109_v50 = vpack.i.bf16 %v10719_v36, %v2856_v31 }
 0x321   : > { %v10729_v21 = vunpack.i.h.bf16 %v10727_v63  ;;  %v10728_v13 = vunpack.i.l.bf16 %v10727_v63  ;;  %v10722_v28 = vpop.permute.xlu0 %10721  ;;  %v16111_v62 = vpack.i.bf16 %v2855_v46, %v2854_v58 }
 0x322   : > { %v10724_v37 = vunpack.i.h.bf16 %v10722_v28  ;;  %v10723_v52 = vunpack.i.l.bf16 %v10722_v28  ;;  %10956 = vrot.lane.b32.xlu1 %v16109_v50, %s13455_s19 }
 0x323   : > { %v2859_v39 = vsel %vm2844_vm11, %v10728_v13, %v10729_v21  ;;  %10951 = vrot.lane.b32.xlu0 %v16111_v62, %s13455_s19 }
 0x324   : > { %v2858_v15 = vsel %vm2844_vm11, %v10724_v37, %v10728_v13  ;;  %v2857_v34 = vsel %vm2844_vm11, %v10723_v52, %v10724_v37  ;;  %v10737_v1 = vpop.permute.xlu1 %10736  ;;  %v16120_v35 = vpack.i.bf16 %v10729_v21, %v2859_v39 }
 0x325   : > { %v10739_v45 = vunpack.i.h.bf16 %v10737_v1  ;;  %v10738_v11 = vunpack.i.l.bf16 %v10737_v1  ;;  %v10732_v14 = vpop.permute.xlu0 %10731  ;;  %v16122_v54 = vpack.i.bf16 %v2858_v15, %v2857_v34 }
 0x326   : > { %v10734_v55 = vunpack.i.h.bf16 %v10732_v14  ;;  %v10733_v20 = vunpack.i.l.bf16 %v10732_v14  ;;  %10966 = vrot.lane.b32.xlu1 %v16120_v35, %s13455_s19 }
 0x327   : > { %v2862_v16 = vsel %vm2844_vm11, %v10738_v11, %v10739_v45  ;;  %10961 = vrot.lane.b32.xlu0 %v16122_v54, %s13455_s19 }
 0x328   : > { %v2861_v38 = vsel %vm2844_vm11, %v10734_v55, %v10738_v11  ;;  %v2860_v3 = vsel %vm2844_vm11, %v10733_v20, %v10734_v55  ;;  %v10747_v57 = vpop.permute.xlu1 %10746  ;;  %v16131_v2 = vpack.i.bf16 %v10739_v45, %v2862_v16  ;;  %v19925_v20 = vld [vmem:[#allocation50_spill] sm:$0xff] }
 0x329   : > { %v10749_v49 = vunpack.i.h.bf16 %v10747_v57  ;;  %v10748_v25 = vunpack.i.l.bf16 %v10747_v57  ;;  %v10742_v44 = vpop.permute.xlu0 %10741  ;;  %v16133_v4 = vpack.i.bf16 %v2861_v38, %v2860_v3  ;;  %v19926_v3 = vld [vmem:[#allocation51_spill] sm:$0xff] }
 0x32a   : > { %v10744_v48 = vunpack.i.h.bf16 %v10742_v44  ;;  %v10743_v42 = vunpack.i.l.bf16 %v10742_v44  ;;  %10976 = vrot.lane.b32.xlu1 %v16131_v2, %s13455_s19 }
 0x32b   : > { %v2865_v53 = vsel %vm2844_vm11, %v10748_v25, %v10749_v49  ;;  %10971 = vrot.lane.b32.xlu0 %v16133_v4, %s13455_s19 }
 0x32c   : > { %v2864_v61 = vsel %vm2844_vm11, %v10744_v48, %v10748_v25  ;;  %v2863_v6 = vsel %vm2844_vm11, %v10743_v42, %v10744_v48  ;;  %v10757_v59 = vpop.permute.xlu1 %10756  ;;  %v16142_v36 = vpack.i.bf16 %v10749_v49, %v2865_v53  ;;  %v1987_v53 = vld [vmem:[#allocation5 + $0xb0] sm:$0xff]  ;;  %v1994_v42 = vld [vmem:[#allocation5 + $0x2c8] sm:$0xff] }
 0x32d   : > { %v10759_v23 = vunpack.i.h.bf16 %v10757_v59  ;;  %v10758_v30 = vunpack.i.l.bf16 %v10757_v59  ;;  %v10752_v27 = vpop.permute.xlu0 %10751  ;;  %v16144_v19 = vpack.i.bf16 %v2864_v61, %v2863_v6  ;;  %v1986_v61 = vld [vmem:[#allocation5 + $0xa8] sm:$0xff]  ;;  %2519 = vmatprep.mubr.f32.mxu0 %v1987_v53  ;;  %2631 = vmatprep.mubr.f32.mxu1 %v1987_v53 }
 0x32e   : > { %v10754_v31 = vunpack.i.h.bf16 %v10752_v27  ;;  %v10753_v46 = vunpack.i.l.bf16 %v10752_v27  ;;  %10986 = vrot.lane.b32.xlu1 %v16142_v36, %s13455_s19  ;;  %v19927_v27 = vld [vmem:[#allocation52_spill] sm:$0xff]  ;;  %2520 = vmatmul.mubr.f32.gmra.mrb[2].mxu0 %v1986_v61 }
 0x32f   : > { %v2868_v58 = vsel %vm2844_vm11, %v10758_v30, %v10759_v23  ;;  %10981 = vrot.lane.b32.xlu0 %v16144_v19, %s13455_s19  ;;  %2632 = vmatmul.mubr.f32.gmra.mrb[50].mxu1 %v1986_v61  ;;  %v1995_v61 = vld [vmem:[#allocation5 + $0x2d0] sm:$0xff] }
 0x330   : > { %v2867_v63 = vsel %vm2844_vm11, %v10754_v31, %v10758_v30  ;;  %v2866_v21 = vsel %vm2844_vm11, %v10753_v46, %v10754_v31  ;;  %v16153_v13 = vpack.i.bf16 %v10759_v23, %v2868_v58  ;;  %v10767_v28 = vpop.permute.xlu1 %10766 }
 0x331   : > { %v16155_v37 = vpack.i.bf16 %v2867_v63, %v2866_v21  ;;  %v10769_v52 = vunpack.i.h.bf16 %v10767_v28  ;;  %v10768_v39 = vunpack.i.l.bf16 %v10767_v28  ;;  %v10762_v15 = vpop.permute.xlu0 %10761  ;;  %v19928_v63 = vld [vmem:[#allocation53_spill] sm:$0xff] }
 0x332   : > { %10996 = vrot.lane.b32.xlu1 %v16153_v13, %s13455_s19  ;;  %v10764_v34 = vunpack.i.h.bf16 %v10762_v15  ;;  %v10763_v1 = vunpack.i.l.bf16 %v10762_v15  ;;  %v1988_v15 = vld [vmem:[#allocation5 + $0x130] sm:$0xff] }
 0x333   : > { %10991 = vrot.lane.b32.xlu0 %v16155_v37, %s13455_s19  ;;  %v16162_v11 = vsel %vm3141_vm12, %v10768_v39, %v10769_v52 }
 0x334   : > { %v10777_v45 = vpop.permute.xlu1 %10776  ;;  %v3142_v16 = vsel %vm3141_vm12, %v10763_v1, %v10764_v34  ;;  %v3143_v44 = vsel %vm3141_vm12, %v10764_v34, %v10768_v39  ;;  %v1989_v39 = vld [vmem:[#allocation5 + $0x138] sm:$0xff] }
 0x335   : > { %v10779_v14 = vunpack.i.h.bf16 %v10777_v45  ;;  %v10778_v55 = vunpack.i.l.bf16 %v10777_v45  ;;  %v10772_v38 = vpop.permute.xlu0 %10771  ;;  %2525 = vmatprep.mubr.f32.mxu0 %v1989_v39  ;;  %2636 = vmatprep.mubr.f32.mxu1 %v1989_v39  ;;  %v19932_v39 = vld [vmem:[#allocation57_spill] sm:$0xff] }
 0x336   : > { %11006 = vrot.lane.b32.xlu1 %v19925_v20, %s13455_s19  ;;  %v10774_v49 = vunpack.i.h.bf16 %v10772_v38  ;;  %v10773_v25 = vunpack.i.l.bf16 %v10772_v38  ;;  %2526 = vmatmul.mubr.f32.gmra.mrb[4].mxu0 %v1988_v15  ;;  %v19930_v38 = vld [vmem:[#allocation55_spill] sm:$0xff] }
 0x337   : > { %11001 = vrot.lane.b32.xlu0 %v19926_v3, %s13455_s19  ;;  %v16170_v57 = vsel %vm3141_vm12, %v10778_v55, %v10779_v14  ;;  %v19929_v14 = vld [vmem:[#allocation54_spill] sm:$0xff]  ;;  %2637 = vmatmul.mubr.f32.gmra.mrb[52].mxu1 %v1988_v15 }
 0x338   : > { %v10787_v48 = vpop.permute.xlu1 %10786  ;;  %v3145_v6 = vsel %vm3141_vm12, %v10773_v25, %v10774_v49  ;;  %v3146_v30 = vsel %vm3141_vm12, %v10774_v49, %v10778_v55 }
 0x339   : > { %v10789_v59 = vunpack.i.h.bf16 %v10787_v48  ;;  %v10788_v23 = vunpack.i.l.bf16 %v10787_v48  ;;  %v10782_v31 = vpop.permute.xlu0 %10781  ;;  %v8575_v46 = vpack.c.bf16 %v3146_v30, %v3143_v44  ;;  %v8577_v58 = vpack.c.bf16 %v3145_v6, %v3142_v16  ;;  %v1991_v6 = vld [vmem:[#allocation5 + $0x1c0] sm:$0xff] }
 0x33a   : > { %11016 = vrot.lane.b32.xlu1 %v19927_v27, %s13455_s19  ;;  %v10784_v21 = vunpack.i.h.bf16 %v10782_v31  ;;  %v10783_v28 = vunpack.i.l.bf16 %v10782_v31  ;;  %2531 = vmatprep.mubr.f32.mxu0 %v1991_v6 }
 0x33b   : > { %11011 = vrot.lane.b32.xlu0 %v19928_v63, %s13455_s19  ;;  %8576 = vmatprep.subr.bf16.mxu0 %v8575_v46  ;;  %v16182_v34 = vsel %vm3141_vm12, %v10788_v23, %v10789_v59  ;;  %v1990_v59 = vld [vmem:[#allocation5 + $0x1b8] sm:$0xff] }
 0x33c   : > { %v10797_v52 = vpop.permute.xlu1 %10796  ;;  %8578 = vmatpush1.bf16.msra.mxu0 %v8577_v58  ;;  %v3148_v55 = vsel %vm3141_vm12, %v10783_v28, %v10784_v21  ;;  %v3149_v48 = vsel %vm3141_vm12, %v10784_v21, %v10788_v23  ;;  %2641 = vmatprep.mubr.f32.mxu1 %v1991_v6  ;;  %v19931_v28 = vld [vmem:[#allocation56_spill] sm:$0xff] }
 0x33d   : > { %v10799_v1 = vunpack.i.h.bf16 %v10797_v52  ;;  %v10798_v45 = vunpack.i.l.bf16 %v10797_v52  ;;  %v10792_v16 = vpop.permute.xlu0 %10791  ;;  %2532 = vmatmul.mubr.f32.gmra.mrb[6].mxu0 %v1990_v59  ;;  %2642 = vmatmul.mubr.f32.gmra.mrb[54].mxu1 %v1990_v59 }
 0x33e   : > { %11026 = vrot.lane.b32.xlu1 %v19929_v14, %s13455_s19  ;;  %v10794_v25 = vunpack.i.h.bf16 %v10792_v16  ;;  %v10793_v44 = vunpack.i.l.bf16 %v10792_v16 }
 0x33f   : > { %11021 = vrot.lane.b32.xlu0 %v19930_v38, %s13455_s19  ;;  %v16190_v49 = vsel %vm3141_vm12, %v10798_v45, %v10799_v1 }
 0x340   : > { %v10807_v53 = vpop.permute.xlu1 %10806  ;;  %v3151_v30 = vsel %vm3141_vm12, %v10793_v44, %v10794_v25  ;;  %v3152_v58 = vsel %vm3141_vm12, %v10794_v25, %v10798_v45  ;;  %v1993_v44 = vld [vmem:[#allocation5 + $0x248] sm:$0xff] }
 0x341   : > { %v10809_v31 = vunpack.i.h.bf16 %v10807_v53  ;;  %v10808_v46 = vunpack.i.l.bf16 %v10807_v53  ;;  %v10802_v23 = vpop.permute.xlu0 %10801  ;;  %v8579_v21 = vpack.c.bf16 %v3152_v58, %v3149_v48  ;;  %v8581_v52 = vpack.c.bf16 %v3151_v30, %v3148_v55  ;;  %v1992_v53 = vld [vmem:[#allocation5 + $0x240] sm:$0xff]  ;;  %2537 = vmatprep.mubr.f32.mxu0 %v1993_v44  ;;  %v19933_v55 = vld [vmem:[#allocation58_spill] sm:$0xff]  ;;  %2646 = vmatprep.mubr.f32.mxu1 %v1993_v44 }
 0x342   : > { %11036 = vrot.lane.b32.xlu1 %v19931_v28, %s13455_s19  ;;  %v10804_v1 = vunpack.i.h.bf16 %v10802_v23  ;;  %v10803_v15 = vunpack.i.l.bf16 %v10802_v23  ;;  %2538 = vmatmul.mubr.f32.gmra.mrb[8].mxu0 %v1992_v53  ;;  %v19934_v58 = vld [vmem:[#allocation59_spill] sm:$0xff]  ;;  %v1997_v28 = vld [vmem:[#allocation5 + $0x358] sm:$0xff] }
 0x343   : > { %11031 = vrot.lane.b32.xlu0 %v19932_v39, %s13455_s19  ;;  %8580 = vmatprep.subr.bf16.mxu0 %v8579_v21  ;;  %v16202_v45 = vsel %vm3141_vm12, %v10808_v46, %v10809_v31 }
 0x344   : > { %v10817_v16 = vpop.permute.xlu1 %10816  ;;  %8582 = vmatpush1.bf16.msra.mxu0 %v8581_v52  ;;  %v3154_v48 = vsel %vm3141_vm12, %v10803_v15, %v10804_v1  ;;  %v3155_v21 = vsel %vm3141_vm12, %v10804_v1, %v10808_v46  ;;  %2647 = vmatmul.mubr.f32.gmra.mrb[56].mxu1 %v1992_v53 }
 0x345   : > { %v10819_v25 = vunpack.i.h.bf16 %v10817_v16  ;;  %v10818_v6 = vunpack.i.l.bf16 %v10817_v16  ;;  %v10812_v30 = vpop.permute.xlu0 %10811  ;;  %2543 = vmatprep.mubr.f32.mxu0 %v1995_v61  ;;  %2651 = vmatprep.mubr.f32.mxu1 %v1995_v61 }
 0x346   : > { %11046 = vrot.lane.b32.xlu1 %v19933_v55, %s13455_s19  ;;  %v10814_v59 = vunpack.i.h.bf16 %v10812_v30  ;;  %v10813_v31 = vunpack.i.l.bf16 %v10812_v30  ;;  %2544 = vmatmul.mubr.f32.gmra.mrb[10].mxu0 %v1994_v42  ;;  %v19936_v30 = vld [vmem:[#allocation61_spill] sm:$0xff] }
 0x347   : > { %11041 = vrot.lane.b32.xlu0 %v19934_v58, %s13455_s19  ;;  %v16210_v23 = vsel %vm3141_vm12, %v10818_v6, %v10819_v25  ;;  %v19935_v25 = vld [vmem:[#allocation60_spill] sm:$0xff]  ;;  %2549 = vmatprep.mubr.f32.mxu0 %v1997_v28 }
 0x348   : > { %v10827_v52 = vpop.permute.xlu1 %10826  ;;  %v3157_v15 = vsel %vm3141_vm12, %v10813_v31, %v10814_v59  ;;  %v3158_v58 = vsel %vm3141_vm12, %v10814_v59, %v10818_v6  ;;  %2652 = vmatmul.mubr.f32.gmra.mrb[58].mxu1 %v1994_v42 }
 0x349   : > { %v10829_v55 = vunpack.i.h.bf16 %v10827_v52  ;;  %v10828_v39 = vunpack.i.l.bf16 %v10827_v52  ;;  %v10822_v46 = vpop.permute.xlu0 %10821  ;;  %v8583_v1 = vpack.c.bf16 %v3158_v58, %v3155_v21  ;;  %v8585_v44 = vpack.c.bf16 %v3157_v15, %v3154_v48  ;;  %v1996_v52 = vld [vmem:[#allocation5 + $0x350] sm:$0xff]  ;;  %v19937_v48 = vld [vmem:[#allocation62_spill] sm:$0xff]  ;;  %v19938_v15 = vld [vmem:[#allocation63_spill] sm:$0xff]  ;;  %2656 = vmatprep.mubr.f32.mxu1 %v1997_v28 }
 0x34a   : > { %11056 = vrot.lane.b32.xlu1 %v19935_v25, %s13455_s19  ;;  %v10824_v16 = vunpack.i.h.bf16 %v10822_v46  ;;  %v10823_v53 = vunpack.i.l.bf16 %v10822_v46  ;;  %2550 = vmatmul.mubr.f32.gmra.mrb[12].mxu0 %v1996_v52 }
 0x34b   : > { %11051 = vrot.lane.b32.xlu0 %v19936_v30, %s13455_s19  ;;  %8584 = vmatprep.subr.bf16.mxu0 %v8583_v1  ;;  %v16222_v6 = vsel %vm3141_vm12, %v10828_v39, %v10829_v55 }
 0x34c   : > { %v10837_v31 = vpop.permute.xlu1 %10836  ;;  %8586 = vmatpush1.bf16.msra.mxu0 %v8585_v44  ;;  %v3160_v58 = vsel %vm3141_vm12, %v10823_v53, %v10824_v16  ;;  %v3161_v1 = vsel %vm3141_vm12, %v10824_v16, %v10828_v39  ;;  %v1999_v53 = vld [vmem:[#allocation5 + $0x3e0] sm:$0xff]  ;;  %2657 = vmatmul.mubr.f32.gmra.mrb[60].mxu1 %v1996_v52  ;;  %v13164_v39 = vld [vmem:[%s13637_s26 + $0x18] sm:$0xff]  ;;  %v19941_v52 = vld [vmem:[#allocation65_spill] sm:$0xff] }
 0x34d   : > { %v10839_v61 = vunpack.i.h.bf16 %v10837_v31  ;;  %v10838_v59 = vunpack.i.l.bf16 %v10837_v31  ;;  %v10832_v21 = vpop.permute.xlu0 %10831  ;;  %v1998_v31 = vld [vmem:[#allocation5 + $0x3d8] sm:$0xff]  ;;  %2555 = vmatprep.mubr.f32.mxu0 %v1999_v53  ;;  %2661 = vmatprep.mubr.f32.mxu1 %v1999_v53 }
 0x34e   : > { %11066 = vrot.lane.b32.xlu1 %v19937_v48, %s13455_s19  ;;  %v10834_v55 = vunpack.i.h.bf16 %v10832_v21  ;;  %v10833_v46 = vunpack.i.l.bf16 %v10832_v21  ;;  %v13163_v21 = vld [vmem:[%s13637_s26 + $0x10] sm:$0xff]  ;;  %2556 = vmatmul.mubr.f32.gmra.mrb[14].mxu0 %v1998_v31  ;;  %v2870_v53 = vld [vmem:[#allocation5 + $0x38] sm:$0xff] }
 0x34f   : > { %11061 = vrot.lane.b32.xlu0 %v19938_v15, %s13455_s19  ;;  %v16230_v42 = vsel %vm3141_vm12, %v10838_v59, %v10839_v61  ;;  %v19939_v61 = vld [vmem:[#allocation64_spill] sm:$0xff]  ;;  %v16241_v28 = vpack.i.bf16 %v13164_v39, %v13163_v21  ;;  %3398 = vmatprep.mubr.f32.mxu0 %v2870_v53  ;;  %v13171_v21 = vld [vmem:[%s13637_s26 + $0x60] sm:$0xff] }
 0x350   : > { %v3163_v48 = vsel %vm3141_vm12, %v10833_v46, %v10834_v55  ;;  %v3164_v15 = vsel %vm3141_vm12, %v10834_v55, %v10838_v59  ;;  %v13165_v46 = vld [vmem:[%s13637_s26] sm:$0xff]  ;;  %v13166_v59 = vld [vmem:[%s13637_s26 + $0x8] sm:$0xff]  ;;  %2662 = vmatmul.mubr.f32.gmra.mrb[62].mxu1 %v1998_v31 }
 0x351   : > { %19940 = vst [vmem:[#allocation35_spill] sm:$0xff] %v16241_v28  ;;  %v8587_v16 = vpack.c.bf16 %v3164_v15, %v3161_v1  ;;  %v8589_v44 = vpack.c.bf16 %v3163_v48, %v3160_v58  ;;  %v16247_v55 = vpack.i.bf16 %v13166_v59, %v13165_v46  ;;  %v13167_v48 = vld [vmem:[%s13637_s26 + $0x38] sm:$0xff]  ;;  %v13168_v58 = vld [vmem:[%s13637_s26 + $0x40] sm:$0xff]  ;;  %3511 = vmatprep.mubr.f32.mxu1 %v2870_v53  ;;  %v13169_v1 = vld [vmem:[%s13637_s26 + $0x28] sm:$0xff] }
 0x352   : > { %11076 = vrot.lane.b32.xlu1 %v19939_v61, %s13455_s19  ;;  %v16253_v15 = vpack.i.bf16 %v13168_v58, %v13167_v48  ;;  %v13172_v39 = vld [vmem:[%s13637_s26 + $0x68] sm:$0xff]  ;;  %v13173_v46 = vld [vmem:[%s13637_s26 + $0x50] sm:$0xff]  ;;  %v13174_v59 = vld [vmem:[%s13637_s26 + $0x58] sm:$0xff] }
 0x353   : > { %11071 = vrot.lane.b32.xlu0 %v19941_v52, %s13455_s19  ;;  %19942 = vst [vmem:[#allocation39_spill] sm:$0xff] %v16247_v55  ;;  %8588 = vmatprep.subr.bf16.mxu0 %v8587_v16  ;;  %v16265_v16 = vpack.i.bf16 %v13172_v39, %v13171_v21  ;;  %v16271_v53 = vpack.i.bf16 %v13174_v59, %v13173_v46  ;;  %v13175_v48 = vld [vmem:[%s13637_s26 + $0x88] sm:$0xff]  ;;  %v13176_v58 = vld [vmem:[%s13637_s26 + $0x90] sm:$0xff]  ;;  %v13178_v21 = vld [vmem:[%s13637_s26 + $0x80] sm:$0xff] }
 0x354   : > { %8590 = vmatpush1.bf16.msra.mxu0 %v8589_v44  ;;  %19943 = vst [vmem:[#allocation41_spill] sm:$0xff] %v16253_v15  ;;  %v13170_v44 = vld [vmem:[%s13637_s26 + $0x30] sm:$0xff]  ;;  %v13180_v59 = vld [vmem:[%s13637_s26 + $0xb8] sm:$0xff] }
 0x355   : > { %v16259_v31 = vpack.i.bf16 %v13170_v44, %v13169_v1  ;;  %19945 = vst [vmem:[#allocation73_spill] sm:$0xff] %v16265_v16  ;;  %19946 = vst [vmem:[#allocation74_spill] sm:$0xff] %v16271_v53  ;;  %v16277_v1 = vpack.i.bf16 %v13176_v58, %v13175_v48  ;;  %v13177_v44 = vld [vmem:[%s13637_s26 + $0x78] sm:$0xff]  ;;  %v13179_v46 = vld [vmem:[%s13637_s26 + $0xb0] sm:$0xff] }
 0x356   : > { %11086 = vrot.lane.b32.xlu1 %v16241_v28, %s13456_s30  ;;  %v16283_v39 = vpack.i.bf16 %v13178_v21, %v13177_v44  ;;  %v13181_v48 = vld [vmem:[%s13637_s26 + $0xa0] sm:$0xff]  ;;  %v13182_v58 = vld [vmem:[%s13637_s26 + $0xa8] sm:$0xff]  ;;  %v13183_v44 = vld [vmem:[%s13637_s26 + $0xd8] sm:$0xff] }
 0x357   : > { %11081 = vrot.lane.b32.xlu0 %v16247_v55, %s13456_s30  ;;  %19944 = vst [vmem:[#allocation72_spill] sm:$0xff] %v16259_v31  ;;  %19947 = vst [vmem:[#allocation43_spill] sm:$0xff] %v16277_v1  ;;  %v13184_v21 = vld [vmem:[%s13637_s26 + $0xe0] sm:$0xff] }
 0x358   : > { %19948 = vst [vmem:[#allocation75_spill] sm:$0xff] %v16283_v39 }
 0x35a   : > { %11096 = vrot.lane.b32.xlu1 %v16253_v15, %s13456_s30 }
 0x35b   : > { %11091 = vrot.lane.b32.xlu0 %v16259_v31, %s13456_s30 }
 0x35e   : > { %11106 = vrot.lane.b32.xlu1 %v16265_v16, %s13456_s30  ;;  %v16289_v16 = vpack.i.bf16 %v13180_v59, %v13179_v46  ;;  %v13185_v46 = vld [vmem:[%s13637_s26 + $0xc8] sm:$0xff]  ;;  %v13186_v59 = vld [vmem:[%s13637_s26 + $0xd0] sm:$0xff] }
 0x35f   : > { %11101 = vrot.lane.b32.xlu0 %v16271_v53, %s13456_s30  ;;  %v16295_v53 = vpack.i.bf16 %v13182_v58, %v13181_v48  ;;  %v13187_v48 = vld [vmem:[%s13637_s26 + $0x100] sm:$0xff]  ;;  %v13188_v58 = vld [vmem:[%s13637_s26 + $0x108] sm:$0xff] }
 0x360   : > { %19949 = vst [vmem:[#allocation45_spill] sm:$0xff] %v16289_v16  ;;  %v16313_v55 = vpack.i.bf16 %v13188_v58, %v13187_v48 }
 0x361   : > { %19950 = vst [vmem:[#allocation85_spill] sm:$0xff] %v16295_v53 }
 0x362   : > { %11116 = vrot.lane.b32.xlu1 %v16277_v1, %s13456_s30  ;;  %v16301_v1 = vpack.i.bf16 %v13184_v21, %v13183_v44  ;;  %19953 = vst [vmem:[#allocation87_spill] sm:$0xff] %v16313_v55  ;;  %v13190_v44 = vld [vmem:[%s13637_s26 + $0xf8] sm:$0xff] }
 0x363   : > { %11111 = vrot.lane.b32.xlu0 %v16283_v39, %s13456_s30  ;;  %v16307_v39 = vpack.i.bf16 %v13186_v59, %v13185_v46 }
 0x364   : > { %19951 = vst [vmem:[#allocation76_spill] sm:$0xff] %v16301_v1 }
 0x365   : > { %19952 = vst [vmem:[#allocation77_spill] sm:$0xff] %v16307_v39 }
 0x366   : > { %11126 = vrot.lane.b32.xlu1 %v16289_v16, %s13456_s30  ;;  %v13189_v16 = vld [vmem:[%s13637_s26 + $0xf0] sm:$0xff] }
 0x367   : > { %11121 = vrot.lane.b32.xlu0 %v16295_v53, %s13456_s30  ;;  %v10847_v31 = vpop.permute.xlu1 %10846  ;;  %v16317_v21 = vpack.i.bf16 %v13190_v44, %v13189_v16  ;;  %v13191_v16 = vld [vmem:[%s13637_s26 + $0x128] sm:$0xff]  ;;  %v13192_v44 = vld [vmem:[%s13637_s26 + $0x130] sm:$0xff] }
 0x368   : > { %v10842_v15 = vpop.permute.xlu0 %10841  ;;  %v10849_v53 = vunpack.i.h.bf16 %v10847_v31  ;;  %v10848_v28 = vunpack.i.l.bf16 %v10847_v31  ;;  %v16325_v25 = vpack.i.bf16 %v13192_v44, %v13191_v16 }
 0x369   : > { %19954 = vst [vmem:[#allocation89_spill] sm:$0xff] %v16317_v21  ;;  %v10844_v52 = vunpack.i.h.bf16 %v10842_v15  ;;  %v10843_v46 = vunpack.i.l.bf16 %v10842_v15 }
 0x36a   : > { %11136 = vrot.lane.b32.xlu1 %v16301_v1, %s13456_s30  ;;  %v16328_v15 = vsel %vm3141_vm12, %v10848_v28, %v10849_v53 }
 0x36b   : > { %11131 = vrot.lane.b32.xlu0 %v16307_v39, %s13456_s30  ;;  %v3166_v31 = vsel %vm3141_vm12, %v10843_v46, %v10844_v52  ;;  %v3167_v16 = vsel %vm3141_vm12, %v10844_v52, %v10848_v28 }
 0x36c   : > { %v10857_v59 = vpop.permute.xlu1 %10856 }
 0x36d   : > { %v10859_v1 = vunpack.i.h.bf16 %v10857_v59  ;;  %v10858_v61 = vunpack.i.l.bf16 %v10857_v59  ;;  %v10852_v48 = vpop.permute.xlu0 %10851  ;;  %v13193_v59 = vld [vmem:[%s13637_s26 + $0x118] sm:$0xff] }
 0x36e   : > { %v10854_v58 = vunpack.i.h.bf16 %v10852_v48  ;;  %v10853_v30 = vunpack.i.l.bf16 %v10852_v48  ;;  %11146 = vrot.lane.b32.xlu1 %v16313_v55, %s13456_s30  ;;  %v13194_v48 = vld [vmem:[%s13637_s26 + $0x120] sm:$0xff] }
 0x36f   : > { %v16332_v39 = vsel %vm3141_vm12, %v10858_v61, %v10859_v1  ;;  %11141 = vrot.lane.b32.xlu0 %v16317_v21, %s13456_s30  ;;  %v16338_v38 = vpack.i.bf16 %v13194_v48, %v13193_v59 }
 0x370   : > { %v3169_v55 = vsel %vm3141_vm12, %v10853_v30, %v10854_v58  ;;  %v10867_v14 = vpop.permute.xlu1 %10866  ;;  %v3170_v53 = vsel %vm3141_vm12, %v10854_v58, %v10858_v61 }
 0x371   : > { %v10862_v44 = vpop.permute.xlu0 %10861  ;;  %v8591_v1 = vpack.c.bf16 %v3170_v53, %v3167_v16  ;;  %v8593_v63 = vpack.c.bf16 %v3169_v55, %v3166_v31  ;;  %v10869_v21 = vunpack.i.h.bf16 %v10867_v14  ;;  %v10868_v27 = vunpack.i.l.bf16 %v10867_v14 }
 0x372   : > { %11156 = vrot.lane.b32.xlu1 %v16325_v25, %s13456_s30  ;;  %v10864_v59 = vunpack.i.h.bf16 %v10862_v44  ;;  %v10863_v48 = vunpack.i.l.bf16 %v10862_v44 }
 0x373   : > { %11151 = vrot.lane.b32.xlu0 %v16338_v38, %s13456_s30  ;;  %8592 = vmatprep.subr.bf16.mxu0 %v8591_v1  ;;  %v16352_v55 = vsel %vm3141_vm12, %v10868_v27, %v10869_v21 }
 0x374   : > { %8594 = vmatpush1.bf16.msra.mxu0 %v8593_v63  ;;  %v10877_v30 = vpop.permute.xlu1 %10876  ;;  %v3172_v14 = vsel %vm3141_vm12, %v10863_v48, %v10864_v59  ;;  %v3173_v53 = vsel %vm3141_vm12, %v10864_v59, %v10868_v27 }
 0x375   : > { %v10879_v61 = vunpack.i.h.bf16 %v10877_v30  ;;  %v10878_v28 = vunpack.i.l.bf16 %v10877_v30  ;;  %v10872_v52 = vpop.permute.xlu0 %10871 }
 0x376   : > { %v10874_v58 = vunpack.i.h.bf16 %v10872_v52  ;;  %v10873_v46 = vunpack.i.l.bf16 %v10872_v52  ;;  %11166 = vrot.lane.b32.xlu1 %v15988_v40, %s13456_s30 }
 0x377   : > { %v16356_v31 = vsel %vm3141_vm12, %v10878_v28, %v10879_v61  ;;  %11161 = vrot.lane.b32.xlu0 %v15990_v8, %s13456_s30 }
 0x378   : > { %v3175_v63 = vsel %vm3141_vm12, %v10873_v46, %v10874_v58  ;;  %v10887_v16 = vpop.permute.xlu1 %10886  ;;  %v3176_v44 = vsel %vm3141_vm12, %v10874_v58, %v10878_v28 }
 0x379   : > { %v10882_v21 = vpop.permute.xlu0 %10881  ;;  %v8595_v1 = vpack.c.bf16 %v3176_v44, %v3173_v53  ;;  %v8597_v30 = vpack.c.bf16 %v3175_v63, %v3172_v14  ;;  %v10889_v48 = vunpack.i.h.bf16 %v10887_v16  ;;  %v10888_v61 = vunpack.i.l.bf16 %v10887_v16 }
 0x37a   : > { %11176 = vrot.lane.b32.xlu1 %v15999_v5, %s13456_s30  ;;  %v10884_v52 = vunpack.i.h.bf16 %v10882_v21  ;;  %v10883_v8 = vunpack.i.l.bf16 %v10882_v21 }
 0x37b   : > { %11171 = vrot.lane.b32.xlu0 %v16001_v32, %s13456_s30  ;;  %8596 = vmatprep.subr.bf16.mxu0 %v8595_v1  ;;  %v16372_v5 = vsel %vm3141_vm12, %v10888_v61, %v10889_v48 }
 0x37c   : > { %8598 = vmatpush1.bf16.msra.mxu0 %v8597_v30  ;;  %v10897_v27 = vpop.permute.xlu1 %10896  ;;  %v3178_v14 = vsel %vm3141_vm12, %v10883_v8, %v10884_v52  ;;  %v3179_v53 = vsel %vm3141_vm12, %v10884_v52, %v10888_v61 }
 0x37d   : > { %v10899_v46 = vunpack.i.h.bf16 %v10897_v27  ;;  %v10898_v59 = vunpack.i.l.bf16 %v10897_v27  ;;  %v10892_v28 = vpop.permute.xlu0 %10891 }
 0x37e   : > { %v10894_v58 = vunpack.i.h.bf16 %v10892_v28  ;;  %v10893_v40 = vunpack.i.l.bf16 %v10892_v28  ;;  %11186 = vrot.lane.b32.xlu1 %v16010_v22, %s13456_s30 }
 0x37f   : > { %v16376_v63 = vsel %vm3141_vm12, %v10898_v59, %v10899_v46  ;;  %11181 = vrot.lane.b32.xlu0 %v16012_v17, %s13456_s30 }
 0x380   : > { %v3181_v32 = vsel %vm3141_vm12, %v10893_v40, %v10894_v58  ;;  %v10907_v16 = vpop.permute.xlu1 %10906  ;;  %v3182_v44 = vsel %vm3141_vm12, %v10894_v58, %v10898_v59  ;;  %v8665_v22 = vpack.c.bf16 %v16376_v63, %v16372_v5 }
 0x381   : > { %v10902_v21 = vpop.permute.xlu0 %10901  ;;  %v8599_v1 = vpack.c.bf16 %v3182_v44, %v3179_v53  ;;  %v8601_v30 = vpack.c.bf16 %v3181_v32, %v3178_v14  ;;  %v10909_v48 = vunpack.i.h.bf16 %v10907_v16  ;;  %v10908_v8 = vunpack.i.l.bf16 %v10907_v16 }
 0x382   : > { %11196 = vrot.lane.b32.xlu1 %v16021_v51, %s13456_s30  ;;  %v10904_v27 = vunpack.i.h.bf16 %v10902_v21  ;;  %v10903_v17 = vunpack.i.l.bf16 %v10902_v21 }
 0x383   : > { %11191 = vrot.lane.b32.xlu0 %v16023_v10, %s13456_s30  ;;  %8600 = vmatprep.subr.bf16.mxu0 %v8599_v1  ;;  %v16392_v51 = vsel %vm3141_vm12, %v10908_v8, %v10909_v48 }
 0x384   : > { %8602 = vmatpush1.bf16.msra.mxu0 %v8601_v30  ;;  %v10917_v40 = vpop.permute.xlu1 %10916  ;;  %v3184_v58 = vsel %vm3141_vm12, %v10903_v17, %v10904_v27  ;;  %v3185_v16 = vsel %vm3141_vm12, %v10904_v27, %v10908_v8 }
 0x385   : > { %v10919_v61 = vunpack.i.h.bf16 %v10917_v40  ;;  %v10918_v52 = vunpack.i.l.bf16 %v10917_v40  ;;  %v10912_v46 = vpop.permute.xlu0 %10911 }
 0x386   : > { %v10914_v59 = vunpack.i.h.bf16 %v10912_v46  ;;  %v10913_v28 = vunpack.i.l.bf16 %v10912_v46  ;;  %11206 = vrot.lane.b32.xlu1 %v16032_v7, %s13456_s30 }
 0x387   : > { %v16396_v14 = vsel %vm3141_vm12, %v10918_v52, %v10919_v61  ;;  %11201 = vrot.lane.b32.xlu0 %v16034_v26, %s13456_s30 }
 0x388   : > { %v3187_v10 = vsel %vm3141_vm12, %v10913_v28, %v10914_v59  ;;  %v10927_v32 = vpop.permute.xlu1 %10926  ;;  %v3188_v53 = vsel %vm3141_vm12, %v10914_v59, %v10918_v52  ;;  %v8669_v7 = vpack.c.bf16 %v16396_v14, %v16392_v51  ;;  %v19972_v51 = vld [vmem:[#allocation63_spill] sm:$0xff] }
 0x389   : > { %v10922_v44 = vpop.permute.xlu0 %10921  ;;  %v8603_v21 = vpack.c.bf16 %v3188_v53, %v3185_v16  ;;  %v8605_v1 = vpack.c.bf16 %v3187_v10, %v3184_v58  ;;  %v10929_v30 = vunpack.i.h.bf16 %v10927_v32  ;;  %v10928_v48 = vunpack.i.l.bf16 %v10927_v32 }
 0x38a   : > { %11216 = vrot.lane.b32.xlu1 %v16043_v24, %s13456_s30  ;;  %v10924_v17 = vunpack.i.h.bf16 %v10922_v44  ;;  %v10923_v26 = vunpack.i.l.bf16 %v10922_v44 }
 0x38b   : > { %11211 = vrot.lane.b32.xlu0 %v16045_v18, %s13456_s30  ;;  %8604 = vmatprep.subr.bf16.mxu0 %v8603_v21  ;;  %v3192_v59 = vsel %vm3141_vm12, %v10928_v48, %v10929_v30 }
 0x38c   : > { %8606 = vmatpush1.bf16.msra.mxu0 %v8605_v1  ;;  %v10937_v8 = vpop.permute.xlu1 %10936  ;;  %v3190_v24 = vsel %vm3141_vm12, %v10923_v26, %v10924_v17  ;;  %v3191_v10 = vsel %vm3141_vm12, %v10924_v17, %v10928_v48  ;;  %v19955_v48 = vpack.c.bf16 %v16170_v57, %v16162_v11 }
 0x38d   : > { %v10939_v27 = vunpack.i.h.bf16 %v10937_v8  ;;  %v10938_v40 = vunpack.i.l.bf16 %v10937_v8  ;;  %v10932_v61 = vpop.permute.xlu0 %10931 }
 0x38e   : > { %v10934_v52 = vunpack.i.h.bf16 %v10932_v61  ;;  %v10933_v46 = vunpack.i.l.bf16 %v10932_v61  ;;  %11226 = vrot.lane.b32.xlu1 %v16054_v47, %s13456_s30 }
 0x38f   : > { %11221 = vrot.lane.b32.xlu0 %v16056_v33, %s13456_s30  ;;  %v3195_v18 = vsel %vm3141_vm12, %v10938_v40, %v10939_v27 }
 0x390   : > { %v3193_v28 = vsel %vm3141_vm12, %v10933_v46, %v10934_v52  ;;  %v10947_v58 = vpop.permute.xlu1 %10946  ;;  %v3194_v32 = vsel %vm3141_vm12, %v10934_v52, %v10938_v40  ;;  %v8639_v16 = vpack.c.bf16 %v3195_v18, %v3192_v59 }
 0x391   : > { %v10942_v53 = vpop.permute.xlu0 %10941  ;;  %v8607_v44 = vpack.c.bf16 %v3194_v32, %v3191_v10  ;;  %v8609_v47 = vpack.c.bf16 %v3193_v28, %v3190_v24  ;;  %v10949_v33 = vunpack.i.h.bf16 %v10947_v58  ;;  %v10948_v21 = vunpack.i.l.bf16 %v10947_v58 }
 0x392   : > { %11236 = vrot.lane.b32.xlu1 %v16065_v12, %s13456_s30  ;;  %8640 = vmatprep.subr.bf16.mxu1 %v8639_v16  ;;  %v10944_v1 = vunpack.i.h.bf16 %v10942_v53  ;;  %v10943_v30 = vunpack.i.l.bf16 %v10942_v53  ;;  %v19956_v16 = vpack.c.bf16 %v16190_v49, %v16182_v34 }
 0x393   : > { %11231 = vrot.lane.b32.xlu0 %v16067_v29, %s13456_s30  ;;  %8608 = vmatprep.subr.bf16.mxu0 %v8607_v44  ;;  %v3198_v29 = vsel %vm3141_vm12, %v10948_v21, %v10949_v33 }
 0x394   : > { %8610 = vmatpush1.bf16.msra.mxu0 %v8609_v47  ;;  %8642 = vmatpush3.bf16.msra.mxu1 %v19955_v48  ;;  %v10957_v17 = vpop.permute.xlu1 %10956  ;;  %v3196_v61 = vsel %vm3141_vm12, %v10943_v30, %v10944_v1  ;;  %v3197_v46 = vsel %vm3141_vm12, %v10944_v1, %v10948_v21 }
 0x395   : > { %v10959_v26 = vunpack.i.h.bf16 %v10957_v17  ;;  %v10958_v8 = vunpack.i.l.bf16 %v10957_v17  ;;  %v10952_v27 = vpop.permute.xlu0 %10951 }
 0x396   : > { %v10954_v40 = vunpack.i.h.bf16 %v10952_v27  ;;  %v10953_v12 = vunpack.i.l.bf16 %v10952_v27  ;;  %11246 = vrot.lane.b32.xlu1 %v16076_v60, %s13456_s30 }
 0x397   : > { %11241 = vrot.lane.b32.xlu0 %v16078_v56, %s13456_s30  ;;  %v3201_v52 = vsel %vm3141_vm12, %v10958_v8, %v10959_v26 }
 0x398   : > { %v3199_v11 = vsel %vm3141_vm12, %v10953_v12, %v10954_v40  ;;  %v10967_v57 = vpop.permute.xlu1 %10966  ;;  %v3200_v24 = vsel %vm3141_vm12, %v10954_v40, %v10958_v8  ;;  %v8643_v59 = vpack.c.bf16 %v3201_v52, %v3198_v29  ;;  %v19957_v29 = vpack.c.bf16 %v16210_v23, %v16202_v45 }
 0x399   : > { %v10962_v18 = vpop.permute.xlu0 %10961  ;;  %v8611_v28 = vpack.c.bf16 %v3200_v24, %v3197_v46  ;;  %v8613_v60 = vpack.c.bf16 %v3199_v11, %v3196_v61  ;;  %v10969_v56 = vunpack.i.h.bf16 %v10967_v57  ;;  %v10968_v58 = vunpack.i.l.bf16 %v10967_v57 }
 0x39a   : > { %11256 = vrot.lane.b32.xlu1 %v16087_v9, %s13456_s30  ;;  %8644 = vmatprep.subr.bf16.mxu1 %v8643_v59  ;;  %v10964_v10 = vunpack.i.h.bf16 %v10962_v18  ;;  %v10963_v32 = vunpack.i.l.bf16 %v10962_v18 }
 0x39b   : > { %11251 = vrot.lane.b32.xlu0 %v16089_v0, %s13456_s30  ;;  %8612 = vmatprep.subr.bf16.mxu0 %v8611_v28  ;;  %v3204_v0 = vsel %vm3141_vm12, %v10968_v58, %v10969_v56 }
 0x39c   : > { %8614 = vmatpush1.bf16.msra.mxu0 %v8613_v60  ;;  %8646 = vmatpush3.bf16.msra.mxu1 %v19956_v16  ;;  %v10977_v53 = vpop.permute.xlu1 %10976  ;;  %v3202_v1 = vsel %vm3141_vm12, %v10963_v32, %v10964_v10  ;;  %v3203_v48 = vsel %vm3141_vm12, %v10964_v10, %v10968_v58 }
 0x39d   : > { %v10979_v44 = vunpack.i.h.bf16 %v10977_v53  ;;  %v10978_v47 = vunpack.i.l.bf16 %v10977_v53  ;;  %v10972_v33 = vpop.permute.xlu0 %10971 }
 0x39e   : > { %v10974_v21 = vunpack.i.h.bf16 %v10972_v33  ;;  %v10973_v9 = vunpack.i.l.bf16 %v10972_v33  ;;  %11266 = vrot.lane.b32.xlu1 %v16098_v41, %s13456_s30 }
 0x39f   : > { %11261 = vrot.lane.b32.xlu0 %v16100_v43, %s13456_s30  ;;  %v3207_v30 = vsel %vm3141_vm12, %v10978_v47, %v10979_v44  ;;  %v19958_v44 = vpack.c.bf16 %v16230_v42, %v16222_v6 }
 0x3a0   : > { %v3205_v34 = vsel %vm3141_vm12, %v10973_v9, %v10974_v21  ;;  %v10987_v49 = vpop.permute.xlu1 %10986  ;;  %v3206_v17 = vsel %vm3141_vm12, %v10974_v21, %v10978_v47  ;;  %v8647_v26 = vpack.c.bf16 %v3207_v30, %v3204_v0 }
 0x3a1   : > { %v10982_v8 = vpop.permute.xlu0 %10981  ;;  %v8615_v27 = vpack.c.bf16 %v3206_v17, %v3203_v48  ;;  %v8617_v41 = vpack.c.bf16 %v3205_v34, %v3202_v1  ;;  %v10989_v43 = vunpack.i.h.bf16 %v10987_v49  ;;  %v10988_v40 = vunpack.i.l.bf16 %v10987_v49 }
 0x3a2   : > { %11276 = vrot.lane.b32.xlu1 %v16109_v50, %s13456_s30  ;;  %8648 = vmatprep.subr.bf16.mxu1 %v8647_v26  ;;  %v10984_v12 = vunpack.i.h.bf16 %v10982_v8  ;;  %v10983_v61 = vunpack.i.l.bf16 %v10982_v8 }
 0x3a3   : > { %11271 = vrot.lane.b32.xlu0 %v16111_v62, %s13456_s30  ;;  %8616 = vmatprep.subr.bf16.mxu0 %v8615_v27  ;;  %v3210_v62 = vsel %vm3141_vm12, %v10988_v40, %v10989_v43  ;;  %v19959_v43 = vpack.c.bf16 %v16332_v39, %v16328_v15 }
 0x3a4   : > { %8618 = vmatpush1.bf16.msra.mxu0 %v8617_v41  ;;  %8650 = vmatpush3.bf16.msra.mxu1 %v19957_v29  ;;  %v10997_v52 = vpop.permute.xlu1 %10996  ;;  %v3208_v59 = vsel %vm3141_vm12, %v10983_v61, %v10984_v12  ;;  %v3209_v28 = vsel %vm3141_vm12, %v10984_v12, %v10988_v40 }
 0x3a5   : > { %v10999_v11 = vunpack.i.h.bf16 %v10997_v52  ;;  %v10998_v57 = vunpack.i.l.bf16 %v10997_v52  ;;  %v10992_v46 = vpop.permute.xlu0 %10991 }
 0x3a6   : > { %v10994_v24 = vunpack.i.h.bf16 %v10992_v46  ;;  %v10993_v50 = vunpack.i.l.bf16 %v10992_v46  ;;  %11286 = vrot.lane.b32.xlu1 %v16120_v35, %s13456_s30 }
 0x3a7   : > { %11281 = vrot.lane.b32.xlu0 %v16122_v54, %s13456_s30  ;;  %v3213_v18 = vsel %vm3141_vm12, %v10998_v57, %v10999_v11 }
 0x3a8   : > { %v3211_v45 = vsel %vm3141_vm12, %v10993_v50, %v10994_v24  ;;  %v11007_v23 = vpop.permute.xlu1 %11006  ;;  %v3212_v60 = vsel %vm3141_vm12, %v10994_v24, %v10998_v57  ;;  %v8651_v56 = vpack.c.bf16 %v3213_v18, %v3210_v62  ;;  %v19960_v18 = vld [vmem:[#allocation52_spill] sm:$0xff] }
 0x3a9   : > { %v11002_v58 = vpop.permute.xlu0 %11001  ;;  %v8619_v10 = vpack.c.bf16 %v3212_v60, %v3209_v28  ;;  %v8621_v35 = vpack.c.bf16 %v3211_v45, %v3208_v59  ;;  %v11009_v54 = vunpack.i.h.bf16 %v11007_v23  ;;  %v11008_v32 = vunpack.i.l.bf16 %v11007_v23  ;;  %v19961_v60 = vld [vmem:[#allocation53_spill] sm:$0xff] }
 0x3aa   : > { %11296 = vrot.lane.b32.xlu1 %v16131_v2, %s13456_s30  ;;  %8652 = vmatprep.subr.bf16.mxu1 %v8651_v56  ;;  %v11004_v16 = vunpack.i.h.bf16 %v11002_v58  ;;  %v11003_v53 = vunpack.i.l.bf16 %v11002_v58  ;;  %v19962_v56 = vpack.c.bf16 %v16356_v31, %v16352_v55 }
 0x3ab   : > { %11291 = vrot.lane.b32.xlu0 %v16133_v4, %s13456_s30  ;;  %8620 = vmatprep.subr.bf16.mxu0 %v8619_v10  ;;  %v3216_v4 = vsel %vm3141_vm12, %v11008_v32, %v11009_v54 }
 0x3ac   : > { %8622 = vmatpush1.bf16.msra.mxu0 %v8621_v35  ;;  %8654 = vmatpush3.bf16.msra.mxu1 %v19958_v44  ;;  %v11017_v47 = vpop.permute.xlu1 %11016  ;;  %v3214_v0 = vsel %vm3141_vm12, %v11003_v53, %v11004_v16  ;;  %v3215_v34 = vsel %vm3141_vm12, %v11004_v16, %v11008_v32  ;;  %v19963_v53 = vld [vmem:[#allocation54_spill] sm:$0xff] }
 0x3ad   : > { %v11019_v33 = vunpack.i.h.bf16 %v11017_v47  ;;  %v11018_v21 = vunpack.i.l.bf16 %v11017_v47  ;;  %v11012_v9 = vpop.permute.xlu0 %11011  ;;  %v19964_v47 = vld [vmem:[#allocation55_spill] sm:$0xff] }
 0x3ae   : > { %v11014_v1 = vunpack.i.h.bf16 %v11012_v9  ;;  %v11013_v2 = vunpack.i.l.bf16 %v11012_v9  ;;  %11306 = vrot.lane.b32.xlu1 %v16142_v36, %s13456_s30 }
 0x3af   : > { %11301 = vrot.lane.b32.xlu0 %v16144_v19, %s13456_s30  ;;  %v3219_v30 = vsel %vm3141_vm12, %v11018_v21, %v11019_v33 }
 0x3b0   : > { %v3217_v6 = vsel %vm3141_vm12, %v11013_v2, %v11014_v1  ;;  %v11027_v42 = vpop.permute.xlu1 %11026  ;;  %v3218_v49 = vsel %vm3141_vm12, %v11014_v1, %v11018_v21  ;;  %v8655_v48 = vpack.c.bf16 %v3219_v30, %v3216_v4 }
 0x3b1   : > { %v11022_v17 = vpop.permute.xlu0 %11021  ;;  %v8623_v26 = vpack.c.bf16 %v3218_v49, %v3215_v34  ;;  %v8625_v36 = vpack.c.bf16 %v3217_v6, %v3214_v0  ;;  %v11029_v19 = vunpack.i.h.bf16 %v11027_v42  ;;  %v11028_v8 = vunpack.i.l.bf16 %v11027_v42  ;;  %v19965_v6 = vld [vmem:[#allocation56_spill] sm:$0xff] }
 0x3b2   : > { %11316 = vrot.lane.b32.xlu1 %v16153_v13, %s13456_s30  ;;  %8656 = vmatprep.subr.bf16.mxu1 %v8655_v48  ;;  %v11024_v27 = vunpack.i.h.bf16 %v11022_v17  ;;  %v11023_v41 = vunpack.i.l.bf16 %v11022_v17  ;;  %v19966_v17 = vld [vmem:[#allocation57_spill] sm:$0xff] }
 0x3b3   : > { %11311 = vrot.lane.b32.xlu0 %v16155_v37, %s13456_s30  ;;  %8624 = vmatprep.subr.bf16.mxu0 %v8623_v26  ;;  %v3222_v37 = vsel %vm3141_vm12, %v11028_v8, %v11029_v19 }
 0x3b4   : > { %8626 = vmatpush1.bf16.msra.mxu0 %v8625_v36  ;;  %8658 = vmatpush3.bf16.msra.mxu1 %v19959_v43  ;;  %v11037_v40 = vpop.permute.xlu1 %11036  ;;  %v3220_v11 = vsel %vm3141_vm12, %v11023_v41, %v11024_v27  ;;  %v3221_v46 = vsel %vm3141_vm12, %v11024_v27, %v11028_v8  ;;  %v19967_v43 = vld [vmem:[#allocation58_spill] sm:$0xff] }
 0x3b5   : > { %v11039_v12 = vunpack.i.h.bf16 %v11037_v40  ;;  %v11038_v61 = vunpack.i.l.bf16 %v11037_v40  ;;  %v11032_v29 = vpop.permute.xlu0 %11031 }
 0x3b6   : > { %v11034_v52 = vunpack.i.h.bf16 %v11032_v29  ;;  %v11033_v13 = vunpack.i.l.bf16 %v11032_v29  ;;  %11326 = vrot.lane.b32.xlu1 %v19925_v20, %s13456_s30 }
 0x3b7   : > { %11321 = vrot.lane.b32.xlu0 %v19926_v3, %s13456_s30  ;;  %v3225_v57 = vsel %vm3141_vm12, %v11038_v61, %v11039_v12  ;;  %v19968_v12 = vld [vmem:[#allocation59_spill] sm:$0xff] }
 0x3b8   : > { %v3223_v39 = vsel %vm3141_vm12, %v11033_v13, %v11034_v52  ;;  %v11047_v15 = vpop.permute.xlu1 %11046  ;;  %v3224_v24 = vsel %vm3141_vm12, %v11034_v52, %v11038_v61  ;;  %v8659_v50 = vpack.c.bf16 %v3225_v57, %v3222_v37 }
 0x3b9   : > { %v11042_v59 = vpop.permute.xlu0 %11041  ;;  %v8627_v62 = vpack.c.bf16 %v3224_v24, %v3221_v46  ;;  %v8629_v20 = vpack.c.bf16 %v3223_v39, %v3220_v11  ;;  %v11049_v3 = vunpack.i.h.bf16 %v11047_v15  ;;  %v11048_v45 = vunpack.i.l.bf16 %v11047_v15  ;;  %v19969_v39 = vld [vmem:[#allocation60_spill] sm:$0xff] }
 0x3ba   : > { %11336 = vrot.lane.b32.xlu1 %v19960_v18, %s13456_s30  ;;  %8660 = vmatprep.subr.bf16.mxu1 %v8659_v50  ;;  %v11044_v23 = vunpack.i.h.bf16 %v11042_v59  ;;  %v11043_v28 = vunpack.i.l.bf16 %v11042_v59  ;;  %v19970_v59 = vld [vmem:[#allocation61_spill] sm:$0xff] }
 0x3bb   : > { %11331 = vrot.lane.b32.xlu0 %v19961_v60, %s13456_s30  ;;  %8628 = vmatprep.subr.bf16.mxu0 %v8627_v62  ;;  %v3228_v33 = vsel %vm3141_vm12, %v11048_v45, %v11049_v3  ;;  %v19971_v60 = vld [vmem:[#allocation62_spill] sm:$0xff] }
 0x3bc   : > { %8630 = vmatpush1.bf16.msra.mxu0 %v8629_v20  ;;  %8662 = vmatpush3.bf16.msra.mxu1 %v19962_v56  ;;  %v11057_v58 = vpop.permute.xlu1 %11056  ;;  %v3226_v44 = vsel %vm3141_vm12, %v11043_v28, %v11044_v23  ;;  %v3227_v9 = vsel %vm3141_vm12, %v11044_v23, %v11048_v45  ;;  %v2869_v20 = vld [vmem:[#allocation5 + $0x30] sm:$0xff] }
 0x3bd   : > { %v11059_v10 = vunpack.i.h.bf16 %v11057_v58  ;;  %v11058_v35 = vunpack.i.l.bf16 %v11057_v58  ;;  %v11052_v54 = vpop.permute.xlu0 %11051 }
 0x3be   : > { %v11054_v32 = vunpack.i.h.bf16 %v11052_v54  ;;  %v11053_v16 = vunpack.i.l.bf16 %v11052_v54  ;;  %11346 = vrot.lane.b32.xlu1 %v19963_v53, %s13456_s30 }
 0x3bf   : > { %11341 = vrot.lane.b32.xlu0 %v19964_v47, %s13456_s30  ;;  %v3231_v21 = vsel %vm3141_vm12, %v11058_v35, %v11059_v10  ;;  %v19973_v47 = vld [vmem:[#allocation64_spill] sm:$0xff] }
 0x3c0   : > { %v3229_v55 = vsel %vm3141_vm12, %v11053_v16, %v11054_v32  ;;  %v11067_v31 = vpop.permute.xlu1 %11066  ;;  %v3230_v1 = vsel %vm3141_vm12, %v11054_v32, %v11058_v35  ;;  %v8663_v2 = vpack.c.bf16 %v3231_v21, %v3228_v33 }
 0x3c1   : > { %v11062_v0 = vpop.permute.xlu0 %11061  ;;  %v8631_v4 = vpack.c.bf16 %v3230_v1, %v3227_v9  ;;  %v8633_v30 = vpack.c.bf16 %v3229_v55, %v3226_v44  ;;  %v11069_v42 = vunpack.i.h.bf16 %v11067_v31  ;;  %v11068_v34 = vunpack.i.l.bf16 %v11067_v31  ;;  %v19974_v9 = vld [vmem:[#allocation65_spill] sm:$0xff] }
 0x3c2   : > { %11356 = vrot.lane.b32.xlu1 %v19965_v6, %s13456_s30  ;;  %8664 = vmatprep.subr.bf16.mxu1 %v8663_v2  ;;  %v11064_v49 = vunpack.i.h.bf16 %v11062_v0  ;;  %v11063_v48 = vunpack.i.l.bf16 %v11062_v0 }
 0x3c3   : > { %11351 = vrot.lane.b32.xlu0 %v19966_v17, %s13456_s30  ;;  %8632 = vmatprep.subr.bf16.mxu0 %v8631_v4  ;;  %v3234_v61 = vsel %vm3141_vm12, %v11068_v34, %v11069_v42  ;;  %v19975_v42 = vld [vmem:[#allocation35_spill] sm:$0xff] }
 0x3c4   : > { %8634 = vmatpush1.bf16.msra.mxu0 %v8633_v30  ;;  %8666 = vmatpush3.bf16.msra.mxu1 %v8665_v22  ;;  %v11077_v26 = vpop.permute.xlu1 %11076  ;;  %v3232_v40 = vsel %vm3141_vm12, %v11063_v48, %v11064_v49  ;;  %v3233_v22 = vsel %vm3141_vm12, %v11064_v49, %v11068_v34  ;;  %v19976_v17 = vld [vmem:[#allocation39_spill] sm:$0xff] }
 0x3c5   : > { %v11079_v36 = vunpack.i.h.bf16 %v11077_v26  ;;  %v11078_v19 = vunpack.i.l.bf16 %v11077_v26  ;;  %v11072_v8 = vpop.permute.xlu0 %11071 }
 0x3c6   : > { %v11074_v27 = vunpack.i.h.bf16 %v11072_v8  ;;  %v11073_v41 = vunpack.i.l.bf16 %v11072_v8  ;;  %11366 = vrot.lane.b32.xlu1 %v19967_v43, %s13456_s30 }
 0x3c7   : > { %11361 = vrot.lane.b32.xlu0 %v19968_v12, %s13456_s30  ;;  %v3237_v29 = vsel %vm3141_vm12, %v11078_v19, %v11079_v36  ;;  %v19977_v12 = vld [vmem:[#allocation41_spill] sm:$0xff] }
 0x3c8   : > { %v3235_v5 = vsel %vm3141_vm12, %v11073_v41, %v11074_v27  ;;  %v11087_v63 = vpop.permute.xlu1 %11086  ;;  %v3236_v52 = vsel %vm3141_vm12, %v11074_v27, %v11078_v19  ;;  %v8667_v13 = vpack.c.bf16 %v3237_v29, %v3234_v61 }
 0x3c9   : > { %v11082_v11 = vpop.permute.xlu0 %11081  ;;  %v8635_v37 = vpack.c.bf16 %v3236_v52, %v3233_v22  ;;  %v8637_v57 = vpack.c.bf16 %v3235_v5, %v3232_v40  ;;  %v11089_v15 = vunpack.i.h.bf16 %v11087_v63  ;;  %v11088_v46 = vunpack.i.l.bf16 %v11087_v63  ;;  %v19978_v22 = vld [vmem:[#allocation72_spill] sm:$0xff] }
 0x3ca   : > { %11376 = vrot.lane.b32.xlu1 %v19969_v39, %s13456_s30  ;;  %8668 = vmatprep.subr.bf16.mxu1 %v8667_v13  ;;  %v11084_v24 = vunpack.i.h.bf16 %v11082_v11  ;;  %v11083_v50 = vunpack.i.l.bf16 %v11082_v11 }
 0x3cb   : > { %11371 = vrot.lane.b32.xlu0 %v19970_v59, %s13456_s30  ;;  %8636 = vmatprep.subr.bf16.mxu0 %v8635_v37  ;;  %v16548_v56 = vsel %vm3848_vm13, %v11088_v46, %v11089_v15  ;;  %v19979_v15 = vld [vmem:[#allocation73_spill] sm:$0xff]  ;;  %v19980_v59 = vld [vmem:[#allocation74_spill] sm:$0xff] }
 0x3cc   : > { %8638 = vmatpush1.bf16.msra.mxu0 %v8637_v57  ;;  %8670 = vmatpush3.bf16.msra.mxu1 %v8669_v7  ;;  %v11097_v62 = vpop.permute.xlu1 %11096  ;;  %v3849_v58 = vsel %vm3848_vm13, %v11083_v50, %v11084_v24  ;;  %v3850_v35 = vsel %vm3848_vm13, %v11084_v24, %v11088_v46 }
 0x3cd   : > { %v11099_v18 = vunpack.i.h.bf16 %v11097_v62  ;;  %v11098_v3 = vunpack.i.l.bf16 %v11097_v62  ;;  %v11092_v45 = vpop.permute.xlu0 %11091 }
 0x3ce   : > { %v11094_v23 = vunpack.i.h.bf16 %v11092_v45  ;;  %v11093_v28 = vunpack.i.l.bf16 %v11092_v45  ;;  %11386 = vrot.lane.b32.xlu1 %v19971_v60, %s13456_s30 }
 0x3cf   : > { %v16552_v10 = vsel %vm3848_vm13, %v11098_v3, %v11099_v18  ;;  %11381 = vrot.lane.b32.xlu0 %v19972_v51, %s13456_s30  ;;  %3399 = vmatmul.mubr.f32.vlgmr.msra.gmra.mrb[0].mxu0 %v2869_v20 }
 0x3d0   : > { %v3852_v14 = vsel %vm3848_vm13, %v11093_v28, %v11094_v23  ;;  %v11107_v7 = vpop.permute.xlu1 %11106  ;;  %v3853_v54 = vsel %vm3848_vm13, %v11094_v23, %v11098_v3  ;;  %3512 = vmatmul.mubr.f32.vlgmr.msra.gmra.mrb[64].mxu1 %v2869_v20  ;;  %v8737_v32 = vpack.c.bf16 %v16552_v10, %v16548_v56 }
 0x3d1   : > { %v11102_v16 = vpop.permute.xlu0 %11101  ;;  %v8671_v53 = vpack.c.bf16 %v3853_v54, %v3850_v35  ;;  %v8673_v44 = vpack.c.bf16 %v3852_v14, %v3849_v58  ;;  %v11109_v33 = vunpack.i.h.bf16 %v11107_v7  ;;  %v11108_v21 = vunpack.i.l.bf16 %v11107_v7  ;;  %v19981_v58 = vld [vmem:[#allocation43_spill] sm:$0xff] }
 0x3d2   : > { %11396 = vrot.lane.b32.xlu1 %v19973_v47, %s13456_s30  ;;  %v11104_v55 = vunpack.i.h.bf16 %v11102_v16  ;;  %v11103_v31 = vunpack.i.l.bf16 %v11102_v16  ;;  %v19982_v54 = vld [vmem:[#allocation75_spill] sm:$0xff] }
 0x3d3   : > { %11391 = vrot.lane.b32.xlu0 %v19974_v9, %s13456_s30  ;;  %8672 = vmatprep.subr.bf16.mxu0 %v8671_v53  ;;  %v16568_v34 = vsel %vm3848_vm13, %v11108_v21, %v11109_v33  ;;  %s13465_s30 = smov [#allocation7]  }
 0x3d4   : > { %8674 = vmatpush1.bf16.msra.mxu0 %v8673_v44  ;;  %v11117_v1 = vpop.permute.xlu1 %11116  ;;  %v3855_v49 = vsel %vm3848_vm13, %v11103_v31, %v11104_v55  ;;  %v3856_v19 = vsel %vm3848_vm13, %v11104_v55, %v11108_v21  ;;  %v19983_v55 = vld [vmem:[#allocation45_spill] sm:$0xff] }
 0x3d5   : > { %v11119_v2 = vunpack.i.h.bf16 %v11117_v1  ;;  %v11118_v0 = vunpack.i.l.bf16 %v11117_v1  ;;  %v11112_v4 = vpop.permute.xlu0 %11111 }
 0x3d6   : > { %v11114_v30 = vunpack.i.h.bf16 %v11112_v4  ;;  %v11113_v6 = vunpack.i.l.bf16 %v11112_v4  ;;  %11406 = vrot.lane.b32.xlu1 %v19975_v42, %s13457_s4 }
 0x3d7   : > { %v16572_v48 = vsel %vm3848_vm13, %v11118_v0, %v11119_v2  ;;  %11401 = vrot.lane.b32.xlu0 %v19976_v17, %s13457_s4  ;;  %v19984_v2 = vld [vmem:[#allocation85_spill] sm:$0xff] }
 0x3d8   : > { %v3858_v26 = vsel %vm3848_vm13, %v11113_v6, %v11114_v30  ;;  %v11127_v36 = vpop.permute.xlu1 %11126  ;;  %v3859_v8 = vsel %vm3848_vm13, %v11114_v30, %v11118_v0  ;;  %v8741_v27 = vpack.c.bf16 %v16572_v48, %v16568_v34 }
 0x3d9   : > { %v11122_v41 = vpop.permute.xlu0 %11121  ;;  %v8675_v43 = vpack.c.bf16 %v3859_v8, %v3856_v19  ;;  %v8677_v40 = vpack.c.bf16 %v3858_v26, %v3855_v49  ;;  %v11129_v61 = vunpack.i.h.bf16 %v11127_v36  ;;  %v11128_v29 = vunpack.i.l.bf16 %v11127_v36  ;;  %v19985_v36 = vld [vmem:[#allocation76_spill] sm:$0xff] }
 0x3da   : > { %11416 = vrot.lane.b32.xlu1 %v19977_v12, %s13457_s4  ;;  %v11124_v5 = vunpack.i.h.bf16 %v11122_v41  ;;  %v11123_v63 = vunpack.i.l.bf16 %v11122_v41 }
 0x3db   : > { %11411 = vrot.lane.b32.xlu0 %v19978_v22, %s13457_s4  ;;  %8676 = vmatprep.subr.bf16.mxu0 %v8675_v43  ;;  %v16588_v46 = vsel %vm3848_vm13, %v11128_v29, %v11129_v61 }
 0x3dc   : > { %8678 = vmatpush1.bf16.msra.mxu0 %v8677_v40  ;;  %v11137_v52 = vpop.permute.xlu1 %11136  ;;  %v3861_v24 = vsel %vm3848_vm13, %v11123_v63, %v11124_v5  ;;  %v3862_v18 = vsel %vm3848_vm13, %v11124_v5, %v11128_v29  ;;  %v19986_v40 = vld [vmem:[#allocation77_spill] sm:$0xff] }
 0x3dd   : > { %v11139_v13 = vunpack.i.h.bf16 %v11137_v52  ;;  %v11138_v11 = vunpack.i.l.bf16 %v11137_v52  ;;  %v11132_v37 = vpop.permute.xlu0 %11131  ;;  %v19987_v52 = vld [vmem:[#allocation87_spill] sm:$0xff] }
 0x3de   : > { %v11134_v57 = vunpack.i.h.bf16 %v11132_v37  ;;  %v11133_v39 = vunpack.i.l.bf16 %v11132_v37  ;;  %11426 = vrot.lane.b32.xlu1 %v19979_v15, %s13457_s4 }
 0x3df   : > { %v16592_v50 = vsel %vm3848_vm13, %v11138_v11, %v11139_v13  ;;  %11421 = vrot.lane.b32.xlu0 %v19980_v59, %s13457_s4 }
 0x3e0   : > { %v3864_v62 = vsel %vm3848_vm13, %v11133_v39, %v11134_v57  ;;  %v11147_v20 = vpop.permute.xlu1 %11146  ;;  %v3865_v3 = vsel %vm3848_vm13, %v11134_v57, %v11138_v11  ;;  %v8745_v45 = vpack.c.bf16 %v16592_v50, %v16588_v46  ;;  %v19988_v57 = vld [vmem:[#allocation89_spill] sm:$0xff] }
 0x3e1   : > { %v11142_v23 = vpop.permute.xlu0 %11141  ;;  %v8679_v28 = vpack.c.bf16 %v3865_v3, %v3862_v18  ;;  %v8681_v60 = vpack.c.bf16 %v3864_v62, %v3861_v24  ;;  %v11149_v51 = vunpack.i.h.bf16 %v11147_v20  ;;  %v11148_v14 = vunpack.i.l.bf16 %v11147_v20 }
 0x3e2   : > { %11436 = vrot.lane.b32.xlu1 %v19981_v58, %s13457_s4  ;;  %v11144_v7 = vunpack.i.h.bf16 %v11142_v23  ;;  %v11143_v35 = vunpack.i.l.bf16 %v11142_v23  ;;  %v13195_v23 = vld [vmem:[%s13637_s26 + $0x10] sm:$0xff]  ;;  %v13197_v58 = vld [vmem:[%s13637_s26] sm:$0xff] }
 0x3e3   : > { %11431 = vrot.lane.b32.xlu0 %v19982_v54, %s13457_s4  ;;  %8680 = vmatprep.subr.bf16.mxu0 %v8679_v28  ;;  %v16608_v31 = vsel %vm3848_vm13, %v11148_v14, %v11149_v51  ;;  %v13196_v28 = vld [vmem:[%s13637_s26 + $0x18] sm:$0xff]  ;;  %v13198_v51 = vld [vmem:[%s13637_s26 + $0x8] sm:$0xff] }
 0x3e4   : > { %8682 = vmatpush1.bf16.msra.mxu0 %v8681_v60  ;;  %v11157_v16 = vpop.permute.xlu1 %11156  ;;  %v3867_v9 = vsel %vm3848_vm13, %v11143_v35, %v11144_v7  ;;  %v3868_v30 = vsel %vm3848_vm13, %v11144_v7, %v11148_v14  ;;  %v16645_v60 = vpack.i.bf16 %v13196_v28, %v13195_v23  ;;  %v16649_v14 = vpack.i.bf16 %v13198_v51, %v13197_v58  ;;  %v13207_v23 = vld [vmem:[%s13637_s26 + $0x88] sm:$0xff]  ;;  %v13208_v28 = vld [vmem:[%s13637_s26 + $0x90] sm:$0xff] }
 0x3e5   : > { %v11159_v53 = vunpack.i.h.bf16 %v11157_v16  ;;  %v11158_v44 = vunpack.i.l.bf16 %v11157_v16  ;;  %v11152_v47 = vpop.permute.xlu0 %11151  ;;  %v16693_v58 = vpack.i.bf16 %v13208_v28, %v13207_v23  ;;  %v13218_v23 = vld [vmem:[%s13637_s26 + $0xd0] sm:$0xff] }
 0x3e6   : > { %v11154_v33 = vunpack.i.h.bf16 %v11152_v47  ;;  %v11153_v21 = vunpack.i.l.bf16 %v11152_v47  ;;  %11446 = vrot.lane.b32.xlu1 %v19983_v55, %s13457_s4  ;;  %v13199_v55 = vld [vmem:[%s13637_s26 + $0x38] sm:$0xff] }
 0x3e7   : > { %v16612_v1 = vsel %vm3848_vm13, %v11158_v44, %v11159_v53  ;;  %11441 = vrot.lane.b32.xlu0 %v19984_v2, %s13457_s4 }
 0x3e8   : > { %v3870_v0 = vsel %vm3848_vm13, %v11153_v21, %v11154_v33  ;;  %v11167_v4 = vpop.permute.xlu1 %11166  ;;  %v3871_v6 = vsel %vm3848_vm13, %v11154_v33, %v11158_v44  ;;  %v8749_v42 = vpack.c.bf16 %v16612_v1, %v16608_v31 }
 0x3e9   : > { %v11162_v49 = vpop.permute.xlu0 %11161  ;;  %v8683_v17 = vpack.c.bf16 %v3871_v6, %v3868_v30  ;;  %v8685_v26 = vpack.c.bf16 %v3870_v0, %v3867_v9  ;;  %v11169_v19 = vunpack.i.h.bf16 %v11167_v4  ;;  %v11168_v8 = vunpack.i.l.bf16 %v11167_v4  ;;  %v13200_v9 = vld [vmem:[%s13637_s26 + $0x40] sm:$0xff]  ;;  %v13201_v30 = vld [vmem:[%s13637_s26 + $0x28] sm:$0xff]  ;;  %v13202_v6 = vld [vmem:[%s13637_s26 + $0x30] sm:$0xff] }
 0x3ea   : > { %11456 = vrot.lane.b32.xlu1 %v19985_v36, %s13457_s4  ;;  %v11164_v41 = vunpack.i.h.bf16 %v11162_v49  ;;  %v11163_v43 = vunpack.i.l.bf16 %v11162_v49  ;;  %v16657_v2 = vpack.i.bf16 %v13200_v9, %v13199_v55  ;;  %v16670_v49 = vpack.i.bf16 %v13202_v6, %v13201_v30  ;;  %v13211_v30 = vld [vmem:[%s13637_s26 + $0xb0] sm:$0xff]  ;;  %v13212_v6 = vld [vmem:[%s13637_s26 + $0xb8] sm:$0xff] }
 0x3eb   : > { %11451 = vrot.lane.b32.xlu0 %v19986_v40, %s13457_s4  ;;  %8684 = vmatprep.subr.bf16.mxu0 %v8683_v17  ;;  %v16628_v13 = vsel %vm3848_vm13, %v11168_v8, %v11169_v19 }
 0x3ec   : > { %8686 = vmatpush1.bf16.msra.mxu0 %v8685_v26  ;;  %v11177_v12 = vpop.permute.xlu1 %11176  ;;  %v3873_v11 = vsel %vm3848_vm13, %v11163_v43, %v11164_v41  ;;  %v3874_v24 = vsel %vm3848_vm13, %v11164_v41, %v11168_v8 }
 0x3ed   : > { %v11179_v61 = vunpack.i.h.bf16 %v11177_v12  ;;  %v11178_v29 = vunpack.i.l.bf16 %v11177_v12  ;;  %v11172_v5 = vpop.permute.xlu0 %11171  ;;  %v13203_v12 = vld [vmem:[%s13637_s26 + $0x60] sm:$0xff] }
 0x3ee   : > { %v11174_v63 = vunpack.i.h.bf16 %v11172_v5  ;;  %v11173_v22 = vunpack.i.l.bf16 %v11172_v5  ;;  %11466 = vrot.lane.b32.xlu1 %v19987_v52, %s13457_s4  ;;  %v13205_v5 = vld [vmem:[%s13637_s26 + $0x50] sm:$0xff] }
 0x3ef   : > { %v16632_v37 = vsel %vm3848_vm13, %v11178_v29, %v11179_v61  ;;  %11461 = vrot.lane.b32.xlu0 %v19988_v57, %s13457_s4  ;;  %v13204_v61 = vld [vmem:[%s13637_s26 + $0x68] sm:$0xff] }
 0x3f0   : > { %v3876_v39 = vsel %vm3848_vm13, %v11173_v22, %v11174_v63  ;;  %v11187_v15 = vpop.permute.xlu1 %11186  ;;  %v3877_v59 = vsel %vm3848_vm13, %v11174_v63, %v11178_v29  ;;  %v8753_v62 = vpack.c.bf16 %v16632_v37, %v16628_v13  ;;  %v16681_v29 = vpack.i.bf16 %v13204_v61, %v13203_v12  ;;  %v13206_v63 = vld [vmem:[%s13637_s26 + $0x58] sm:$0xff] }
 0x3f1   : > { %v11182_v20 = vpop.permute.xlu0 %11181  ;;  %v8687_v18 = vpack.c.bf16 %v3877_v59, %v3874_v24  ;;  %v8689_v3 = vpack.c.bf16 %v3876_v39, %v3873_v11  ;;  %v11189_v7 = vunpack.i.h.bf16 %v11187_v15  ;;  %v11188_v35 = vunpack.i.l.bf16 %v11187_v15 }
 0x3f2   : > { %11476 = vrot.lane.b32.xlu1 %v16325_v25, %s13457_s4  ;;  %v11184_v54 = vunpack.i.h.bf16 %v11182_v20  ;;  %v11183_v16 = vunpack.i.l.bf16 %v11182_v20  ;;  %v16685_v22 = vpack.i.bf16 %v13206_v63, %v13205_v5 }
 0x3f3   : > { %11471 = vrot.lane.b32.xlu0 %v16338_v38, %s13457_s4  ;;  %8688 = vmatprep.subr.bf16.mxu0 %v8687_v18  ;;  %v16660_v38 = vsel %vm3848_vm13, %v11188_v35, %v11189_v7  ;;  %s13353_s4 = sshll.u32 %s13465_s30, 4  ;;  %s13354_s4 = int_to_ptr.vmem [resolvable:$false] %s13353_s4 }
 0x3f4   : > { %8690 = vmatpush1.bf16.msra.mxu0 %v8689_v3  ;;  %v11197_v25 = vpop.permute.xlu1 %11196  ;;  %v3879_v0 = vsel %vm3848_vm13, %v11183_v16, %v11184_v54  ;;  %v3880_v36 = vsel %vm3848_vm13, %v11184_v54, %v11188_v35  ;;  %v13209_v54 = vld [vmem:[%s13637_s26 + $0x78] sm:$0xff]  ;;  %v13210_v16 = vld [vmem:[%s13637_s26 + $0x80] sm:$0xff] }
 0x3f5   : > { %v11199_v53 = vunpack.i.h.bf16 %v11197_v25  ;;  %v11198_v44 = vunpack.i.l.bf16 %v11197_v25  ;;  %v11192_v47 = vpop.permute.xlu0 %11191  ;;  %v16706_v25 = vpack.i.bf16 %v13210_v16, %v13209_v54 }
 0x3f6   : > { %v11194_v33 = vunpack.i.h.bf16 %v11192_v47  ;;  %v11193_v21 = vunpack.i.l.bf16 %v11192_v47  ;;  %11486 = vrot.lane.b32.xlu1 %v16645_v60, %s13458_s22 }
 0x3f7   : > { %v16664_v4 = vsel %vm3848_vm13, %v11198_v44, %v11199_v53  ;;  %11481 = vrot.lane.b32.xlu0 %v16649_v14, %s13458_s22 }
 0x3f8   : > { %v3882_v17 = vsel %vm3848_vm13, %v11193_v21, %v11194_v33  ;;  %v11207_v26 = vpop.permute.xlu1 %11206  ;;  %v3883_v19 = vsel %vm3848_vm13, %v11194_v33, %v11198_v44  ;;  %v8757_v8 = vpack.c.bf16 %v16664_v4, %v16660_v38 }
 0x3f9   : > { %v11202_v41 = vpop.permute.xlu0 %11201  ;;  %v8691_v43 = vpack.c.bf16 %v3883_v19, %v3880_v36  ;;  %v8693_v40 = vpack.c.bf16 %v3882_v17, %v3879_v0  ;;  %v11209_v52 = vunpack.i.h.bf16 %v11207_v26  ;;  %v11208_v11 = vunpack.i.l.bf16 %v11207_v26  ;;  %v13213_v26 = vld [vmem:[%s13637_s26 + $0xa0] sm:$0xff]  ;;  %v13214_v36 = vld [vmem:[%s13637_s26 + $0xa8] sm:$0xff] }
 0x3fa   : > { %11496 = vrot.lane.b32.xlu1 %v16657_v2, %s13458_s22  ;;  %v11204_v57 = vunpack.i.h.bf16 %v11202_v41  ;;  %v11203_v39 = vunpack.i.l.bf16 %v11202_v41  ;;  %v16717_v17 = vpack.i.bf16 %v13212_v6, %v13211_v30  ;;  %v16721_v19 = vpack.i.bf16 %v13214_v36, %v13213_v26  ;;  %v13220_v30 = vld [vmem:[%s13637_s26 + $0x108] sm:$0xff]  ;;  %v13221_v26 = vld [vmem:[%s13637_s26 + $0xf0] sm:$0xff]  ;;  %v13222_v36 = vld [vmem:[%s13637_s26 + $0xf8] sm:$0xff] }
 0x3fb   : > { %11491 = vrot.lane.b32.xlu0 %v16670_v49, %s13458_s22  ;;  %8692 = vmatprep.subr.bf16.mxu0 %v8691_v43  ;;  %v16696_v51 = vsel %vm3848_vm13, %v11208_v11, %v11209_v52 }
 0x3fc   : > { %8694 = vmatpush1.bf16.msra.mxu0 %v8693_v40  ;;  %v11217_v15 = vpop.permute.xlu1 %11216  ;;  %v3885_v7 = vsel %vm3848_vm13, %v11203_v39, %v11204_v57  ;;  %v3886_v47 = vsel %vm3848_vm13, %v11204_v57, %v11208_v11  ;;  %v13215_v39 = vld [vmem:[%s13637_s26 + $0xd8] sm:$0xff] }
 0x3fd   : > { %v11219_v24 = vunpack.i.h.bf16 %v11217_v15  ;;  %v11218_v59 = vunpack.i.l.bf16 %v11217_v15  ;;  %v11212_v20 = vpop.permute.xlu0 %11211  ;;  %v13216_v15 = vld [vmem:[%s13637_s26 + $0xe0] sm:$0xff] }
 0x3fe   : > { %v11214_v18 = vunpack.i.h.bf16 %v11212_v20  ;;  %v11213_v3 = vunpack.i.l.bf16 %v11212_v20  ;;  %11506 = vrot.lane.b32.xlu1 %v16681_v29, %s13458_s22 }
 0x3ff   : > { %v16700_v35 = vsel %vm3848_vm13, %v11218_v59, %v11219_v24  ;;  %11501 = vrot.lane.b32.xlu0 %v16685_v22, %s13458_s22  ;;  %v16729_v24 = vpack.i.bf16 %v13216_v15, %v13215_v39 }
 0x400   : > { %v3888_v53 = vsel %vm3848_vm13, %v11213_v3, %v11214_v18  ;;  %v11227_v44 = vpop.permute.xlu1 %11226  ;;  %v3889_v33 = vsel %vm3848_vm13, %v11214_v18, %v11218_v59  ;;  %v8761_v21 = vpack.c.bf16 %v16700_v35, %v16696_v51  ;;  %v13217_v3 = vld [vmem:[%s13637_s26 + $0xc8] sm:$0xff] }
 0x401   : > { %v11222_v55 = vpop.permute.xlu0 %11221  ;;  %v8695_v9 = vpack.c.bf16 %v3889_v33, %v3886_v47  ;;  %v8697_v0 = vpack.c.bf16 %v3888_v53, %v3885_v7  ;;  %v11229_v41 = vunpack.i.h.bf16 %v11227_v44  ;;  %v11228_v43 = vunpack.i.l.bf16 %v11227_v44  ;;  %v2872_v47 = vld [vmem:[#allocation5 + $0xc0] sm:$0xff] }
 0x402   : > { %11516 = vrot.lane.b32.xlu1 %v16693_v58, %s13458_s22  ;;  %v11224_v40 = vunpack.i.h.bf16 %v11222_v55  ;;  %v11223_v12 = vunpack.i.l.bf16 %v11222_v55  ;;  %v16742_v28 = vpack.i.bf16 %v13218_v23, %v13217_v3  ;;  %3404 = vmatprep.mubr.f32.mxu0 %v2872_v47  ;;  %v13223_v3 = vld [vmem:[%s13637_s26 + $0x128] sm:$0xff]  ;;  %v13224_v23 = vld [vmem:[%s13637_s26 + $0x130] sm:$0xff] }
 0x403   : > { %11511 = vrot.lane.b32.xlu0 %v16706_v25, %s13458_s22  ;;  %8696 = vmatprep.subr.bf16.mxu0 %v8695_v9  ;;  %v16732_v59 = vsel %vm3848_vm13, %v11228_v43, %v11229_v41  ;;  %v16757_v41 = vpack.i.bf16 %v13222_v36, %v13221_v26 }
 0x404   : > { %8698 = vmatpush1.bf16.msra.mxu0 %v8697_v0  ;;  %v11237_v61 = vpop.permute.xlu1 %11236  ;;  %v3891_v20 = vsel %vm3848_vm13, %v11223_v12, %v11224_v40  ;;  %v3892_v16 = vsel %vm3848_vm13, %v11224_v40, %v11228_v43  ;;  %3516 = vmatprep.mubr.f32.mxu1 %v2872_v47  ;;  %v13219_v0 = vld [vmem:[%s13637_s26 + $0x100] sm:$0xff] }
 0x405   : > { %v11239_v5 = vunpack.i.h.bf16 %v11237_v61  ;;  %v11238_v63 = vunpack.i.l.bf16 %v11237_v61  ;;  %v11232_v52 = vpop.permute.xlu0 %11231  ;;  %v16753_v6 = vpack.i.bf16 %v13220_v30, %v13219_v0 }
 0x406   : > { %v11234_v11 = vunpack.i.h.bf16 %v11232_v52  ;;  %v11233_v57 = vunpack.i.l.bf16 %v11232_v52  ;;  %11526 = vrot.lane.b32.xlu1 %v16717_v17, %s13458_s22 }
 0x407   : > { %v16736_v18 = vsel %vm3848_vm13, %v11238_v63, %v11239_v5  ;;  %11521 = vrot.lane.b32.xlu0 %v16721_v19, %s13458_s22  ;;  %v2871_v5 = vld [vmem:[#allocation5 + $0xb8] sm:$0xff] }
 0x408   : > { %v3894_v7 = vsel %vm3848_vm13, %v11233_v57, %v11234_v11  ;;  %v11247_v54 = vpop.permute.xlu1 %11246  ;;  %v3895_v53 = vsel %vm3848_vm13, %v11234_v11, %v11238_v63  ;;  %v8765_v44 = vpack.c.bf16 %v16736_v18, %v16732_v59  ;;  %v2874_v63 = vld [vmem:[#allocation5 + $0x148] sm:$0xff]  ;;  %3517 = vmatmul.mubr.f32.gmra.mrb[66].mxu1 %v2871_v5  ;;  %3405 = vmatmul.mubr.f32.gmra.mrb[2].mxu0 %v2871_v5  ;;  %v2876_v5 = vld [vmem:[#allocation5 + $0x1d0] sm:$0xff] }
 0x409   : > { %v11242_v33 = vpop.permute.xlu0 %11241  ;;  %v8699_v55 = vpack.c.bf16 %v3895_v53, %v3892_v16  ;;  %v8701_v9 = vpack.c.bf16 %v3894_v7, %v3891_v20  ;;  %v11249_v43 = vunpack.i.h.bf16 %v11247_v54  ;;  %v11248_v40 = vunpack.i.l.bf16 %v11247_v54  ;;  %3521 = vmatprep.mubr.f32.mxu1 %v2874_v63  ;;  %3410 = vmatprep.mubr.f32.mxu0 %v2874_v63  ;;  %v13225_v16 = vld [vmem:[%s13637_s26 + $0x118] sm:$0xff]  ;;  %v13226_v53 = vld [vmem:[%s13637_s26 + $0x120] sm:$0xff] }
 0x40a   : > { %11536 = vrot.lane.b32.xlu1 %v16729_v24, %s13458_s22  ;;  %v11244_v12 = vunpack.i.h.bf16 %v11242_v33  ;;  %v11243_v61 = vunpack.i.l.bf16 %v11242_v33  ;;  %v16765_v7 = vpack.i.bf16 %v13224_v23, %v13223_v3  ;;  %v16772_v47 = vpack.i.bf16 %v13226_v53, %v13225_v16 }
 0x40b   : > { %11531 = vrot.lane.b32.xlu0 %v16742_v28, %s13458_s22  ;;  %8700 = vmatprep.subr.bf16.mxu0 %v8699_v55  ;;  %v3899_v33 = vsel %vm3848_vm13, %v11248_v40, %v11249_v43 }
 0x40c   : > { %8702 = vmatpush1.bf16.msra.mxu0 %v8701_v9  ;;  %v11257_v52 = vpop.permute.xlu1 %11256  ;;  %v3897_v54 = vsel %vm3848_vm13, %v11243_v61, %v11244_v12  ;;  %v2873_v9 = vld [vmem:[#allocation5 + $0x140] sm:$0xff]  ;;  %v3898_v26 = vsel %vm3848_vm13, %v11244_v12, %v11248_v40  ;;  %v2875_v40 = vld [vmem:[#allocation5 + $0x1c8] sm:$0xff] }
 0x40d   : > { %v11259_v11 = vunpack.i.h.bf16 %v11257_v52  ;;  %v11258_v57 = vunpack.i.l.bf16 %v11257_v52  ;;  %v11252_v39 = vpop.permute.xlu0 %11251  ;;  %3522 = vmatmul.mubr.f32.gmra.mrb[68].mxu1 %v2873_v9  ;;  %3411 = vmatmul.mubr.f32.gmra.mrb[4].mxu0 %v2873_v9 }
 0x40e   : > { %v11254_v15 = vunpack.i.h.bf16 %v11252_v39  ;;  %v11253_v20 = vunpack.i.l.bf16 %v11252_v39  ;;  %11546 = vrot.lane.b32.xlu1 %v16753_v6, %s13458_s22  ;;  %3526 = vmatprep.mubr.f32.mxu1 %v2876_v5 }
 0x40f   : > { %11541 = vrot.lane.b32.xlu0 %v16757_v41, %s13458_s22  ;;  %v3902_v55 = vsel %vm3848_vm13, %v11258_v57, %v11259_v11  ;;  %3416 = vmatprep.mubr.f32.mxu0 %v2876_v5 }
 0x410   : > { %v3900_v0 = vsel %vm3848_vm13, %v11253_v20, %v11254_v15  ;;  %v11267_v30 = vpop.permute.xlu1 %11266  ;;  %v3901_v36 = vsel %vm3848_vm13, %v11254_v15, %v11258_v57  ;;  %v8735_v61 = vpack.c.bf16 %v3902_v55, %v3899_v33  ;;  %v2878_v57 = vld [vmem:[#allocation5 + $0x258] sm:$0xff] }
 0x411   : > { %v11262_v63 = vpop.permute.xlu0 %11261  ;;  %v8703_v52 = vpack.c.bf16 %v3901_v36, %v3898_v26  ;;  %v8705_v39 = vpack.c.bf16 %v3900_v0, %v3897_v54  ;;  %v11269_v43 = vunpack.i.h.bf16 %v11267_v30  ;;  %v11268_v11 = vunpack.i.l.bf16 %v11267_v30  ;;  %3527 = vmatmul.mubr.f32.gmra.mrb[70].mxu1 %v2875_v40  ;;  %3417 = vmatmul.mubr.f32.gmra.mrb[6].mxu0 %v2875_v40 }
 0x412   : > { %11556 = vrot.lane.b32.xlu1 %v16765_v7, %s13458_s22  ;;  %8736 = vmatprep.subr.bf16.mxu1 %v8735_v61  ;;  %v11264_v20 = vunpack.i.h.bf16 %v11262_v63  ;;  %v11263_v3 = vunpack.i.l.bf16 %v11262_v63 }
 0x413   : > { %11551 = vrot.lane.b32.xlu0 %v16772_v47, %s13458_s22  ;;  %8704 = vmatprep.subr.bf16.mxu0 %v8703_v52  ;;  %v3905_v55 = vsel %vm3848_vm13, %v11268_v11, %v11269_v43 }
 0x414   : > { %8706 = vmatpush1.bf16.msra.mxu0 %v8705_v39  ;;  %8738 = vmatpush3.bf16.msra.mxu1 %v8737_v32  ;;  %v11277_v12 = vpop.permute.xlu1 %11276  ;;  %v3903_v33 = vsel %vm3848_vm13, %v11263_v3, %v11264_v20  ;;  %v3904_v9 = vsel %vm3848_vm13, %v11264_v20, %v11268_v11  ;;  %v2880_v39 = vld [vmem:[#allocation5 + $0x2e0] sm:$0xff] }
 0x415   : > { %v11279_v15 = vunpack.i.h.bf16 %v11277_v12  ;;  %v11278_v23 = vunpack.i.l.bf16 %v11277_v12  ;;  %v11272_v54 = vpop.permute.xlu0 %11271  ;;  %3422 = vmatprep.mubr.f32.mxu0 %v2878_v57  ;;  %3531 = vmatprep.mubr.f32.mxu1 %v2878_v57  ;;  %v2879_v12 = vld [vmem:[#allocation5 + $0x2d8] sm:$0xff]  ;;  %v2882_v57 = vld [vmem:[#allocation5 + $0x368] sm:$0xff] }
 0x416   : > { %v11274_v16 = vunpack.i.h.bf16 %v11272_v54  ;;  %v11273_v53 = vunpack.i.l.bf16 %v11272_v54  ;;  %11566 = vrot.lane.b32.xlu1 %v16645_v60, %s13459_s24  ;;  %v2877_v60 = vld [vmem:[#allocation5 + $0x250] sm:$0xff] }
 0x417   : > { %v3908_v56 = vsel %vm3848_vm13, %v11278_v23, %v11279_v15  ;;  %11561 = vrot.lane.b32.xlu0 %v16649_v14, %s13459_s24  ;;  %3532 = vmatmul.mubr.f32.gmra.mrb[72].mxu1 %v2877_v60 }
 0x418   : > { %v3906_v10 = vsel %vm3848_vm13, %v11273_v53, %v11274_v16  ;;  %v11287_v32 = vpop.permute.xlu1 %11286  ;;  %v3907_v0 = vsel %vm3848_vm13, %v11274_v16, %v11278_v23  ;;  %v8739_v30 = vpack.c.bf16 %v3908_v56, %v3905_v55  ;;  %3423 = vmatmul.mubr.f32.gmra.mrb[8].mxu0 %v2877_v60  ;;  %3536 = vmatprep.mubr.f32.mxu1 %v2880_v39 }
 0x419   : > { %v11282_v26 = vpop.permute.xlu0 %11281  ;;  %v8707_v36 = vpack.c.bf16 %v3907_v0, %v3904_v9  ;;  %v8709_v61 = vpack.c.bf16 %v3906_v10, %v3903_v33  ;;  %v11289_v14 = vunpack.i.h.bf16 %v11287_v32  ;;  %v11288_v5 = vunpack.i.l.bf16 %v11287_v32  ;;  %3428 = vmatprep.mubr.f32.mxu0 %v2880_v39  ;;  %v2881_v9 = vld [vmem:[#allocation5 + $0x360] sm:$0xff]  ;;  %v2884_v0 = vld [vmem:[#allocation5 + $0x3f0] sm:$0xff] }
 0x41a   : > { %8740 = vmatprep.subr.bf16.mxu1 %v8739_v30  ;;  %11576 = vrot.lane.b32.xlu1 %v16657_v2, %s13459_s24  ;;  %v11284_v63 = vunpack.i.h.bf16 %v11282_v26  ;;  %v11283_v52 = vunpack.i.l.bf16 %v11282_v26 }
 0x41b   : > { %8708 = vmatprep.subr.bf16.mxu0 %v8707_v36  ;;  %8742 = vmatpush3.bf16.msra.mxu1 %v8741_v27  ;;  %v3911_v27 = vsel %vm3848_vm13, %v11288_v5, %v11289_v14 }
 0x41c   : > { %8710 = vmatpush1.bf16.msra.mxu0 %v8709_v61  ;;  %v11297_v43 = vpop.permute.xlu1 %11296  ;;  %11571 = vrot.lane.b32.xlu0 %v16670_v49, %s13459_s24  ;;  %v3909_v34 = vsel %vm3848_vm13, %v11283_v52, %v11284_v63  ;;  %v3910_v48 = vsel %vm3848_vm13, %v11284_v63, %v11288_v5 }
 0x41d   : > { %v11299_v11 = vunpack.i.h.bf16 %v11297_v43  ;;  %v11298_v20 = vunpack.i.l.bf16 %v11297_v43  ;;  %v11292_v3 = vpop.permute.xlu0 %11291  ;;  %3537 = vmatmul.mubr.f32.gmra.mrb[74].mxu1 %v2879_v12  ;;  %3429 = vmatmul.mubr.f32.gmra.mrb[10].mxu0 %v2879_v12 }
 0x41e   : > { %v11294_v2 = vunpack.i.h.bf16 %v11292_v3  ;;  %v11293_v40 = vunpack.i.l.bf16 %v11292_v3  ;;  %11586 = vrot.lane.b32.xlu1 %v16681_v29, %s13459_s24  ;;  %3541 = vmatprep.mubr.f32.mxu1 %v2882_v57 }
 0x41f   : > { %v3914_v49 = vsel %vm3848_vm13, %v11298_v20, %v11299_v11  ;;  %3434 = vmatprep.mubr.f32.mxu0 %v2882_v57 }
 0x420   : > { %v3912_v15 = vsel %vm3848_vm13, %v11293_v40, %v11294_v2  ;;  %v11307_v23 = vpop.permute.xlu1 %11306  ;;  %v3913_v54 = vsel %vm3848_vm13, %v11294_v2, %v11298_v20  ;;  %v8743_v16 = vpack.c.bf16 %v3914_v49, %v3911_v27  ;;  %11581 = vrot.lane.b32.xlu0 %v16685_v22, %s13459_s24  ;;  %v3577_v40 = vld [vmem:[#allocation5 + $0x48] sm:$0xff] }
 0x421   : > { %v11302_v29 = vpop.permute.xlu0 %11301  ;;  %v8711_v53 = vpack.c.bf16 %v3913_v54, %v3910_v48  ;;  %v8713_v33 = vpack.c.bf16 %v3912_v15, %v3909_v34  ;;  %v11309_v55 = vunpack.i.h.bf16 %v11307_v23  ;;  %v11308_v56 = vunpack.i.l.bf16 %v11307_v23  ;;  %3542 = vmatmul.mubr.f32.gmra.mrb[76].mxu1 %v2881_v9  ;;  %3435 = vmatmul.mubr.f32.gmra.mrb[12].mxu0 %v2881_v9 }
 0x422   : > { %8744 = vmatprep.subr.bf16.mxu1 %v8743_v16  ;;  %11596 = vrot.lane.b32.xlu1 %v16693_v58, %s13459_s24  ;;  %v11304_v10 = vunpack.i.h.bf16 %v11302_v29  ;;  %v11303_v32 = vunpack.i.l.bf16 %v11302_v29 }
 0x423   : > { %8712 = vmatprep.subr.bf16.mxu0 %v8711_v53  ;;  %8746 = vmatpush3.bf16.msra.mxu1 %v8745_v45  ;;  %v3917_v50 = vsel %vm3848_vm13, %v11308_v56, %v11309_v55 }
 0x424   : > { %8714 = vmatpush1.bf16.msra.mxu0 %v8713_v33  ;;  %v11317_v22 = vpop.permute.xlu1 %11316  ;;  %11591 = vrot.lane.b32.xlu0 %v16706_v25, %s13459_s24  ;;  %v3915_v46 = vsel %vm3848_vm13, %v11303_v32, %v11304_v10  ;;  %v3916_v14 = vsel %vm3848_vm13, %v11304_v10, %v11308_v56 }
 0x425   : > { %v11319_v30 = vunpack.i.h.bf16 %v11317_v22  ;;  %v11318_v60 = vunpack.i.l.bf16 %v11317_v22  ;;  %v11312_v26 = vpop.permute.xlu0 %11311  ;;  %3440 = vmatprep.mubr.f32.mxu0 %v2884_v0  ;;  %3546 = vmatprep.mubr.f32.mxu1 %v2884_v0 }
 0x426   : > { %v11314_v58 = vunpack.i.h.bf16 %v11312_v26  ;;  %v11313_v36 = vunpack.i.l.bf16 %v11312_v26  ;;  %11606 = vrot.lane.b32.xlu1 %v16717_v17, %s13459_s24  ;;  %v2883_v17 = vld [vmem:[#allocation5 + $0x3e8] sm:$0xff] }
 0x427   : > { %v3920_v45 = vsel %vm3848_vm13, %v11318_v60, %v11319_v30  ;;  %3547 = vmatmul.mubr.f32.gmra.mrb[78].mxu1 %v2883_v17  ;;  %3441 = vmatmul.mubr.f32.gmra.mrb[14].mxu0 %v2883_v17 }
 0x428   : > { %v3918_v25 = vsel %vm3848_vm13, %v11313_v36, %v11314_v58  ;;  %v11327_v61 = vpop.permute.xlu1 %11326  ;;  %v3919_v5 = vsel %vm3848_vm13, %v11314_v58, %v11318_v60  ;;  %v8747_v63 = vpack.c.bf16 %v3920_v45, %v3917_v50  ;;  %11601 = vrot.lane.b32.xlu0 %v16721_v19, %s13459_s24  ;;  %4218 = vmatprep.mubr.f32.mxu1 %v3577_v40 }
 0x429   : > { %v11322_v52 = vpop.permute.xlu0 %11321  ;;  %v8715_v39 = vpack.c.bf16 %v3919_v5, %v3916_v14  ;;  %v8717_v43 = vpack.c.bf16 %v3918_v25, %v3915_v46  ;;  %v11329_v11 = vunpack.i.h.bf16 %v11327_v61  ;;  %v11328_v20 = vunpack.i.l.bf16 %v11327_v61  ;;  %4105 = vmatprep.mubr.f32.mxu0 %v3577_v40 }
 0x42a   : > { %8748 = vmatprep.subr.bf16.mxu1 %v8747_v63  ;;  %11616 = vrot.lane.b32.xlu1 %v16729_v24, %s13459_s24  ;;  %v11324_v3 = vunpack.i.h.bf16 %v11322_v52  ;;  %v11323_v2 = vunpack.i.l.bf16 %v11322_v52 }
 0x42b   : > { %8716 = vmatprep.subr.bf16.mxu0 %v8715_v39  ;;  %8750 = vmatpush3.bf16.msra.mxu1 %v8749_v42  ;;  %v3923_v1 = vsel %vm3848_vm13, %v11328_v20, %v11329_v11 }
 0x42c   : > { %8718 = vmatpush1.bf16.msra.mxu0 %v8717_v43  ;;  %v11337_v19 = vpop.permute.xlu1 %11336  ;;  %11611 = vrot.lane.b32.xlu0 %v16742_v28, %s13459_s24  ;;  %v3921_v31 = vsel %vm3848_vm13, %v11323_v2, %v11324_v3  ;;  %v3922_v57 = vsel %vm3848_vm13, %v11324_v3, %v11328_v20 }
 0x42d   : > { %v11339_v12 = vunpack.i.h.bf16 %v11337_v19  ;;  %v11338_v34 = vunpack.i.l.bf16 %v11337_v19  ;;  %v11332_v48 = vpop.permute.xlu0 %11331 }
 0x42e   : > { %v11334_v24 = vunpack.i.h.bf16 %v11332_v48  ;;  %v11333_v27 = vunpack.i.l.bf16 %v11332_v48  ;;  %11626 = vrot.lane.b32.xlu1 %v16753_v6, %s13459_s24 }
 0x42f   : > { %v3926_v42 = vsel %vm3848_vm13, %v11338_v34, %v11339_v12 }
 0x430   : > { %v3924_v49 = vsel %vm3848_vm13, %v11333_v27, %v11334_v24  ;;  %v11347_v28 = vpop.permute.xlu1 %11346  ;;  %v3925_v15 = vsel %vm3848_vm13, %v11334_v24, %v11338_v34  ;;  %v8751_v23 = vpack.c.bf16 %v3926_v42, %v3923_v1  ;;  %11621 = vrot.lane.b32.xlu0 %v16757_v41, %s13459_s24 }
 0x431   : > { %v11342_v54 = vpop.permute.xlu0 %11341  ;;  %v8719_v6 = vpack.c.bf16 %v3925_v15, %v3922_v57  ;;  %v8721_v16 = vpack.c.bf16 %v3924_v49, %v3921_v31  ;;  %v11349_v29 = vunpack.i.h.bf16 %v11347_v28  ;;  %v11348_v53 = vunpack.i.l.bf16 %v11347_v28 }
 0x432   : > { %8752 = vmatprep.subr.bf16.mxu1 %v8751_v23  ;;  %11636 = vrot.lane.b32.xlu1 %v16765_v7, %s13459_s24  ;;  %v11344_v33 = vunpack.i.h.bf16 %v11342_v54  ;;  %v11343_v55 = vunpack.i.l.bf16 %v11342_v54 }
 0x433   : > { %8720 = vmatprep.subr.bf16.mxu0 %v8719_v6  ;;  %8754 = vmatpush3.bf16.msra.mxu1 %v8753_v62  ;;  %v3929_v0 = vsel %vm3848_vm13, %v11348_v53, %v11349_v29 }
 0x434   : > { %8722 = vmatpush1.bf16.msra.mxu0 %v8721_v16  ;;  %v11357_v56 = vpop.permute.xlu1 %11356  ;;  %11631 = vrot.lane.b32.xlu0 %v16772_v47, %s13459_s24  ;;  %v3927_v7 = vsel %vm3848_vm13, %v11343_v55, %v11344_v33  ;;  %v3928_v37 = vsel %vm3848_vm13, %v11344_v33, %v11348_v53 }
 0x435   : > { %v11359_v41 = vunpack.i.h.bf16 %v11357_v56  ;;  %v11358_v10 = vunpack.i.l.bf16 %v11357_v56  ;;  %v11352_v32 = vpop.permute.xlu0 %11351 }
 0x436   : > { %v11354_v9 = vunpack.i.h.bf16 %v11352_v32  ;;  %v11353_v22 = vunpack.i.l.bf16 %v11352_v32 }
 0x437   : > { %v3932_v30 = vsel %vm3848_vm13, %v11358_v10, %v11359_v41 }
 0x438   : > { %v3930_v60 = vsel %vm3848_vm13, %v11353_v22, %v11354_v9  ;;  %v11367_v13 = vpop.permute.xlu1 %11366  ;;  %v3931_v62 = vsel %vm3848_vm13, %v11354_v9, %v11358_v10  ;;  %v8755_v26 = vpack.c.bf16 %v3932_v30, %v3929_v0  ;;  %v3576_v0 = vld [vmem:[#allocation5 + $0x40] sm:$0xff] }
 0x439   : > { %v11362_v47 = vpop.permute.xlu0 %11361  ;;  %v8723_v58 = vpack.c.bf16 %v3931_v62, %v3928_v37  ;;  %v8725_v36 = vpack.c.bf16 %v3930_v60, %v3927_v7  ;;  %v11369_v46 = vunpack.i.h.bf16 %v11367_v13  ;;  %v11368_v50 = vunpack.i.l.bf16 %v11367_v13 }
 0x43a   : > { %8756 = vmatprep.subr.bf16.mxu1 %v8755_v26  ;;  %v11364_v45 = vunpack.i.h.bf16 %v11362_v47  ;;  %v11363_v25 = vunpack.i.l.bf16 %v11362_v47 }
 0x43b   : > { %8724 = vmatprep.subr.bf16.mxu0 %v8723_v58  ;;  %8758 = vmatpush3.bf16.msra.mxu1 %v8757_v8  ;;  %v3935_v43 = vsel %vm3848_vm13, %v11368_v50, %v11369_v46 }
 0x43c   : > { %8726 = vmatpush1.bf16.msra.mxu0 %v8725_v36  ;;  %v11377_v61 = vpop.permute.xlu1 %11376  ;;  %v3933_v39 = vsel %vm3848_vm13, %v11363_v25, %v11364_v45  ;;  %v3934_v2 = vsel %vm3848_vm13, %v11364_v45, %v11368_v50 }
 0x43d   : > { %v11379_v14 = vunpack.i.h.bf16 %v11377_v61  ;;  %v11378_v5 = vunpack.i.l.bf16 %v11377_v61  ;;  %v11372_v63 = vpop.permute.xlu0 %11371 }
 0x43e   : > { %v11374_v17 = vunpack.i.h.bf16 %v11372_v63  ;;  %v11373_v52 = vunpack.i.l.bf16 %v11372_v63 }
 0x43f   : > { %v3938_v11 = vsel %vm3848_vm13, %v11378_v5, %v11379_v14 }
 0x440   : > { %v3936_v20 = vsel %vm3848_vm13, %v11373_v52, %v11374_v17  ;;  %v11387_v3 = vpop.permute.xlu1 %11386  ;;  %v3937_v38 = vsel %vm3848_vm13, %v11374_v17, %v11378_v5  ;;  %v8759_v4 = vpack.c.bf16 %v3938_v11, %v3935_v43 }
 0x441   : > { %v11382_v8 = vpop.permute.xlu0 %11381  ;;  %v8727_v40 = vpack.c.bf16 %v3937_v38, %v3934_v2  ;;  %v8729_v19 = vpack.c.bf16 %v3936_v20, %v3933_v39  ;;  %v11389_v12 = vunpack.i.h.bf16 %v11387_v3  ;;  %v11388_v34 = vunpack.i.l.bf16 %v11387_v3 }
 0x442   : > { %8760 = vmatprep.subr.bf16.mxu1 %v8759_v4  ;;  %v11384_v48 = vunpack.i.h.bf16 %v11382_v8  ;;  %v11383_v24 = vunpack.i.l.bf16 %v11382_v8 }
 0x443   : > { %8728 = vmatprep.subr.bf16.mxu0 %v8727_v40  ;;  %8762 = vmatpush3.bf16.msra.mxu1 %v8761_v21  ;;  %v3941_v15 = vsel %vm3848_vm13, %v11388_v34, %v11389_v12 }
 0x444   : > { %8730 = vmatpush1.bf16.msra.mxu0 %v8729_v19  ;;  %v11397_v27 = vpop.permute.xlu1 %11396  ;;  %v3939_v57 = vsel %vm3848_vm13, %v11383_v24, %v11384_v48  ;;  %v3940_v51 = vsel %vm3848_vm13, %v11384_v48, %v11388_v34 }
 0x445   : > { %v11399_v31 = vunpack.i.h.bf16 %v11397_v27  ;;  %v11398_v1 = vunpack.i.l.bf16 %v11397_v27  ;;  %v11392_v42 = vpop.permute.xlu0 %11391 }
 0x446   : > { %v11394_v49 = vunpack.i.h.bf16 %v11392_v42  ;;  %v11393_v28 = vunpack.i.l.bf16 %v11392_v42 }
 0x447   : > { %v3944_v23 = vsel %vm3848_vm13, %v11398_v1, %v11399_v31 }
 0x448   : > { %v3942_v54 = vsel %vm3848_vm13, %v11393_v28, %v11394_v49  ;;  %v11407_v6 = vpop.permute.xlu1 %11406  ;;  %v3943_v35 = vsel %vm3848_vm13, %v11394_v49, %v11398_v1  ;;  %v8763_v21 = vpack.c.bf16 %v3944_v23, %v3941_v15 }
 0x449   : > { %v11409_v16 = vunpack.i.h.bf16 %v11407_v6  ;;  %v11408_v29 = vunpack.i.l.bf16 %v11407_v6  ;;  %v11402_v53 = vpop.permute.xlu0 %11401  ;;  %v8731_v33 = vpack.c.bf16 %v3943_v35, %v3940_v51  ;;  %v8733_v55 = vpack.c.bf16 %v3942_v54, %v3939_v57 }
 0x44a   : > { %v11404_v56 = vunpack.i.h.bf16 %v11402_v53  ;;  %v11403_v41 = vunpack.i.l.bf16 %v11402_v53  ;;  %8764 = vmatprep.subr.bf16.mxu1 %v8763_v21 }
 0x44b   : > { %v4350_v10 = vsel %vm4347_vm14, %v11408_v29, %v11409_v16  ;;  %8732 = vmatprep.subr.bf16.mxu0 %v8731_v33  ;;  %8766 = vmatpush3.bf16.msra.mxu1 %v8765_v44 }
 0x44c   : > { %v11645_v32 = vpack.i.bf16 %v11409_v16, %v4350_v10  ;;  %v4349_v9 = vsel %vm4347_vm14, %v11404_v56, %v11408_v29  ;;  %v4348_v22 = vsel %vm4347_vm14, %v11403_v41, %v11404_v56  ;;  %8734 = vmatpush1.bf16.msra.mxu0 %v8733_v55  ;;  %v11417_v7 = vpop.permute.xlu1 %11416 }
 0x44d   : > { %v11419_v30 = vunpack.i.h.bf16 %v11417_v7  ;;  %v11418_v60 = vunpack.i.l.bf16 %v11417_v7  ;;  %v11412_v13 = vpop.permute.xlu0 %11411  ;;  %v11640_v37 = vpack.i.bf16 %v4349_v9, %v4348_v22 }
 0x44e   : > { %v11414_v62 = vunpack.i.h.bf16 %v11412_v13  ;;  %v11413_v26 = vunpack.i.l.bf16 %v11412_v13  ;;  %11646 = vrot.lane.b32.xlu1 %v11645_v32, %s13459_s24  ;;  %4219 = vmatmul.mubr.f32.vlgmr.msra.gmra.mrb[80].mxu1 %v3576_v0 }
 0x44f   : > { %v4353_v59 = vsel %vm4347_vm14, %v11418_v60, %v11419_v30  ;;  %11641 = vrot.lane.b32.xlu0 %v11640_v37, %s13459_s24  ;;  %4106 = vmatmul.mubr.f32.vlgmr.msra.gmra.mrb[0].mxu0 %v3576_v0 }
 0x450   : > { %v11655_v18 = vpack.i.bf16 %v11419_v30, %v4353_v59  ;;  %v4352_v44 = vsel %vm4347_vm14, %v11414_v62, %v11418_v60  ;;  %v4351_v47 = vsel %vm4347_vm14, %v11413_v26, %v11414_v62  ;;  %v11427_v58 = vpop.permute.xlu1 %11426 }
 0x451   : > { %v11429_v36 = vunpack.i.h.bf16 %v11427_v58  ;;  %v11428_v46 = vunpack.i.l.bf16 %v11427_v58  ;;  %v11422_v50 = vpop.permute.xlu0 %11421  ;;  %v11650_v45 = vpack.i.bf16 %v4352_v44, %v4351_v47 }
 0x452   : > { %v11424_v25 = vunpack.i.h.bf16 %v11422_v50  ;;  %v11423_v61 = vunpack.i.l.bf16 %v11422_v50  ;;  %11656 = vrot.lane.b32.xlu1 %v11655_v18, %s13459_s24 }
 0x453   : > { %v4356_v14 = vsel %vm4347_vm14, %v11428_v46, %v11429_v36  ;;  %11651 = vrot.lane.b32.xlu0 %v11650_v45, %s13459_s24 }
 0x454   : > { %v11665_v5 = vpack.i.bf16 %v11429_v36, %v4356_v14  ;;  %v4355_v63 = vsel %vm4347_vm14, %v11424_v25, %v11428_v46  ;;  %v4354_v17 = vsel %vm4347_vm14, %v11423_v61, %v11424_v25  ;;  %v11437_v52 = vpop.permute.xlu1 %11436 }
 0x455   : > { %v11439_v39 = vunpack.i.h.bf16 %v11437_v52  ;;  %v11438_v43 = vunpack.i.l.bf16 %v11437_v52  ;;  %v11432_v11 = vpop.permute.xlu0 %11431  ;;  %v11660_v20 = vpack.i.bf16 %v4355_v63, %v4354_v17 }
 0x456   : > { %v11434_v3 = vunpack.i.h.bf16 %v11432_v11  ;;  %v11433_v2 = vunpack.i.l.bf16 %v11432_v11  ;;  %11666 = vrot.lane.b32.xlu1 %v11665_v5, %s13459_s24 }
 0x457   : > { %v4359_v38 = vsel %vm4347_vm14, %v11438_v43, %v11439_v39  ;;  %11661 = vrot.lane.b32.xlu0 %v11660_v20, %s13459_s24 }
 0x458   : > { %v11675_v4 = vpack.i.bf16 %v11439_v39, %v4359_v38  ;;  %v4358_v8 = vsel %vm4347_vm14, %v11434_v3, %v11438_v43  ;;  %v4357_v40 = vsel %vm4347_vm14, %v11433_v2, %v11434_v3  ;;  %v11447_v19 = vpop.permute.xlu1 %11446 }
 0x459   : > { %v11449_v12 = vunpack.i.h.bf16 %v11447_v19  ;;  %v11448_v34 = vunpack.i.l.bf16 %v11447_v19  ;;  %v11442_v48 = vpop.permute.xlu0 %11441  ;;  %v11670_v24 = vpack.i.bf16 %v4358_v8, %v4357_v40 }
 0x45a   : > { %v11444_v27 = vunpack.i.h.bf16 %v11442_v48  ;;  %v11443_v31 = vunpack.i.l.bf16 %v11442_v48  ;;  %11676 = vrot.lane.b32.xlu1 %v11675_v4, %s13459_s24 }
 0x45b   : > { %v4362_v1 = vsel %vm4347_vm14, %v11448_v34, %v11449_v12  ;;  %11671 = vrot.lane.b32.xlu0 %v11670_v24, %s13459_s24 }
 0x45c   : > { %v11685_v42 = vpack.i.bf16 %v11449_v12, %v4362_v1  ;;  %v4361_v49 = vsel %vm4347_vm14, %v11444_v27, %v11448_v34  ;;  %v4360_v28 = vsel %vm4347_vm14, %v11443_v31, %v11444_v27  ;;  %v11457_v57 = vpop.permute.xlu1 %11456 }
 0x45d   : > { %v11459_v15 = vunpack.i.h.bf16 %v11457_v57  ;;  %v11458_v23 = vunpack.i.l.bf16 %v11457_v57  ;;  %v11452_v54 = vpop.permute.xlu0 %11451  ;;  %v11680_v6 = vpack.i.bf16 %v4361_v49, %v4360_v28 }
 0x45e   : > { %v11454_v51 = vunpack.i.h.bf16 %v11452_v54  ;;  %v11453_v35 = vunpack.i.l.bf16 %v11452_v54  ;;  %11686 = vrot.lane.b32.xlu1 %v11685_v42, %s13459_s24 }
 0x45f   : > { %v4365_v21 = vsel %vm4347_vm14, %v11458_v23, %v11459_v15  ;;  %11681 = vrot.lane.b32.xlu0 %v11680_v6, %s13459_s24 }
 0x460   : > { %v11695_v16 = vpack.i.bf16 %v11459_v15, %v4365_v21  ;;  %v4364_v29 = vsel %vm4347_vm14, %v11454_v51, %v11458_v23  ;;  %v4363_v53 = vsel %vm4347_vm14, %v11453_v35, %v11454_v51  ;;  %v11467_v33 = vpop.permute.xlu1 %11466 }
 0x461   : > { %v11469_v55 = vunpack.i.h.bf16 %v11467_v33  ;;  %v11468_v56 = vunpack.i.l.bf16 %v11467_v33  ;;  %v11462_v41 = vpop.permute.xlu0 %11461  ;;  %v11690_v10 = vpack.i.bf16 %v4364_v29, %v4363_v53 }
 0x462   : > { %v11464_v32 = vunpack.i.h.bf16 %v11462_v41  ;;  %v11463_v9 = vunpack.i.l.bf16 %v11462_v41  ;;  %11696 = vrot.lane.b32.xlu1 %v11695_v16, %s13459_s24 }
 0x463   : > { %v4368_v22 = vsel %vm4347_vm14, %v11468_v56, %v11469_v55  ;;  %11691 = vrot.lane.b32.xlu0 %v11690_v10, %s13459_s24 }
 0x464   : > { %v11705_v7 = vpack.i.bf16 %v11469_v55, %v4368_v22  ;;  %v4367_v0 = vsel %vm4347_vm14, %v11464_v32, %v11468_v56  ;;  %v4366_v30 = vsel %vm4347_vm14, %v11463_v9, %v11464_v32  ;;  %v11477_v60 = vpop.permute.xlu1 %11476 }
 0x465   : > { %v11479_v13 = vunpack.i.h.bf16 %v11477_v60  ;;  %v11478_v37 = vunpack.i.l.bf16 %v11477_v60  ;;  %v11472_v62 = vpop.permute.xlu0 %11471  ;;  %v11700_v26 = vpack.i.bf16 %v4367_v0, %v4366_v30 }
 0x466   : > { %v11474_v59 = vunpack.i.h.bf16 %v11472_v62  ;;  %v11473_v18 = vunpack.i.l.bf16 %v11472_v62  ;;  %11706 = vrot.lane.b32.xlu1 %v11705_v7, %s13459_s24 }
 0x467   : > { %v4371_v44 = vsel %vm4347_vm14, %v11478_v37, %v11479_v13  ;;  %11701 = vrot.lane.b32.xlu0 %v11700_v26, %s13459_s24 }
 0x468   : > { %v11715_v47 = vpack.i.bf16 %v11479_v13, %v4371_v44  ;;  %v4370_v58 = vsel %vm4347_vm14, %v11474_v59, %v11478_v37  ;;  %v4369_v36 = vsel %vm4347_vm14, %v11473_v18, %v11474_v59  ;;  %v11487_v46 = vpop.permute.xlu1 %11486 }
 0x469   : > { %v11489_v50 = vunpack.i.h.bf16 %v11487_v46  ;;  %v11488_v45 = vunpack.i.l.bf16 %v11487_v46  ;;  %v11482_v25 = vpop.permute.xlu0 %11481  ;;  %v11710_v61 = vpack.i.bf16 %v4370_v58, %v4369_v36 }
 0x46a   : > { %v11484_v14 = vunpack.i.h.bf16 %v11482_v25  ;;  %v11483_v5 = vunpack.i.l.bf16 %v11482_v25  ;;  %11716 = vrot.lane.b32.xlu1 %v11715_v47, %s13459_s24 }
 0x46b   : > { %v4439_v63 = vsel %vm4436_vm15, %v11488_v45, %v11489_v50  ;;  %11711 = vrot.lane.b32.xlu0 %v11710_v61, %s13459_s24 }
 0x46c   : > { %v11725_v17 = vpack.i.bf16 %v11489_v50, %v4439_v63  ;;  %v4438_v52 = vsel %vm4436_vm15, %v11484_v14, %v11488_v45  ;;  %v4437_v39 = vsel %vm4436_vm15, %v11483_v5, %v11484_v14  ;;  %v11497_v43 = vpop.permute.xlu1 %11496 }
 0x46d   : > { %v11499_v11 = vunpack.i.h.bf16 %v11497_v43  ;;  %v11498_v20 = vunpack.i.l.bf16 %v11497_v43  ;;  %v11492_v3 = vpop.permute.xlu0 %11491  ;;  %v11720_v2 = vpack.i.bf16 %v4438_v52, %v4437_v39 }
 0x46e   : > { %v11494_v38 = vunpack.i.h.bf16 %v11492_v3  ;;  %v11493_v4 = vunpack.i.l.bf16 %v11492_v3  ;;  %11726 = vrot.lane.b32.xlu1 %v11725_v17, %s13459_s24 }
 0x46f   : > { %v4442_v8 = vsel %vm4436_vm15, %v11498_v20, %v11499_v11  ;;  %11721 = vrot.lane.b32.xlu0 %v11720_v2, %s13459_s24 }
 0x470   : > { %v11735_v40 = vpack.i.bf16 %v11499_v11, %v4442_v8  ;;  %v4441_v19 = vsel %vm4436_vm15, %v11494_v38, %v11498_v20  ;;  %v4440_v12 = vsel %vm4436_vm15, %v11493_v4, %v11494_v38  ;;  %v11507_v34 = vpop.permute.xlu1 %11506 }
 0x471   : > { %v11509_v48 = vunpack.i.h.bf16 %v11507_v34  ;;  %v11508_v24 = vunpack.i.l.bf16 %v11507_v34  ;;  %v11502_v27 = vpop.permute.xlu0 %11501  ;;  %v11730_v31 = vpack.i.bf16 %v4441_v19, %v4440_v12 }
 0x472   : > { %v11504_v1 = vunpack.i.h.bf16 %v11502_v27  ;;  %v11503_v42 = vunpack.i.l.bf16 %v11502_v27  ;;  %11736 = vrot.lane.b32.xlu1 %v11735_v40, %s13459_s24 }
 0x473   : > { %v4445_v49 = vsel %vm4436_vm15, %v11508_v24, %v11509_v48  ;;  %11731 = vrot.lane.b32.xlu0 %v11730_v31, %s13459_s24 }
 0x474   : > { %v11745_v28 = vpack.i.bf16 %v11509_v48, %v4445_v49  ;;  %v4444_v57 = vsel %vm4436_vm15, %v11504_v1, %v11508_v24  ;;  %v4443_v15 = vsel %vm4436_vm15, %v11503_v42, %v11504_v1  ;;  %v11517_v23 = vpop.permute.xlu1 %11516 }
 0x475   : > { %v11519_v54 = vunpack.i.h.bf16 %v11517_v23  ;;  %v11518_v6 = vunpack.i.l.bf16 %v11517_v23  ;;  %v11512_v51 = vpop.permute.xlu0 %11511  ;;  %v11740_v35 = vpack.i.bf16 %v4444_v57, %v4443_v15 }
 0x476   : > { %v11514_v21 = vunpack.i.h.bf16 %v11512_v51  ;;  %v11513_v16 = vunpack.i.l.bf16 %v11512_v51  ;;  %11746 = vrot.lane.b32.xlu1 %v11745_v28, %s13459_s24 }
 0x477   : > { %v4448_v29 = vsel %vm4436_vm15, %v11518_v6, %v11519_v54  ;;  %11741 = vrot.lane.b32.xlu0 %v11740_v35, %s13459_s24 }
 0x478   : > { %v11755_v53 = vpack.i.bf16 %v11519_v54, %v4448_v29  ;;  %v4447_v33 = vsel %vm4436_vm15, %v11514_v21, %v11518_v6  ;;  %v4446_v55 = vsel %vm4436_vm15, %v11513_v16, %v11514_v21  ;;  %v11527_v56 = vpop.permute.xlu1 %11526  ;;  %v19989_v6 = vld [vmem:[#allocation90_spill] sm:$0xff]  ;;  %v19990_v21 = vld [vmem:[#allocation91_spill] sm:$0xff] }
 0x479   : > { %v11529_v41 = vunpack.i.h.bf16 %v11527_v56  ;;  %v11528_v10 = vunpack.i.l.bf16 %v11527_v56  ;;  %v11522_v32 = vpop.permute.xlu0 %11521  ;;  %v11750_v9 = vpack.i.bf16 %v4447_v33, %v4446_v55 }
 0x47a   : > { %v11524_v22 = vunpack.i.h.bf16 %v11522_v32  ;;  %v11523_v7 = vunpack.i.l.bf16 %v11522_v32  ;;  %11756 = vrot.lane.b32.xlu1 %v11755_v53, %s13459_s24 }
 0x47b   : > { %v4451_v0 = vsel %vm4436_vm15, %v11528_v10, %v11529_v41  ;;  %11751 = vrot.lane.b32.xlu0 %v11750_v9, %s13459_s24 }
 0x47c   : > { %v11765_v30 = vpack.i.bf16 %v11529_v41, %v4451_v0  ;;  %v4450_v60 = vsel %vm4436_vm15, %v11524_v22, %v11528_v10  ;;  %v4449_v13 = vsel %vm4436_vm15, %v11523_v7, %v11524_v22  ;;  %v11537_v37 = vpop.permute.xlu1 %11536  ;;  %v19991_v22 = vld [vmem:[#allocation92_spill] sm:$0xff] }
 0x47d   : > { %v11539_v62 = vunpack.i.h.bf16 %v11537_v37  ;;  %v11538_v26 = vunpack.i.l.bf16 %v11537_v37  ;;  %v11532_v59 = vpop.permute.xlu0 %11531  ;;  %v11760_v18 = vpack.i.bf16 %v4450_v60, %v4449_v13  ;;  %v19992_v60 = vld [vmem:[#allocation93_spill] sm:$0xff] }
 0x47e   : > { %v11534_v44 = vunpack.i.h.bf16 %v11532_v59  ;;  %v11533_v47 = vunpack.i.l.bf16 %v11532_v59  ;;  %11766 = vrot.lane.b32.xlu1 %v11765_v30, %s13459_s24 }
 0x47f   : > { %v4454_v58 = vsel %vm4436_vm15, %v11538_v26, %v11539_v62  ;;  %11761 = vrot.lane.b32.xlu0 %v11760_v18, %s13459_s24 }
 0x480   : > { %v11775_v36 = vpack.i.bf16 %v11539_v62, %v4454_v58  ;;  %v4453_v46 = vsel %vm4436_vm15, %v11534_v44, %v11538_v26  ;;  %v4452_v50 = vsel %vm4436_vm15, %v11533_v47, %v11534_v44  ;;  %v11547_v45 = vpop.permute.xlu1 %11546  ;;  %v19993_v44 = vld [vmem:[#allocation94_spill] sm:$0xff] }
 0x481   : > { %v11549_v25 = vunpack.i.h.bf16 %v11547_v45  ;;  %v11548_v61 = vunpack.i.l.bf16 %v11547_v45  ;;  %v11542_v14 = vpop.permute.xlu0 %11541  ;;  %v11770_v5 = vpack.i.bf16 %v4453_v46, %v4452_v50 }
 0x482   : > { %v11544_v63 = vunpack.i.h.bf16 %v11542_v14  ;;  %v11543_v17 = vunpack.i.l.bf16 %v11542_v14  ;;  %11776 = vrot.lane.b32.xlu1 %v11775_v36, %s13459_s24  ;;  %v19994_v36 = vld [vmem:[#allocation95_spill] sm:$0xff] }
 0x483   : > { %v4457_v52 = vsel %vm4436_vm15, %v11548_v61, %v11549_v25  ;;  %11771 = vrot.lane.b32.xlu0 %v11770_v5, %s13459_s24 }
 0x484   : > { %v11785_v39 = vpack.i.bf16 %v11549_v25, %v4457_v52  ;;  %v4456_v43 = vsel %vm4436_vm15, %v11544_v63, %v11548_v61  ;;  %v4455_v11 = vsel %vm4436_vm15, %v11543_v17, %v11544_v63  ;;  %v11557_v20 = vpop.permute.xlu1 %11556 }
 0x485   : > { %v11559_v3 = vunpack.i.h.bf16 %v11557_v20  ;;  %v11558_v2 = vunpack.i.l.bf16 %v11557_v20  ;;  %v11552_v38 = vpop.permute.xlu0 %11551  ;;  %v11780_v4 = vpack.i.bf16 %v4456_v43, %v4455_v11 }
 0x486   : > { %v11554_v8 = vunpack.i.h.bf16 %v11552_v38  ;;  %v11553_v40 = vunpack.i.l.bf16 %v11552_v38  ;;  %11786 = vrot.lane.b32.xlu1 %v11785_v39, %s13459_s24  ;;  %v19995_v39 = vld [vmem:[#allocation96_spill] sm:$0xff] }
 0x487   : > { %v4460_v19 = vsel %vm4436_vm15, %v11558_v2, %v11559_v3  ;;  %11781 = vrot.lane.b32.xlu0 %v11780_v4, %s13459_s24 }
 0x488   : > { %v11795_v12 = vpack.i.bf16 %v11559_v3, %v4460_v19  ;;  %v4459_v34 = vsel %vm4436_vm15, %v11554_v8, %v11558_v2  ;;  %v4458_v48 = vsel %vm4436_vm15, %v11553_v40, %v11554_v8  ;;  %v11567_v24 = vpop.permute.xlu1 %11566  ;;  %v19996_v3 = vld [vmem:[#allocation97_spill] sm:$0xff] }
 0x489   : > { %v11790_v27 = vpack.i.bf16 %v4459_v34, %v4458_v48  ;;  %v11569_v31 = vunpack.i.h.bf16 %v11567_v24  ;;  %v11568_v1 = vunpack.i.l.bf16 %v11567_v24  ;;  %v11562_v42 = vpop.permute.xlu0 %11561  ;;  %v19998_v24 = vld [vmem:[#allocation99_spill] sm:$0xff] }
 0x48a   : > { %11796 = vrot.lane.b32.xlu1 %v11795_v12, %s13459_s24  ;;  %v11564_v49 = vunpack.i.h.bf16 %v11562_v42  ;;  %v11563_v28 = vunpack.i.l.bf16 %v11562_v42  ;;  %v19997_v12 = vld [vmem:[#allocation98_spill] sm:$0xff] }
 0x48b   : > { %11791 = vrot.lane.b32.xlu0 %v11790_v27, %s13459_s24  ;;  %v16962_v15 = vsel %vm4733_vm2, %v11568_v1, %v11569_v31 }
 0x48c   : > { %v11577_v57 = vpop.permute.xlu1 %11576  ;;  %v4734_v51 = vsel %vm4733_vm2, %v11563_v28, %v11564_v49  ;;  %v4735_v33 = vsel %vm4733_vm2, %v11564_v49, %v11568_v1 }
 0x48d   : > { %v11579_v23 = vunpack.i.h.bf16 %v11577_v57  ;;  %v11578_v54 = vunpack.i.l.bf16 %v11577_v57 }
 0x48e   : > { %11806 = vrot.lane.b32.xlu1 %v19989_v6, %s13459_s24  ;;  %v11572_v35 = vpop.permute.xlu0 %11571 }
 0x48f   : > { %11801 = vrot.lane.b32.xlu0 %v19990_v21, %s13459_s24  ;;  %v16970_v16 = vsel %vm4733_vm2, %v11578_v54, %v11579_v23  ;;  %v11574_v29 = vunpack.i.h.bf16 %v11572_v35  ;;  %v11573_v53 = vunpack.i.l.bf16 %v11572_v35 }
 0x490   : > { %v11587_v55 = vpop.permute.xlu1 %11586  ;;  %v8833_v56 = vpack.c.bf16 %v16970_v16, %v16962_v15 }
 0x491   : > { %v4737_v41 = vsel %vm4733_vm2, %v11573_v53, %v11574_v29  ;;  %v11589_v10 = vunpack.i.h.bf16 %v11587_v55  ;;  %v11588_v32 = vunpack.i.l.bf16 %v11587_v55  ;;  %v4738_v9 = vsel %vm4733_vm2, %v11574_v29, %v11578_v54  ;;  %v20000_v53 = vld [vmem:[#allocation101_spill] sm:$0xff] }
 0x492   : > { %11816 = vrot.lane.b32.xlu1 %v19991_v22, %s13459_s24  ;;  %v11582_v7 = vpop.permute.xlu0 %11581  ;;  %v8767_v0 = vpack.c.bf16 %v4738_v9, %v4735_v33  ;;  %v8769_v30 = vpack.c.bf16 %v4737_v41, %v4734_v51  ;;  %v19999_v51 = vld [vmem:[#allocation100_spill] sm:$0xff]  ;;  %v20001_v22 = vld [vmem:[#allocation102_spill] sm:$0xff] }
 0x493   : > { %11811 = vrot.lane.b32.xlu0 %v19992_v60, %s13459_s24  ;;  %v11584_v13 = vunpack.i.h.bf16 %v11582_v7  ;;  %v11583_v37 = vunpack.i.l.bf16 %v11582_v7  ;;  %v16982_v26 = vsel %vm4733_vm2, %v11588_v32, %v11589_v10  ;;  %v5170_v60 = vld [vmem:[%s13637_s26 + $0x18] sm:$0xff] }
 0x494   : > { %8768 = vmatprep.subr.bf16.mxu0 %v8767_v0  ;;  %v11597_v62 = vpop.permute.xlu1 %11596 }
 0x495   : > { %8770 = vmatpush1.bf16.msra.mxu0 %v8769_v30  ;;  %v11599_v59 = vunpack.i.h.bf16 %v11597_v62  ;;  %v11598_v18 = vunpack.i.l.bf16 %v11597_v62  ;;  %v4740_v47 = vsel %vm4733_vm2, %v11583_v37, %v11584_v13  ;;  %v4741_v25 = vsel %vm4733_vm2, %v11584_v13, %v11588_v32  ;;  %v20002_v30 = vld [vmem:[#allocation103_spill] sm:$0xff] }
 0x496   : > { %11826 = vrot.lane.b32.xlu1 %v19993_v44, %s13459_s24  ;;  %v11592_v58 = vpop.permute.xlu0 %11591  ;;  %v5171_v13 = vld [vmem:[%s13637_s26 + $0x20] sm:$0xff]  ;;  %v5168_v44 = vld [vmem:[%s13637_s26 + $0x8] sm:$0xff] }
 0x497   : > { %11821 = vrot.lane.b32.xlu0 %v19994_v36, %s13459_s24  ;;  %v16990_v46 = vsel %vm4733_vm2, %v11598_v18, %v11599_v59  ;;  %v11594_v50 = vunpack.i.h.bf16 %v11592_v58  ;;  %v11593_v45 = vunpack.i.l.bf16 %v11592_v58 }
 0x498   : > { %v11607_v61 = vpop.permute.xlu1 %11606  ;;  %v8837_v14 = vpack.c.bf16 %v16990_v46, %v16982_v26 }
 0x499   : > { %v4743_v5 = vsel %vm4733_vm2, %v11593_v45, %v11594_v50  ;;  %v11609_v63 = vunpack.i.h.bf16 %v11607_v61  ;;  %v11608_v17 = vunpack.i.l.bf16 %v11607_v61  ;;  %v4744_v52 = vsel %vm4733_vm2, %v11594_v50, %v11598_v18  ;;  %v20003_v45 = vld [vmem:[#allocation82_spill] sm:$0xff] }
 0x49a   : > { %11836 = vrot.lane.b32.xlu1 %v19995_v39, %s13459_s24  ;;  %v11602_v43 = vpop.permute.xlu0 %11601  ;;  %v8771_v11 = vpack.c.bf16 %v4744_v52, %v4741_v25  ;;  %v8773_v20 = vpack.c.bf16 %v4743_v5, %v4740_v47  ;;  %v5169_v47 = vld [vmem:[%s13637_s26 + $0x10] sm:$0xff]  ;;  %v17043_v25 = vpack.i.bf16 %v5171_v13, %v5170_v60  ;;  %v5174_v52 = vld [vmem:[%s13637_s26 + $0x40] sm:$0xff]  ;;  %v5175_v39 = vld [vmem:[%s13637_s26 + $0x48] sm:$0xff] }
 0x49b   : > { %11831 = vrot.lane.b32.xlu0 %v19996_v3, %s13459_s24  ;;  %v11604_v2 = vunpack.i.h.bf16 %v11602_v43  ;;  %v11603_v38 = vunpack.i.l.bf16 %v11602_v43  ;;  %v17002_v8 = vsel %vm4733_vm2, %v11608_v17, %v11609_v63  ;;  %v20004_v63 = vld [vmem:[#allocation104_spill] sm:$0xff]  ;;  %v5172_v43 = vld [vmem:[%s13637_s26 + $0x30] sm:$0xff] }
 0x49c   : > { %8772 = vmatprep.subr.bf16.mxu0 %v8771_v11  ;;  %v11617_v4 = vpop.permute.xlu1 %11616  ;;  %v5173_v11 = vld [vmem:[%s13637_s26 + $0x38] sm:$0xff] }
 0x49d   : > { %8774 = vmatpush1.bf16.msra.mxu0 %v8773_v20  ;;  %v11619_v40 = vunpack.i.h.bf16 %v11617_v4  ;;  %v11618_v19 = vunpack.i.l.bf16 %v11617_v4  ;;  %v4746_v34 = vsel %vm4733_vm2, %v11603_v38, %v11604_v2  ;;  %v4747_v42 = vsel %vm4733_vm2, %v11604_v2, %v11608_v17  ;;  %v5178_v2 = vld [vmem:[%s13637_s26 + $0x68] sm:$0xff]  ;;  %v5179_v38 = vld [vmem:[%s13637_s26 + $0x70] sm:$0xff]  ;;  %v5176_v4 = vld [vmem:[%s13637_s26 + $0x58] sm:$0xff] }
 0x49e   : > { %11846 = vrot.lane.b32.xlu1 %v19997_v12, %s13459_s24  ;;  %v11612_v48 = vpop.permute.xlu0 %11611  ;;  %v17047_v17 = vpack.i.bf16 %v5169_v47, %v5168_v44  ;;  %v17055_v20 = vpack.i.bf16 %v5175_v39, %v5174_v52  ;;  %v17059_v3 = vpack.i.bf16 %v5173_v11, %v5172_v43  ;;  %v5198_v44 = vld [vmem:[%s13637_s26 + $0x130] sm:$0xff]  ;;  %v5199_v47 = vld [vmem:[%s13637_s26 + $0x138] sm:$0xff] }
 0x49f   : > { %11841 = vrot.lane.b32.xlu0 %v19998_v24, %s13459_s24  ;;  %v17010_v27 = vsel %vm4733_vm2, %v11618_v19, %v11619_v40  ;;  %v11614_v31 = vunpack.i.h.bf16 %v11612_v48  ;;  %v11613_v1 = vunpack.i.l.bf16 %v11612_v48  ;;  %v5177_v40 = vld [vmem:[%s13637_s26 + $0x60] sm:$0xff]  ;;  %v5183_v48 = vld [vmem:[%s13637_s26 + $0x98] sm:$0xff]  ;;  %v17127_v43 = vpack.i.bf16 %v5199_v47, %v5198_v44 }
 0x4a0   : > { %v11627_v49 = vpop.permute.xlu1 %11626  ;;  %v8841_v28 = vpack.c.bf16 %v17010_v27, %v17002_v8  ;;  %v17071_v12 = vpack.i.bf16 %v5177_v40, %v5176_v4  ;;  %v5180_v24 = vld [vmem:[%s13637_s26 + $0x80] sm:$0xff] }
 0x4a1   : > { %v4749_v57 = vsel %vm4733_vm2, %v11613_v1, %v11614_v31  ;;  %v11629_v23 = vunpack.i.h.bf16 %v11627_v49  ;;  %v11628_v54 = vunpack.i.l.bf16 %v11627_v49  ;;  %v4750_v6 = vsel %vm4733_vm2, %v11614_v31, %v11618_v19  ;;  %v5181_v31 = vld [vmem:[%s13637_s26 + $0x88] sm:$0xff]  ;;  %v5186_v49 = vld [vmem:[%s13637_s26 + $0xb8] sm:$0xff] }
 0x4a2   : > { %11856 = vrot.lane.b32.xlu1 %v19999_v51, %s13459_s24  ;;  %v11622_v35 = vpop.permute.xlu0 %11621  ;;  %v8775_v21 = vpack.c.bf16 %v4750_v6, %v4747_v42  ;;  %v8777_v29 = vpack.c.bf16 %v4749_v57, %v4746_v34  ;;  %v17067_v19 = vpack.i.bf16 %v5179_v38, %v5178_v2  ;;  %v5182_v34 = vld [vmem:[%s13637_s26 + $0x90] sm:$0xff]  ;;  %v17083_v42 = vpack.i.bf16 %v5181_v31, %v5180_v24  ;;  %v5187_v57 = vld [vmem:[%s13637_s26 + $0xc0] sm:$0xff] }
 0x4a3   : > { %11851 = vrot.lane.b32.xlu0 %v20000_v53, %s13459_s24  ;;  %v11624_v33 = vunpack.i.h.bf16 %v11622_v35  ;;  %v11623_v55 = vunpack.i.l.bf16 %v11622_v35  ;;  %v17022_v10 = vsel %vm4733_vm2, %v11628_v54, %v11629_v23  ;;  %v17079_v1 = vpack.i.bf16 %v5183_v48, %v5182_v34  ;;  %v5184_v23 = vld [vmem:[%s13637_s26 + $0xa8] sm:$0xff]  ;;  %v5190_v35 = vld [vmem:[%s13637_s26 + $0xe0] sm:$0xff]  ;;  %v5189_v53 = vld [vmem:[%s13637_s26 + $0xd8] sm:$0xff] }
 0x4a4   : > { %8776 = vmatprep.subr.bf16.mxu0 %v8775_v21  ;;  %v11637_v41 = vpop.permute.xlu1 %11636  ;;  %v17091_v6 = vpack.i.bf16 %v5187_v57, %v5186_v49  ;;  %v5191_v21 = vld [vmem:[%s13637_s26 + $0xe8] sm:$0xff] }
 0x4a5   : > { %8778 = vmatpush1.bf16.msra.mxu0 %v8777_v29  ;;  %v11639_v32 = vunpack.i.h.bf16 %v11637_v41  ;;  %v11638_v9 = vunpack.i.l.bf16 %v11637_v41  ;;  %v4752_v7 = vsel %vm4733_vm2, %v11623_v55, %v11624_v33  ;;  %v4753_v18 = vsel %vm4733_vm2, %v11624_v33, %v11628_v54  ;;  %v5185_v54 = vld [vmem:[%s13637_s26 + $0xb0] sm:$0xff]  ;;  %v5194_v55 = vld [vmem:[%s13637_s26 + $0x108] sm:$0xff] }
 0x4a6   : > { %11866 = vrot.lane.b32.xlu1 %v20001_v22, %s13459_s24  ;;  %v11632_v0 = vpop.permute.xlu0 %11631  ;;  %v17095_v51 = vpack.i.bf16 %v5185_v54, %v5184_v23  ;;  %v5188_v29 = vld [vmem:[%s13637_s26 + $0xd0] sm:$0xff]  ;;  %v17103_v33 = vpack.i.bf16 %v5191_v21, %v5190_v35  ;;  %v5193_v22 = vld [vmem:[%s13637_s26 + $0x100] sm:$0xff] }
 0x4a7   : > { %11861 = vrot.lane.b32.xlu0 %v20002_v30, %s13459_s24  ;;  %v17032_v37 = vsel %vm4733_vm2, %v11638_v9, %v11639_v32  ;;  %v11634_v62 = vunpack.i.h.bf16 %v11632_v0  ;;  %v11633_v59 = vunpack.i.l.bf16 %v11632_v0  ;;  %v17108_v41 = vpack.i.bf16 %v5189_v53, %v5188_v29  ;;  %v5195_v32 = vld [vmem:[%s13637_s26 + $0x110] sm:$0xff] }
 0x4a8   : > { %v8845_v58 = vpack.c.bf16 %v17032_v37, %v17022_v10  ;;  %v17115_v30 = vpack.i.bf16 %v5195_v32, %v5194_v55 }
 0x4a9   : > { %v4755_v36 = vsel %vm4733_vm2, %v11633_v59, %v11634_v62  ;;  %v4756_v50 = vsel %vm4733_vm2, %v11634_v62, %v11638_v9  ;;  %v5192_v9 = vld [vmem:[%s13637_s26 + $0xf8] sm:$0xff] }
 0x4aa   : > { %11876 = vrot.lane.b32.xlu1 %v20003_v45, %s13459_s24  ;;  %v8779_v61 = vpack.c.bf16 %v4756_v50, %v4753_v18  ;;  %v8781_v5 = vpack.c.bf16 %v4755_v36, %v4752_v7  ;;  %v17117_v60 = vpack.i.bf16 %v5193_v22, %v5192_v9  ;;  %v5196_v50 = vld [vmem:[%s13637_s26 + $0x120] sm:$0xff]  ;;  %v5197_v45 = vld [vmem:[%s13637_s26 + $0x128] sm:$0xff] }
 0x4ab   : > { %11871 = vrot.lane.b32.xlu0 %v20004_v63, %s13459_s24  ;;  %v17138_v4 = vpack.i.bf16 %v5197_v45, %v5196_v50 }
 0x4ac   : > { %8780 = vmatprep.subr.bf16.mxu0 %v8779_v61 }
 0x4ad   : > { %8782 = vmatpush1.bf16.msra.mxu0 %v8781_v5 }
 0x4ae   : > { %11886 = vrot.lane.b32.xlu1 %v17043_v25, %s13454_s18 }
 0x4af   : > { %11881 = vrot.lane.b32.xlu0 %v17047_v17, %s13454_s18 }
 0x4b2   : > { %11896 = vrot.lane.b32.xlu1 %v17055_v20, %s13454_s18 }
 0x4b3   : > { %11891 = vrot.lane.b32.xlu0 %v17059_v3, %s13454_s18 }
 0x4b6   : > { %11906 = vrot.lane.b32.xlu1 %v17067_v19, %s13454_s18 }
 0x4b7   : > { %11901 = vrot.lane.b32.xlu0 %v17071_v12, %s13454_s18 }
 0x4ba   : > { %11916 = vrot.lane.b32.xlu1 %v17079_v1, %s13454_s18 }
 0x4bb   : > { %11911 = vrot.lane.b32.xlu0 %v17083_v42, %s13454_s18 }
 0x4be   : > { %11926 = vrot.lane.b32.xlu1 %v17091_v6, %s13454_s18 }
 0x4bf   : > { %11921 = vrot.lane.b32.xlu0 %v17095_v51, %s13454_s18 }
 0x4c0   : > { %v11647_v7 = vpop.permute.xlu1 %11646 }
 0x4c1   : > { %v11642_v0 = vpop.permute.xlu0 %11641  ;;  %v11649_v13 = vunpack.i.h.bf16 %v11647_v7  ;;  %v11648_v62 = vunpack.i.l.bf16 %v11647_v7 }
 0x4c2   : > { %11936 = vrot.lane.b32.xlu1 %v17103_v33, %s13454_s18  ;;  %v11644_v59 = vunpack.i.h.bf16 %v11642_v0  ;;  %v11643_v18 = vunpack.i.l.bf16 %v11642_v0 }
 0x4c3   : > { %11931 = vrot.lane.b32.xlu0 %v17108_v41, %s13454_s18  ;;  %v17130_v11 = vsel %vm4733_vm2, %v11648_v62, %v11649_v13 }
 0x4c4   : > { %v11657_v36 = vpop.permute.xlu1 %11656  ;;  %v4758_v2 = vsel %vm4733_vm2, %v11643_v18, %v11644_v59  ;;  %v4759_v48 = vsel %vm4733_vm2, %v11644_v59, %v11648_v62 }
 0x4c5   : > { %v11659_v61 = vunpack.i.h.bf16 %v11657_v36  ;;  %v11658_v5 = vunpack.i.l.bf16 %v11657_v36  ;;  %v11652_v63 = vpop.permute.xlu0 %11651 }
 0x4c6   : > { %v11654_v52 = vunpack.i.h.bf16 %v11652_v63  ;;  %v11653_v39 = vunpack.i.l.bf16 %v11652_v63  ;;  %11946 = vrot.lane.b32.xlu1 %v17115_v30, %s13454_s18 }
 0x4c7   : > { %v17134_v38 = vsel %vm4733_vm2, %v11658_v5, %v11659_v61  ;;  %11941 = vrot.lane.b32.xlu0 %v17117_v60, %s13454_s18 }
 0x4c8   : > { %v4761_v40 = vsel %vm4733_vm2, %v11653_v39, %v11654_v52  ;;  %v11667_v34 = vpop.permute.xlu1 %11666  ;;  %v4762_v24 = vsel %vm4733_vm2, %v11654_v52, %v11658_v5  ;;  %v8849_v31 = vpack.c.bf16 %v17134_v38, %v17130_v11 }
 0x4c9   : > { %v11662_v49 = vpop.permute.xlu0 %11661  ;;  %v8783_v57 = vpack.c.bf16 %v4762_v24, %v4759_v48  ;;  %v8785_v23 = vpack.c.bf16 %v4761_v40, %v4758_v2  ;;  %v11669_v54 = vunpack.i.h.bf16 %v11667_v34  ;;  %v11668_v35 = vunpack.i.l.bf16 %v11667_v34 }
 0x4ca   : > { %11956 = vrot.lane.b32.xlu1 %v17127_v43, %s13454_s18  ;;  %v11664_v21 = vunpack.i.h.bf16 %v11662_v49  ;;  %v11663_v29 = vunpack.i.l.bf16 %v11662_v49 }
 0x4cb   : > { %11951 = vrot.lane.b32.xlu0 %v17138_v4, %s13454_s18  ;;  %8784 = vmatprep.subr.bf16.mxu0 %v8783_v57  ;;  %v17152_v0 = vsel %vm4733_vm2, %v11668_v35, %v11669_v54  ;;  %s7659_s18 = scalar_lea.sflag [#allocation4], %s13633_s25 }
 0x4cc   : > { %8786 = vmatpush1.bf16.msra.mxu0 %v8785_v23  ;;  %v11677_v53 = vpop.permute.xlu1 %11676  ;;  %v4764_v13 = vsel %vm4733_vm2, %v11663_v29, %v11664_v21  ;;  %v4765_v44 = vsel %vm4733_vm2, %v11664_v21, %v11668_v35 }
 0x4cd   : > { %v11679_v55 = vunpack.i.h.bf16 %v11677_v53  ;;  %v11678_v32 = vunpack.i.l.bf16 %v11677_v53  ;;  %v11672_v9 = vpop.permute.xlu0 %11671 }
 0x4ce   : > { %v11674_v22 = vunpack.i.h.bf16 %v11672_v9  ;;  %v11673_v7 = vunpack.i.l.bf16 %v11672_v9  ;;  %11966 = vrot.lane.b32.xlu1 %v17043_v25, %s13443_s20 }
 0x4cf   : > { %v17156_v62 = vsel %vm4733_vm2, %v11678_v32, %v11679_v55  ;;  %11961 = vrot.lane.b32.xlu0 %v17047_v17, %s13443_s20 }
 0x4d0   : > { %v4767_v59 = vsel %vm4733_vm2, %v11673_v7, %v11674_v22  ;;  %v11687_v18 = vpop.permute.xlu1 %11686  ;;  %v4768_v47 = vsel %vm4733_vm2, %v11674_v22, %v11678_v32  ;;  %v8853_v36 = vpack.c.bf16 %v17156_v62, %v17152_v0 }
 0x4d1   : > { %v11682_v50 = vpop.permute.xlu0 %11681  ;;  %v8787_v45 = vpack.c.bf16 %v4768_v47, %v4765_v44  ;;  %v8789_v61 = vpack.c.bf16 %v4767_v59, %v4764_v13  ;;  %v11689_v5 = vunpack.i.h.bf16 %v11687_v18  ;;  %v11688_v63 = vunpack.i.l.bf16 %v11687_v18 }
 0x4d2   : > { %11976 = vrot.lane.b32.xlu1 %v17055_v20, %s13443_s20  ;;  %v11684_v52 = vunpack.i.h.bf16 %v11682_v50  ;;  %v11683_v39 = vunpack.i.l.bf16 %v11682_v50 }
 0x4d3   : > { %11971 = vrot.lane.b32.xlu0 %v17059_v3, %s13443_s20  ;;  %8788 = vmatprep.subr.bf16.mxu0 %v8787_v45  ;;  %v17172_v57 = vsel %vm4733_vm2, %v11688_v63, %v11689_v5 }
 0x4d4   : > { %8790 = vmatpush1.bf16.msra.mxu0 %v8789_v61  ;;  %v11697_v2 = vpop.permute.xlu1 %11696  ;;  %v4770_v23 = vsel %vm4733_vm2, %v11683_v39, %v11684_v52  ;;  %v4771_v29 = vsel %vm4733_vm2, %v11684_v52, %v11688_v63 }
 0x4d5   : > { %v11699_v40 = vunpack.i.h.bf16 %v11697_v2  ;;  %v11698_v34 = vunpack.i.l.bf16 %v11697_v2  ;;  %v11692_v48 = vpop.permute.xlu0 %11691 }
 0x4d6   : > { %v11694_v24 = vunpack.i.h.bf16 %v11692_v48  ;;  %v11693_v49 = vunpack.i.l.bf16 %v11692_v48  ;;  %11986 = vrot.lane.b32.xlu1 %v17067_v19, %s13443_s20 }
 0x4d7   : > { %v17176_v54 = vsel %vm4733_vm2, %v11698_v34, %v11699_v40  ;;  %11981 = vrot.lane.b32.xlu0 %v17071_v12, %s13443_s20 }
 0x4d8   : > { %v4773_v35 = vsel %vm4733_vm2, %v11693_v49, %v11694_v24  ;;  %v11707_v21 = vpop.permute.xlu1 %11706  ;;  %v4774_v53 = vsel %vm4733_vm2, %v11694_v24, %v11698_v34  ;;  %v8857_v55 = vpack.c.bf16 %v17176_v54, %v17172_v57 }
 0x4d9   : > { %v11702_v32 = vpop.permute.xlu0 %11701  ;;  %v8791_v9 = vpack.c.bf16 %v4774_v53, %v4771_v29  ;;  %v8793_v22 = vpack.c.bf16 %v4773_v35, %v4770_v23  ;;  %v11709_v7 = vunpack.i.h.bf16 %v11707_v21  ;;  %v11708_v13 = vunpack.i.l.bf16 %v11707_v21 }
 0x4da   : > { %11996 = vrot.lane.b32.xlu1 %v17079_v1, %s13443_s20  ;;  %v11704_v59 = vunpack.i.h.bf16 %v11702_v32  ;;  %v11703_v18 = vunpack.i.l.bf16 %v11702_v32 }
 0x4db   : > { %11991 = vrot.lane.b32.xlu0 %v17083_v42, %s13443_s20  ;;  %8792 = vmatprep.subr.bf16.mxu0 %v8791_v9  ;;  %v17192_v63 = vsel %vm4733_vm2, %v11708_v13, %v11709_v7 }
 0x4dc   : > { %8794 = vmatpush1.bf16.msra.mxu0 %v8793_v22  ;;  %v11717_v44 = vpop.permute.xlu1 %11716  ;;  %v4776_v52 = vsel %vm4733_vm2, %v11703_v18, %v11704_v59  ;;  %v4777_v34 = vsel %vm4733_vm2, %v11704_v59, %v11708_v13 }
 0x4dd   : > { %v11719_v47 = vunpack.i.h.bf16 %v11717_v44  ;;  %v11718_v50 = vunpack.i.l.bf16 %v11717_v44  ;;  %v11712_v45 = vpop.permute.xlu0 %11711 }
 0x4de   : > { %v11714_v61 = vunpack.i.h.bf16 %v11712_v45  ;;  %v11713_v5 = vunpack.i.l.bf16 %v11712_v45  ;;  %12006 = vrot.lane.b32.xlu1 %v17091_v6, %s13443_s20 }
 0x4df   : > { %v17196_v39 = vsel %vm4733_vm2, %v11718_v50, %v11719_v47  ;;  %12001 = vrot.lane.b32.xlu0 %v17095_v51, %s13443_s20 }
 0x4e0   : > { %v4779_v2 = vsel %vm4733_vm2, %v11713_v5, %v11714_v61  ;;  %v11727_v40 = vpop.permute.xlu1 %11726  ;;  %v4780_v48 = vsel %vm4733_vm2, %v11714_v61, %v11718_v50  ;;  %v8861_v24 = vpack.c.bf16 %v17196_v39, %v17192_v63 }
 0x4e1   : > { %v11722_v49 = vpop.permute.xlu0 %11721  ;;  %v8795_v23 = vpack.c.bf16 %v4780_v48, %v4777_v34  ;;  %v8797_v35 = vpack.c.bf16 %v4779_v2, %v4776_v52  ;;  %v11729_v21 = vunpack.i.h.bf16 %v11727_v40  ;;  %v11728_v29 = vunpack.i.l.bf16 %v11727_v40 }
 0x4e2   : > { %12016 = vrot.lane.b32.xlu1 %v17103_v33, %s13443_s20  ;;  %v11724_v53 = vunpack.i.h.bf16 %v11722_v49  ;;  %v11723_v32 = vunpack.i.l.bf16 %v11722_v49 }
 0x4e3   : > { %12011 = vrot.lane.b32.xlu0 %v17108_v41, %s13443_s20  ;;  %8796 = vmatprep.subr.bf16.mxu0 %v8795_v23  ;;  %v4784_v47 = vsel %vm4733_vm2, %v11728_v29, %v11729_v21 }
 0x4e4   : > { %8798 = vmatpush1.bf16.msra.mxu0 %v8797_v35  ;;  %v11737_v9 = vpop.permute.xlu1 %11736  ;;  %v4782_v44 = vsel %vm4733_vm2, %v11723_v32, %v11724_v53  ;;  %v4783_v5 = vsel %vm4733_vm2, %v11724_v53, %v11728_v29 }
 0x4e5   : > { %v11739_v22 = vunpack.i.h.bf16 %v11737_v9  ;;  %v11738_v7 = vunpack.i.l.bf16 %v11737_v9  ;;  %v11732_v13 = vpop.permute.xlu0 %11731 }
 0x4e6   : > { %v11734_v59 = vunpack.i.h.bf16 %v11732_v13  ;;  %v11733_v18 = vunpack.i.l.bf16 %v11732_v13  ;;  %12026 = vrot.lane.b32.xlu1 %v17115_v30, %s13443_s20 }
 0x4e7   : > { %12021 = vrot.lane.b32.xlu0 %v17117_v60, %s13443_s20  ;;  %v4787_v50 = vsel %vm4733_vm2, %v11738_v7, %v11739_v22 }
 0x4e8   : > { %v4785_v45 = vsel %vm4733_vm2, %v11733_v18, %v11734_v59  ;;  %v11747_v61 = vpop.permute.xlu1 %11746  ;;  %v4786_v52 = vsel %vm4733_vm2, %v11734_v59, %v11738_v7  ;;  %v8831_v2 = vpack.c.bf16 %v4787_v50, %v4784_v47  ;;  %v3579_v50 = vld [vmem:[#allocation5 + $0xd0] sm:$0xff] }
 0x4e9   : > { %v11742_v40 = vpop.permute.xlu0 %11741  ;;  %v8799_v34 = vpack.c.bf16 %v4786_v52, %v4783_v5  ;;  %v8801_v48 = vpack.c.bf16 %v4785_v45, %v4782_v44  ;;  %v11749_v49 = vunpack.i.h.bf16 %v11747_v61  ;;  %v11748_v23 = vunpack.i.l.bf16 %v11747_v61  ;;  %4111 = vmatprep.mubr.f32.mxu0 %v3579_v50  ;;  %4223 = vmatprep.mubr.f32.mxu1 %v3579_v50  ;;  %v3578_v52 = vld [vmem:[#allocation5 + $0xc8] sm:$0xff] }
 0x4ea   : > { %12036 = vrot.lane.b32.xlu1 %v17127_v43, %s13443_s20  ;;  %8832 = vmatprep.subr.bf16.mxu1 %v8831_v2  ;;  %v11744_v35 = vunpack.i.h.bf16 %v11742_v40  ;;  %v11743_v21 = vunpack.i.l.bf16 %v11742_v40 }
 0x4eb   : > { %12031 = vrot.lane.b32.xlu0 %v17138_v4, %s13443_s20  ;;  %8800 = vmatprep.subr.bf16.mxu0 %v8799_v34  ;;  %v4790_v59 = vsel %vm4733_vm2, %v11748_v23, %v11749_v49  ;;  %s13460_s20 = smov 110  }
 0x4ec   : > { %8802 = vmatpush1.bf16.msra.mxu0 %v8801_v48  ;;  %8834 = vmatpush3.bf16.msra.mxu1 %v8833_v56  ;;  %v11757_v29 = vpop.permute.xlu1 %11756  ;;  %v4788_v13 = vsel %vm4733_vm2, %v11743_v21, %v11744_v35  ;;  %v4789_v56 = vsel %vm4733_vm2, %v11744_v35, %v11748_v23  ;;  %v3581_v23 = vld [vmem:[#allocation5 + $0x158] sm:$0xff] }
 0x4ed   : > { %v11759_v53 = vunpack.i.h.bf16 %v11757_v29  ;;  %v11758_v32 = vunpack.i.l.bf16 %v11757_v29  ;;  %v11752_v9 = vpop.permute.xlu0 %11751  ;;  %4112 = vmatmul.mubr.f32.gmra.mrb[2].mxu0 %v3578_v52  ;;  %4224 = vmatmul.mubr.f32.gmra.mrb[82].mxu1 %v3578_v52 }
 0x4ee   : > { %v11754_v22 = vunpack.i.h.bf16 %v11752_v9  ;;  %v11753_v7 = vunpack.i.l.bf16 %v11752_v9  ;;  %12046 = vrot.lane.b32.xlu1 %v17043_v25, %s13451_s6  ;;  %4117 = vmatprep.mubr.f32.mxu0 %v3581_v23  ;;  %v3580_v9 = vld [vmem:[#allocation5 + $0x150] sm:$0xff] }
 0x4ef   : > { %12041 = vrot.lane.b32.xlu0 %v17047_v17, %s13451_s6  ;;  %v4793_v18 = vsel %vm4733_vm2, %v11758_v32, %v11759_v53  ;;  %4228 = vmatprep.mubr.f32.mxu1 %v3581_v23 }
 0x4f0   : > { %v4791_v15 = vsel %vm4733_vm2, %v11753_v7, %v11754_v22  ;;  %v11767_v16 = vpop.permute.xlu1 %11766  ;;  %v4792_v44 = vsel %vm4733_vm2, %v11754_v22, %v11758_v32  ;;  %v8835_v47 = vpack.c.bf16 %v4793_v18, %v4790_v59 }
 0x4f1   : > { %v11762_v45 = vpop.permute.xlu0 %11761  ;;  %v8803_v61 = vpack.c.bf16 %v4792_v44, %v4789_v56  ;;  %v8805_v5 = vpack.c.bf16 %v4791_v15, %v4788_v13  ;;  %v11769_v2 = vunpack.i.h.bf16 %v11767_v16  ;;  %v11768_v40 = vunpack.i.l.bf16 %v11767_v16  ;;  %4118 = vmatmul.mubr.f32.gmra.mrb[4].mxu0 %v3580_v9  ;;  %4229 = vmatmul.mubr.f32.gmra.mrb[84].mxu1 %v3580_v9  ;;  %v3583_v44 = vld [vmem:[#allocation5 + $0x1e0] sm:$0xff] }
 0x4f2   : > { %12056 = vrot.lane.b32.xlu1 %v17055_v20, %s13451_s6  ;;  %8836 = vmatprep.subr.bf16.mxu1 %v8835_v47  ;;  %v11764_v34 = vunpack.i.h.bf16 %v11762_v45  ;;  %v11763_v48 = vunpack.i.l.bf16 %v11762_v45 }
 0x4f3   : > { %12051 = vrot.lane.b32.xlu0 %v17059_v3, %s13451_s6  ;;  %8804 = vmatprep.subr.bf16.mxu0 %v8803_v61  ;;  %v4796_v26 = vsel %vm4733_vm2, %v11768_v40, %v11769_v2  ;;  %v3585_v2 = vld [vmem:[#allocation5 + $0x268] sm:$0xff] }
 0x4f4   : > { %8806 = vmatpush1.bf16.msra.mxu0 %v8805_v5  ;;  %8838 = vmatpush3.bf16.msra.mxu1 %v8837_v14  ;;  %v11777_v49 = vpop.permute.xlu1 %11776  ;;  %v4794_v22 = vsel %vm4733_vm2, %v11763_v48, %v11764_v34  ;;  %v4795_v13 = vsel %vm4733_vm2, %v11764_v34, %v11768_v40  ;;  %v3582_v5 = vld [vmem:[#allocation5 + $0x1d8] sm:$0xff] }
 0x4f5   : > { %v11779_v35 = vunpack.i.h.bf16 %v11777_v49  ;;  %v11778_v21 = vunpack.i.l.bf16 %v11777_v49  ;;  %v11772_v29 = vpop.permute.xlu0 %11771  ;;  %4123 = vmatprep.mubr.f32.mxu0 %v3583_v44  ;;  %4233 = vmatprep.mubr.f32.mxu1 %v3583_v44 }
 0x4f6   : > { %v11774_v53 = vunpack.i.h.bf16 %v11772_v29  ;;  %v11773_v32 = vunpack.i.l.bf16 %v11772_v29  ;;  %12066 = vrot.lane.b32.xlu1 %v17067_v19, %s13451_s6  ;;  %4124 = vmatmul.mubr.f32.gmra.mrb[6].mxu0 %v3582_v5 }
 0x4f7   : > { %12061 = vrot.lane.b32.xlu0 %v17071_v12, %s13451_s6  ;;  %v4799_v46 = vsel %vm4733_vm2, %v11778_v21, %v11779_v35  ;;  %4129 = vmatprep.mubr.f32.mxu0 %v3585_v2 }
 0x4f8   : > { %v4797_v14 = vsel %vm4733_vm2, %v11773_v32, %v11774_v53  ;;  %v11787_v7 = vpop.permute.xlu1 %11786  ;;  %v4798_v59 = vsel %vm4733_vm2, %v11774_v53, %v11778_v21  ;;  %v8839_v18 = vpack.c.bf16 %v4799_v46, %v4796_v26  ;;  %4234 = vmatmul.mubr.f32.gmra.mrb[86].mxu1 %v3582_v5  ;;  %v3584_v46 = vld [vmem:[#allocation5 + $0x260] sm:$0xff] }
 0x4f9   : > { %v11782_v15 = vpop.permute.xlu0 %11781  ;;  %v8807_v16 = vpack.c.bf16 %v4798_v59, %v4795_v13  ;;  %v8809_v56 = vpack.c.bf16 %v4797_v14, %v4794_v22  ;;  %v11789_v47 = vunpack.i.h.bf16 %v11787_v7  ;;  %v11788_v50 = vunpack.i.l.bf16 %v11787_v7  ;;  %4238 = vmatprep.mubr.f32.mxu1 %v3585_v2 }
 0x4fa   : > { %12076 = vrot.lane.b32.xlu1 %v17079_v1, %s13451_s6  ;;  %8840 = vmatprep.subr.bf16.mxu1 %v8839_v18  ;;  %v11784_v45 = vunpack.i.h.bf16 %v11782_v15  ;;  %v11783_v61 = vunpack.i.l.bf16 %v11782_v15  ;;  %v3587_v18 = vld [vmem:[#allocation5 + $0x2f0] sm:$0xff] }
 0x4fb   : > { %12071 = vrot.lane.b32.xlu0 %v17083_v42, %s13451_s6  ;;  %8808 = vmatprep.subr.bf16.mxu0 %v8807_v16  ;;  %v4802_v8 = vsel %vm4733_vm2, %v11788_v50, %v11789_v47 }
 0x4fc   : > { %8810 = vmatpush1.bf16.msra.mxu0 %v8809_v56  ;;  %8842 = vmatpush3.bf16.msra.mxu1 %v8841_v28  ;;  %v11797_v52 = vpop.permute.xlu1 %11796  ;;  %v4800_v35 = vsel %vm4733_vm2, %v11783_v61, %v11784_v45  ;;  %v4801_v29 = vsel %vm4733_vm2, %v11784_v45, %v11788_v50  ;;  %v3586_v45 = vld [vmem:[#allocation5 + $0x2e8] sm:$0xff] }
 0x4fd   : > { %v11799_v40 = vunpack.i.h.bf16 %v11797_v52  ;;  %v11798_v34 = vunpack.i.l.bf16 %v11797_v52  ;;  %v11792_v48 = vpop.permute.xlu0 %11791  ;;  %4130 = vmatmul.mubr.f32.gmra.mrb[8].mxu0 %v3584_v46  ;;  %4239 = vmatmul.mubr.f32.gmra.mrb[88].mxu1 %v3584_v46 }
 0x4fe   : > { %v11794_v49 = vunpack.i.h.bf16 %v11792_v48  ;;  %v11793_v23 = vunpack.i.l.bf16 %v11792_v48  ;;  %12086 = vrot.lane.b32.xlu1 %v17091_v6, %s13451_s6  ;;  %4135 = vmatprep.mubr.f32.mxu0 %v3587_v18 }
 0x4ff   : > { %12081 = vrot.lane.b32.xlu0 %v17095_v51, %s13451_s6  ;;  %v4805_v27 = vsel %vm4733_vm2, %v11798_v34, %v11799_v40  ;;  %4243 = vmatprep.mubr.f32.mxu1 %v3587_v18 }
 0x500   : > { %v4803_v28 = vsel %vm4733_vm2, %v11793_v23, %v11794_v49  ;;  %v11807_v21 = vpop.permute.xlu1 %11806  ;;  %v4804_v53 = vsel %vm4733_vm2, %v11794_v49, %v11798_v34  ;;  %v8843_v32 = vpack.c.bf16 %v4805_v27, %v4802_v8  ;;  %v3589_v23 = vld [vmem:[#allocation5 + $0x378] sm:$0xff] }
 0x501   : > { %v11802_v9 = vpop.permute.xlu0 %11801  ;;  %v8811_v22 = vpack.c.bf16 %v4804_v53, %v4801_v29  ;;  %v8813_v26 = vpack.c.bf16 %v4803_v28, %v4800_v35  ;;  %v11809_v14 = vunpack.i.h.bf16 %v11807_v21  ;;  %v11808_v7 = vunpack.i.l.bf16 %v11807_v21  ;;  %4136 = vmatmul.mubr.f32.gmra.mrb[10].mxu0 %v3586_v45  ;;  %4244 = vmatmul.mubr.f32.gmra.mrb[90].mxu1 %v3586_v45  ;;  %v3588_v21 = vld [vmem:[#allocation5 + $0x370] sm:$0xff]  ;;  %v3591_v53 = vld [vmem:[#allocation5 + $0x400] sm:$0xff]  ;;  %v4462_v45 = vld [vmem:[#allocation5 + $0x58] sm:$0xff] }
 0x502   : > { %12096 = vrot.lane.b32.xlu1 %v17103_v33, %s13451_s6  ;;  %8844 = vmatprep.subr.bf16.mxu1 %v8843_v32  ;;  %v11804_v13 = vunpack.i.h.bf16 %v11802_v9  ;;  %v11803_v59 = vunpack.i.l.bf16 %v11802_v9 }
 0x503   : > { %12091 = vrot.lane.b32.xlu0 %v17108_v41, %s13451_s6  ;;  %8812 = vmatprep.subr.bf16.mxu0 %v8811_v22  ;;  %v4808_v10 = vsel %vm4733_vm2, %v11808_v7, %v11809_v14 }
 0x504   : > { %8814 = vmatpush1.bf16.msra.mxu0 %v8813_v26  ;;  %8846 = vmatpush3.bf16.msra.mxu1 %v8845_v58  ;;  %v11817_v15 = vpop.permute.xlu1 %11816  ;;  %v4806_v61 = vsel %vm4733_vm2, %v11803_v59, %v11804_v13  ;;  %v4807_v52 = vsel %vm4733_vm2, %v11804_v13, %v11808_v7 }
 0x505   : > { %v11819_v16 = vunpack.i.h.bf16 %v11817_v15  ;;  %v11818_v56 = vunpack.i.l.bf16 %v11817_v15  ;;  %v11812_v44 = vpop.permute.xlu0 %11811  ;;  %4141 = vmatprep.mubr.f32.mxu0 %v3589_v23  ;;  %4248 = vmatprep.mubr.f32.mxu1 %v3589_v23 }
 0x506   : > { %v11814_v47 = vunpack.i.h.bf16 %v11812_v44  ;;  %v11813_v50 = vunpack.i.l.bf16 %v11812_v44  ;;  %12106 = vrot.lane.b32.xlu1 %v17115_v30, %s13451_s6  ;;  %4142 = vmatmul.mubr.f32.gmra.mrb[12].mxu0 %v3588_v21 }
 0x507   : > { %12101 = vrot.lane.b32.xlu0 %v17117_v60, %s13451_s6  ;;  %v4811_v37 = vsel %vm4733_vm2, %v11818_v56, %v11819_v16  ;;  %4147 = vmatprep.mubr.f32.mxu0 %v3591_v53 }
 0x508   : > { %v4809_v58 = vsel %vm4733_vm2, %v11813_v50, %v11814_v47  ;;  %v11827_v5 = vpop.permute.xlu1 %11826  ;;  %v4810_v2 = vsel %vm4733_vm2, %v11814_v47, %v11818_v56  ;;  %v8847_v40 = vpack.c.bf16 %v4811_v37, %v4808_v10  ;;  %4249 = vmatmul.mubr.f32.gmra.mrb[92].mxu1 %v3588_v21 }
 0x509   : > { %v11822_v34 = vpop.permute.xlu0 %11821  ;;  %v8815_v48 = vpack.c.bf16 %v4810_v2, %v4807_v52  ;;  %v8817_v49 = vpack.c.bf16 %v4809_v58, %v4806_v61  ;;  %v11829_v35 = vunpack.i.h.bf16 %v11827_v5  ;;  %v11828_v8 = vunpack.i.l.bf16 %v11827_v5  ;;  %4253 = vmatprep.mubr.f32.mxu1 %v3591_v53 }
 0x50a   : > { %12116 = vrot.lane.b32.xlu1 %v17127_v43, %s13451_s6  ;;  %8848 = vmatprep.subr.bf16.mxu1 %v8847_v40  ;;  %v11824_v27 = vunpack.i.h.bf16 %v11822_v34  ;;  %v11823_v28 = vunpack.i.l.bf16 %v11822_v34 }
 0x50b   : > { %12111 = vrot.lane.b32.xlu0 %v17138_v4, %s13451_s6  ;;  %8816 = vmatprep.subr.bf16.mxu0 %v8815_v48  ;;  %v4814_v11 = vsel %vm4733_vm2, %v11828_v8, %v11829_v35 }
 0x50c   : > { %8818 = vmatpush1.bf16.msra.mxu0 %v8817_v49  ;;  %8850 = vmatpush3.bf16.msra.mxu1 %v8849_v31  ;;  %v11837_v29 = vpop.permute.xlu1 %11836  ;;  %v4812_v14 = vsel %vm4733_vm2, %v11823_v28, %v11824_v27  ;;  %v4813_v13 = vsel %vm4733_vm2, %v11824_v27, %v11828_v8 }
 0x50d   : > { %v11839_v32 = vunpack.i.h.bf16 %v11837_v29  ;;  %v11838_v9 = vunpack.i.l.bf16 %v11837_v29  ;;  %v11832_v22 = vpop.permute.xlu0 %11831 }
 0x50e   : > { %v11834_v26 = vunpack.i.h.bf16 %v11832_v22  ;;  %v11833_v46 = vunpack.i.l.bf16 %v11832_v22  ;;  %12126 = vrot.lane.b32.xlu1 %v17043_v25, %s13460_s20 }
 0x50f   : > { %12121 = vrot.lane.b32.xlu0 %v17047_v17, %s13460_s20  ;;  %v4817_v38 = vsel %vm4733_vm2, %v11838_v9, %v11839_v32  ;;  %v3590_v17 = vld [vmem:[#allocation5 + $0x3f8] sm:$0xff] }
 0x510   : > { %v4815_v31 = vsel %vm4733_vm2, %v11833_v46, %v11834_v26  ;;  %v11847_v7 = vpop.permute.xlu1 %11846  ;;  %v4816_v59 = vsel %vm4733_vm2, %v11834_v26, %v11838_v9  ;;  %v8851_v18 = vpack.c.bf16 %v4817_v38, %v4814_v11  ;;  %4148 = vmatmul.mubr.f32.gmra.mrb[14].mxu0 %v3590_v17  ;;  %4254 = vmatmul.mubr.f32.gmra.mrb[94].mxu1 %v3590_v17  ;;  %v4461_v11 = vld [vmem:[#allocation5 + $0x50] sm:$0xff] }
 0x511   : > { %v11842_v25 = vpop.permute.xlu0 %11841  ;;  %v8819_v15 = vpack.c.bf16 %v4816_v59, %v4813_v13  ;;  %v8821_v16 = vpack.c.bf16 %v4815_v31, %v4812_v14  ;;  %v11849_v56 = vunpack.i.h.bf16 %v11847_v7  ;;  %v11848_v44 = vunpack.i.l.bf16 %v11847_v7  ;;  %4990 = vmatprep.mubr.f32.mxu0 %v4462_v45  ;;  %5103 = vmatprep.mubr.f32.mxu1 %v4462_v45 }
 0x512   : > { %12136 = vrot.lane.b32.xlu1 %v17055_v20, %s13460_s20  ;;  %8852 = vmatprep.subr.bf16.mxu1 %v8851_v18  ;;  %v11844_v47 = vunpack.i.h.bf16 %v11842_v25  ;;  %v11843_v50 = vunpack.i.l.bf16 %v11842_v25 }
 0x513   : > { %12131 = vrot.lane.b32.xlu0 %v17059_v3, %s13460_s20  ;;  %8820 = vmatprep.subr.bf16.mxu0 %v8819_v15  ;;  %v4820_v0 = vsel %vm4733_vm2, %v11848_v44, %v11849_v56 }
 0x514   : > { %8822 = vmatpush1.bf16.msra.mxu0 %v8821_v16  ;;  %8854 = vmatpush3.bf16.msra.mxu1 %v8853_v36  ;;  %v11857_v61 = vpop.permute.xlu1 %11856  ;;  %v4818_v3 = vsel %vm4733_vm2, %v11843_v50, %v11844_v47  ;;  %v4819_v2 = vsel %vm4733_vm2, %v11844_v47, %v11848_v44 }
 0x515   : > { %v11859_v10 = vunpack.i.h.bf16 %v11857_v61  ;;  %v11858_v37 = vunpack.i.l.bf16 %v11857_v61  ;;  %v11852_v20 = vpop.permute.xlu0 %11851 }
 0x516   : > { %v11854_v58 = vunpack.i.h.bf16 %v11852_v20  ;;  %v11853_v5 = vunpack.i.l.bf16 %v11852_v20  ;;  %12146 = vrot.lane.b32.xlu1 %v17067_v19, %s13460_s20 }
 0x517   : > { %12141 = vrot.lane.b32.xlu0 %v17071_v12, %s13460_s20  ;;  %v4823_v62 = vsel %vm4733_vm2, %v11858_v37, %v11859_v10 }
 0x518   : > { %v4821_v36 = vsel %vm4733_vm2, %v11853_v5, %v11854_v58  ;;  %v11867_v52 = vpop.permute.xlu1 %11866  ;;  %v4822_v40 = vsel %vm4733_vm2, %v11854_v58, %v11858_v37  ;;  %v8855_v34 = vpack.c.bf16 %v4823_v62, %v4820_v0 }
 0x519   : > { %v11862_v19 = vpop.permute.xlu0 %11861  ;;  %v8823_v48 = vpack.c.bf16 %v4822_v40, %v4819_v2  ;;  %v8825_v49 = vpack.c.bf16 %v4821_v36, %v4818_v3  ;;  %v11869_v12 = vunpack.i.h.bf16 %v11867_v52  ;;  %v11868_v23 = vunpack.i.l.bf16 %v11867_v52 }
 0x51a   : > { %12156 = vrot.lane.b32.xlu1 %v17079_v1, %s13460_s20  ;;  %8856 = vmatprep.subr.bf16.mxu1 %v8855_v34  ;;  %v11864_v35 = vunpack.i.h.bf16 %v11862_v19  ;;  %v11863_v8 = vunpack.i.l.bf16 %v11862_v19 }
 0x51b   : > { %12151 = vrot.lane.b32.xlu0 %v17083_v42, %s13460_s20  ;;  %8824 = vmatprep.subr.bf16.mxu0 %v8823_v48  ;;  %v4826_v42 = vsel %vm4733_vm2, %v11868_v23, %v11869_v12 }
 0x51c   : > { %8826 = vmatpush1.bf16.msra.mxu0 %v8825_v49  ;;  %8858 = vmatpush3.bf16.msra.mxu1 %v8857_v55  ;;  %v11877_v27 = vpop.permute.xlu1 %11876  ;;  %v4824_v32 = vsel %vm4733_vm2, %v11863_v8, %v11864_v35  ;;  %v4825_v55 = vsel %vm4733_vm2, %v11864_v35, %v11868_v23 }
 0x51d   : > { %v11879_v28 = vunpack.i.h.bf16 %v11877_v27  ;;  %v11878_v21 = vunpack.i.l.bf16 %v11877_v27  ;;  %v11872_v29 = vpop.permute.xlu0 %11871 }
 0x51e   : > { %v11874_v53 = vunpack.i.h.bf16 %v11872_v29  ;;  %v11873_v1 = vunpack.i.l.bf16 %v11872_v29  ;;  %12166 = vrot.lane.b32.xlu1 %v17091_v6, %s13460_s20 }
 0x51f   : > { %12161 = vrot.lane.b32.xlu0 %v17095_v51, %s13460_s20  ;;  %v4829_v9 = vsel %vm4733_vm2, %v11878_v21, %v11879_v28 }
 0x520   : > { %v4827_v57 = vsel %vm4733_vm2, %v11873_v1, %v11874_v53  ;;  %v11887_v54 = vpop.permute.xlu1 %11886  ;;  %v4828_v22 = vsel %vm4733_vm2, %v11874_v53, %v11878_v21  ;;  %v8859_v26 = vpack.c.bf16 %v4829_v9, %v4826_v42 }
 0x521   : > { %v11882_v46 = vpop.permute.xlu0 %11881  ;;  %v8827_v14 = vpack.c.bf16 %v4828_v22, %v4825_v55  ;;  %v8829_v6 = vpack.c.bf16 %v4827_v57, %v4824_v32  ;;  %v11889_v38 = vunpack.i.h.bf16 %v11887_v54  ;;  %v11888_v31 = vunpack.i.l.bf16 %v11887_v54 }
 0x522   : > { %12176 = vrot.lane.b32.xlu1 %v17103_v33, %s13460_s20  ;;  %8860 = vmatprep.subr.bf16.mxu1 %v8859_v26  ;;  %v11884_v13 = vunpack.i.h.bf16 %v11882_v46  ;;  %v11883_v59 = vunpack.i.l.bf16 %v11882_v46 }
 0x523   : > { %12171 = vrot.lane.b32.xlu0 %v17108_v41, %s13460_s20  ;;  %8828 = vmatprep.subr.bf16.mxu0 %v8827_v14  ;;  %v5298_v41 = vsel %vm2844_vm11, %v11888_v31, %v11889_v38 }
 0x524   : > { %8830 = vmatpush1.bf16.msra.mxu0 %v8829_v6  ;;  %8862 = vmatpush3.bf16.msra.mxu1 %v8861_v24  ;;  %v11897_v51 = vpop.permute.xlu1 %11896  ;;  %v5297_v18 = vsel %vm2844_vm11, %v11884_v13, %v11888_v31  ;;  %v5296_v25 = vsel %vm2844_vm11, %v11883_v59, %v11884_v13 }
 0x525   : > { %v11892_v7 = vpop.permute.xlu0 %11891  ;;  %v11899_v63 = vunpack.i.h.bf16 %v11897_v51  ;;  %v11898_v39 = vunpack.i.l.bf16 %v11897_v51  ;;  %v12200_v50 = vpack.i.bf16 %v5297_v18, %v5296_v25 }
 0x526   : > { %12186 = vrot.lane.b32.xlu1 %v17115_v30, %s13460_s20  ;;  %v11894_v15 = vunpack.i.h.bf16 %v11892_v7  ;;  %v11893_v16 = vunpack.i.l.bf16 %v11892_v7  ;;  %v12205_v30 = vpack.i.bf16 %v11889_v38, %v5298_v41 }
 0x527   : > { %12181 = vrot.lane.b32.xlu0 %v17117_v60, %s13460_s20  ;;  %4991 = vmatmul.mubr.f32.vlgmr.msra.gmra.mrb[0].mxu0 %v4461_v11  ;;  %v5301_v17 = vsel %vm2844_vm11, %v11898_v39, %v11899_v63 }
 0x528   : > { %v11907_v33 = vpop.permute.xlu1 %11906  ;;  %5104 = vmatmul.mubr.f32.vlgmr.msra.gmra.mrb[96].mxu1 %v4461_v11  ;;  %v5300_v45 = vsel %vm2844_vm11, %v11894_v15, %v11898_v39  ;;  %v5299_v61 = vsel %vm2844_vm11, %v11893_v16, %v11894_v15 }
 0x529   : > { %v11902_v24 = vpop.permute.xlu0 %11901  ;;  %v11909_v56 = vunpack.i.h.bf16 %v11907_v33  ;;  %v11908_v44 = vunpack.i.l.bf16 %v11907_v33  ;;  %v12210_v0 = vpack.i.bf16 %v5300_v45, %v5299_v61 }
 0x52a   : > { %12196 = vrot.lane.b32.xlu1 %v17127_v43, %s13460_s20  ;;  %v11904_v10 = vunpack.i.h.bf16 %v11902_v24  ;;  %v11903_v37 = vunpack.i.l.bf16 %v11902_v24  ;;  %v12215_v43 = vpack.i.bf16 %v11899_v63, %v5301_v17 }
 0x52b   : > { %12191 = vrot.lane.b32.xlu0 %v17138_v4, %s13460_s20  ;;  %v5304_v20 = vsel %vm2844_vm11, %v11908_v44, %v11909_v56 }
 0x52c   : > { %v11917_v60 = vpop.permute.xlu1 %11916  ;;  %v5303_v62 = vsel %vm2844_vm11, %v11904_v10, %v11908_v44  ;;  %v5302_v36 = vsel %vm2844_vm11, %v11903_v37, %v11904_v10  ;;  %v12225_v40 = vpack.i.bf16 %v11909_v56, %v5304_v20 }
 0x52d   : > { %v11912_v47 = vpop.permute.xlu0 %11911  ;;  %v11919_v58 = vunpack.i.h.bf16 %v11917_v60  ;;  %v11918_v5 = vunpack.i.l.bf16 %v11917_v60  ;;  %v12220_v23 = vpack.i.bf16 %v5303_v62, %v5302_v36 }
 0x52e   : > { %12206 = vrot.lane.b32.xlu1 %v12205_v30, %s13460_s20  ;;  %v11914_v52 = vunpack.i.h.bf16 %v11912_v47  ;;  %v11913_v2 = vunpack.i.l.bf16 %v11912_v47 }
 0x52f   : > { %12201 = vrot.lane.b32.xlu0 %v12200_v50, %s13460_s20  ;;  %v5307_v19 = vsel %vm2844_vm11, %v11918_v5, %v11919_v58 }
 0x530   : > { %v11927_v4 = vpop.permute.xlu1 %11926  ;;  %v5306_v35 = vsel %vm2844_vm11, %v11914_v52, %v11918_v5  ;;  %v5305_v8 = vsel %vm2844_vm11, %v11913_v2, %v11914_v52  ;;  %v12235_v21 = vpack.i.bf16 %v11919_v58, %v5307_v19 }
 0x531   : > { %v11922_v3 = vpop.permute.xlu0 %11921  ;;  %v11929_v48 = vunpack.i.h.bf16 %v11927_v4  ;;  %v11928_v49 = vunpack.i.l.bf16 %v11927_v4  ;;  %v12230_v9 = vpack.i.bf16 %v5306_v35, %v5305_v8 }
 0x532   : > { %12216 = vrot.lane.b32.xlu1 %v12215_v43, %s13460_s20  ;;  %v11924_v27 = vunpack.i.h.bf16 %v11922_v3  ;;  %v11923_v28 = vunpack.i.l.bf16 %v11922_v3 }
 0x533   : > { %12211 = vrot.lane.b32.xlu0 %v12210_v0, %s13460_s20  ;;  %v5310_v53 = vsel %vm2844_vm11, %v11928_v49, %v11929_v48 }
 0x534   : > { %v11937_v34 = vpop.permute.xlu1 %11936  ;;  %v5309_v57 = vsel %vm2844_vm11, %v11924_v27, %v11928_v49  ;;  %v5308_v54 = vsel %vm2844_vm11, %v11923_v28, %v11924_v27  ;;  %v12245_v26 = vpack.i.bf16 %v11929_v48, %v5310_v53 }
 0x535   : > { %v11932_v12 = vpop.permute.xlu0 %11931  ;;  %v11939_v1 = vunpack.i.h.bf16 %v11937_v34  ;;  %v11938_v32 = vunpack.i.l.bf16 %v11937_v34  ;;  %v12240_v38 = vpack.i.bf16 %v5309_v57, %v5308_v54 }
 0x536   : > { %12226 = vrot.lane.b32.xlu1 %v12225_v40, %s13460_s20  ;;  %v11934_v55 = vunpack.i.h.bf16 %v11932_v12  ;;  %v11933_v22 = vunpack.i.l.bf16 %v11932_v12 }
 0x537   : > { %12221 = vrot.lane.b32.xlu0 %v12220_v23, %s13460_s20  ;;  %v5313_v14 = vsel %vm2844_vm11, %v11938_v32, %v11939_v1 }
 0x538   : > { %v11947_v29 = vpop.permute.xlu1 %11946  ;;  %v5312_v31 = vsel %vm2844_vm11, %v11934_v55, %v11938_v32  ;;  %v5311_v7 = vsel %vm2844_vm11, %v11933_v22, %v11934_v55  ;;  %v12255_v33 = vpack.i.bf16 %v11939_v1, %v5313_v14 }
 0x539   : > { %v11942_v42 = vpop.permute.xlu0 %11941  ;;  %v11949_v6 = vunpack.i.h.bf16 %v11947_v29  ;;  %v11948_v51 = vunpack.i.l.bf16 %v11947_v29  ;;  %v12250_v25 = vpack.i.bf16 %v5312_v31, %v5311_v7 }
 0x53a   : > { %12236 = vrot.lane.b32.xlu1 %v12235_v21, %s13460_s20  ;;  %v11944_v13 = vunpack.i.h.bf16 %v11942_v42  ;;  %v11943_v59 = vunpack.i.l.bf16 %v11942_v42 }
 0x53b   : > { %12231 = vrot.lane.b32.xlu0 %v12230_v9, %s13460_s20  ;;  %v5316_v63 = vsel %vm2844_vm11, %v11948_v51, %v11949_v6 }
 0x53c   : > { %v11957_v46 = vpop.permute.xlu1 %11956  ;;  %v5315_v15 = vsel %vm2844_vm11, %v11944_v13, %v11948_v51  ;;  %v5314_v16 = vsel %vm2844_vm11, %v11943_v59, %v11944_v13  ;;  %v12265_v17 = vpack.i.bf16 %v11949_v6, %v5316_v63 }
 0x53d   : > { %v11952_v11 = vpop.permute.xlu0 %11951  ;;  %v11959_v39 = vunpack.i.h.bf16 %v11957_v46  ;;  %v11958_v24 = vunpack.i.l.bf16 %v11957_v46  ;;  %v12260_v61 = vpack.i.bf16 %v5315_v15, %v5314_v16 }
 0x53e   : > { %12246 = vrot.lane.b32.xlu1 %v12245_v26, %s13460_s20  ;;  %v11954_v30 = vunpack.i.h.bf16 %v11952_v11  ;;  %v11953_v60 = vunpack.i.l.bf16 %v11952_v11 }
 0x53f   : > { %12241 = vrot.lane.b32.xlu0 %v12240_v38, %s13460_s20  ;;  %v5319_v44 = vsel %vm2844_vm11, %v11958_v24, %v11959_v39 }
 0x540   : > { %v11967_v41 = vpop.permute.xlu1 %11966  ;;  %v5318_v10 = vsel %vm2844_vm11, %v11954_v30, %v11958_v24  ;;  %v5317_v37 = vsel %vm2844_vm11, %v11953_v60, %v11954_v30  ;;  %v12275_v20 = vpack.i.bf16 %v11959_v39, %v5319_v44 }
 0x541   : > { %v11962_v18 = vpop.permute.xlu0 %11961  ;;  %v11969_v47 = vunpack.i.h.bf16 %v11967_v41  ;;  %v11968_v50 = vunpack.i.l.bf16 %v11967_v41  ;;  %v12270_v36 = vpack.i.bf16 %v5318_v10, %v5317_v37 }
 0x542   : > { %12256 = vrot.lane.b32.xlu1 %v12255_v33, %s13460_s20  ;;  %v11964_v43 = vunpack.i.h.bf16 %v11962_v18  ;;  %v11963_v4 = vunpack.i.l.bf16 %v11962_v18 }
 0x543   : > { %12251 = vrot.lane.b32.xlu0 %v12250_v25, %s13460_s20  ;;  %v5386_v5 = vsel %vm347_vm0, %v11968_v50, %v11969_v47 }
 0x544   : > { %v11977_v56 = vpop.permute.xlu1 %11976  ;;  %v5385_v52 = vsel %vm347_vm0, %v11964_v43, %v11968_v50  ;;  %v5384_v2 = vsel %vm347_vm0, %v11963_v4, %v11964_v43  ;;  %v12285_v19 = vpack.i.bf16 %v11969_v47, %v5386_v5 }
 0x545   : > { %v11972_v45 = vpop.permute.xlu0 %11971  ;;  %v11979_v3 = vunpack.i.h.bf16 %v11977_v56  ;;  %v11978_v0 = vunpack.i.l.bf16 %v11977_v56  ;;  %v12280_v8 = vpack.i.bf16 %v5385_v52, %v5384_v2 }
 0x546   : > { %12266 = vrot.lane.b32.xlu1 %v12265_v17, %s13460_s20  ;;  %v11974_v40 = vunpack.i.h.bf16 %v11972_v45  ;;  %v11973_v34 = vunpack.i.l.bf16 %v11972_v45 }
 0x547   : > { %12261 = vrot.lane.b32.xlu0 %v12260_v61, %s13460_s20  ;;  %v5389_v49 = vsel %vm347_vm0, %v11978_v0, %v11979_v3 }
 0x548   : > { %v11987_v58 = vpop.permute.xlu1 %11986  ;;  %v5388_v27 = vsel %vm347_vm0, %v11974_v40, %v11978_v0  ;;  %v5387_v28 = vsel %vm347_vm0, %v11973_v34, %v11974_v40  ;;  %v12295_v53 = vpack.i.bf16 %v11979_v3, %v5389_v49 }
 0x549   : > { %v11982_v62 = vpop.permute.xlu0 %11981  ;;  %v11989_v12 = vunpack.i.h.bf16 %v11987_v58  ;;  %v11988_v23 = vunpack.i.l.bf16 %v11987_v58  ;;  %v12290_v54 = vpack.i.bf16 %v5388_v27, %v5387_v28 }
 0x54a   : > { %12276 = vrot.lane.b32.xlu1 %v12275_v20, %s13460_s20  ;;  %v11984_v21 = vunpack.i.h.bf16 %v11982_v62  ;;  %v11983_v29 = vunpack.i.l.bf16 %v11982_v62 }
 0x54b   : > { %12271 = vrot.lane.b32.xlu0 %v12270_v36, %s13460_s20  ;;  %v5392_v32 = vsel %vm347_vm0, %v11988_v23, %v11989_v12 }
 0x54c   : > { %v11997_v48 = vpop.permute.xlu1 %11996  ;;  %v5391_v55 = vsel %vm347_vm0, %v11984_v21, %v11988_v23  ;;  %v5390_v22 = vsel %vm347_vm0, %v11983_v29, %v11984_v21  ;;  %v12305_v14 = vpack.i.bf16 %v11989_v12, %v5392_v32 }
 0x54d   : > { %v11992_v35 = vpop.permute.xlu0 %11991  ;;  %v11999_v42 = vunpack.i.h.bf16 %v11997_v48  ;;  %v11998_v9 = vunpack.i.l.bf16 %v11997_v48  ;;  %v12300_v7 = vpack.i.bf16 %v5391_v55, %v5390_v22 }
 0x54e   : > { %12286 = vrot.lane.b32.xlu1 %v12285_v19, %s13460_s20  ;;  %v11994_v26 = vunpack.i.h.bf16 %v11992_v35  ;;  %v11993_v46 = vunpack.i.l.bf16 %v11992_v35 }
 0x54f   : > { %12281 = vrot.lane.b32.xlu0 %v12280_v8, %s13460_s20  ;;  %v5395_v51 = vsel %vm347_vm0, %v11998_v9, %v11999_v42 }
 0x550   : > { %v12007_v1 = vpop.permute.xlu1 %12006  ;;  %v5394_v13 = vsel %vm347_vm0, %v11994_v26, %v11998_v9  ;;  %v5393_v59 = vsel %vm347_vm0, %v11993_v46, %v11994_v26  ;;  %v12315_v63 = vpack.i.bf16 %v11999_v42, %v5395_v51 }
 0x551   : > { %v12002_v57 = vpop.permute.xlu0 %12001  ;;  %v12009_v11 = vunpack.i.h.bf16 %v12007_v1  ;;  %v12008_v38 = vunpack.i.l.bf16 %v12007_v1  ;;  %v12310_v16 = vpack.i.bf16 %v5394_v13, %v5393_v59 }
 0x552   : > { %12296 = vrot.lane.b32.xlu1 %v12295_v53, %s13460_s20  ;;  %v12004_v33 = vunpack.i.h.bf16 %v12002_v57  ;;  %v12003_v41 = vunpack.i.l.bf16 %v12002_v57 }
 0x553   : > { %12291 = vrot.lane.b32.xlu0 %v12290_v54, %s13460_s20  ;;  %v5398_v24 = vsel %vm347_vm0, %v12008_v38, %v12009_v11 }
 0x554   : > { %v12017_v6 = vpop.permute.xlu1 %12016  ;;  %v5397_v30 = vsel %vm347_vm0, %v12004_v33, %v12008_v38  ;;  %v5396_v60 = vsel %vm347_vm0, %v12003_v41, %v12004_v33  ;;  %v12325_v44 = vpack.i.bf16 %v12009_v11, %v5398_v24  ;;  %v4463_v41 = vld [vmem:[#allocation5 + $0xd8] sm:$0xff] }
 0x555   : > { %v12012_v31 = vpop.permute.xlu0 %12011  ;;  %v12019_v18 = vunpack.i.h.bf16 %v12017_v6  ;;  %v12018_v25 = vunpack.i.l.bf16 %v12017_v6  ;;  %v12320_v37 = vpack.i.bf16 %v5397_v30, %v5396_v60  ;;  %v4466_v60 = vld [vmem:[#allocation5 + $0x168] sm:$0xff] }
 0x556   : > { %12306 = vrot.lane.b32.xlu1 %v12305_v14, %s13460_s20  ;;  %v12014_v17 = vunpack.i.h.bf16 %v12012_v31  ;;  %v12013_v56 = vunpack.i.l.bf16 %v12012_v31 }
 0x557   : > { %12301 = vrot.lane.b32.xlu0 %v12300_v7, %s13460_s20  ;;  %v5401_v50 = vsel %vm347_vm0, %v12018_v25, %v12019_v18  ;;  %v4464_v7 = vld [vmem:[#allocation5 + $0xe0] sm:$0xff] }
 0x558   : > { %v12027_v39 = vpop.permute.xlu1 %12026  ;;  %v5400_v43 = vsel %vm347_vm0, %v12014_v17, %v12018_v25  ;;  %v5399_v4 = vsel %vm347_vm0, %v12013_v56, %v12014_v17  ;;  %v12335_v5 = vpack.i.bf16 %v12019_v18, %v5401_v50  ;;  %5108 = vmatprep.mubr.f32.mxu1 %v4464_v7  ;;  %4996 = vmatprep.mubr.f32.mxu0 %v4464_v7 }
 0x559   : > { %v12022_v15 = vpop.permute.xlu0 %12021  ;;  %v12029_v45 = vunpack.i.h.bf16 %v12027_v39  ;;  %v12028_v61 = vunpack.i.l.bf16 %v12027_v39  ;;  %v12330_v2 = vpack.i.bf16 %v5400_v43, %v5399_v4  ;;  %5109 = vmatmul.mubr.f32.gmra.mrb[98].mxu1 %v4463_v41  ;;  %4997 = vmatmul.mubr.f32.gmra.mrb[2].mxu0 %v4463_v41  ;;  %v4468_v4 = vld [vmem:[#allocation5 + $0x1f0] sm:$0xff] }
 0x55a   : > { %12316 = vrot.lane.b32.xlu1 %v12315_v63, %s13460_s20  ;;  %v12024_v20 = vunpack.i.h.bf16 %v12022_v15  ;;  %v12023_v58 = vunpack.i.l.bf16 %v12022_v15  ;;  %5113 = vmatprep.mubr.f32.mxu1 %v4466_v60 }
 0x55b   : > { %12311 = vrot.lane.b32.xlu0 %v12310_v16, %s13460_s20  ;;  %v5404_v0 = vsel %vm347_vm0, %v12028_v61, %v12029_v45  ;;  %5002 = vmatprep.mubr.f32.mxu0 %v4466_v60 }
 0x55c   : > { %v12037_v47 = vpop.permute.xlu1 %12036  ;;  %v5403_v40 = vsel %vm347_vm0, %v12024_v20, %v12028_v61  ;;  %v5402_v34 = vsel %vm347_vm0, %v12023_v58, %v12024_v20  ;;  %v12345_v49 = vpack.i.bf16 %v12029_v45, %v5404_v0  ;;  %v4465_v45 = vld [vmem:[#allocation5 + $0x160] sm:$0xff]  ;;  %v4467_v0 = vld [vmem:[#allocation5 + $0x1e8] sm:$0xff] }
 0x55d   : > { %v12032_v10 = vpop.permute.xlu0 %12031  ;;  %v12039_v62 = vunpack.i.h.bf16 %v12037_v47  ;;  %v12038_v36 = vunpack.i.l.bf16 %v12037_v47  ;;  %v12340_v28 = vpack.i.bf16 %v5403_v40, %v5402_v34  ;;  %5114 = vmatmul.mubr.f32.gmra.mrb[100].mxu1 %v4465_v45  ;;  %5003 = vmatmul.mubr.f32.gmra.mrb[4].mxu0 %v4465_v45  ;;  %v4470_v34 = vld [vmem:[#allocation5 + $0x278] sm:$0xff] }
 0x55e   : > { %12326 = vrot.lane.b32.xlu1 %v12325_v44, %s13460_s20  ;;  %v12034_v19 = vunpack.i.h.bf16 %v12032_v10  ;;  %v12033_v48 = vunpack.i.l.bf16 %v12032_v10  ;;  %5118 = vmatprep.mubr.f32.mxu1 %v4468_v4 }
 0x55f   : > { %12321 = vrot.lane.b32.xlu0 %v12320_v37, %s13460_s20  ;;  %v5407_v23 = vsel %vm347_vm0, %v12038_v36, %v12039_v62  ;;  %5008 = vmatprep.mubr.f32.mxu0 %v4468_v4 }
 0x560   : > { %v12047_v3 = vpop.permute.xlu1 %12046  ;;  %v5406_v21 = vsel %vm347_vm0, %v12034_v19, %v12038_v36  ;;  %v5405_v29 = vsel %vm347_vm0, %v12033_v48, %v12034_v19  ;;  %v12355_v32 = vpack.i.bf16 %v12039_v62, %v5407_v23  ;;  %vm5768_vm0 = vcmask 900096  }
 0x561   : > { %v12042_v52 = vpop.permute.xlu0 %12041  ;;  %v12049_v35 = vunpack.i.h.bf16 %v12047_v3  ;;  %v12048_v8 = vunpack.i.l.bf16 %v12047_v3  ;;  %v12350_v22 = vpack.i.bf16 %v5406_v21, %v5405_v29  ;;  %5119 = vmatmul.mubr.f32.gmra.mrb[102].mxu1 %v4467_v0  ;;  %5009 = vmatmul.mubr.f32.gmra.mrb[6].mxu0 %v4467_v0 }
 0x562   : > { %12336 = vrot.lane.b32.xlu1 %v12335_v5, %s13460_s20  ;;  %v12044_v53 = vunpack.i.h.bf16 %v12042_v52  ;;  %v12043_v1 = vunpack.i.l.bf16 %v12042_v52  ;;  %5123 = vmatprep.mubr.f32.mxu1 %v4470_v34 }
 0x563   : > { %12331 = vrot.lane.b32.xlu0 %v12330_v2, %s13460_s20  ;;  %v5474_v54 = vsel %vm1959_vm8, %v12048_v8, %v12049_v35  ;;  %5014 = vmatprep.mubr.f32.mxu0 %v4470_v34 }
 0x564   : > { %v12057_v12 = vpop.permute.xlu1 %12056  ;;  %v5473_v26 = vsel %vm1959_vm8, %v12044_v53, %v12048_v8  ;;  %v5472_v46 = vsel %vm1959_vm8, %v12043_v1, %v12044_v53  ;;  %v12365_v13 = vpack.i.bf16 %v12049_v35, %v5474_v54  ;;  %v4469_v35 = vld [vmem:[#allocation5 + $0x270] sm:$0xff]  ;;  %v4472_v1 = vld [vmem:[#allocation5 + $0x300] sm:$0xff]  ;;  %v4471_v54 = vld [vmem:[#allocation5 + $0x2f8] sm:$0xff] }
 0x565   : > { %v12052_v27 = vpop.permute.xlu0 %12051  ;;  %v12059_v42 = vunpack.i.h.bf16 %v12057_v12  ;;  %v12058_v9 = vunpack.i.l.bf16 %v12057_v12  ;;  %v12360_v39 = vpack.i.bf16 %v5473_v26, %v5472_v46  ;;  %5124 = vmatmul.mubr.f32.gmra.mrb[104].mxu1 %v4469_v35  ;;  %5015 = vmatmul.mubr.f32.gmra.mrb[8].mxu0 %v4469_v35  ;;  %v17485_v35 = vld [vmem:[%s13637_s26 + $0x18] sm:$0xff] }
 0x566   : > { %12346 = vrot.lane.b32.xlu1 %v12345_v49, %s13460_s20  ;;  %v12054_v14 = vunpack.i.h.bf16 %v12052_v27  ;;  %v12053_v6 = vunpack.i.l.bf16 %v12052_v27  ;;  %5128 = vmatprep.mubr.f32.mxu1 %v4472_v1 }
 0x567   : > { %12341 = vrot.lane.b32.xlu0 %v12340_v28, %s13460_s20  ;;  %v5477_v59 = vsel %vm1959_vm8, %v12058_v9, %v12059_v42  ;;  %5020 = vmatprep.mubr.f32.mxu0 %v4472_v1 }
 0x568   : > { %v12067_v57 = vpop.permute.xlu1 %12066  ;;  %v5476_v24 = vsel %vm1959_vm8, %v12054_v14, %v12058_v9  ;;  %v5475_v18 = vsel %vm1959_vm8, %v12053_v6, %v12054_v14  ;;  %v12375_v25 = vpack.i.bf16 %v12059_v42, %v5477_v59  ;;  %v4473_v59 = vld [vmem:[#allocation5 + $0x380] sm:$0xff] }
 0x569   : > { %v12062_v55 = vpop.permute.xlu0 %12061  ;;  %v12069_v51 = vunpack.i.h.bf16 %v12067_v57  ;;  %v12068_v11 = vunpack.i.l.bf16 %v12067_v57  ;;  %v12370_v10 = vpack.i.bf16 %v5476_v24, %v5475_v18  ;;  %5129 = vmatmul.mubr.f32.gmra.mrb[106].mxu1 %v4471_v54  ;;  %5021 = vmatmul.mubr.f32.gmra.mrb[10].mxu0 %v4471_v54 }
 0x56a   : > { %12356 = vrot.lane.b32.xlu1 %v12355_v32, %s13460_s20  ;;  %v12064_v38 = vunpack.i.h.bf16 %v12062_v55  ;;  %v12063_v31 = vunpack.i.l.bf16 %v12062_v55 }
 0x56b   : > { %12351 = vrot.lane.b32.xlu0 %v12350_v22, %s13460_s20  ;;  %v5480_v15 = vsel %vm1959_vm8, %v12068_v11, %v12069_v51 }
 0x56c   : > { %v12077_v33 = vpop.permute.xlu1 %12076  ;;  %v5479_v16 = vsel %vm1959_vm8, %v12064_v38, %v12068_v11  ;;  %v5478_v30 = vsel %vm1959_vm8, %v12063_v31, %v12064_v38  ;;  %v12385_v37 = vpack.i.bf16 %v12069_v51, %v5480_v15  ;;  %v4474_v31 = vld [vmem:[#allocation5 + $0x388] sm:$0xff] }
 0x56d   : > { %v12072_v63 = vpop.permute.xlu0 %12071  ;;  %v12079_v17 = vunpack.i.h.bf16 %v12077_v33  ;;  %v12078_v56 = vunpack.i.l.bf16 %v12077_v33  ;;  %v12380_v43 = vpack.i.bf16 %v5479_v16, %v5478_v30  ;;  %5133 = vmatprep.mubr.f32.mxu1 %v4474_v31  ;;  %5026 = vmatprep.mubr.f32.mxu0 %v4474_v31  ;;  %v17524_v31 = vld [vmem:[%s13637_s26 + $0x30] sm:$0xff] }
 0x56e   : > { %12366 = vrot.lane.b32.xlu1 %v12365_v13, %s13460_s20  ;;  %v12074_v44 = vunpack.i.h.bf16 %v12072_v63  ;;  %v12073_v47 = vunpack.i.l.bf16 %v12072_v63  ;;  %5134 = vmatmul.mubr.f32.gmra.mrb[108].mxu1 %v4473_v59 }
 0x56f   : > { %12361 = vrot.lane.b32.xlu0 %v12360_v39, %s13460_s20  ;;  %v5483_v20 = vsel %vm1959_vm8, %v12078_v56, %v12079_v17  ;;  %5027 = vmatmul.mubr.f32.gmra.mrb[12].mxu0 %v4473_v59 }
 0x570   : > { %v12087_v50 = vpop.permute.xlu1 %12086  ;;  %v5482_v58 = vsel %vm1959_vm8, %v12074_v44, %v12078_v56  ;;  %v5481_v5 = vsel %vm1959_vm8, %v12073_v47, %v12074_v44  ;;  %v12395_v19 = vpack.i.bf16 %v12079_v17, %v5483_v20  ;;  %v4476_v56 = vld [vmem:[#allocation5 + $0x410] sm:$0xff] }
 0x571   : > { %v12082_v61 = vpop.permute.xlu0 %12081  ;;  %v12089_v62 = vunpack.i.h.bf16 %v12087_v50  ;;  %v12088_v36 = vunpack.i.l.bf16 %v12087_v50  ;;  %v12390_v23 = vpack.i.bf16 %v5482_v58, %v5481_v5  ;;  %5138 = vmatprep.mubr.f32.mxu1 %v4476_v56  ;;  %v4475_v50 = vld [vmem:[#allocation5 + $0x408] sm:$0xff]  ;;  %5032 = vmatprep.mubr.f32.mxu0 %v4476_v56 }
 0x572   : > { %12376 = vrot.lane.b32.xlu1 %v12375_v25, %s13460_s20  ;;  %v12084_v52 = vunpack.i.h.bf16 %v12082_v61  ;;  %v12083_v2 = vunpack.i.l.bf16 %v12082_v61  ;;  %5139 = vmatmul.mubr.f32.gmra.mrb[110].mxu1 %v4475_v50 }
 0x573   : > { %12371 = vrot.lane.b32.xlu0 %v12370_v10, %s13460_s20  ;;  %v5486_v8 = vsel %vm1959_vm8, %v12088_v36, %v12089_v62  ;;  %5033 = vmatmul.mubr.f32.gmra.mrb[14].mxu0 %v4475_v50 }
 0x574   : > { %v12097_v3 = vpop.permute.xlu1 %12096  ;;  %v5485_v27 = vsel %vm1959_vm8, %v12084_v52, %v12088_v36  ;;  %v5484_v28 = vsel %vm1959_vm8, %v12083_v2, %v12084_v52  ;;  %v12405_v32 = vpack.i.bf16 %v12089_v62, %v5486_v8  ;;  %v5497_v52 = vld [vmem:[#allocation5 + $0x68] sm:$0xff]  ;;  %v13228_v8 = vld [vmem:[%s13637_s26 + $0x20] sm:$0xff] }
 0x575   : > { %v12092_v40 = vpop.permute.xlu0 %12091  ;;  %v12099_v48 = vunpack.i.h.bf16 %v12097_v3  ;;  %v12098_v49 = vunpack.i.l.bf16 %v12097_v3  ;;  %v12400_v57 = vpack.i.bf16 %v5485_v27, %v5484_v28  ;;  %6138 = vmatprep.mubr.f32.mxu1 %v5497_v52  ;;  %6025 = vmatprep.mubr.f32.mxu0 %v5497_v52  ;;  %v17489_v27 = vpack.i.bf16 %v13228_v8, %v17485_v35  ;;  %v17492_v28 = vld [vmem:[%s13637_s26 + $0x8] sm:$0xff] }
 0x576   : > { %12386 = vrot.lane.b32.xlu1 %v12385_v37, %s13460_s20  ;;  %v12094_v21 = vunpack.i.h.bf16 %v12092_v40  ;;  %v12093_v53 = vunpack.i.l.bf16 %v12092_v40  ;;  %20005 = vst [vmem:[#allocation78_spill] sm:$0xff] %v17492_v28 }
 0x577   : > { %12381 = vrot.lane.b32.xlu0 %v12380_v43, %s13460_s20  ;;  %v5489_v42 = vsel %vm1959_vm8, %v12098_v49, %v12099_v48 }
 0x578   : > { %v12107_v12 = vpop.permute.xlu1 %12106  ;;  %v5488_v55 = vsel %vm1959_vm8, %v12094_v21, %v12098_v49  ;;  %v5487_v6 = vsel %vm1959_vm8, %v12093_v53, %v12094_v21  ;;  %v12415_v7 = vpack.i.bf16 %v12099_v48, %v5489_v42  ;;  %v17495_v21 = vld [vmem:[%s13637_s26 + $0x10] sm:$0xff] }
 0x579   : > { %v12102_v29 = vpop.permute.xlu0 %12101  ;;  %v12109_v22 = vunpack.i.h.bf16 %v12107_v12  ;;  %v12108_v26 = vunpack.i.l.bf16 %v12107_v12  ;;  %v12410_v39 = vpack.i.bf16 %v5488_v55, %v5487_v6 }
 0x57a   : > { %12396 = vrot.lane.b32.xlu1 %v12395_v19, %s13460_s20  ;;  %v12104_v46 = vunpack.i.h.bf16 %v12102_v29  ;;  %v12103_v51 = vunpack.i.l.bf16 %v12102_v29  ;;  %v17499_v29 = vpack.i.bf16 %v17495_v21, %v17492_v28 }
 0x57b   : > { %12391 = vrot.lane.b32.xlu0 %v12390_v23, %s13460_s20  ;;  %v5492_v33 = vsel %vm1959_vm8, %v12108_v26, %v12109_v22 }
 0x57c   : > { %v12117_v9 = vpop.permute.xlu1 %12116  ;;  %v5491_v41 = vsel %vm1959_vm8, %v12104_v46, %v12108_v26  ;;  %v5490_v24 = vsel %vm1959_vm8, %v12103_v51, %v12104_v46  ;;  %v12425_v44 = vpack.i.bf16 %v12109_v22, %v5492_v33  ;;  %v17505_v46 = vld [vmem:[%s13637_s26 + $0x40] sm:$0xff] }
 0x57d   : > { %v12112_v14 = vpop.permute.xlu0 %12111  ;;  %v12119_v11 = vunpack.i.h.bf16 %v12117_v9  ;;  %v12118_v38 = vunpack.i.l.bf16 %v12117_v9  ;;  %v12420_v43 = vpack.i.bf16 %v5491_v41, %v5490_v24 }
 0x57e   : > { %12406 = vrot.lane.b32.xlu1 %v12405_v32, %s13460_s20  ;;  %v12114_v25 = vunpack.i.h.bf16 %v12112_v14  ;;  %v12113_v15 = vunpack.i.l.bf16 %v12112_v14  ;;  %v17508_v14 = vld [vmem:[%s13637_s26 + $0x48] sm:$0xff] }
 0x57f   : > { %12401 = vrot.lane.b32.xlu0 %v12400_v57, %s13460_s20  ;;  %v5495_v18 = vsel %vm1959_vm8, %v12118_v38, %v12119_v11  ;;  %v17512_v6 = vpack.i.bf16 %v17508_v14, %v17505_v46 }
 0x580   : > { %v12127_v13 = vpop.permute.xlu1 %12126  ;;  %v12435_v45 = vpack.i.bf16 %v12119_v11, %v5495_v18  ;;  %v5494_v4 = vsel %vm1959_vm8, %v12114_v25, %v12118_v38  ;;  %v5493_v20 = vsel %vm1959_vm8, %v12113_v15, %v12114_v25  ;;  %v17541_v15 = vld [vmem:[%s13637_s26 + $0x68] sm:$0xff] }
 0x581   : > { %v12122_v63 = vpop.permute.xlu0 %12121  ;;  %v12129_v16 = vunpack.i.h.bf16 %v12127_v13  ;;  %v12128_v30 = vunpack.i.l.bf16 %v12127_v13  ;;  %v12430_v49 = vpack.i.bf16 %v5494_v4, %v5493_v20 }
 0x582   : > { %12416 = vrot.lane.b32.xlu1 %v12415_v7, %s13460_s20  ;;  %v12124_v60 = vunpack.i.h.bf16 %v12122_v63  ;;  %v12123_v17 = vunpack.i.l.bf16 %v12122_v63  ;;  %v17527_v7 = vld [vmem:[%s13637_s26 + $0x38] sm:$0xff] }
 0x583   : > { %12411 = vrot.lane.b32.xlu0 %v12410_v39, %s13460_s20  ;;  %v17471_v3 = vsel %vm5768_vm0, %v12128_v30, %v12129_v16  ;;  %v17531_v13 = vpack.i.bf16 %v17527_v7, %v17524_v31  ;;  %v17544_v16 = vld [vmem:[%s13637_s26 + $0x70] sm:$0xff] }
 0x584   : > { %v12137_v47 = vpop.permute.xlu1 %12136  ;;  %v5769_v0 = vsel %vm5768_vm0, %v12123_v17, %v12124_v60  ;;  %v5770_v36 = vsel %vm5768_vm0, %v12124_v60, %v12128_v30  ;;  %v17548_v30 = vpack.i.bf16 %v17544_v16, %v17541_v15  ;;  %v17551_v60 = vld [vmem:[%s13637_s26 + $0x58] sm:$0xff]  ;;  %v17554_v17 = vld [vmem:[%s13637_s26 + $0x60] sm:$0xff] }
 0x585   : > { %v12139_v61 = vunpack.i.h.bf16 %v12137_v47  ;;  %v12138_v10 = vunpack.i.l.bf16 %v12137_v47  ;;  %v12132_v37 = vpop.permute.xlu0 %12131  ;;  %v17558_v56 = vpack.i.bf16 %v17554_v17, %v17551_v60 }
 0x586   : > { %v12134_v58 = vunpack.i.h.bf16 %v12132_v37  ;;  %v12133_v5 = vunpack.i.l.bf16 %v12132_v37  ;;  %12426 = vrot.lane.b32.xlu1 %v12425_v44, %s13460_s20 }
 0x587   : > { %v17475_v62 = vsel %vm5768_vm0, %v12138_v10, %v12139_v61  ;;  %12421 = vrot.lane.b32.xlu0 %v12420_v43, %s13460_s20 }
 0x588   : > { %v5772_v2 = vsel %vm5768_vm0, %v12133_v5, %v12134_v58  ;;  %v12147_v40 = vpop.permute.xlu1 %12146  ;;  %v5773_v34 = vsel %vm5768_vm0, %v12134_v58, %v12138_v10  ;;  %v17565_v58 = vld [vmem:[%s13637_s26 + $0x90] sm:$0xff]  ;;  %v13240_v5 = vld [vmem:[%s13637_s26 + $0x98] sm:$0xff] }
 0x589   : > { %v12142_v48 = vpop.permute.xlu0 %12141  ;;  %v8863_v12 = vpack.c.bf16 %v5773_v34, %v5770_v36  ;;  %v8865_v23 = vpack.c.bf16 %v5772_v2, %v5769_v0  ;;  %v12149_v53 = vunpack.i.h.bf16 %v12147_v40  ;;  %v12148_v1 = vunpack.i.l.bf16 %v12147_v40  ;;  %20006 = vst [vmem:[#allocation79_spill] sm:$0xff] %v17565_v58  ;;  %v17581_v40 = vld [vmem:[%s13637_s26 + $0x80] sm:$0xff]  ;;  %v17584_v34 = vld [vmem:[%s13637_s26 + $0x88] sm:$0xff] }
 0x58a   : > { %12436 = vrot.lane.b32.xlu1 %v12435_v45, %s13460_s20  ;;  %v12144_v32 = vunpack.i.h.bf16 %v12142_v48  ;;  %v12143_v42 = vunpack.i.l.bf16 %v12142_v48  ;;  %v17569_v0 = vpack.i.bf16 %v13240_v5, %v17565_v58  ;;  %v17588_v48 = vpack.i.bf16 %v17584_v34, %v17581_v40 }
 0x58b   : > { %12431 = vrot.lane.b32.xlu0 %v12430_v49, %s13460_s20  ;;  %8864 = vmatprep.subr.bf16.mxu0 %v8863_v12  ;;  %v17515_v51 = vsel %vm5768_vm0, %v12148_v1, %v12149_v53  ;;  %v17679_v53 = vld [vmem:[%s13637_s26 + $0x130] sm:$0xff] }
 0x58c   : > { %8866 = vmatpush1.bf16.msra.mxu0 %v8865_v23  ;;  %v12157_v9 = vpop.permute.xlu1 %12156  ;;  %v5775_v11 = vsel %vm5768_vm0, %v12143_v42, %v12144_v32  ;;  %v5776_v41 = vsel %vm5768_vm0, %v12144_v32, %v12148_v1  ;;  %20011 = vst [vmem:[#allocation67_spill] sm:$0xff] %v17679_v53 }
 0x58d   : > { %v12159_v57 = vunpack.i.h.bf16 %v12157_v9  ;;  %v12158_v54 = vunpack.i.l.bf16 %v12157_v9  ;;  %v12152_v55 = vpop.permute.xlu0 %12151  ;;  %v17598_v9 = vld [vmem:[%s13637_s26 + $0xb8] sm:$0xff] }
 0x58e   : > { %v12154_v22 = vunpack.i.h.bf16 %v12152_v55  ;;  %v12153_v26 = vunpack.i.l.bf16 %v12152_v55  ;;  %12446 = vrot.lane.b32.xlu1 %v17489_v27, %s13446_s7  ;;  %v17608_v55 = vld [vmem:[%s13637_s26 + $0xa8] sm:$0xff] }
 0x58f   : > { %v17519_v38 = vsel %vm5768_vm0, %v12158_v54, %v12159_v57  ;;  %12441 = vrot.lane.b32.xlu0 %v17499_v29, %s13446_s7  ;;  %v17601_v57 = vld [vmem:[%s13637_s26 + $0xc0] sm:$0xff] }
 0x590   : > { %v5778_v59 = vsel %vm5768_vm0, %v12153_v26, %v12154_v22  ;;  %v12167_v33 = vpop.permute.xlu1 %12166  ;;  %v5779_v63 = vsel %vm5768_vm0, %v12154_v22, %v12158_v54  ;;  %v17605_v54 = vpack.i.bf16 %v17601_v57, %v17598_v9  ;;  %v17611_v22 = vld [vmem:[%s13637_s26 + $0xb0] sm:$0xff] }
 0x591   : > { %v12162_v24 = vpop.permute.xlu0 %12161  ;;  %v8867_v18 = vpack.c.bf16 %v5779_v63, %v5776_v41  ;;  %v8869_v25 = vpack.c.bf16 %v5778_v59, %v5775_v11  ;;  %v12169_v44 = vunpack.i.h.bf16 %v12167_v33  ;;  %v12168_v47 = vunpack.i.l.bf16 %v12167_v33 }
 0x592   : > { %12456 = vrot.lane.b32.xlu1 %v17512_v6, %s13446_s7  ;;  %v12164_v50 = vunpack.i.h.bf16 %v12162_v24  ;;  %v12163_v45 = vunpack.i.l.bf16 %v12162_v24  ;;  %v17615_v26 = vpack.i.bf16 %v17611_v22, %v17608_v55 }
 0x593   : > { %12451 = vrot.lane.b32.xlu0 %v17531_v13, %s13446_s7  ;;  %8868 = vmatprep.subr.bf16.mxu0 %v8867_v18  ;;  %v17572_v36 = vsel %vm5768_vm0, %v12168_v47, %v12169_v44 }
 0x594   : > { %8870 = vmatpush1.bf16.msra.mxu0 %v8869_v25  ;;  %v12177_v61 = vpop.permute.xlu1 %12176  ;;  %v5781_v52 = vsel %vm5768_vm0, %v12163_v45, %v12164_v50  ;;  %v5782_v23 = vsel %vm5768_vm0, %v12164_v50, %v12168_v47  ;;  %v17622_v50 = vld [vmem:[%s13637_s26 + $0xe0] sm:$0xff]  ;;  %v13248_v45 = vld [vmem:[%s13637_s26 + $0xe8] sm:$0xff] }
 0x595   : > { %v12179_v10 = vunpack.i.h.bf16 %v12177_v61  ;;  %v12178_v37 = vunpack.i.l.bf16 %v12177_v61  ;;  %v12172_v43 = vpop.permute.xlu0 %12171  ;;  %20007 = vst [vmem:[#allocation86_spill] sm:$0xff] %v17622_v50  ;;  %v17626_v61 = vpack.i.bf16 %v13248_v45, %v17622_v50 }
 0x596   : > { %v12174_v4 = vunpack.i.h.bf16 %v12172_v43  ;;  %v12173_v20 = vunpack.i.l.bf16 %v12172_v43  ;;  %12466 = vrot.lane.b32.xlu1 %v17548_v30, %s13446_s7 }
 0x597   : > { %v17576_v2 = vsel %vm5768_vm0, %v12178_v37, %v12179_v10  ;;  %12461 = vrot.lane.b32.xlu0 %v17558_v56, %s13446_s7 }
 0x598   : > { %v5784_v49 = vsel %vm5768_vm0, %v12173_v20, %v12174_v4  ;;  %v12187_v12 = vpop.permute.xlu1 %12186  ;;  %v5785_v8 = vsel %vm5768_vm0, %v12174_v4, %v12178_v37  ;;  %v17638_v4 = vld [vmem:[%s13637_s26 + $0xd0] sm:$0xff]  ;;  %v17641_v20 = vld [vmem:[%s13637_s26 + $0xd8] sm:$0xff] }
 0x599   : > { %v12182_v1 = vpop.permute.xlu0 %12181  ;;  %v8871_v32 = vpack.c.bf16 %v5785_v8, %v5782_v23  ;;  %v8873_v42 = vpack.c.bf16 %v5784_v49, %v5781_v52  ;;  %v12189_v11 = vunpack.i.h.bf16 %v12187_v12  ;;  %v12188_v59 = vunpack.i.l.bf16 %v12187_v12 }
 0x59a   : > { %12476 = vrot.lane.b32.xlu1 %v17569_v0, %s13446_s7  ;;  %v12184_v33 = vunpack.i.h.bf16 %v12182_v1  ;;  %v12183_v41 = vunpack.i.l.bf16 %v12182_v1  ;;  %v17645_v5 = vpack.i.bf16 %v17641_v20, %v17638_v4 }
 0x59b   : > { %12471 = vrot.lane.b32.xlu0 %v17588_v48, %s13446_s7  ;;  %8872 = vmatprep.subr.bf16.mxu0 %v8871_v32  ;;  %v17629_v10 = vsel %vm5768_vm0, %v12188_v59, %v12189_v11  ;;  %v17655_v11 = vld [vmem:[%s13637_s26 + $0x108] sm:$0xff] }
 0x59c   : > { %8874 = vmatpush1.bf16.msra.mxu0 %v8873_v42  ;;  %v12197_v63 = vpop.permute.xlu1 %12196  ;;  %v5787_v37 = vsel %vm5768_vm0, %v12183_v41, %v12184_v33  ;;  %v5788_v12 = vsel %vm5768_vm0, %v12184_v33, %v12188_v59  ;;  %20008 = vst [vmem:[#allocation88_spill] sm:$0xff] %v17655_v11  ;;  %v17658_v41 = vld [vmem:[%s13637_s26 + $0x110] sm:$0xff]  ;;  %v17665_v59 = vld [vmem:[%s13637_s26 + $0xf8] sm:$0xff]  ;;  %v17668_v33 = vld [vmem:[%s13637_s26 + $0x100] sm:$0xff] }
 0x59d   : > { %v12199_v24 = vunpack.i.h.bf16 %v12197_v63  ;;  %v12198_v18 = vunpack.i.l.bf16 %v12197_v63  ;;  %v12192_v25 = vpop.permute.xlu0 %12191  ;;  %v17662_v63 = vpack.i.bf16 %v17658_v41, %v17655_v11  ;;  %20009 = vst [vmem:[#allocation80_spill] sm:$0xff] %v17665_v59  ;;  %20010 = vst [vmem:[#allocation81_spill] sm:$0xff] %v17668_v33 }
 0x59e   : > { %v12194_v44 = vunpack.i.h.bf16 %v12192_v25  ;;  %v12193_v47 = vunpack.i.l.bf16 %v12192_v25  ;;  %12486 = vrot.lane.b32.xlu1 %v17605_v54, %s13446_s7 }
 0x59f   : > { %v17633_v43 = vsel %vm5768_vm0, %v12198_v18, %v12199_v24  ;;  %12481 = vrot.lane.b32.xlu0 %v17615_v26, %s13446_s7  ;;  %v17672_v24 = vpack.i.bf16 %v17668_v33, %v17665_v59 }
 0x5a0   : > { %v5790_v52 = vsel %vm5768_vm0, %v12193_v47, %v12194_v44  ;;  %v12207_v49 = vpop.permute.xlu1 %12206  ;;  %v5791_v23 = vsel %vm5768_vm0, %v12194_v44, %v12198_v18 }
 0x5a1   : > { %v12202_v1 = vpop.permute.xlu0 %12201  ;;  %v8875_v32 = vpack.c.bf16 %v5791_v23, %v5788_v12  ;;  %v8877_v42 = vpack.c.bf16 %v5790_v52, %v5787_v37  ;;  %v12209_v18 = vunpack.i.h.bf16 %v12207_v49  ;;  %v12208_v25 = vunpack.i.l.bf16 %v12207_v49  ;;  %v13256_v49 = vld [vmem:[%s13637_s26 + $0x138] sm:$0xff] }
 0x5a2   : > { %12496 = vrot.lane.b32.xlu1 %v17626_v61, %s13446_s7  ;;  %v12204_v44 = vunpack.i.h.bf16 %v12202_v1  ;;  %v12203_v47 = vunpack.i.l.bf16 %v12202_v1  ;;  %v17683_v1 = vpack.i.bf16 %v13256_v49, %v17679_v53 }
 0x5a3   : > { %12491 = vrot.lane.b32.xlu0 %v17645_v5, %s13446_s7  ;;  %8876 = vmatprep.subr.bf16.mxu0 %v8875_v32  ;;  %v17686_v32 = vsel %vm5768_vm0, %v12208_v25, %v12209_v18 }
 0x5a4   : > { %8878 = vmatpush1.bf16.msra.mxu0 %v8877_v42  ;;  %v12217_v45 = vpop.permute.xlu1 %12216  ;;  %20012 = vst [vmem:[#allocation110_spill] sm:$0xff] %v17686_v32  ;;  %v5793_v42 = vsel %vm5768_vm0, %v12203_v47, %v12204_v44  ;;  %v5794_v53 = vsel %vm5768_vm0, %v12204_v44, %v12208_v25 }
 0x5a5   : > { %v12219_v37 = vunpack.i.h.bf16 %v12217_v45  ;;  %v12218_v52 = vunpack.i.l.bf16 %v12217_v45  ;;  %v12212_v12 = vpop.permute.xlu0 %12211  ;;  %v17695_v45 = vld [vmem:[%s13637_s26 + $0x120] sm:$0xff] }
 0x5a6   : > { %v12214_v23 = vunpack.i.h.bf16 %v12212_v12  ;;  %v12213_v8 = vunpack.i.l.bf16 %v12212_v12  ;;  %12506 = vrot.lane.b32.xlu1 %v17662_v63, %s13446_s7  ;;  %20014 = vst [vmem:[#allocation107_spill] sm:$0xff] %v17695_v45  ;;  %v17698_v12 = vld [vmem:[%s13637_s26 + $0x128] sm:$0xff] }
 0x5a7   : > { %v17690_v39 = vsel %vm5768_vm0, %v12218_v52, %v12219_v37  ;;  %12501 = vrot.lane.b32.xlu0 %v17672_v24, %s13446_s7  ;;  %v17702_v19 = vpack.i.bf16 %v17698_v12, %v17695_v45 }
 0x5a8   : > { %20013 = vst [vmem:[#allocation20_spill] sm:$0xff] %v17690_v39  ;;  %v5796_v49 = vsel %vm5768_vm0, %v12213_v8, %v12214_v23  ;;  %v12227_v18 = vpop.permute.xlu1 %12226  ;;  %v5797_v47 = vsel %vm5768_vm0, %v12214_v23, %v12218_v52 }
 0x5a9   : > { %v12222_v50 = vpop.permute.xlu0 %12221  ;;  %v8879_v58 = vpack.c.bf16 %v5797_v47, %v5794_v53  ;;  %v8881_v59 = vpack.c.bf16 %v5796_v49, %v5793_v42  ;;  %v12229_v28 = vunpack.i.h.bf16 %v12227_v18  ;;  %v12228_v11 = vunpack.i.l.bf16 %v12227_v18 }
 0x5aa   : > { %12516 = vrot.lane.b32.xlu1 %v17683_v1, %s13446_s7  ;;  %v12224_v45 = vunpack.i.h.bf16 %v12222_v50  ;;  %v12223_v33 = vunpack.i.l.bf16 %v12222_v50 }
 0x5ab   : > { %12511 = vrot.lane.b32.xlu0 %v17702_v19, %s13446_s7  ;;  %8880 = vmatprep.subr.bf16.mxu0 %v8879_v58  ;;  %v17716_v53 = vsel %vm5768_vm0, %v12228_v11, %v12229_v28  ;;  %s13461_s7 = smov 84  }
 0x5ac   : > { %8882 = vmatpush1.bf16.msra.mxu0 %v8881_v59  ;;  %v12237_v8 = vpop.permute.xlu1 %12236  ;;  %v5799_v42 = vsel %vm5768_vm0, %v12223_v33, %v12224_v45  ;;  %v5800_v49 = vsel %vm5768_vm0, %v12224_v45, %v12228_v11 }
 0x5ad   : > { %v12239_v25 = vunpack.i.h.bf16 %v12237_v8  ;;  %v12238_v44 = vunpack.i.l.bf16 %v12237_v8  ;;  %v12232_v52 = vpop.permute.xlu0 %12231 }
 0x5ae   : > { %v12234_v23 = vunpack.i.h.bf16 %v12232_v52  ;;  %v12233_v37 = vunpack.i.l.bf16 %v12232_v52  ;;  %12526 = vrot.lane.b32.xlu1 %v17489_v27, %s13458_s22 }
 0x5af   : > { %v17720_v50 = vsel %vm5768_vm0, %v12238_v44, %v12239_v25  ;;  %12521 = vrot.lane.b32.xlu0 %v17499_v29, %s13458_s22 }
 0x5b0   : > { %v5802_v58 = vsel %vm5768_vm0, %v12233_v37, %v12234_v23  ;;  %v12247_v59 = vpop.permute.xlu1 %12246  ;;  %v5803_v18 = vsel %vm5768_vm0, %v12234_v23, %v12238_v44 }
 0x5b1   : > { %v12242_v28 = vpop.permute.xlu0 %12241  ;;  %v8883_v8 = vpack.c.bf16 %v5803_v18, %v5800_v49  ;;  %v8885_v52 = vpack.c.bf16 %v5802_v58, %v5799_v42  ;;  %v12249_v33 = vunpack.i.h.bf16 %v12247_v59  ;;  %v12248_v25 = vunpack.i.l.bf16 %v12247_v59 }
 0x5b2   : > { %12536 = vrot.lane.b32.xlu1 %v17512_v6, %s13458_s22  ;;  %v12244_v32 = vunpack.i.h.bf16 %v12242_v28  ;;  %v12243_v39 = vunpack.i.l.bf16 %v12242_v28 }
 0x5b3   : > { %12531 = vrot.lane.b32.xlu0 %v17531_v13, %s13458_s22  ;;  %8884 = vmatprep.subr.bf16.mxu0 %v8883_v8  ;;  %v17736_v6 = vsel %vm5768_vm0, %v12248_v25, %v12249_v33 }
 0x5b4   : > { %8886 = vmatpush1.bf16.msra.mxu0 %v8885_v52  ;;  %v12257_v11 = vpop.permute.xlu1 %12256  ;;  %v5805_v42 = vsel %vm5768_vm0, %v12243_v39, %v12244_v32  ;;  %v5806_v49 = vsel %vm5768_vm0, %v12244_v32, %v12248_v25 }
 0x5b5   : > { %v12259_v45 = vunpack.i.h.bf16 %v12257_v11  ;;  %v12258_v37 = vunpack.i.l.bf16 %v12257_v11  ;;  %v12252_v44 = vpop.permute.xlu0 %12251 }
 0x5b6   : > { %v12254_v23 = vunpack.i.h.bf16 %v12252_v44  ;;  %v12253_v47 = vunpack.i.l.bf16 %v12252_v44  ;;  %12546 = vrot.lane.b32.xlu1 %v17548_v30, %s13458_s22 }
 0x5b7   : > { %v17740_v58 = vsel %vm5768_vm0, %v12258_v37, %v12259_v45  ;;  %12541 = vrot.lane.b32.xlu0 %v17558_v56, %s13458_s22 }
 0x5b8   : > { %v5808_v13 = vsel %vm5768_vm0, %v12253_v47, %v12254_v23  ;;  %v12267_v59 = vpop.permute.xlu1 %12266  ;;  %v5809_v18 = vsel %vm5768_vm0, %v12254_v23, %v12258_v37  ;;  %v8953_v30 = vpack.c.bf16 %v17740_v58, %v17736_v6  ;;  %v20036_v6 = vld [vmem:[#allocation67_spill] sm:$0xff] }
 0x5b9   : > { %v12262_v28 = vpop.permute.xlu0 %12261  ;;  %v8887_v8 = vpack.c.bf16 %v5809_v18, %v5806_v49  ;;  %v8889_v52 = vpack.c.bf16 %v5808_v13, %v5805_v42  ;;  %v12269_v39 = vunpack.i.h.bf16 %v12267_v59  ;;  %v12268_v33 = vunpack.i.l.bf16 %v12267_v59 }
 0x5ba   : > { %12556 = vrot.lane.b32.xlu1 %v17569_v0, %s13458_s22  ;;  %v12264_v11 = vunpack.i.h.bf16 %v12262_v28  ;;  %v12263_v56 = vunpack.i.l.bf16 %v12262_v28  ;;  %v12730_v58 = vpack.i.bf16 %v20036_v6, %v17698_v12 }
 0x5bb   : > { %12551 = vrot.lane.b32.xlu0 %v17588_v48, %s13458_s22  ;;  %8888 = vmatprep.subr.bf16.mxu0 %v8887_v8  ;;  %v17756_v23 = vsel %vm5768_vm0, %v12268_v33, %v12269_v39 }
 0x5bc   : > { %8890 = vmatpush1.bf16.msra.mxu0 %v8889_v52  ;;  %v12277_v32 = vpop.permute.xlu1 %12276  ;;  %v5811_v42 = vsel %vm5768_vm0, %v12263_v56, %v12264_v11  ;;  %v5812_v49 = vsel %vm5768_vm0, %v12264_v11, %v12268_v33 }
 0x5bd   : > { %v12279_v47 = vunpack.i.h.bf16 %v12277_v32  ;;  %v12278_v25 = vunpack.i.l.bf16 %v12277_v32  ;;  %v12272_v45 = vpop.permute.xlu0 %12271 }
 0x5be   : > { %v12274_v37 = vunpack.i.h.bf16 %v12272_v45  ;;  %v12273_v44 = vunpack.i.l.bf16 %v12272_v45  ;;  %12566 = vrot.lane.b32.xlu1 %v17605_v54, %s13458_s22 }
 0x5bf   : > { %v17760_v13 = vsel %vm5768_vm0, %v12278_v25, %v12279_v47  ;;  %12561 = vrot.lane.b32.xlu0 %v17615_v26, %s13458_s22 }
 0x5c0   : > { %v5814_v48 = vsel %vm5768_vm0, %v12273_v44, %v12274_v37  ;;  %v12287_v59 = vpop.permute.xlu1 %12286  ;;  %v5815_v18 = vsel %vm5768_vm0, %v12274_v37, %v12278_v25  ;;  %v8957_v54 = vpack.c.bf16 %v17760_v13, %v17756_v23 }
 0x5c1   : > { %v12282_v28 = vpop.permute.xlu0 %12281  ;;  %v8891_v8 = vpack.c.bf16 %v5815_v18, %v5812_v49  ;;  %v8893_v52 = vpack.c.bf16 %v5814_v48, %v5811_v42  ;;  %v12289_v39 = vunpack.i.h.bf16 %v12287_v59  ;;  %v12288_v56 = vunpack.i.l.bf16 %v12287_v59 }
 0x5c2   : > { %12576 = vrot.lane.b32.xlu1 %v17626_v61, %s13458_s22  ;;  %v12284_v32 = vunpack.i.h.bf16 %v12282_v28  ;;  %v12283_v26 = vunpack.i.l.bf16 %v12282_v28 }
 0x5c3   : > { %12571 = vrot.lane.b32.xlu0 %v17645_v5, %s13458_s22  ;;  %8892 = vmatprep.subr.bf16.mxu0 %v8891_v8  ;;  %v5819_v42 = vsel %vm5768_vm0, %v12288_v56, %v12289_v39 }
 0x5c4   : > { %8894 = vmatpush1.bf16.msra.mxu0 %v8893_v52  ;;  %v12297_v33 = vpop.permute.xlu1 %12296  ;;  %v5817_v44 = vsel %vm5768_vm0, %v12283_v26, %v12284_v32  ;;  %v5818_v49 = vsel %vm5768_vm0, %v12284_v32, %v12288_v56  ;;  %v20015_v56 = vpack.c.bf16 %v17475_v62, %v17471_v3  ;;  %v17799_v3 = vpack.i.bf16 %v17505_v46, %v17527_v7 }
 0x5c5   : > { %v12299_v11 = vunpack.i.h.bf16 %v12297_v33  ;;  %v12298_v47 = vunpack.i.l.bf16 %v12297_v33  ;;  %v12292_v25 = vpop.permute.xlu0 %12291  ;;  %v17811_v46 = vpack.i.bf16 %v17541_v15, %v17554_v17  ;;  %v17821_v17 = vpack.i.bf16 %v17581_v40, %v17551_v60 }
 0x5c6   : > { %v12294_v45 = vunpack.i.h.bf16 %v12292_v25  ;;  %v12293_v37 = vunpack.i.l.bf16 %v12292_v25  ;;  %12586 = vrot.lane.b32.xlu1 %v17662_v63, %s13458_s22 }
 0x5c7   : > { %12581 = vrot.lane.b32.xlu0 %v17672_v24, %s13458_s22  ;;  %v5822_v5 = vsel %vm5768_vm0, %v12298_v47, %v12299_v11 }
 0x5c8   : > { %v5820_v48 = vsel %vm5768_vm0, %v12293_v37, %v12294_v45  ;;  %v12307_v59 = vpop.permute.xlu1 %12306  ;;  %v5821_v18 = vsel %vm5768_vm0, %v12294_v45, %v12298_v47  ;;  %v8927_v28 = vpack.c.bf16 %v5822_v5, %v5819_v42 }
 0x5c9   : > { %v12302_v8 = vpop.permute.xlu0 %12301  ;;  %v8895_v52 = vpack.c.bf16 %v5821_v18, %v5818_v49  ;;  %v8897_v63 = vpack.c.bf16 %v5820_v48, %v5817_v44  ;;  %v12309_v24 = vunpack.i.h.bf16 %v12307_v59  ;;  %v12308_v26 = vunpack.i.l.bf16 %v12307_v59 }
 0x5ca   : > { %12596 = vrot.lane.b32.xlu1 %v17683_v1, %s13458_s22  ;;  %8928 = vmatprep.subr.bf16.mxu1 %v8927_v28  ;;  %v12304_v39 = vunpack.i.h.bf16 %v12302_v8  ;;  %v12303_v33 = vunpack.i.l.bf16 %v12302_v8  ;;  %v12615_v44 = vpack.i.bf16 %v17524_v31, %v17508_v14 }
 0x5cb   : > { %12591 = vrot.lane.b32.xlu0 %v17702_v19, %s13458_s22  ;;  %8896 = vmatprep.subr.bf16.mxu0 %v8895_v52  ;;  %v5825_v62 = vsel %vm5768_vm0, %v12308_v26, %v12309_v24  ;;  %v20016_v24 = vpack.c.bf16 %v17519_v38, %v17515_v51  ;;  %s13355_s22 = scalar_lea.vmem %s13354_s4, 6144 }
 0x5cc   : > { %8898 = vmatpush1.bf16.msra.mxu0 %v8897_v63  ;;  %8930 = vmatpush3.bf16.msra.mxu1 %v20015_v56  ;;  %v12317_v32 = vpop.permute.xlu1 %12316  ;;  %v5823_v19 = vsel %vm5768_vm0, %v12303_v33, %v12304_v39 }
 0x5cd   : > { %v12319_v11 = vunpack.i.h.bf16 %v12317_v32  ;;  %v12318_v47 = vunpack.i.l.bf16 %v12317_v32  ;;  %v12312_v25 = vpop.permute.xlu0 %12311 }
 0x5ce   : > { %v12314_v45 = vunpack.i.h.bf16 %v12312_v25  ;;  %v12313_v37 = vunpack.i.l.bf16 %v12312_v25  ;;  %12606 = vrot.lane.b32.xlu1 %v17489_v27, %s13448_s10  ;;  %v5824_v27 = vsel %vm5768_vm0, %v12304_v39, %v12308_v26 }
 0x5cf   : > { %12601 = vrot.lane.b32.xlu0 %v17499_v29, %s13448_s10  ;;  %v5828_v42 = vsel %vm5768_vm0, %v12318_v47, %v12319_v11  ;;  %v12625_v29 = vpack.i.bf16 %v17584_v34, %v17544_v16 }
 0x5d0   : > { %v5826_v5 = vsel %vm5768_vm0, %v12313_v37, %v12314_v45  ;;  %v12327_v48 = vpop.permute.xlu1 %12326  ;;  %v5827_v14 = vsel %vm5768_vm0, %v12314_v45, %v12318_v47  ;;  %v8931_v59 = vpack.c.bf16 %v5828_v42, %v5825_v62  ;;  %v17837_v62 = vpack.i.bf16 %v17598_v9, %v17611_v22 }
 0x5d1   : > { %v12322_v49 = vpop.permute.xlu0 %12321  ;;  %v8899_v18 = vpack.c.bf16 %v5827_v14, %v5824_v27  ;;  %v8901_v28 = vpack.c.bf16 %v5826_v5, %v5823_v19  ;;  %v12329_v7 = vunpack.i.h.bf16 %v12327_v48  ;;  %v12328_v8 = vunpack.i.l.bf16 %v12327_v48 }
 0x5d2   : > { %12616 = vrot.lane.b32.xlu1 %v12615_v44, %s13448_s10  ;;  %8932 = vmatprep.subr.bf16.mxu1 %v8931_v59  ;;  %v12324_v52 = vunpack.i.h.bf16 %v12322_v49  ;;  %v12323_v63 = vunpack.i.l.bf16 %v12322_v49  ;;  %v12645_v19 = vpack.i.bf16 %v17641_v20, %v17601_v57  ;;  %v20017_v14 = vpack.c.bf16 %v17576_v2, %v17572_v36  ;;  %v17844_v49 = vpop.f32.mrb[16].mxu1 }
 0x5d3   : > { %12611 = vrot.lane.b32.xlu0 %v17799_v3, %s13448_s10  ;;  %8900 = vmatprep.subr.bf16.mxu0 %v8899_v18  ;;  %v5831_v51 = vsel %vm5768_vm0, %v12328_v8, %v12329_v7  ;;  %v17846_v22 = vpop.f32.mrb[17].mxu1 }
 0x5d4   : > { %8902 = vmatpush1.bf16.msra.mxu0 %v8901_v28  ;;  %8934 = vmatpush3.bf16.msra.mxu1 %v20016_v24  ;;  %v12337_v26 = vpop.permute.xlu1 %12336  ;;  %v5829_v32 = vsel %vm5768_vm0, %v12323_v63, %v12324_v52  ;;  %v5830_v25 = vsel %vm5768_vm0, %v12324_v52, %v12328_v8  ;;  %v17853_v7 = vpop.f32.mrb[18].mxu1 }
 0x5d5   : > { %v12339_v39 = vunpack.i.h.bf16 %v12337_v26  ;;  %v12338_v16 = vunpack.i.l.bf16 %v12337_v26  ;;  %v12332_v33 = vpop.permute.xlu0 %12331  ;;  %v17860_v52 = vpop.f32.mrb[19].mxu1 }
 0x5d6   : > { %v12334_v56 = vunpack.i.h.bf16 %v12332_v33  ;;  %v12333_v15 = vunpack.i.l.bf16 %v12332_v33  ;;  %12626 = vrot.lane.b32.xlu1 %v12625_v29, %s13448_s10 }
 0x5d7   : > { %12621 = vrot.lane.b32.xlu0 %v17811_v46, %s13448_s10  ;;  %v5834_v38 = vsel %vm5768_vm0, %v12338_v16, %v12339_v39  ;;  %v17865_v39 = vpop.f32.mrb[20].mxu1 }
 0x5d8   : > { %v5832_v11 = vsel %vm5768_vm0, %v12333_v15, %v12334_v56  ;;  %v12347_v47 = vpop.permute.xlu1 %12346  ;;  %v5833_v45 = vsel %vm5768_vm0, %v12334_v56, %v12338_v16  ;;  %v8935_v37 = vpack.c.bf16 %v5834_v38, %v5831_v51  ;;  %v17867_v15 = vpop.f32.mrb[21].mxu1 }
 0x5d9   : > { %v12342_v44 = vpop.permute.xlu0 %12341  ;;  %v8903_v60 = vpack.c.bf16 %v5833_v45, %v5830_v25  ;;  %v8905_v40 = vpack.c.bf16 %v5832_v11, %v5829_v32  ;;  %v12349_v42 = vunpack.i.h.bf16 %v12347_v47  ;;  %v12348_v5 = vunpack.i.l.bf16 %v12347_v47  ;;  %v17873_v51 = vpop.f32.mrb[22].mxu1 }
 0x5da   : > { %12636 = vrot.lane.b32.xlu1 %v17821_v17, %s13448_s10  ;;  %8936 = vmatprep.subr.bf16.mxu1 %v8935_v37  ;;  %v12344_v48 = vunpack.i.h.bf16 %v12342_v44  ;;  %v12343_v27 = vunpack.i.l.bf16 %v12342_v44  ;;  %v12660_v32 = vpack.i.bf16 %v17485_v35, %v17495_v21  ;;  %v17877_v45 = vpop.f32.mrb[23].mxu1  ;;  %v20018_v37 = vpack.c.bf16 %v17633_v43, %v17629_v10  ;;  %v20019_v43 = vld [vmem:[#allocation81_spill] sm:$0xff] }
 0x5db   : > { %12631 = vrot.lane.b32.xlu0 %v17569_v0, %s13448_s10  ;;  %8904 = vmatprep.subr.bf16.mxu0 %v8903_v60  ;;  %v17851_v0 = vpack.i.bf16 %v17638_v4, %v17608_v55  ;;  %v5837_v2 = vsel %vm5768_vm0, %v12348_v5, %v12349_v42  ;;  %v17882_v60 = vpop.f32.mrb[24].mxu1 }
 0x5dc   : > { %8906 = vmatpush1.bf16.msra.mxu0 %v8905_v40  ;;  %8938 = vmatpush3.bf16.msra.mxu1 %v20017_v14  ;;  %v12357_v59 = vpop.permute.xlu1 %12356  ;;  %v5835_v36 = vsel %vm5768_vm0, %v12343_v27, %v12344_v48  ;;  %v5836_v26 = vsel %vm5768_vm0, %v12344_v48, %v12348_v5  ;;  %v20020_v27 = vld [vmem:[#allocation88_spill] sm:$0xff] }
 0x5dd   : > { %v12359_v57 = vunpack.i.h.bf16 %v12357_v59  ;;  %v12358_v18 = vunpack.i.l.bf16 %v12357_v59  ;;  %v12352_v9 = vpop.permute.xlu0 %12351  ;;  %v17896_v14 = vpack.i.bf16 %v20020_v27, %v20019_v43  ;;  %v17936_v43 = vadd.f32 %v17860_v52, %v17853_v7 }
 0x5de   : > { %v12354_v28 = vunpack.i.h.bf16 %v12352_v9  ;;  %v12353_v29 = vunpack.i.l.bf16 %v12352_v9  ;;  %12646 = vrot.lane.b32.xlu1 %v12645_v19, %s13448_s10  ;;  %v17884_v19 = vpop.f32.mrb[25].mxu1 }
 0x5df   : > { %12641 = vrot.lane.b32.xlu0 %v17837_v62, %s13448_s10  ;;  %v5840_v8 = vsel %vm5768_vm0, %v12358_v18, %v12359_v57  ;;  %v17890_v48 = vpop.f32.mrb[26].mxu1 }
 0x5e0   : > { %v5838_v63 = vsel %vm5768_vm0, %v12353_v29, %v12354_v28  ;;  %v12367_v24 = vpop.permute.xlu1 %12366  ;;  %v5839_v55 = vsel %vm5768_vm0, %v12354_v28, %v12358_v18  ;;  %v8939_v4 = vpack.c.bf16 %v5840_v8, %v5837_v2  ;;  %v17900_v18 = vpop.f32.mrb[27].mxu1 }
 0x5e1   : > { %v12362_v16 = vpop.permute.xlu0 %12361  ;;  %v8907_v33 = vpack.c.bf16 %v5839_v55, %v5836_v26  ;;  %v8909_v56 = vpack.c.bf16 %v5838_v63, %v5835_v36  ;;  %v12369_v38 = vunpack.i.h.bf16 %v12367_v24  ;;  %v12368_v11 = vunpack.i.l.bf16 %v12367_v24  ;;  %v17905_v36 = vpop.f32.mrb[28].mxu1  ;;  %v20021_v55 = vld [vmem:[#allocation78_spill] sm:$0xff] }
 0x5e2   : > { %12656 = vrot.lane.b32.xlu1 %v17851_v0, %s13448_s10  ;;  %8940 = vmatprep.subr.bf16.mxu1 %v8939_v4  ;;  %v12364_v47 = vunpack.i.h.bf16 %v12362_v16  ;;  %v12363_v25 = vunpack.i.l.bf16 %v12362_v16  ;;  %v17907_v24 = vpop.f32.mrb[29].mxu1  ;;  %v12685_v4 = vpack.i.bf16 %v17524_v31, %v20021_v55 }
 0x5e3   : > { %12651 = vrot.lane.b32.xlu0 %v17626_v61, %s13448_s10  ;;  %8908 = vmatprep.subr.bf16.mxu0 %v8907_v33  ;;  %v12675_v61 = vpack.i.bf16 %v17698_v12, %v17658_v41  ;;  %v5843_v59 = vsel %vm5768_vm0, %v12368_v11, %v12369_v38  ;;  %v17912_v16 = vpop.f32.mrb[30].mxu1  ;;  %v17918_v38 = vadd.f32 %v17846_v22, %v17844_v49 }
 0x5e4   : > { %8910 = vmatpush1.bf16.msra.mxu0 %v8909_v56  ;;  %8942 = vmatpush3.bf16.msra.mxu1 %v20018_v37  ;;  %v12377_v44 = vpop.permute.xlu1 %12376  ;;  %v5841_v10 = vsel %vm5768_vm0, %v12363_v25, %v12364_v47  ;;  %v5842_v41 = vsel %vm5768_vm0, %v12364_v47, %v12368_v11  ;;  %v17920_v11 = vpop.f32.mrb[31].mxu1  ;;  %v20022_v47 = vld [vmem:[#allocation20_spill] sm:$0xff]  ;;  %v20023_v25 = vld [vmem:[#allocation110_spill] sm:$0xff] }
 0x5e5   : > { %v12379_v35 = vunpack.i.h.bf16 %v12377_v44  ;;  %v12378_v21 = vunpack.i.l.bf16 %v12377_v44  ;;  %v12372_v40 = vpop.permute.xlu0 %12371  ;;  %v20024_v37 = vpack.c.bf16 %v20022_v47, %v20023_v25  ;;  %v17925_v44 = vpop.f32.mrb[0].mxu1 }
 0x5e6   : > { %v12374_v42 = vunpack.i.h.bf16 %v12372_v40  ;;  %v12373_v5 = vunpack.i.l.bf16 %v12372_v40  ;;  %12666 = vrot.lane.b32.xlu1 %v17799_v3, %s13461_s7 }
 0x5e7   : > { %12661 = vrot.lane.b32.xlu0 %v12660_v32, %s13461_s7  ;;  %v5846_v57 = vsel %vm5768_vm0, %v12378_v21, %v12379_v35 }
 0x5e8   : > { %v5844_v3 = vsel %vm5768_vm0, %v12373_v5, %v12374_v42  ;;  %v12387_v9 = vpop.permute.xlu1 %12386  ;;  %v5845_v28 = vsel %vm5768_vm0, %v12374_v42, %v12378_v21  ;;  %v8943_v29 = vpack.c.bf16 %v5846_v57, %v5843_v59  ;;  %v20025_v42 = vld [vmem:[#allocation80_spill] sm:$0xff]  ;;  %v20026_v5 = vld [vmem:[#allocation107_spill] sm:$0xff] }
 0x5e9   : > { %v12382_v2 = vpop.permute.xlu0 %12381  ;;  %v8911_v8 = vpack.c.bf16 %v5845_v28, %v5842_v41  ;;  %v8913_v63 = vpack.c.bf16 %v5844_v3, %v5841_v10  ;;  %v12389_v26 = vunpack.i.h.bf16 %v12387_v9  ;;  %v12388_v33 = vunpack.i.l.bf16 %v12387_v9  ;;  %v17931_v10 = vpop.f32.mrb[1].mxu1 }
 0x5ea   : > { %12676 = vrot.lane.b32.xlu1 %v12675_v61, %s13448_s10  ;;  %8944 = vmatprep.subr.bf16.mxu1 %v8943_v29  ;;  %v12384_v56 = vunpack.i.h.bf16 %v12382_v2  ;;  %v12383_v32 = vunpack.i.l.bf16 %v12382_v2  ;;  %v17929_v61 = vpack.i.bf16 %v20026_v5, %v20025_v42  ;;  %v17938_v27 = vpop.f32.mrb[2].mxu1  ;;  %v17947_v9 = vadd.f32 %v17867_v15, %v17865_v39  ;;  %v20027_v39 = vld [vmem:[#allocation79_spill] sm:$0xff] }
 0x5eb   : > { %12671 = vrot.lane.b32.xlu0 %v17896_v14, %s13448_s10  ;;  %8912 = vmatprep.subr.bf16.mxu0 %v8911_v8  ;;  %v5849_v57 = vsel %vm5768_vm0, %v12388_v33, %v12389_v26  ;;  %v17949_v41 = vpop.f32.mrb[3].mxu1  ;;  %v12700_v15 = vpack.i.bf16 %v20027_v39, %v17584_v34  ;;  %v17979_v42 = vadd.f32 %v17884_v19, %v17882_v60 }
 0x5ec   : > { %8914 = vmatpush1.bf16.msra.mxu0 %v8913_v63  ;;  %8946 = vmatpush3.bf16.msra.mxu1 %v20024_v37  ;;  %v12397_v31 = vpop.permute.xlu1 %12396  ;;  %v5847_v59 = vsel %vm5768_vm0, %v12383_v32, %v12384_v56  ;;  %v5848_v28 = vsel %vm5768_vm0, %v12384_v56, %v12388_v33  ;;  %v17954_v8 = vpop.f32.mrb[4].mxu1  ;;  %v20028_v37 = vpack.c.bf16 %v17720_v50, %v17716_v53  ;;  %v20029_v53 = vld [vmem:[#allocation86_spill] sm:$0xff] }
 0x5ed   : > { %v12399_v35 = vunpack.i.h.bf16 %v12397_v31  ;;  %v12398_v21 = vunpack.i.l.bf16 %v12397_v31  ;;  %v12392_v40 = vpop.permute.xlu0 %12391  ;;  %v17956_v55 = vpop.f32.mrb[5].mxu1  ;;  %v12715_v50 = vpack.i.bf16 %v20029_v53, %v17641_v20 }
 0x5ee   : > { %v12394_v49 = vunpack.i.h.bf16 %v12392_v40  ;;  %v12393_v22 = vunpack.i.l.bf16 %v12392_v40  ;;  %12686 = vrot.lane.b32.xlu1 %v12685_v4, %s13461_s7  ;;  %v17962_v4 = vpop.f32.mrb[6].mxu1  ;;  %v17975_v40 = vadd.f32 %v17877_v45, %v17873_v51 }
 0x5ef   : > { %12681 = vrot.lane.b32.xlu0 %v17683_v1, %s13448_s10  ;;  %v5852_v3 = vsel %vm5768_vm0, %v12398_v21, %v12399_v35  ;;  %v17966_v25 = vpop.f32.mrb[7].mxu1 }
 0x5f0   : > { %v5850_v7 = vsel %vm5768_vm0, %v12393_v22, %v12394_v49  ;;  %v12407_v52 = vpop.permute.xlu1 %12406  ;;  %v5851_v29 = vsel %vm5768_vm0, %v12394_v49, %v12398_v21  ;;  %v8947_v2 = vpack.c.bf16 %v5852_v3, %v5849_v57  ;;  %v17971_v31 = vpop.f32.mrb[8].mxu1 }
 0x5f1   : > { %v12402_v1 = vpop.permute.xlu0 %12401  ;;  %v8915_v63 = vpack.c.bf16 %v5851_v29, %v5848_v28  ;;  %v8917_v26 = vpack.c.bf16 %v5850_v7, %v5847_v59  ;;  %v12409_v33 = vunpack.i.h.bf16 %v12407_v52  ;;  %v12408_v56 = vunpack.i.l.bf16 %v12407_v52  ;;  %v17981_v5 = vpop.f32.mrb[9].mxu1 }
 0x5f2   : > { %8948 = vmatprep.subr.bf16.mxu1 %v8947_v2  ;;  %12696 = vrot.lane.b32.xlu1 %v17811_v46, %s13461_s7  ;;  %v12404_v32 = vunpack.i.h.bf16 %v12402_v1  ;;  %v12403_v47 = vunpack.i.l.bf16 %v12402_v1  ;;  %v17989_v59 = vadd.f32 %v17900_v18, %v17890_v48  ;;  %v17991_v51 = vpop.f32.mrb[10].mxu1 }
 0x5f3   : > { %12691 = vrot.lane.b32.xlu0 %v17929_v61, %s13448_s10  ;;  %8916 = vmatprep.subr.bf16.mxu0 %v8915_v63  ;;  %20030 = vst [vmem:[#allocation27_spill] sm:$0xff] %v17991_v51  ;;  %v5855_v60 = vsel %vm5768_vm0, %v12408_v56, %v12409_v33  ;;  %v18001_v57 = vpop.f32.mrb[11].mxu1  ;;  %s9218_s10 = smul.u32 192, %s13633_s25 }
 0x5f4   : > { %8918 = vmatpush1.bf16.msra.mxu0 %v8917_v26  ;;  %8950 = vmatpush3.bf16.msra.mxu1 %v20028_v37  ;;  %v12417_v46 = vpop.permute.xlu1 %12416  ;;  %v5853_v45 = vsel %vm5768_vm0, %v12403_v47, %v12404_v32  ;;  %20031 = vst [vmem:[#allocation46_spill] sm:$0xff] %v18001_v57  ;;  %v5854_v18 = vsel %vm5768_vm0, %v12404_v32, %v12408_v56  ;;  %v18006_v52 = vpop.f32.mrb[12].mxu1 }
 0x5f5   : > { %v12419_v34 = vunpack.i.h.bf16 %v12417_v46  ;;  %v12418_v35 = vunpack.i.l.bf16 %v12417_v46  ;;  %v12412_v21 = vpop.permute.xlu0 %12411  ;;  %20032 = vst [vmem:[#allocation47_spill] sm:$0xff] %v18006_v52  ;;  %v18008_v1 = vpop.f32.mrb[13].mxu1  ;;  %s19264_s11 = scalar_lea.vmem [#allocation7], %s9218_s10 }
 0x5f6   : > { %v12414_v49 = vunpack.i.h.bf16 %v12412_v21  ;;  %v12413_v22 = vunpack.i.l.bf16 %v12412_v21  ;;  %12706 = vrot.lane.b32.xlu1 %v17821_v17, %s13461_s7  ;;  %v17999_v17 = vadd.f32 %v17907_v24, %v17905_v36  ;;  %20033 = vst [vmem:[#allocation48_spill] sm:$0xff] %v18008_v1  ;;  %v18013_v36 = vadd.f32 %v17920_v11, %v17912_v16  ;;  %v18015_v24 = vpop.f32.mrb[14].mxu1  ;;  %s7674_s6 = sshll.u32 %s19264_s11, 4  ;;  %s19321_s6 = int_to_ptr.vmem [resolvable:$true] %s7674_s6 }
 0x5f7   : > { %12701 = vrot.lane.b32.xlu0 %v12700_v15, %s13461_s7  ;;  %v5858_v19 = vsel %vm5768_vm0, %v12418_v35, %v12419_v34  ;;  %20034 = vst [vmem:[#allocation49_spill] sm:$0xff] %v18015_v24  ;;  %v18019_v33 = vpop.f32.mrb[15].mxu1  ;;  %v5506_v24 = vld [vmem:[#allocation5 + $0x308] sm:$0xff]  ;;  %s13349_s19 = scalar_lea.vmem %s19321_s6, 3072  ;;  %p13356_p12 = scmp.lt.s32.totalorder %s19321_s6, %s13354_s4 }
 0x5f8   : > { %v5856_v20 = vsel %vm5768_vm0, %v12413_v22, %v12414_v49  ;;  %v12427_v48 = vpop.permute.xlu1 %12426  ;;  %v5857_v3 = vsel %vm5768_vm0, %v12414_v49, %v12418_v35  ;;  %v8951_v7 = vpack.c.bf16 %v5858_v19, %v5855_v60  ;;  %20035 = vst [vmem:[#allocation71_spill] sm:$0xff] %v18019_v33  ;;  %v18024_v16 = vpop.f32.mrb[32].mxu1  ;;  %p13350_p4 = scmp.ne.s32.totalorder %s19321_s6, %s13349_s19  ;;  %p13357_p13 = scmp.lt.s32.totalorder %s13355_s22, %s13349_s19 }
 0x5f9   : > { %v12422_v28 = vpop.permute.xlu0 %12421  ;;  %v8919_v29 = vpack.c.bf16 %v5857_v3, %v5854_v18  ;;  %v8921_v2 = vpack.c.bf16 %v5856_v20, %v5853_v45  ;;  %v12429_v63 = vunpack.i.h.bf16 %v12427_v48  ;;  %v12428_v26 = vunpack.i.l.bf16 %v12427_v48  ;;  %v18026_v37 = vpop.f32.mrb[33].mxu1 }
 0x5fa   : > { %8952 = vmatprep.subr.bf16.mxu1 %v8951_v7  ;;  %12716 = vrot.lane.b32.xlu1 %v12715_v50, %s13461_s7  ;;  %v12424_v39 = vunpack.i.h.bf16 %v12422_v28  ;;  %v12423_v15 = vunpack.i.l.bf16 %v12422_v28  ;;  %p13351_p6 = pnand %p13350_p4, %p13579_p10  ;;  %p13358_p0 = por %p13357_p13, %p13356_p12 }
 0x5fb   : > { %12711 = vrot.lane.b32.xlu0 %v17837_v62, %s13461_s7  ;;  %8920 = vmatprep.subr.bf16.mxu0 %v8919_v29  ;;  %v18030_v62 = vpop.f32.mrb[34].mxu1 }
 0x5fc   : > { %8922 = vmatpush1.bf16.msra.mxu0 %v8921_v2  ;;  %8954 = vmatpush3.bf16.msra.mxu1 %v8953_v30  ;;  %v12437_v56 = vpop.permute.xlu1 %12436  ;;  %v5859_v35 = vsel %vm5768_vm0, %v12423_v15, %v12424_v39  ;;  %v5861_v30 = vsel %vm5768_vm0, %v12428_v26, %v12429_v63  ;;  %v18039_v49 = vpop.f32.mrb[35].mxu1  ;;  %p13352_p8 = pneg %p13351_p6 }
 0x5fd   : > { %v12439_v11 = vunpack.i.h.bf16 %v12437_v56  ;;  %v12438_v32 = vunpack.i.l.bf16 %v12437_v56  ;;  %v12432_v47 = vpop.permute.xlu0 %12431  ;;  %v18044_v60 = vpop.f32.mrb[36].mxu1 }
 0x5fe   : > { %v12434_v46 = vunpack.i.h.bf16 %v12432_v47  ;;  %v12433_v34 = vunpack.i.l.bf16 %v12432_v47  ;;  %12726 = vrot.lane.b32.xlu1 %v17896_v14, %s13461_s7  ;;  %v5860_v14 = vsel %vm5768_vm0, %v12424_v39, %v12428_v26  ;;  %v18046_v18 = vpop.f32.mrb[37].mxu1  ;;  %v5496_v39 = vld [vmem:[#allocation5 + $0x60] sm:$0xff]  ;;  %v5499_v47 = vld [vmem:[#allocation5 + $0xf0] sm:$0xff]  ;;  %p13359_p5 = pnand %p13358_p0, %p13352_p8 }
 0x5ff   : > { %12721 = vrot.lane.b32.xlu0 %v17851_v0, %s13461_s7  ;;  %v5864_v21 = vsel %vm5768_vm0, %v12438_v32, %v12439_v11  ;;  %v18050_v7 = vpop.f32.mrb[38].mxu1 }
 0x600   : > { %v5862_v22 = vsel %vm5768_vm0, %v12433_v34, %v12434_v46  ;;  %v12447_v53 = vpop.permute.xlu1 %12446  ;;  %v5863_v50 = vsel %vm5768_vm0, %v12434_v46, %v12438_v32  ;;  %v8955_v45 = vpack.c.bf16 %v5864_v21, %v5861_v30  ;;  %v18054_v29 = vpop.f32.mrb[39].mxu1 }
 0x601   : > { %v12449_v0 = vunpack.i.h.bf16 %v12447_v53  ;;  %v12448_v19 = vunpack.i.l.bf16 %v12447_v53  ;;  %v12442_v20 = vpop.permute.xlu0 %12441  ;;  %v8923_v12 = vpack.c.bf16 %v5863_v50, %v5860_v14  ;;  %v8925_v48 = vpack.c.bf16 %v5862_v22, %v5859_v35 }
 0x602   : > { %v12444_v3 = vunpack.i.h.bf16 %v12442_v20  ;;  %8956 = vmatprep.subr.bf16.mxu1 %v8955_v45  ;;  %12736 = vrot.lane.b32.xlu1 %v17929_v61, %s13461_s7  ;;  %v12443_v63 = vunpack.i.l.bf16 %v12442_v20  ;;  %v18060_v61 = vpop.f32.mrb[40].mxu1  ;;  %v5498_v20 = vld [vmem:[#allocation5 + $0xe8] sm:$0xff] }
 0x603   : > { %v6269_v28 = vsel %vm702_vm1, %v12448_v19, %v12449_v0  ;;  %12731 = vrot.lane.b32.xlu0 %v12730_v58, %s13461_s7  ;;  %8924 = vmatprep.subr.bf16.mxu0 %v8923_v12  ;;  %v18062_v46 = vpop.f32.mrb[41].mxu1 }
 0x604   : > { %v6268_v2 = vsel %vm702_vm1, %v12444_v3, %v12448_v19  ;;  %8926 = vmatpush1.bf16.msra.mxu0 %v8925_v48  ;;  %8958 = vmatpush3.bf16.msra.mxu1 %v8957_v54  ;;  %v12457_v26 = vpop.permute.xlu1 %12456  ;;  %v18064_v6 = vpop.f32.mrb[42].mxu1  ;;  %v6267_v13 = vsel %vm702_vm1, %v12443_v63, %v12444_v3  ;;  %v5501_v3 = vld [vmem:[#allocation5 + $0x178] sm:$0xff]  ;;  %v7885_v63 = vadd.f32 %v18026_v37, %v18024_v16 }
 0x605   : > { %v12459_v15 = vunpack.i.h.bf16 %v12457_v26  ;;  %v12458_v56 = vunpack.i.l.bf16 %v12457_v26  ;;  %v12452_v11 = vpop.permute.xlu0 %12451  ;;  %v12740_v32 = vpack.i.bf16 %v6269_v28, %v6268_v2  ;;  %v18070_v23 = vpop.f32.mrb[43].mxu1 }
 0x606   : > { %v12454_v34 = vunpack.i.h.bf16 %v12452_v11  ;;  %v12453_v35 = vunpack.i.l.bf16 %v12452_v11  ;;  %v18075_v53 = vpop.f32.mrb[44].mxu1 }
 0x607   : > { %v6272_v58 = vsel %vm702_vm1, %v12458_v56, %v12459_v15  ;;  %v18067_v30 = vpack.i.bf16 %v12459_v15, %v12449_v0  ;;  %12741 = vrot.lane.b32.xlu0 %v12740_v32, %s13461_s7  ;;  %6139 = vmatmul.mubr.f32.vlgmr.msra.gmra.mrb[112].mxu1 %v5496_v39  ;;  %v18077_v12 = vpop.f32.mrb[45].mxu1 }
 0x608   : > { %v6271_v54 = vsel %vm702_vm1, %v12454_v34, %v12458_v56  ;;  %v6270_v21 = vsel %vm702_vm1, %v12453_v35, %v12454_v34  ;;  %v12467_v22 = vpop.permute.xlu1 %12466  ;;  %6143 = vmatprep.mubr.f32.mxu1 %v5499_v47  ;;  %6026 = vmatmul.mubr.f32.vlgmr.msra.gmra.mrb[0].mxu0 %v5496_v39  ;;  %v18079_v28 = vpop.f32.mrb[46].mxu1 }
 0x609   : > { %v12469_v14 = vunpack.i.h.bf16 %v12467_v22  ;;  %v12468_v50 = vunpack.i.l.bf16 %v12467_v22  ;;  %v12462_v45 = vpop.permute.xlu0 %12461  ;;  %v12745_v0 = vpack.i.bf16 %v6272_v58, %v6271_v54  ;;  %v12750_v19 = vpack.i.bf16 %v6270_v21, %v6267_v13  ;;  %6031 = vmatprep.mubr.f32.mxu0 %v5499_v47  ;;  %v18086_v26 = vpop.f32.mrb[47].mxu1  ;;  %v5500_v58 = vld [vmem:[#allocation5 + $0x170] sm:$0xff]  ;;  %v5503_v21 = vld [vmem:[#allocation5 + $0x200] sm:$0xff] }
 0x60a   : > { %v12464_v48 = vunpack.i.h.bf16 %v12462_v45  ;;  %v12463_v15 = vunpack.i.l.bf16 %v12462_v45  ;;  %v18089_v11 = vpop.f32.mrb[48].mxu1  ;;  %v18092_v13 = vadd.f32 %v7885_v63, %v17918_v38 }
 0x60b   : > { %v6275_v2 = vsel %vm702_vm1, %v12468_v50, %v12469_v14  ;;  %12746 = vrot.lane.b32.xlu1 %v12745_v0, %s13461_s7  ;;  %12751 = vrot.lane.b32.xlu0 %v12750_v19, %s13461_s7  ;;  %v18094_v16 = vpop.f32.mrb[49].mxu1 }
 0x60c   : > { %v6274_v39 = vsel %vm702_vm1, %v12464_v48, %v12468_v50  ;;  %v12477_v56 = vpop.permute.xlu1 %12476  ;;  %6144 = vmatmul.mubr.f32.gmra.mrb[114].mxu1 %v5498_v20  ;;  %6032 = vmatmul.mubr.f32.gmra.mrb[2].mxu0 %v5498_v20  ;;  %v18096_v22 = vpop.f32.mrb[50].mxu1  ;;  %v6273_v19 = vsel %vm702_vm1, %v12463_v15, %v12464_v48  ;;  %v5505_v15 = vld [vmem:[#allocation5 + $0x288] sm:$0xff] }
 0x60d   : > { %v12479_v32 = vunpack.i.h.bf16 %v12477_v56  ;;  %v12478_v47 = vunpack.i.l.bf16 %v12477_v56  ;;  %v12472_v34 = vpop.permute.xlu0 %12471  ;;  %v12755_v35 = vpack.i.bf16 %v6275_v2, %v6274_v39  ;;  %6148 = vmatprep.mubr.f32.mxu1 %v5501_v3  ;;  %6037 = vmatprep.mubr.f32.mxu0 %v5501_v3  ;;  %v18102_v0 = vpop.f32.mrb[51].mxu1 }
 0x60e   : > { %v12474_v37 = vunpack.i.h.bf16 %v12472_v34  ;;  %v12473_v54 = vunpack.i.l.bf16 %v12472_v34  ;;  %v18107_v2 = vpop.f32.mrb[52].mxu1  ;;  %v5502_v34 = vld [vmem:[#allocation5 + $0x1f8] sm:$0xff] }
 0x60f   : > { %v6278_v50 = vsel %vm702_vm1, %v12478_v47, %v12479_v32  ;;  %v18099_v45 = vpack.i.bf16 %v12479_v32, %v12469_v14  ;;  %12756 = vrot.lane.b32.xlu1 %v12755_v35, %s13461_s7  ;;  %v18109_v35 = vpop.f32.mrb[53].mxu1 }
 0x610   : > { %v6277_v38 = vsel %vm702_vm1, %v12474_v37, %v12478_v47  ;;  %v6276_v20 = vsel %vm702_vm1, %v12473_v54, %v12474_v37  ;;  %v12487_v3 = vpop.permute.xlu1 %12486  ;;  %6149 = vmatmul.mubr.f32.gmra.mrb[116].mxu1 %v5500_v58  ;;  %6038 = vmatmul.mubr.f32.gmra.mrb[4].mxu0 %v5500_v58  ;;  %v7888_v47 = vadd.f32 %v18039_v49, %v18030_v62  ;;  %v18115_v54 = vpop.f32.mrb[54].mxu1 }
 0x611   : > { %v12489_v63 = vunpack.i.h.bf16 %v12487_v3  ;;  %v12488_v39 = vunpack.i.l.bf16 %v12487_v3  ;;  %v12482_v56 = vpop.permute.xlu0 %12481  ;;  %v12765_v14 = vpack.i.bf16 %v6276_v20, %v6273_v19  ;;  %v12760_v32 = vpack.i.bf16 %v6278_v50, %v6277_v38  ;;  %6153 = vmatprep.mubr.f32.mxu1 %v5503_v21  ;;  %6043 = vmatprep.mubr.f32.mxu0 %v5503_v21  ;;  %v18122_v21 = vpop.f32.mrb[55].mxu1 }
 0x612   : > { %v12484_v48 = vunpack.i.h.bf16 %v12482_v56  ;;  %v7891_v37 = vadd.f32 %v18046_v18, %v18044_v60  ;;  %v7894_v50 = vadd.f32 %v18054_v29, %v18050_v7  ;;  %v12483_v38 = vunpack.i.l.bf16 %v12482_v56  ;;  %v18131_v18 = vpop.f32.mrb[56].mxu1  ;;  %v5504_v7 = vld [vmem:[#allocation5 + $0x280] sm:$0xff] }
 0x613   : > { %v6281_v58 = vsel %vm702_vm1, %v12488_v39, %v12489_v63  ;;  %12766 = vrot.lane.b32.xlu1 %v12765_v14, %s13461_s7  ;;  %12761 = vrot.lane.b32.xlu0 %v12760_v32, %s13461_s7  ;;  %v18126_v49 = vadd.f32 %v7888_v47, %v17936_v43  ;;  %v5507_v47 = vld [vmem:[#allocation5 + $0x310] sm:$0xff] }
 0x614   : > { %v6280_v19 = vsel %vm702_vm1, %v12484_v48, %v12488_v39  ;;  %v12497_v62 = vpop.permute.xlu1 %12496  ;;  %6154 = vmatmul.mubr.f32.gmra.mrb[118].mxu1 %v5502_v34  ;;  %v18129_v60 = vadd.f32 %v7891_v37, %v17947_v9  ;;  %v18134_v29 = vadd.f32 %v7894_v50, %v17975_v40  ;;  %v18136_v39 = vpop.f32.mrb[57].mxu1  ;;  %6044 = vmatmul.mubr.f32.gmra.mrb[6].mxu0 %v5502_v34 }
 0x615   : > { %v12499_v20 = vunpack.i.h.bf16 %v12497_v62  ;;  %v12498_v3 = vunpack.i.l.bf16 %v12497_v62  ;;  %v12492_v14 = vpop.permute.xlu0 %12491  ;;  %v12770_v32 = vpack.i.bf16 %v6281_v58, %v6280_v19  ;;  %6158 = vmatprep.mubr.f32.mxu1 %v5505_v15  ;;  %v7897_v9 = vadd.f32 %v18062_v46, %v18060_v61  ;;  %v18140_v37 = vpop.f32.mrb[58].mxu1  ;;  %6049 = vmatprep.mubr.f32.mxu0 %v5505_v15 }
 0x616   : > { %v12494_v56 = vunpack.i.h.bf16 %v12492_v14  ;;  %v12493_v43 = vunpack.i.l.bf16 %v12492_v14  ;;  %v18146_v40 = vpop.f32.mrb[59].mxu1  ;;  %v6279_v50 = vsel %vm702_vm1, %v12483_v38, %v12484_v48  ;;  %v5509_v38 = vld [vmem:[#allocation5 + $0x398] sm:$0xff] }
 0x617   : > { %v6284_v62 = vsel %vm702_vm1, %v12498_v3, %v12499_v20  ;;  %v18143_v58 = vpack.i.bf16 %v12499_v20, %v12489_v63  ;;  %12771 = vrot.lane.b32.xlu0 %v12770_v32, %s13461_s7  ;;  %v18152_v61 = vadd.f32 %v7897_v9, %v17979_v42  ;;  %v18154_v46 = vpop.f32.mrb[60].mxu1  ;;  %v7903_v42 = vadd.f32 %v18077_v12, %v18075_v53 }
 0x618   : > { %v6283_v34 = vsel %vm702_vm1, %v12494_v56, %v12498_v3  ;;  %v6282_v19 = vsel %vm702_vm1, %v12493_v43, %v12494_v56  ;;  %v12507_v14 = vpop.permute.xlu1 %12506  ;;  %6159 = vmatmul.mubr.f32.gmra.mrb[120].mxu1 %v5504_v7  ;;  %v18156_v1 = vpop.f32.mrb[61].mxu1  ;;  %6050 = vmatmul.mubr.f32.gmra.mrb[8].mxu0 %v5504_v7  ;;  %v7900_v3 = vadd.f32 %v18070_v23, %v18064_v6 }
 0x619   : > { %v12509_v15 = vunpack.i.h.bf16 %v12507_v14  ;;  %v12508_v63 = vunpack.i.l.bf16 %v12507_v14  ;;  %v12502_v20 = vpop.permute.xlu0 %12501  ;;  %v12775_v33 = vpack.i.bf16 %v6284_v62, %v6283_v34  ;;  %v12780_v32 = vpack.i.bf16 %v6282_v19, %v6279_v50  ;;  %6163 = vmatprep.mubr.f32.mxu1 %v5507_v47  ;;  %v18162_v56 = vpop.f32.mrb[62].mxu1  ;;  %6055 = vmatprep.mubr.f32.mxu0 %v5507_v47 }
 0x61a   : > { %v12504_v48 = vunpack.i.h.bf16 %v12502_v20  ;;  %v7906_v7 = vadd.f32 %v18086_v26, %v18079_v28  ;;  %v18169_v9 = vpop.f32.mrb[63].mxu1  ;;  %v12503_v6 = vunpack.i.l.bf16 %v12502_v20  ;;  %v18173_v53 = vadd.f32 %v7900_v3, %v17989_v59  ;;  %v5508_v28 = vld [vmem:[#allocation5 + $0x390] sm:$0xff]  ;;  %v5511_v20 = vld [vmem:[#allocation5 + $0x420] sm:$0xff] }
 0x61b   : > { %v6287_v43 = vsel %vm702_vm1, %v12508_v63, %v12509_v15  ;;  %12776 = vrot.lane.b32.xlu1 %v12775_v33, %s13461_s7  ;;  %12781 = vrot.lane.b32.xlu0 %v12780_v32, %s13461_s7  ;;  %v18176_v12 = vadd.f32 %v7903_v42, %v17999_v17  ;;  %v18178_v47 = vpop.f32.mrb[64].mxu1  ;;  %v7941_v17 = vadd.f32 %v18094_v16, %v18089_v11 }
 0x61c   : > { %v6286_v62 = vsel %vm702_vm1, %v12504_v48, %v12508_v63  ;;  %v12517_v23 = vpop.permute.xlu1 %12516  ;;  %6164 = vmatmul.mubr.f32.gmra.mrb[122].mxu1 %v5506_v24  ;;  %v18181_v26 = vadd.f32 %v7906_v7, %v18013_v36  ;;  %v18183_v14 = vpop.f32.mrb[65].mxu1  ;;  %6056 = vmatmul.mubr.f32.gmra.mrb[10].mxu0 %v5506_v24 }
 0x61d   : > { %v12519_v33 = vunpack.i.h.bf16 %v12517_v23  ;;  %v12518_v50 = vunpack.i.l.bf16 %v12517_v23  ;;  %v12512_v34 = vpop.permute.xlu0 %12511  ;;  %v12785_v19 = vpack.i.bf16 %v6287_v43, %v6286_v62  ;;  %6168 = vmatprep.mubr.f32.mxu1 %v5509_v38  ;;  %v18187_v32 = vpop.f32.mrb[66].mxu1  ;;  %6061 = vmatprep.mubr.f32.mxu0 %v5509_v38  ;;  %v6285_v43 = vsel %vm702_vm1, %v12503_v6, %v12504_v48  ;;  %v5510_v48 = vld [vmem:[#allocation5 + $0x418] sm:$0xff] }
 0x61e   : > { %v12514_v63 = vunpack.i.h.bf16 %v12512_v34  ;;  %v12513_v59 = vunpack.i.l.bf16 %v12512_v34  ;;  %v18193_v36 = vpop.f32.mrb[67].mxu1  ;;  %v18201_v11 = vadd.f32 %v7941_v17, %v18092_v13  ;;  %v7947_v13 = vadd.f32 %v18109_v35, %v18107_v2 }
 0x61f   : > { %v6290_v3 = vsel %vm702_vm1, %v12518_v50, %v12519_v33  ;;  %v18190_v42 = vpack.i.bf16 %v12519_v33, %v12509_v15  ;;  %12786 = vrot.lane.b32.xlu1 %v12785_v19, %s13461_s7  ;;  %v18203_v16 = vpop.f32.mrb[68].mxu1  ;;  %v7944_v19 = vadd.f32 %v18102_v0, %v18096_v22  ;;  %v7953_v22 = vadd.f32 %v18136_v39, %v18131_v18 }
 0x620   : > { %v6289_v24 = vsel %vm702_vm1, %v12514_v63, %v12518_v50  ;;  %v6288_v7 = vsel %vm702_vm1, %v12513_v59, %v12514_v63  ;;  %v18198_v62 = vpop.permute.xlu1 %12526  ;;  %6169 = vmatmul.mubr.f32.gmra.mrb[124].mxu1 %v5508_v28  ;;  %v18207_v6 = vpop.f32.mrb[69].mxu1  ;;  %6062 = vmatmul.mubr.f32.gmra.mrb[12].mxu0 %v5508_v28  ;;  %v7950_v28 = vadd.f32 %v18122_v21, %v18115_v54  ;;  %vm6739_vm1 = vcmask 687104  }
 0x621   : > { %v19583_v15 = vunpack.i.h.bf16 %v18198_v62  ;;  %v12528_v38 = vunpack.i.l.bf16 %v18198_v62  ;;  %v12522_v23 = vpop.permute.xlu0 %12521  ;;  %v12795_v33 = vpack.i.bf16 %v6288_v7, %v6285_v43  ;;  %v12790_v34 = vpack.i.bf16 %v6290_v3, %v6289_v24  ;;  %6173 = vmatprep.mubr.f32.mxu1 %v5511_v20  ;;  %v18213_v63 = vpop.f32.mrb[70].mxu1  ;;  %6067 = vmatprep.mubr.f32.mxu0 %v5511_v20 }
 0x622   : > { %v12524_v50 = vunpack.i.h.bf16 %v12522_v23  ;;  %v18224_v0 = vpop.f32.mrb[71].mxu1  ;;  %v12523_v35 = vunpack.i.l.bf16 %v12522_v23  ;;  %v18230_v17 = vadd.f32 %v7944_v19, %v18126_v49  ;;  %v18233_v3 = vadd.f32 %v7947_v13, %v18129_v60 }
 0x623   : > { %v6357_v59 = vsel %vm4436_vm15, %v12528_v38, %v19583_v15  ;;  %12796 = vrot.lane.b32.xlu1 %v12795_v33, %s13461_s7  ;;  %12791 = vrot.lane.b32.xlu0 %v12790_v34, %s13461_s7  ;;  %v18235_v43 = vpop.f32.mrb[72].mxu1  ;;  %v18240_v24 = vadd.f32 %v7950_v28, %v18134_v29  ;;  %v18245_v23 = vadd.f32 %v7953_v22, %v18152_v61 }
 0x624   : > { %v6356_v2 = vsel %vm4436_vm15, %v12524_v50, %v12528_v38  ;;  %v18227_v20 = vpop.permute.xlu1 %12536  ;;  %6174 = vmatmul.mubr.f32.gmra.mrb[126].mxu1 %v5510_v48  ;;  %v18242_v7 = vpop.f32.mrb[73].mxu1  ;;  %6068 = vmatmul.mubr.f32.gmra.mrb[14].mxu0 %v5510_v48  ;;  %v6355_v29 = vsel %vm4436_vm15, %v12523_v35, %v12524_v50  ;;  %v7956_v50 = vadd.f32 %v18146_v40, %v18140_v37 }
 0x625   : > { %v19580_v54 = vunpack.i.h.bf16 %v18227_v20  ;;  %v12538_v21 = vunpack.i.l.bf16 %v18227_v20  ;;  %v12532_v18 = vpop.permute.xlu0 %12531  ;;  %v12800_v39 = vpack.i.bf16 %v6357_v59, %v6356_v2  ;;  %v18247_v60 = vpop.f32.mrb[74].mxu1  ;;  %v7959_v35 = vadd.f32 %v18156_v1, %v18154_v46 }
 0x626   : > { %v12534_v38 = vunpack.i.h.bf16 %v12532_v18  ;;  %v12533_v49 = vunpack.i.l.bf16 %v12532_v18  ;;  %v18253_v34 = vpop.f32.mrb[75].mxu1 }
 0x627   : > { %v6360_v33 = vsel %vm4436_vm15, %v12538_v21, %v19580_v54  ;;  %12801 = vrot.lane.b32.xlu0 %v12800_v39, %s13461_s7  ;;  %v18260_v61 = vpop.f32.mrb[76].mxu1 }
 0x628   : > { %v6359_v19 = vsel %vm4436_vm15, %v12534_v38, %v12538_v21  ;;  %v6358_v48 = vsel %vm4436_vm15, %v12533_v49, %v12534_v38  ;;  %v18258_v13 = vpop.permute.xlu1 %12546  ;;  %v18264_v39 = vpop.f32.mrb[77].mxu1  ;;  %v7962_v49 = vadd.f32 %v18169_v9, %v18162_v56 }
 0x629   : > { %v19581_v59 = vunpack.i.h.bf16 %v18258_v13  ;;  %v12548_v28 = vunpack.i.l.bf16 %v18258_v13  ;;  %v12542_v22 = vpop.permute.xlu0 %12541  ;;  %v12805_v2 = vpack.i.bf16 %v6360_v33, %v6359_v19  ;;  %v12810_v18 = vpack.i.bf16 %v6358_v48, %v6355_v29  ;;  %v18270_v21 = vpop.f32.mrb[78].mxu1 }
 0x62a   : > { %v12544_v54 = vunpack.i.h.bf16 %v12542_v22  ;;  %v7997_v33 = vadd.f32 %v18183_v14, %v18178_v47  ;;  %v18281_v37 = vpop.f32.mrb[79].mxu1  ;;  %v12543_v40 = vunpack.i.l.bf16 %v12542_v22  ;;  %v18287_v29 = vadd.f32 %v7956_v50, %v18173_v53 }
 0x62b   : > { %v6363_v38 = vsel %vm4436_vm15, %v12548_v28, %v19581_v59  ;;  %12806 = vrot.lane.b32.xlu1 %v12805_v2, %s13461_s7  ;;  %12811 = vrot.lane.b32.xlu0 %v12810_v18, %s13461_s7  ;;  %v18290_v19 = vadd.f32 %v7959_v35, %v18176_v12  ;;  %v18292_v48 = vpop.f32.mrb[80].mxu1  ;;  %v18297_v2 = vadd.f32 %v7962_v49, %v18181_v26 }
 0x62c   : > { %v6362_v1 = vsel %vm4436_vm15, %v12544_v54, %v12548_v28  ;;  %v18284_v46 = vpop.permute.xlu1 %12556  ;;  %v18299_v28 = vpop.f32.mrb[81].mxu1  ;;  %v18302_v53 = vadd.f32 %v7997_v33, %v18201_v11  ;;  %v6361_v26 = vsel %vm4436_vm15, %v12543_v40, %v12544_v54  ;;  %v8000_v54 = vadd.f32 %v18193_v36, %v18187_v32 }
 0x62d   : > { %v19582_v56 = vunpack.i.h.bf16 %v18284_v46  ;;  %v12558_v9 = vunpack.i.l.bf16 %v18284_v46  ;;  %v12552_v47 = vpop.permute.xlu0 %12551  ;;  %v12815_v14 = vpack.i.bf16 %v6363_v38, %v6362_v1  ;;  %v18304_v12 = vpop.f32.mrb[82].mxu1  ;;  %v8003_v40 = vadd.f32 %v18207_v6, %v18203_v16 }
 0x62e   : > { %v12554_v22 = vunpack.i.h.bf16 %v12552_v47  ;;  %v12553_v18 = vunpack.i.l.bf16 %v12552_v47  ;;  %v18310_v35 = vpop.f32.mrb[83].mxu1 }
 0x62f   : > { %v6366_v50 = vsel %vm4436_vm15, %v12558_v9, %v19582_v56  ;;  %12816 = vrot.lane.b32.xlu1 %v12815_v14, %s13461_s7  ;;  %v18317_v11 = vpop.f32.mrb[84].mxu1 }
 0x630   : > { %v6365_v38 = vsel %vm4436_vm15, %v12554_v22, %v12558_v9  ;;  %v6364_v49 = vsel %vm4436_vm15, %v12553_v18, %v12554_v22  ;;  %v18315_v1 = vpop.permute.xlu1 %12566  ;;  %v18321_v14 = vpop.f32.mrb[85].mxu1  ;;  %v8006_v18 = vadd.f32 %v18224_v0, %v18213_v63 }
 0x631   : > { %v19584_v33 = vunpack.i.h.bf16 %v18315_v1  ;;  %v12568_v47 = vunpack.i.l.bf16 %v18315_v1  ;;  %v12562_v59 = vpop.permute.xlu0 %12561  ;;  %v12825_v56 = vpack.i.bf16 %v6364_v49, %v6361_v26  ;;  %v12820_v15 = vpack.i.bf16 %v6366_v50, %v6365_v38  ;;  %v18327_v9 = vpop.f32.mrb[86].mxu1 }
 0x632   : > { %v12564_v52 = vunpack.i.h.bf16 %v12562_v59  ;;  %v8009_v50 = vadd.f32 %v18242_v7, %v18235_v43  ;;  %v18338_v32 = vpop.f32.mrb[87].mxu1  ;;  %v12563_v16 = vunpack.i.l.bf16 %v12562_v59  ;;  %v18344_v26 = vadd.f32 %v8000_v54, %v18230_v17 }
 0x633   : > { %v6369_v22 = vsel %vm4436_vm15, %v12568_v47, %v19584_v33  ;;  %12826 = vrot.lane.b32.xlu1 %v12825_v56, %s13461_s7  ;;  %12821 = vrot.lane.b32.xlu0 %v12820_v15, %s13461_s7  ;;  %v18347_v56 = vadd.f32 %v8003_v40, %v18233_v3  ;;  %v18349_v15 = vpop.f32.mrb[88].mxu1  ;;  %v18354_v38 = vadd.f32 %v8006_v18, %v18240_v24 }
 0x634   : > { %v6368_v36 = vsel %vm4436_vm15, %v12564_v52, %v12568_v47  ;;  %v18341_v6 = vpop.permute.xlu1 %12576  ;;  %v18356_v59 = vpop.f32.mrb[89].mxu1  ;;  %v18359_v17 = vadd.f32 %v8009_v50, %v18245_v23  ;;  %v6367_v24 = vsel %vm4436_vm15, %v12563_v16, %v12564_v52  ;;  %v8012_v52 = vadd.f32 %v18253_v34, %v18247_v60 }
 0x635   : > { %v19585_v63 = vunpack.i.h.bf16 %v18341_v6  ;;  %v12578_v0 = vunpack.i.l.bf16 %v18341_v6  ;;  %v12572_v43 = vpop.permute.xlu0 %12571  ;;  %v12830_v7 = vpack.i.bf16 %v6369_v22, %v6368_v36  ;;  %v18361_v3 = vpop.f32.mrb[90].mxu1  ;;  %v8015_v16 = vadd.f32 %v18264_v39, %v18260_v61 }
 0x636   : > { %v12574_v49 = vunpack.i.h.bf16 %v12572_v43  ;;  %v12573_v47 = vunpack.i.l.bf16 %v12572_v43  ;;  %v18367_v40 = vpop.f32.mrb[91].mxu1 }
 0x637   : > { %v6372_v54 = vsel %vm4436_vm15, %v12578_v0, %v19585_v63  ;;  %12831 = vrot.lane.b32.xlu0 %v12830_v7, %s13461_s7  ;;  %v18374_v23 = vpop.f32.mrb[92].mxu1 }
 0x638   : > { %v6371_v22 = vsel %vm4436_vm15, %v12574_v49, %v12578_v0  ;;  %v6370_v18 = vsel %vm4436_vm15, %v12573_v47, %v12574_v49  ;;  %v18372_v36 = vpop.permute.xlu1 %12586  ;;  %v18378_v7 = vpop.f32.mrb[93].mxu1  ;;  %v8018_v47 = vadd.f32 %v18281_v37, %v18270_v21 }
 0x639   : > { %v19586_v50 = vunpack.i.h.bf16 %v18372_v36  ;;  %v12588_v43 = vunpack.i.l.bf16 %v18372_v36  ;;  %v12582_v33 = vpop.permute.xlu0 %12581  ;;  %v12835_v63 = vpack.i.bf16 %v6372_v54, %v6371_v22  ;;  %v12840_v57 = vpack.i.bf16 %v6370_v18, %v6367_v24  ;;  %v18384_v0 = vpop.f32.mrb[94].mxu1 }
 0x63a   : > { %v12584_v51 = vunpack.i.h.bf16 %v12582_v33  ;;  %v8053_v54 = vadd.f32 %v18299_v28, %v18292_v48  ;;  %v18395_v60 = vpop.f32.mrb[95].mxu1  ;;  %v12583_v61 = vunpack.i.l.bf16 %v12582_v33  ;;  %v18401_v24 = vadd.f32 %v8012_v52, %v18287_v29 }
 0x63b   : > { %v6375_v49 = vsel %vm4436_vm15, %v12588_v43, %v19586_v50  ;;  %12836 = vrot.lane.b32.xlu1 %v12835_v63, %s13461_s7  ;;  %12841 = vrot.lane.b32.xlu0 %v12840_v57, %s13461_s7  ;;  %v18404_v63 = vadd.f32 %v8015_v16, %v18290_v19  ;;  %v8107_v57 = vpop.f32.mrb[96].mxu1  ;;  %v18409_v28 = vadd.f32 %v8018_v47, %v18297_v2 }
 0x63c   : > { %v6374_v34 = vsel %vm4436_vm15, %v12584_v51, %v12588_v43  ;;  %v18398_v39 = vpop.permute.xlu1 %12596  ;;  %v8108_v18 = vpop.f32.mrb[97].mxu1  ;;  %v4261_v50 = vadd.f32 %v8053_v54, %v18302_v53  ;;  %v6373_v52 = vsel %vm4436_vm15, %v12583_v61, %v12584_v51  ;;  %v8059_v51 = vadd.f32 %v18321_v14, %v18317_v11 }
 0x63d   : > { %v12599_v22 = vunpack.i.h.bf16 %v18398_v39  ;;  %v12598_v21 = vunpack.i.l.bf16 %v18398_v39  ;;  %v12592_v37 = vpop.permute.xlu0 %12591  ;;  %v12845_v48 = vpack.i.bf16 %v6375_v49, %v6374_v34  ;;  %v8109_v29 = vadd.f32 %v8108_v18, %v8107_v57 }
 0x63e   : > { %v12594_v33 = vunpack.i.h.bf16 %v12592_v37  ;;  %v12593_v43 = vunpack.i.l.bf16 %v12592_v37  ;;  %v18445_v11 = vadd.f32 %v8059_v51, %v18347_v56  ;;  %v13259_v56 = vld [vmem:[%s13637_s26 + $0x20] sm:$0xff] }
 0x63f   : > { %v6378_v19 = vsel %vm4436_vm15, %v12598_v21, %v12599_v22  ;;  %12846 = vrot.lane.b32.xlu1 %v12845_v48, %s13461_s7  ;;  %v18421_v47 = vadd.f32 %v8109_v29, %v4261_v50  ;;  %v8056_v48 = vadd.f32 %v18310_v35, %v18304_v12  ;;  %v20037_v50 = vunpack.i.h.bf16 %v18198_v62 }
 0x640   : > { %v6377_v16 = vsel %vm4436_vm15, %v12594_v33, %v12598_v21  ;;  %v6376_v49 = vsel %vm4436_vm15, %v12593_v43, %v12594_v33  ;;  %v18419_v2 = vpop.permute.xlu1 %12606  ;;  %v20038_v21 = vunpack.i.h.bf16 %v18227_v20  ;;  %v8062_v20 = vadd.f32 %v18338_v32, %v18327_v9 }
 0x641   : > { %v12609_v34 = vunpack.i.h.bf16 %v18419_v2  ;;  %v12608_v53 = vunpack.i.l.bf16 %v18419_v2  ;;  %v12602_v54 = vpop.permute.xlu0 %12601  ;;  %v12855_v57 = vpack.i.bf16 %v6376_v49, %v6373_v52  ;;  %v12850_v37 = vpack.i.bf16 %v6378_v19, %v6377_v16 }
 0x642   : > { %v12604_v18 = vunpack.i.h.bf16 %v12602_v54  ;;  %v12860_v33 = vpack.i.bf16 %v20038_v21, %v20037_v50  ;;  %v18442_v35 = vadd.f32 %v8056_v48, %v18344_v26  ;;  %v8065_v49 = vadd.f32 %v18356_v59, %v18349_v15 }
 0x643   : > { %v6445_v61 = vsel %vm880_vm3, %v12608_v53, %v12609_v34  ;;  %12856 = vrot.lane.b32.xlu1 %v12855_v57, %s13461_s7  ;;  %12851 = vrot.lane.b32.xlu0 %v12850_v37, %s13461_s7  ;;  %v8068_v26 = vadd.f32 %v18367_v40, %v18361_v3  ;;  %v13260_v57 = vld [vmem:[%s13637_s26 + $0x48] sm:$0xff]  ;;  %v18462_v48 = vadd.f32 %v8062_v20, %v18354_v38 }
 0x644   : > { %v6444_v43 = vsel %vm880_vm3, %v12604_v18, %v12608_v53  ;;  %v18439_v12 = vpop.permute.xlu1 %12616  ;;  %v12603_v53 = vunpack.i.l.bf16 %v12602_v54  ;;  %v18459_v37 = vpack.i.bf16 %v13260_v57, %v13259_v56  ;;  %v8071_v9 = vadd.f32 %v18378_v7, %v18374_v23 }
 0x645   : > { %v12619_v14 = vunpack.i.h.bf16 %v18439_v12  ;;  %v19592_v29 = vunpack.i.l.bf16 %v18439_v12  ;;  %v12612_v62 = vpop.permute.xlu0 %12611  ;;  %v12865_v19 = vpack.i.bf16 %v6445_v61, %v6444_v43  ;;  %v18473_v3 = vadd.f32 %v8065_v49, %v18359_v17 }
 0x646   : > { %v12614_v52 = vunpack.i.h.bf16 %v12612_v62  ;;  %v12613_v16 = vunpack.i.l.bf16 %v12612_v62  ;;  %v18478_v23 = vadd.f32 %v8068_v26, %v18401_v24  ;;  %v18481_v7 = vadd.f32 %v8071_v9, %v18404_v63 }
 0x647   : > { %12866 = vrot.lane.b32.xlu1 %v12865_v19, %s13461_s7  ;;  %12861 = vrot.lane.b32.xlu0 %v12860_v33, %s13461_s7  ;;  %v6443_v21 = vsel %vm880_vm3, %v12603_v53, %v12604_v18  ;;  %v20039_v17 = vunpack.i.h.bf16 %v18258_v13  ;;  %v20040_v33 = vunpack.i.h.bf16 %v18284_v46  ;;  %v8110_v13 = vpop.f32.mrb[98].mxu1 }
 0x648   : > { %v6448_v32 = vsel %vm880_vm3, %v12614_v52, %v19592_v29  ;;  %v6447_v15 = vsel %vm880_vm3, %v12613_v16, %v12614_v52  ;;  %v18470_v59 = vpop.permute.xlu1 %12626  ;;  %v6446_v40 = vsel %vm880_vm3, %v12619_v14, %v12613_v16  ;;  %v8074_v52 = vadd.f32 %v18395_v60, %v18384_v0  ;;  %v8111_v26 = vpop.f32.mrb[99].mxu1 }
 0x649   : > { %v19591_v54 = vunpack.i.l.bf16 %v18470_v59  ;;  %v12622_v38 = vpop.permute.xlu0 %12621  ;;  %v12870_v51 = vpack.i.bf16 %v6448_v32, %v6447_v15  ;;  %v12885_v43 = vpack.i.bf16 %v20040_v33, %v20039_v17  ;;  %v12629_v14 = vunpack.i.h.bf16 %v18470_v59  ;;  %v8113_v56 = vpop.f32.mrb[100].mxu1 }
 0x64a   : > { %v12624_v61 = vunpack.i.h.bf16 %v12622_v38  ;;  %v12623_v50 = vunpack.i.l.bf16 %v12622_v38  ;;  %v12880_v24 = vpack.i.bf16 %v6446_v40, %v6443_v21  ;;  %v18505_v53 = vadd.f32 %v8074_v52, %v18409_v28  ;;  %v8114_v32 = vpop.f32.mrb[101].mxu1 }
 0x64b   : > { %12876 = vrot.lane.b32.xlu1 %v18459_v37, %s13461_s7  ;;  %12871 = vrot.lane.b32.xlu0 %v12870_v51, %s13461_s7  ;;  %v8112_v51 = vadd.f32 %v8111_v26, %v8110_v13 }
 0x64c   : > { %v12637_v62 = vpop.permute.xlu1 %12636  ;;  %v6451_v63 = vsel %vm880_vm3, %v12624_v61, %v19591_v54  ;;  %v6450_v18 = vsel %vm880_vm3, %v12623_v50, %v12624_v61  ;;  %v8116_v61 = vpop.f32.mrb[102].mxu1 }
 0x64d   : > { %v12638_v19 = vunpack.i.l.bf16 %v12637_v62  ;;  %v18496_v20 = vpop.permute.xlu0 %12631  ;;  %v12639_v16 = vunpack.i.h.bf16 %v12637_v62  ;;  %v12890_v9 = vpack.i.bf16 %v6451_v63, %v6450_v18  ;;  %v13261_v62 = vld [vmem:[%s13637_s26 + $0x70] sm:$0xff]  ;;  %v18527_v63 = vadd.f32 %v8112_v51, %v18442_v35  ;;  %v8117_v18 = vpop.f32.mrb[103].mxu1 }
 0x64e   : > { %v19590_v46 = vunpack.i.h.bf16 %v18496_v20  ;;  %v12633_v49 = vunpack.i.l.bf16 %v18496_v20  ;;  %v8119_v13 = vpop.f32.mrb[104].mxu1 }
 0x64f   : > { %12886 = vrot.lane.b32.xlu1 %v12885_v43, %s13461_s7  ;;  %12881 = vrot.lane.b32.xlu0 %v12880_v24, %s13461_s7  ;;  %v6449_v15 = vsel %vm880_vm3, %v12638_v19, %v12623_v50  ;;  %v6452_v21 = vsel %vm880_vm3, %v12639_v16, %v12629_v14  ;;  %v8115_v43 = vadd.f32 %v8114_v32, %v8113_v56  ;;  %v13262_v50 = vld [vmem:[%s13637_s26 + $0x98] sm:$0xff]  ;;  %v8120_v35 = vpop.f32.mrb[105].mxu1 }
 0x650   : > { %v6453_v57 = vsel %vm880_vm3, %v12629_v14, %v12633_v49  ;;  %v6454_v0 = vsel %vm880_vm3, %v12633_v49, %v19590_v46  ;;  %v18511_v60 = vpop.permute.xlu1 %12646  ;;  %v18524_v24 = vpack.i.bf16 %v13262_v50, %v13261_v62  ;;  %v12905_v16 = vpack.i.bf16 %v6452_v21, %v6449_v15 }
 0x651   : > { %v12895_v40 = vpack.i.bf16 %v6454_v0, %v6453_v57  ;;  %v19588_v38 = vunpack.i.l.bf16 %v18511_v60  ;;  %v18515_v28 = vpop.permute.xlu0 %12641  ;;  %v12649_v19 = vunpack.i.h.bf16 %v18511_v60  ;;  %v18531_v52 = vadd.f32 %v8115_v43, %v18445_v11 }
 0x652   : > { %v12644_v17 = vunpack.i.h.bf16 %v18515_v28  ;;  %v12643_v33 = vunpack.i.l.bf16 %v18515_v28  ;;  %v8118_v57 = vadd.f32 %v8117_v18, %v8116_v61  ;;  %v8121_v32 = vadd.f32 %v8120_v35, %v8119_v13 }
 0x653   : > { %12896 = vrot.lane.b32.xlu1 %v12895_v40, %s13461_s7  ;;  %12891 = vrot.lane.b32.xlu0 %v12890_v9, %s13461_s7  ;;  %v8122_v40 = vpop.f32.mrb[106].mxu1  ;;  %v20041_v11 = vunpack.i.h.bf16 %v18315_v1  ;;  %v20042_v15 = vunpack.i.h.bf16 %v18341_v6 }
 0x654   : > { %v12657_v14 = vpop.permute.xlu1 %12656  ;;  %v6457_v49 = vsel %vm880_vm3, %v12644_v17, %v19588_v38  ;;  %v6456_v26 = vsel %vm880_vm3, %v12643_v33, %v12644_v17  ;;  %v18549_v51 = vadd.f32 %v8118_v57, %v18462_v48  ;;  %v8123_v61 = vpop.f32.mrb[107].mxu1 }
 0x655   : > { %v18537_v56 = vpop.permute.xlu0 %12651  ;;  %v12910_v28 = vpack.i.bf16 %v20042_v15, %v20041_v11  ;;  %v12915_v21 = vpack.i.bf16 %v6457_v49, %v6456_v26  ;;  %v12659_v17 = vunpack.i.h.bf16 %v12657_v14  ;;  %v12658_v43 = vunpack.i.l.bf16 %v12657_v14  ;;  %v8125_v6 = vpop.f32.mrb[108].mxu1  ;;  %v13264_v15 = vld [vmem:[%s13637_s26 + $0xe8] sm:$0xff] }
 0x656   : > { %v19587_v0 = vunpack.i.h.bf16 %v18537_v56  ;;  %v12653_v9 = vunpack.i.l.bf16 %v18537_v56  ;;  %v8126_v14 = vpop.f32.mrb[109].mxu1  ;;  %v8124_v57 = vadd.f32 %v8123_v61, %v8122_v40 }
 0x657   : > { %12906 = vrot.lane.b32.xlu1 %v12905_v16, %s13461_s7  ;;  %12901 = vrot.lane.b32.xlu0 %v18524_v24, %s13461_s7  ;;  %v18562_v16 = vadd.f32 %v8121_v32, %v18473_v3  ;;  %v8127_v35 = vadd.f32 %v8126_v14, %v8125_v6  ;;  %v8128_v11 = vpop.f32.mrb[110].mxu1  ;;  %v6455_v6 = vsel %vm880_vm3, %v12658_v43, %v12643_v33  ;;  %v20043_v33 = vunpack.i.h.bf16 %v18372_v36 }
 0x658   : > { %v6459_v62 = vsel %vm880_vm3, %v12649_v19, %v12653_v9  ;;  %v18552_v1 = vpop.permute.xlu1 %12666  ;;  %v6460_v50 = vsel %vm880_vm3, %v12653_v9, %v19587_v0  ;;  %v13263_v9 = vld [vmem:[%s13637_s26 + $0xc0] sm:$0xff]  ;;  %v8129_v32 = vpop.f32.mrb[111].mxu1  ;;  %v18581_v61 = vadd.f32 %v8124_v57, %v18478_v23  ;;  %v6458_v14 = vsel %vm880_vm3, %v12659_v17, %v12649_v19 }
 0x659   : > { %v19589_v18 = vunpack.i.h.bf16 %v18552_v1  ;;  %v12668_v48 = vunpack.i.l.bf16 %v18552_v1  ;;  %v18559_v13 = vpop.permute.xlu0 %12661  ;;  %v18570_v0 = vpack.i.bf16 %v13264_v15, %v13263_v9  ;;  %v12920_v9 = vpack.i.bf16 %v6460_v50, %v6459_v62 }
 0x65a   : > { %v19593_v49 = vunpack.i.h.bf16 %v18559_v13  ;;  %v12663_v26 = vunpack.i.l.bf16 %v18559_v13  ;;  %v12935_v19 = vpack.i.bf16 %v12599_v22, %v20043_v33  ;;  %v12930_v17 = vpack.i.bf16 %v6458_v14, %v6455_v6 }
 0x65b   : > { %12916 = vrot.lane.b32.xlu1 %v12915_v21, %s13461_s7  ;;  %12911 = vrot.lane.b32.xlu0 %v12910_v28, %s13461_s7  ;;  %v6744_v3 = vsel %vm6739_vm1, %v12668_v48, %v19589_v18  ;;  %v18584_v28 = vadd.f32 %v8127_v35, %v18481_v7  ;;  %v8130_v21 = vadd.f32 %v8129_v32, %v8128_v11 }
 0x65c   : > { %v18575_v38 = vpop.permute.xlu1 %12676  ;;  %v6741_v40 = vsel %vm6739_vm1, %v12663_v26, %v19593_v49 }
 0x65d   : > { %v12672_v15 = vpop.permute.xlu0 %12671  ;;  %v8959_v18 = vpack.c.bf16 %v6744_v3, %v6741_v40  ;;  %v12678_v46 = vunpack.i.l.bf16 %v18575_v38  ;;  %v18590_v49 = vadd.f32 %v8130_v21, %v18505_v53  ;;  %v12679_v23 = vunpack.i.h.bf16 %v18575_v38 }
 0x65e   : > { %v12674_v54 = vunpack.i.h.bf16 %v12672_v15  ;;  %v12673_v29 = vunpack.i.l.bf16 %v12672_v15  ;;  %v13266_v15 = vld [vmem:[%s13637_s26 + $0x138] sm:$0xff] }
 0x65f   : > { %12926 = vrot.lane.b32.xlu1 %v18570_v0, %s13461_s7  ;;  %12921 = vrot.lane.b32.xlu0 %v12920_v9, %s13461_s7  ;;  %v13265_v9 = vld [vmem:[%s13637_s26 + $0x110] sm:$0xff] }
 0x660   : > { %v12687_v7 = vpop.permute.xlu1 %12686  ;;  %8960 = vmatprep.subr.bf16.mxu0 %v8959_v18  ;;  %v6463_v53 = vsel %vm880_vm3, %v12674_v54, %v12678_v46  ;;  %v6462_v57 = vsel %vm880_vm3, %v12673_v29, %v12674_v54 }
 0x661   : > { %v12689_v43 = vunpack.i.h.bf16 %v12687_v7  ;;  %v12688_v62 = vunpack.i.l.bf16 %v12687_v7  ;;  %v18600_v50 = vpop.permute.xlu0 %12681  ;;  %v12940_v32 = vpack.i.bf16 %v6463_v53, %v6462_v57  ;;  %v18624_v7 = vpack.i.bf16 %v13266_v15, %v13265_v9  ;;  %v6468_v9 = vld [vmem:[#allocation5 + $0x78] sm:$0xff] }
 0x662   : > { %v12684_v35 = vunpack.i.h.bf16 %v18600_v50  ;;  %v12683_v18 = vunpack.i.l.bf16 %v18600_v50  ;;  %6996 = vmatprep.mubr.f32.mxu0 %v6468_v9  ;;  %7109 = vmatprep.mubr.f32.mxu1 %v6468_v9 }
 0x663   : > { %v6740_v36 = vsel %vm6739_vm1, %v12688_v62, %v12663_v26  ;;  %v6743_v39 = vsel %vm6739_vm1, %v12689_v43, %v12668_v48  ;;  %12936 = vrot.lane.b32.xlu1 %v12935_v19, %s13461_s7  ;;  %12931 = vrot.lane.b32.xlu0 %v12930_v17, %s13461_s7 }
 0x664   : > { %v8961_v22 = vpack.c.bf16 %v6743_v39, %v6740_v36  ;;  %v6465_v11 = vsel %vm880_vm3, %v12679_v23, %v12683_v18  ;;  %v6466_v54 = vsel %vm880_vm3, %v12683_v18, %v12684_v35  ;;  %v18616_v3 = vpop.permute.xlu1 %12696 }
 0x665   : > { %v12945_v40 = vpack.i.bf16 %v6466_v54, %v6465_v11  ;;  %v12692_v26 = vpop.permute.xlu0 %12691  ;;  %v19608_v6 = vunpack.i.h.bf16 %v18616_v3  ;;  %v12698_v14 = vunpack.i.l.bf16 %v18616_v3 }
 0x666   : > { %v12694_v21 = vunpack.i.h.bf16 %v12692_v26  ;;  %v12693_v48 = vunpack.i.l.bf16 %v12692_v26  ;;  %8962 = vmatpush1.bf16.msra.mxu0 %v8961_v22 }
 0x667   : > { %12946 = vrot.lane.b32.xlu1 %v12945_v40, %s13461_s7  ;;  %12941 = vrot.lane.b32.xlu0 %v12940_v32, %s13461_s7  ;;  %v6747_v39 = vsel %vm6739_vm1, %v12698_v14, %v19608_v6 }
 0x668   : > { %v6464_v33 = vsel %vm880_vm3, %v12694_v21, %v12679_v23  ;;  %v6461_v19 = vsel %vm880_vm3, %v12693_v48, %v12673_v29  ;;  %v12707_v17 = vpop.permute.xlu1 %12706  ;;  %v20044_v23 = vunpack.i.l.bf16 %v18439_v12  ;;  %vm7246_vm3 = vcmask 457728  }
 0x669   : > { %v12955_v43 = vpack.i.bf16 %v6464_v33, %v6461_v19  ;;  %v18628_v62 = vpop.permute.xlu0 %12701  ;;  %v12709_v53 = vunpack.i.h.bf16 %v12707_v17  ;;  %v12708_v57 = vunpack.i.l.bf16 %v12707_v17  ;;  %v20045_v19 = vunpack.i.l.bf16 %v18470_v59 }
 0x66a   : > { %v19609_v18 = vunpack.i.h.bf16 %v18628_v62  ;;  %v12703_v36 = vunpack.i.l.bf16 %v18628_v62  ;;  %v12960_v22 = vpack.i.bf16 %v20044_v23, %v12609_v34  ;;  %v20046_v17 = vunpack.i.h.bf16 %v18496_v20 }
 0x66b   : > { %12956 = vrot.lane.b32.xlu1 %v12955_v43, %s13461_s7  ;;  %12951 = vrot.lane.b32.xlu0 %v18624_v7, %s13461_s7  ;;  %v6746_v29 = vsel %vm6739_vm1, %v12708_v57, %v12698_v14 }
 0x66c   : > { %v6749_v11 = vsel %vm6739_vm1, %v12709_v53, %v12703_v36  ;;  %v18644_v54 = vpop.permute.xlu1 %12716  ;;  %v6750_v32 = vsel %vm6739_vm1, %v12703_v36, %v19609_v18 }
 0x66d   : > { %v8965_v40 = vpack.c.bf16 %v6749_v11, %v6746_v29  ;;  %v18649_v26 = vpop.permute.xlu0 %12711  ;;  %v19605_v21 = vunpack.i.h.bf16 %v18644_v54  ;;  %v12718_v48 = vunpack.i.l.bf16 %v18644_v54  ;;  %v8963_v14 = vpack.c.bf16 %v6750_v32, %v6747_v39 }
 0x66e   : > { %v19604_v2 = vunpack.i.h.bf16 %v18649_v26  ;;  %v12713_v34 = vunpack.i.l.bf16 %v18649_v26  ;;  %v20048_v11 = vunpack.i.h.bf16 %v18537_v56 }
 0x66f   : > { %12966 = vrot.lane.b32.xlu1 %v18067_v30, %s13461_s7  ;;  %12961 = vrot.lane.b32.xlu0 %v12960_v22, %s13461_s7  ;;  %v6756_v12 = vsel %vm6739_vm1, %v12718_v48, %v19605_v21  ;;  %v12970_v30 = vpack.i.bf16 %v20046_v17, %v20045_v19  ;;  %v20047_v22 = vunpack.i.l.bf16 %v18511_v60  ;;  %v12990_v19 = vpack.i.bf16 %v12684_v35, %v12678_v46 }
 0x670   : > { %v18661_v15 = vpop.permute.xlu1 %12726  ;;  %8964 = vmatprep.subr.bf16.mxu0 %v8963_v14  ;;  %v6753_v33 = vsel %vm6739_vm1, %v12713_v34, %v19604_v2 }
 0x671   : > { %v12722_v43 = vpop.permute.xlu0 %12721  ;;  %8966 = vmatpush1.bf16.msra.mxu0 %v8965_v40  ;;  %v8967_v53 = vpack.c.bf16 %v6756_v12, %v6753_v33  ;;  %v19602_v39 = vunpack.i.h.bf16 %v18661_v15  ;;  %v12728_v29 = vunpack.i.l.bf16 %v18661_v15  ;;  %v12980_v32 = vpack.i.bf16 %v20048_v11, %v20047_v22  ;;  %v13271_v11 = vld [vmem:[%s13637_s26 + $0x68] sm:$0xff] }
 0x672   : > { %v12724_v57 = vunpack.i.h.bf16 %v12722_v43  ;;  %v12723_v36 = vunpack.i.l.bf16 %v12722_v43  ;;  %v13267_v43 = vld [vmem:[%s13637_s26 + $0x40] sm:$0xff] }
 0x673   : > { %12976 = vrot.lane.b32.xlu1 %v18099_v45, %s13461_s7  ;;  %12971 = vrot.lane.b32.xlu0 %v12970_v30, %s13461_s7 }
 0x674   : > { %v6755_v59 = vsel %vm6739_vm1, %v12724_v57, %v12718_v48  ;;  %v6752_v20 = vsel %vm6739_vm1, %v12723_v36, %v12713_v34  ;;  %v12737_v23 = vpop.permute.xlu1 %12736  ;;  %8968 = vmatprep.subr.bf16.mxu0 %v8967_v53  ;;  %v6759_v34 = vsel %vm6739_vm1, %v12728_v29, %v19602_v39  ;;  %v13268_v53 = vld [vmem:[%s13637_s26 + $0x38] sm:$0xff] }
 0x675   : > { %v8969_v40 = vpack.c.bf16 %v6755_v59, %v6752_v20  ;;  %v18681_v14 = vpop.permute.xlu0 %12731  ;;  %v12739_v12 = vunpack.i.h.bf16 %v12737_v23  ;;  %v12738_v9 = vunpack.i.l.bf16 %v12737_v23  ;;  %v13005_v57 = vpack.i.bf16 %v13267_v43, %v13268_v53  ;;  %v13269_v36 = vld [vmem:[%s13637_s26 + $0x18] sm:$0xff]  ;;  %v13276_v53 = vld [vmem:[%s13637_s26 + $0x80] sm:$0xff] }
 0x676   : > { %v19603_v45 = vunpack.i.h.bf16 %v18681_v14  ;;  %v12733_v48 = vunpack.i.l.bf16 %v18681_v14  ;;  %v13275_v43 = vld [vmem:[%s13637_s26 + $0x58] sm:$0xff] }
 0x677   : > { %12986 = vrot.lane.b32.xlu1 %v18143_v58, %s13461_s7  ;;  %12981 = vrot.lane.b32.xlu0 %v12980_v32, %s13461_s7  ;;  %v6758_v60 = vsel %vm6739_vm1, %v12738_v9, %v12728_v29  ;;  %v13270_v29 = vld [vmem:[%s13637_s26 + $0x10] sm:$0xff]  ;;  %v13272_v32 = vld [vmem:[%s13637_s26 + $0x60] sm:$0xff] }
 0x678   : > { %v6761_v56 = vsel %vm6739_vm1, %v12739_v12, %v12733_v48  ;;  %8970 = vmatpush1.bf16.msra.mxu0 %v8969_v40  ;;  %v6762_v33 = vsel %vm6739_vm1, %v12733_v48, %v19603_v45  ;;  %v13000_v38 = vpack.i.bf16 %v13269_v36, %v13270_v29  ;;  %v13015_v40 = vpack.i.bf16 %v13271_v11, %v13272_v32  ;;  %v13273_v12 = vld [vmem:[%s13637_s26 + $0x8] sm:$0xff]  ;;  %v13274_v9 = vld [vmem:[%s13637_s26 + $0x30] sm:$0xff] }
 0x679   : > { %v8973_v17 = vpack.c.bf16 %v6761_v56, %v6758_v60  ;;  %v18700_v30 = vpop.permute.xlu0 %12741  ;;  %v8971_v58 = vpack.c.bf16 %v6762_v33, %v6759_v34  ;;  %v13010_v48 = vpack.i.bf16 %v13274_v9, %v13273_v12  ;;  %v13277_v36 = vld [vmem:[%s13637_s26 + $0x90] sm:$0xff]  ;;  %v13278_v29 = vld [vmem:[%s13637_s26 + $0x88] sm:$0xff]  ;;  %v13279_v12 = vld [vmem:[%s13637_s26 + $0xe0] sm:$0xff] }
 0x67a   : > { %v19601_v50 = vunpack.i.h.bf16 %v18700_v30  ;;  %v12743_v46 = vunpack.i.l.bf16 %v18700_v30  ;;  %v13280_v9 = vld [vmem:[%s13637_s26 + $0xd8] sm:$0xff] }
 0x67b   : > { %12996 = vrot.lane.b32.xlu1 %v18190_v42, %s13461_s7  ;;  %12991 = vrot.lane.b32.xlu0 %v12990_v19, %s13461_s7 }
 0x67c   : > { %8972 = vmatprep.subr.bf16.mxu0 %v8971_v58  ;;  %v6765_v56 = vsel %vm6739_vm1, %v12743_v46, %v19601_v50 }
 0x67d   : > { %v18711_v35 = vpop.permute.xlu1 %12746  ;;  %v12752_v42 = vpop.permute.xlu0 %12751  ;;  %8974 = vmatpush1.bf16.msra.mxu0 %v8973_v17 }
 0x67e   : > { %v19600_v59 = vunpack.i.h.bf16 %v18711_v35  ;;  %v12748_v20 = vunpack.i.l.bf16 %v18711_v35  ;;  %v12754_v23 = vunpack.i.h.bf16 %v12752_v42  ;;  %v12753_v22 = vunpack.i.l.bf16 %v12752_v42 }
 0x67f   : > { %13006 = vrot.lane.b32.xlu1 %v13005_v57, %s13462_s8  ;;  %13001 = vrot.lane.b32.xlu0 %v13000_v38, %s13462_s8  ;;  %v13025_v57 = vpack.i.bf16 %v13276_v53, %v13275_v43  ;;  %v13020_v38 = vpack.i.bf16 %v13277_v36, %v13278_v29  ;;  %v13283_v29 = vld [vmem:[%s13637_s26 + $0x108] sm:$0xff] }
 0x680   : > { %v6767_v34 = vsel %vm6739_vm1, %v12754_v23, %v12748_v20  ;;  %v6764_v60 = vsel %vm6739_vm1, %v12753_v22, %v12743_v46  ;;  %v6768_v33 = vsel %vm6739_vm1, %v12748_v20, %v19600_v59 }
 0x681   : > { %v8977_v19 = vpack.c.bf16 %v6767_v34, %v6764_v60  ;;  %v18729_v17 = vpop.permute.xlu1 %12756  ;;  %v8975_v58 = vpack.c.bf16 %v6768_v33, %v6765_v56  ;;  %v13281_v34 = vld [vmem:[%s13637_s26 + $0xb8] sm:$0xff]  ;;  %v13282_v60 = vld [vmem:[%s13637_s26 + $0xb0] sm:$0xff] }
 0x682   : > { %v19599_v46 = vunpack.i.h.bf16 %v18729_v17  ;;  %v12758_v42 = vunpack.i.l.bf16 %v18729_v17  ;;  %v13030_v56 = vpack.i.bf16 %v13281_v34, %v13282_v60 }
 0x683   : > { %13016 = vrot.lane.b32.xlu1 %v13015_v40, %s13462_s8  ;;  %13011 = vrot.lane.b32.xlu0 %v13010_v48, %s13462_s8  ;;  %v13035_v48 = vpack.i.bf16 %v13279_v12, %v13280_v9 }
 0x684   : > { %8976 = vmatprep.subr.bf16.mxu0 %v8975_v58  ;;  %v6771_v58 = vsel %vm6739_vm1, %v12758_v42, %v19599_v46  ;;  %v7565_v46 = vld [vmem:[%s19377_s2 + $0x18] sm:$0xff] }
 0x685   : > { %8978 = vmatpush1.bf16.msra.mxu0 %v8977_v19  ;;  %v12767_v20 = vpop.permute.xlu1 %12766  ;;  %v18739_v23 = vpop.permute.xlu0 %12761 }
 0x686   : > { %v12769_v22 = vunpack.i.h.bf16 %v12767_v20  ;;  %v12768_v11 = vunpack.i.l.bf16 %v12767_v20  ;;  %v19594_v32 = vunpack.i.h.bf16 %v18739_v23  ;;  %v12763_v40 = vunpack.i.l.bf16 %v18739_v23 }
 0x687   : > { %13026 = vrot.lane.b32.xlu1 %v13025_v57, %s13462_s8  ;;  %13021 = vrot.lane.b32.xlu0 %v13020_v38, %s13462_s8  ;;  %v13284_v38 = vld [vmem:[%s13637_s26 + $0x100] sm:$0xff] }
 0x688   : > { %v6770_v33 = vsel %vm6739_vm1, %v12768_v11, %v12758_v42  ;;  %v6773_v19 = vsel %vm6739_vm1, %v12769_v22, %v12763_v40  ;;  %v6774_v43 = vsel %vm6739_vm1, %v12763_v40, %v19594_v32  ;;  %v13045_v20 = vpack.i.bf16 %v13283_v29, %v13284_v38  ;;  %v13285_v22 = vld [vmem:[%s13637_s26 + $0xa8] sm:$0xff]  ;;  %v13286_v11 = vld [vmem:[%s13637_s26 + $0xd0] sm:$0xff] }
 0x689   : > { %v8981_v53 = vpack.c.bf16 %v6773_v19, %v6770_v33  ;;  %v18757_v57 = vpop.permute.xlu0 %12771  ;;  %v8979_v36 = vpack.c.bf16 %v6774_v43, %v6771_v58  ;;  %v13040_v42 = vpack.i.bf16 %v13286_v11, %v13285_v22  ;;  %v13287_v19 = vld [vmem:[%s13637_s26 + $0xf8] sm:$0xff]  ;;  %v13288_v58 = vld [vmem:[%s13637_s26 + $0x120] sm:$0xff]  ;;  %v13289_v29 = vld [vmem:[%s13637_s26 + $0x130] sm:$0xff] }
 0x68a   : > { %v19598_v12 = vunpack.i.h.bf16 %v18757_v57  ;;  %v12773_v40 = vunpack.i.l.bf16 %v18757_v57  ;;  %v13055_v43 = vpack.i.bf16 %v13288_v58, %v13287_v19  ;;  %v13290_v38 = vld [vmem:[%s13637_s26 + $0x128] sm:$0xff] }
 0x68b   : > { %13036 = vrot.lane.b32.xlu1 %v13035_v48, %s13462_s8  ;;  %13031 = vrot.lane.b32.xlu0 %v13030_v56, %s13462_s8 }
 0x68c   : > { %8980 = vmatprep.subr.bf16.mxu0 %v8979_v36  ;;  %v13050_v36 = vpack.i.bf16 %v13289_v29, %v13290_v38  ;;  %v6777_v11 = vsel %vm6739_vm1, %v12773_v40, %v19598_v12  ;;  %v13463_v12 = vmov 0  }
 0x68d   : > { %8982 = vmatpush1.bf16.msra.mxu0 %v8981_v53  ;;  %v18767_v9 = vpop.permute.xlu1 %12776  ;;  %v12782_v48 = vpop.permute.xlu0 %12781  ;;  %13080 = vset.pattern.permute.xlu0 %v13463_v12 }
 0x68e   : > { %v19597_v34 = vunpack.i.h.bf16 %v18767_v9  ;;  %v12778_v60 = vunpack.i.l.bf16 %v18767_v9  ;;  %v12784_v56 = vunpack.i.h.bf16 %v12782_v48  ;;  %v12783_v33 = vunpack.i.l.bf16 %v12782_v48  ;;  %13081 = vset.pattern.permute.xlu1 %v13463_v12 }
 0x68f   : > { %13046 = vrot.lane.b32.xlu1 %v13045_v20, %s13462_s8  ;;  %13041 = vrot.lane.b32.xlu0 %v13040_v42, %s13462_s8 }
 0x690   : > { %v6779_v53 = vsel %vm6739_vm1, %v12784_v56, %v12778_v60  ;;  %v6776_v22 = vsel %vm6739_vm1, %v12783_v33, %v12773_v40  ;;  %v6780_v20 = vsel %vm6739_vm1, %v12778_v60, %v19597_v34 }
 0x691   : > { %v8985_v48 = vpack.c.bf16 %v6779_v53, %v6776_v22  ;;  %v18785_v42 = vpop.permute.xlu1 %12786  ;;  %v8983_v32 = vpack.c.bf16 %v6780_v20, %v6777_v11 }
 0x692   : > { %v19596_v56 = vunpack.i.h.bf16 %v18785_v42  ;;  %v12788_v33 = vunpack.i.l.bf16 %v18785_v42 }
 0x693   : > { %13056 = vrot.lane.b32.xlu1 %v13055_v43, %s13462_s8  ;;  %13051 = vrot.lane.b32.xlu0 %v13050_v36, %s13462_s8 }
 0x694   : > { %8984 = vmatprep.subr.bf16.mxu0 %v8983_v32  ;;  %v6783_v36 = vsel %vm6739_vm1, %v12788_v33, %v19596_v56 }
 0x695   : > { %8986 = vmatpush1.bf16.msra.mxu0 %v8985_v48  ;;  %v12797_v19 = vpop.permute.xlu1 %12796  ;;  %v18791_v40 = vpop.permute.xlu0 %12791 }
 0x696   : > { %v12799_v58 = vunpack.i.h.bf16 %v12797_v19  ;;  %v12798_v29 = vunpack.i.l.bf16 %v12797_v19  ;;  %v19595_v60 = vunpack.i.h.bf16 %v18791_v40  ;;  %v12793_v38 = vunpack.i.l.bf16 %v18791_v40 }
 0x697   : > { %13066 = vrot.lane.b32.xlu1 %v18524_v24, %s13462_s8  ;;  %13061 = vrot.lane.b32.xlu0 %v18459_v37, %s13462_s8 }
 0x698   : > { %v6782_v43 = vsel %vm6739_vm1, %v12798_v29, %v12788_v33  ;;  %v6785_v32 = vsel %vm6739_vm1, %v12799_v58, %v12793_v38  ;;  %v6786_v53 = vsel %vm6739_vm1, %v12793_v38, %v19595_v60 }
 0x699   : > { %v8989_v22 = vpack.c.bf16 %v6785_v32, %v6782_v43  ;;  %v18807_v11 = vpop.permute.xlu0 %12801  ;;  %v8987_v20 = vpack.c.bf16 %v6786_v53, %v6783_v36 }
 0x69a   : > { %v12804_v37 = vunpack.i.h.bf16 %v18807_v11  ;;  %v12803_v24 = vunpack.i.l.bf16 %v18807_v11 }
 0x69b   : > { %13076 = vrot.lane.b32.xlu1 %v18624_v7, %s13462_s8  ;;  %13071 = vrot.lane.b32.xlu0 %v18570_v0, %s13462_s8 }
 0x69c   : > { %8988 = vmatprep.subr.bf16.mxu0 %v8987_v20  ;;  %v6789_v0 = vsel %vm6739_vm1, %v12803_v24, %v12804_v37 }
 0x69d   : > { %8990 = vmatpush1.bf16.msra.mxu0 %v8989_v22  ;;  %v18815_v48 = vpop.permute.xlu1 %12806  ;;  %v12812_v33 = vpop.permute.xlu0 %12811 }
 0x69e   : > { %v12809_v19 = vunpack.i.h.bf16 %v18815_v48  ;;  %v12808_v58 = vunpack.i.l.bf16 %v18815_v48  ;;  %v12814_v29 = vunpack.i.h.bf16 %v12812_v33  ;;  %v12813_v38 = vunpack.i.l.bf16 %v12812_v33 }
 0x6a0   : > { %v6791_v7 = vsel %vm6739_vm1, %v12814_v29, %v12808_v58  ;;  %v6788_v43 = vsel %vm6739_vm1, %v12813_v38, %v12803_v24  ;;  %v6792_v32 = vsel %vm6739_vm1, %v12808_v58, %v12809_v19 }
 0x6a1   : > { %v8993_v36 = vpack.c.bf16 %v6791_v7, %v6788_v43  ;;  %v18827_v53 = vpop.permute.xlu1 %12816  ;;  %v8991_v22 = vpack.c.bf16 %v6792_v32, %v6789_v0 }
 0x6a2   : > { %v12819_v20 = vunpack.i.h.bf16 %v18827_v53  ;;  %v12818_v33 = vunpack.i.l.bf16 %v18827_v53 }
 0x6a3   : > { %8992 = vmatprep.subr.bf16.mxu0 %v8991_v22 }
 0x6a4   : > { %8994 = vmatpush1.bf16.msra.mxu0 %v8993_v36  ;;  %v6795_v43 = vsel %vm6739_vm1, %v12818_v33, %v12819_v20 }
 0x6a5   : > { %v12827_v29 = vpop.permute.xlu1 %12826  ;;  %v18831_v38 = vpop.permute.xlu0 %12821 }
 0x6a6   : > { %v12829_v60 = vunpack.i.h.bf16 %v12827_v29  ;;  %v12828_v56 = vunpack.i.l.bf16 %v12827_v29  ;;  %v12824_v24 = vunpack.i.h.bf16 %v18831_v38  ;;  %v12823_v34 = vunpack.i.l.bf16 %v18831_v38  ;;  %v7562_v29 = vld [vmem:[%s19377_s2] sm:$0xff] }
 0x6a7   : > { %7572 = vperm.xlu0 %13080, %v7562_v29  }
 0x6a8   : > { %v6794_v58 = vsel %vm6739_vm1, %v12828_v56, %v12818_v33  ;;  %v6797_v7 = vsel %vm6739_vm1, %v12829_v60, %v12823_v34  ;;  %v6798_v0 = vsel %vm6739_vm1, %v12823_v34, %v12824_v24  ;;  %v7563_v56 = vld [vmem:[%s19377_s2 + $0x8] sm:$0xff] }
 0x6a9   : > { %v8997_v32 = vpack.c.bf16 %v6797_v7, %v6794_v58  ;;  %v18843_v36 = vpop.permute.xlu0 %12831  ;;  %v8995_v22 = vpack.c.bf16 %v6798_v0, %v6795_v43  ;;  %7577 = vperm.xlu1 %13081, %v7563_v56  }
 0x6aa   : > { %v19607_v60 = vunpack.i.h.bf16 %v18843_v36  ;;  %v12833_v33 = vunpack.i.l.bf16 %v18843_v36 }
 0x6ab   : > { %8996 = vmatprep.subr.bf16.mxu0 %v8995_v22  ;;  %7587 = vperm.xlu0 %13080, %v7565_v46  }
 0x6ac   : > { %8998 = vmatpush1.bf16.msra.mxu0 %v8997_v32  ;;  %v7564_v32 = vld [vmem:[%s19377_s2 + $0x10] sm:$0xff]  ;;  %v6801_v12 = vsel %vm6739_vm1, %v12833_v33, %v19607_v60 }
 0x6ad   : > { %v18853_v34 = vpop.permute.xlu1 %12836  ;;  %v12842_v58 = vpop.permute.xlu0 %12841  ;;  %7582 = vperm.xlu1 %13081, %v7564_v32  }
 0x6ae   : > { %v19606_v7 = vunpack.i.h.bf16 %v18853_v34  ;;  %v12838_v43 = vunpack.i.l.bf16 %v18853_v34  ;;  %v12844_v0 = vunpack.i.h.bf16 %v12842_v58  ;;  %v12843_v22 = vunpack.i.l.bf16 %v12842_v58 }
 0x6b0   : > { %v6803_v59 = vsel %vm6739_vm1, %v12844_v0, %v12838_v43  ;;  %v6800_v29 = vsel %vm6739_vm1, %v12843_v22, %v12833_v33  ;;  %v6804_v56 = vsel %vm6739_vm1, %v12838_v43, %v19606_v7  ;;  %v7567_v0 = vld [vmem:[%s19377_s2 + $0x28] sm:$0xff]  ;;  %v7566_v22 = vld [vmem:[%s19377_s2 + $0x20] sm:$0xff] }
 0x6b1   : > { %v9001_v58 = vpack.c.bf16 %v6803_v59, %v6800_v29  ;;  %v18871_v50 = vpop.permute.xlu1 %12846  ;;  %v8999_v39 = vpack.c.bf16 %v6804_v56, %v6801_v12  ;;  %7597 = vperm.xlu0 %13080, %v7567_v0   ;;  %7592 = vperm.xlu1 %13081, %v7566_v22   ;;  %v7568_v56 = vld [vmem:[%s19377_s2 + $0x30] sm:$0xff] }
 0x6b2   : > { %v12849_v33 = vunpack.i.h.bf16 %v18871_v50  ;;  %v12848_v45 = vunpack.i.l.bf16 %v18871_v50 }
 0x6b3   : > { %9000 = vmatprep.subr.bf16.mxu0 %v8999_v39  ;;  %v7569_v39 = vld [vmem:[%s19377_s2 + $0x38] sm:$0xff] }
 0x6b4   : > { %9002 = vmatpush1.bf16.msra.mxu0 %v9001_v58  ;;  %v6807_v0 = vsel %vm6739_vm1, %v12848_v45, %v12849_v33 }
 0x6b5   : > { %v12857_v59 = vpop.permute.xlu1 %12856  ;;  %v18881_v43 = vpop.permute.xlu0 %12851  ;;  %7607 = vperm.xlu0 %13080, %v7569_v39   ;;  %7602 = vperm.xlu1 %13081, %v7568_v56  }
 0x6b6   : > { %v12859_v46 = vunpack.i.h.bf16 %v12857_v59  ;;  %v12858_v32 = vunpack.i.l.bf16 %v12857_v59  ;;  %v12854_v29 = vunpack.i.h.bf16 %v18881_v43  ;;  %v12853_v12 = vunpack.i.l.bf16 %v18881_v43 }
 0x6b8   : > { %v6806_v58 = vsel %vm6739_vm1, %v12858_v32, %v12848_v45  ;;  %v6809_v2 = vsel %vm6739_vm1, %v12859_v46, %v12853_v12  ;;  %v6810_v22 = vsel %vm6739_vm1, %v12853_v12, %v12854_v29 }
 0x6b9   : > { %v9005_v59 = vpack.c.bf16 %v6809_v2, %v6806_v58  ;;  %v18899_v21 = vpop.permute.xlu1 %12866  ;;  %v12862_v7 = vpop.permute.xlu0 %12861  ;;  %v9003_v60 = vpack.c.bf16 %v6810_v22, %v6807_v0  ;;  %v20049_v22 = vunpack.i.h.bf16 %v18552_v1 }
 0x6ba   : > { %v12864_v6 = vunpack.i.h.bf16 %v12862_v7  ;;  %v12863_v18 = vunpack.i.l.bf16 %v12862_v7  ;;  %v12869_v46 = vunpack.i.h.bf16 %v18899_v21  ;;  %v12868_v32 = vunpack.i.l.bf16 %v18899_v21 }
 0x6bb   : > { %9004 = vmatprep.subr.bf16.mxu0 %v9003_v60  ;;  %v20061_v21 = vunpack.i.h.bf16 %v18729_v17 }
 0x6bc   : > { %9006 = vmatpush1.bf16.msra.mxu0 %v9005_v59  ;;  %v6790_v45 = vsel %vm6739_vm1, %v12804_v37, %v12863_v18  ;;  %v6793_v2 = vsel %vm6739_vm1, %v12809_v19, %v12864_v6  ;;  %v20050_v18 = vunpack.i.h.bf16 %v18559_v13  ;;  %v6813_v6 = vsel %vm6739_vm1, %v12868_v32, %v12869_v46 }
 0x6bd   : > { %v12877_v12 = vpop.permute.xlu1 %12876  ;;  %v18909_v58 = vpop.permute.xlu0 %12871  ;;  %v9023_v39 = vpack.c.bf16 %v6793_v2, %v6790_v45 }
 0x6be   : > { %v12879_v7 = vunpack.i.h.bf16 %v12877_v12  ;;  %v12878_v56 = vunpack.i.l.bf16 %v12877_v12  ;;  %v12874_v60 = vunpack.i.h.bf16 %v18909_v58  ;;  %v12873_v0 = vunpack.i.l.bf16 %v18909_v58 }
 0x6bf   : > { %9024 = vmatprep.subr.bf16.mxu1 %v9023_v39 }
 0x6c0   : > { %v6745_v11 = vsel %vm6739_vm1, %v20049_v22, %v12879_v7  ;;  %v6742_v37 = vsel %vm6739_vm1, %v20050_v18, %v12878_v56  ;;  %v6816_v48 = vsel %vm6739_vm1, %v12873_v0, %v12874_v60 }
 0x6c1   : > { %v9025_v19 = vpack.c.bf16 %v6745_v11, %v6742_v37  ;;  %v12887_v59 = vpop.permute.xlu1 %12886  ;;  %v12882_v45 = vpop.permute.xlu0 %12881  ;;  %v9007_v2 = vpack.c.bf16 %v6816_v48, %v6813_v6 }
 0x6c2   : > { %v12889_v12 = vunpack.i.h.bf16 %v12887_v59  ;;  %v12888_v1 = vunpack.i.l.bf16 %v12887_v59  ;;  %v12884_v39 = vunpack.i.h.bf16 %v12882_v45  ;;  %v12883_v7 = vunpack.i.l.bf16 %v12882_v45 }
 0x6c3   : > { %9008 = vmatprep.subr.bf16.mxu0 %v9007_v2  ;;  %9026 = vmatpush3.bf16.msra.mxu1 %v9025_v19 }
 0x6c4   : > { %v6812_v13 = vsel %vm6739_vm1, %v12883_v7, %v12868_v32  ;;  %v6815_v56 = vsel %vm6739_vm1, %v12884_v39, %v12873_v0  ;;  %v6796_v22 = vsel %vm6739_vm1, %v12819_v20, %v12888_v1  ;;  %v6799_v11 = vsel %vm6739_vm1, %v12824_v24, %v12889_v12 }
 0x6c5   : > { %v9009_v18 = vpack.c.bf16 %v6815_v56, %v6812_v13  ;;  %v18933_v37 = vpop.permute.xlu1 %12896  ;;  %v18935_v6 = vpop.permute.xlu0 %12891  ;;  %v9027_v48 = vpack.c.bf16 %v6799_v11, %v6796_v22  ;;  %v20051_v56 = vunpack.i.h.bf16 %v18628_v62  ;;  %v20052_v11 = vunpack.i.h.bf16 %v18616_v3 }
 0x6c6   : > { %v19610_v19 = vunpack.i.h.bf16 %v18933_v37  ;;  %v12898_v32 = vunpack.i.l.bf16 %v18933_v37  ;;  %v12894_v0 = vunpack.i.h.bf16 %v18935_v6  ;;  %v12893_v53 = vunpack.i.l.bf16 %v18935_v6 }
 0x6c7   : > { %9010 = vmatpush1.bf16.msra.mxu0 %v9009_v18  ;;  %9028 = vmatprep.subr.bf16.mxu1 %v9027_v48  ;;  %v20053_v62 = vunpack.i.h.bf16 %v18843_v36  ;;  %v20054_v3 = vunpack.i.h.bf16 %v18853_v34 }
 0x6c8   : > { %v6819_v20 = vsel %vm6739_vm1, %v12893_v53, %v12894_v0  ;;  %v6822_v38 = vsel %vm6739_vm1, %v12898_v32, %v19610_v19 }
 0x6c9   : > { %v12907_v24 = vpop.permute.xlu1 %12906  ;;  %v12902_v59 = vpop.permute.xlu0 %12901  ;;  %v9011_v45 = vpack.c.bf16 %v6822_v38, %v6819_v20 }
 0x6ca   : > { %v12909_v2 = vunpack.i.h.bf16 %v12907_v24  ;;  %v12908_v12 = vunpack.i.l.bf16 %v12907_v24  ;;  %v12904_v1 = vunpack.i.h.bf16 %v12902_v59  ;;  %v12903_v39 = vunpack.i.l.bf16 %v12902_v59 }
 0x6cb   : > { %9012 = vmatprep.subr.bf16.mxu0 %v9011_v45 }
 0x6cc   : > { %v6818_v7 = vsel %vm6739_vm1, %v12908_v12, %v12893_v53  ;;  %v6821_v13 = vsel %vm6739_vm1, %v12909_v2, %v12898_v32  ;;  %v6751_v22 = vsel %vm6739_vm1, %v20051_v56, %v12904_v1  ;;  %v6748_v18 = vsel %vm6739_vm1, %v20052_v11, %v12903_v39 }
 0x6cd   : > { %v9013_v48 = vpack.c.bf16 %v6821_v13, %v6818_v7  ;;  %v9029_v19 = vpack.c.bf16 %v6751_v22, %v6748_v18  ;;  %v18955_v20 = vpop.permute.xlu1 %12916  ;;  %v12912_v38 = vpop.permute.xlu0 %12911  ;;  %v20055_v22 = vunpack.i.h.bf16 %v18644_v54  ;;  %v20056_v11 = vunpack.i.h.bf16 %v18649_v26 }
 0x6ce   : > { %v12914_v24 = vunpack.i.h.bf16 %v12912_v38  ;;  %v12913_v59 = vunpack.i.l.bf16 %v12912_v38  ;;  %v12919_v53 = vunpack.i.h.bf16 %v18955_v20  ;;  %v12918_v32 = vunpack.i.l.bf16 %v18955_v20  ;;  %v19077_v20 = vld [vmem:[#allocation5 + $0x208] sm:$0xff] }
 0x6cf   : > { %9014 = vmatpush1.bf16.msra.mxu0 %v9013_v48  ;;  %9030 = vmatpush3.bf16.msra.mxu1 %v9029_v19 }
 0x6d0   : > { %v6802_v45 = vsel %vm6739_vm1, %v20053_v62, %v12913_v59  ;;  %v6805_v2 = vsel %vm6739_vm1, %v20054_v3, %v12914_v24  ;;  %v6825_v18 = vsel %vm6739_vm1, %v12918_v32, %v12919_v53 }
 0x6d1   : > { %v12927_v12 = vpop.permute.xlu1 %12926  ;;  %v18965_v1 = vpop.permute.xlu0 %12921  ;;  %v9031_v39 = vpack.c.bf16 %v6805_v2, %v6802_v45 }
 0x6d2   : > { %v12929_v7 = vunpack.i.h.bf16 %v12927_v12  ;;  %v12928_v13 = vunpack.i.l.bf16 %v12927_v12  ;;  %v12924_v19 = vunpack.i.h.bf16 %v18965_v1  ;;  %v12923_v56 = vunpack.i.l.bf16 %v18965_v1 }
 0x6d3   : > { %9032 = vmatprep.subr.bf16.mxu1 %v9031_v39 }
 0x6d4   : > { %v6757_v36 = vsel %vm6739_vm1, %v20055_v22, %v12929_v7  ;;  %v6754_v34 = vsel %vm6739_vm1, %v20056_v11, %v12928_v13  ;;  %v6828_v48 = vsel %vm6739_vm1, %v12923_v56, %v12924_v19 }
 0x6d5   : > { %v9033_v38 = vpack.c.bf16 %v6757_v36, %v6754_v34  ;;  %v12937_v24 = vpop.permute.xlu1 %12936  ;;  %v12932_v59 = vpop.permute.xlu0 %12931  ;;  %v9015_v62 = vpack.c.bf16 %v6828_v48, %v6825_v18 }
 0x6d6   : > { %v12939_v45 = vunpack.i.h.bf16 %v12937_v24  ;;  %v12938_v54 = vunpack.i.l.bf16 %v12937_v24  ;;  %v12934_v3 = vunpack.i.h.bf16 %v12932_v59  ;;  %v12933_v2 = vunpack.i.l.bf16 %v12932_v59 }
 0x6d7   : > { %9016 = vmatprep.subr.bf16.mxu0 %v9015_v62  ;;  %9034 = vmatpush3.bf16.msra.mxu1 %v9033_v38 }
 0x6d8   : > { %v6824_v26 = vsel %vm6739_vm1, %v12933_v2, %v12918_v32  ;;  %v6827_v12 = vsel %vm6739_vm1, %v12934_v3, %v12923_v56  ;;  %v6808_v39 = vsel %vm6739_vm1, %v12849_v33, %v12938_v54  ;;  %v6811_v7 = vsel %vm6739_vm1, %v12854_v29, %v12939_v45 }
 0x6d9   : > { %v9017_v13 = vpack.c.bf16 %v6827_v12, %v6824_v26  ;;  %v18989_v22 = vpop.permute.xlu1 %12946  ;;  %v18991_v36 = vpop.permute.xlu0 %12941  ;;  %v9035_v11 = vpack.c.bf16 %v6811_v7, %v6808_v39  ;;  %v20057_v7 = vunpack.i.h.bf16 %v18681_v14 }
 0x6da   : > { %v19611_v34 = vunpack.i.h.bf16 %v18989_v22  ;;  %v12948_v32 = vunpack.i.l.bf16 %v18989_v22  ;;  %v12944_v56 = vunpack.i.h.bf16 %v18991_v36  ;;  %v12943_v50 = vunpack.i.l.bf16 %v18991_v36  ;;  %v8163_v18 = vpop.f32.mrb[112].mxu1 }
 0x6db   : > { %v8164_v33 = vpop.f32.mrb[113].mxu1  ;;  %9018 = vmatpush1.bf16.msra.mxu0 %v9017_v13  ;;  %9036 = vmatprep.subr.bf16.mxu1 %v9035_v11 }
 0x6dc   : > { %v8165_v43 = vadd.f32 %v8164_v33, %v8163_v18  ;;  %v6831_v29 = vsel %vm6739_vm1, %v12943_v50, %v12944_v56  ;;  %v6834_v48 = vsel %vm6739_vm1, %v12948_v32, %v19611_v34  ;;  %v20058_v33 = vunpack.i.h.bf16 %v18661_v15 }
 0x6dd   : > { %v12957_v38 = vpop.permute.xlu1 %12956  ;;  %v12952_v24 = vpop.permute.xlu0 %12951  ;;  %v9019_v59 = vpack.c.bf16 %v6834_v48, %v6831_v29 }
 0x6de   : > { %v19004_v62 = vadd.f32 %v8165_v43, %v18421_v47  ;;  %v12959_v45 = vunpack.i.h.bf16 %v12957_v38  ;;  %v12958_v54 = vunpack.i.l.bf16 %v12957_v38  ;;  %v12954_v3 = vunpack.i.h.bf16 %v12952_v24 }
 0x6df   : > { %v12953_v2 = vunpack.i.l.bf16 %v12952_v24  ;;  %9020 = vmatprep.subr.bf16.mxu0 %v9019_v59  ;;  %v8166_v26 = vpop.f32.mrb[114].mxu1 }
 0x6e0   : > { %v6830_v12 = vsel %vm6739_vm1, %v12958_v54, %v12943_v50  ;;  %v6833_v39 = vsel %vm6739_vm1, %v12959_v45, %v12948_v32  ;;  %v6763_v13 = vsel %vm6739_vm1, %v20057_v7, %v12954_v3  ;;  %v8167_v11 = vpop.f32.mrb[115].mxu1  ;;  %v19014_v32 = vld [vmem:[#allocation5 + $0x70] sm:$0xff]  ;;  %v20059_v54 = vunpack.i.h.bf16 %v18700_v30 }
 0x6e1   : > { %v9021_v18 = vpack.c.bf16 %v6833_v39, %v6830_v12  ;;  %v6760_v47 = vsel %vm6739_vm1, %v20058_v33, %v12953_v2  ;;  %v12967_v43 = vpop.permute.xlu1 %12966  ;;  %v12962_v29 = vpop.permute.xlu0 %12961  ;;  %v8168_v48 = vadd.f32 %v8167_v11, %v8166_v26  ;;  %v20060_v3 = vunpack.i.h.bf16 %v18711_v35  ;;  %v19028_v12 = vld [vmem:[#allocation5 + $0x100] sm:$0xff] }
 0x6e2   : > { %v9037_v38 = vpack.c.bf16 %v6763_v13, %v6760_v47  ;;  %v12969_v24 = vunpack.i.h.bf16 %v12967_v43  ;;  %v12968_v59 = vunpack.i.l.bf16 %v12967_v43  ;;  %v12964_v34 = vunpack.i.h.bf16 %v12962_v29 }
 0x6e3   : > { %v12963_v50 = vunpack.i.l.bf16 %v12962_v29  ;;  %9022 = vmatpush1.bf16.msra.mxu0 %v9021_v18  ;;  %v19017_v14 = vadd.f32 %v8168_v48, %v18527_v63  ;;  %v8169_v45 = vpop.f32.mrb[116].mxu1  ;;  %v20062_v29 = vunpack.i.h.bf16 %v18739_v23 }
 0x6e4   : > { %v6766_v15 = vsel %vm6739_vm1, %v20059_v54, %v12968_v59  ;;  %v6769_v2 = vsel %vm6739_vm1, %v20060_v3, %v12969_v24  ;;  %9038 = vmatpush3.bf16.msra.mxu1 %v9037_v38  ;;  %v6817_v26 = vsel %vm6739_vm1, %v12874_v60, %v12964_v34  ;;  %v8170_v39 = vpop.f32.mrb[117].mxu1  ;;  %v19035_v60 = vld [vmem:[#allocation5 + $0xf8] sm:$0xff]  ;;  %v20063_v24 = vunpack.i.h.bf16 %v18933_v37  ;;  %v19056_v37 = vld [vmem:[#allocation5 + $0x180] sm:$0xff] }
 0x6e5   : > { %v9041_v7 = vpack.c.bf16 %v6769_v2, %v6766_v15  ;;  %v12977_v63 = vpop.permute.xlu1 %12976  ;;  %v12972_v13 = vpop.permute.xlu0 %12971  ;;  %v6814_v30 = vsel %vm6739_vm1, %v12869_v46, %v12963_v50  ;;  %v8171_v11 = vadd.f32 %v8170_v39, %v8169_v45  ;;  %v19052_v50 = vld [vmem:[#allocation5 + $0x188] sm:$0xff] }
 0x6e6   : > { %v12979_v18 = vunpack.i.h.bf16 %v12977_v63  ;;  %v12978_v35 = vunpack.i.l.bf16 %v12977_v63  ;;  %v12974_v33 = vunpack.i.h.bf16 %v12972_v13  ;;  %v12973_v47 = vunpack.i.l.bf16 %v12972_v13  ;;  %6997 = vmatmul.mubr.f32.vlgmr.msra.gmra.mrb[0].mxu0 %v19014_v32 }
 0x6e7   : > { %v9039_v58 = vpack.c.bf16 %v6817_v26, %v6814_v30  ;;  %7002 = vmatprep.mubr.f32.mxu0 %v19028_v12  ;;  %v19038_v34 = vadd.f32 %v8171_v11, %v18531_v52  ;;  %v8172_v43 = vpop.f32.mrb[118].mxu1  ;;  %v20064_v63 = vunpack.i.h.bf16 %v18757_v57 }
 0x6e8   : > { %v6772_v46 = vsel %vm6739_vm1, %v20061_v21, %v12978_v35  ;;  %v6775_v48 = vsel %vm6739_vm1, %v20062_v29, %v12979_v18  ;;  %v6820_v38 = vsel %vm6739_vm1, %v12894_v0, %v12973_v47  ;;  %v6823_v59 = vsel %vm6739_vm1, %v20063_v24, %v12974_v33  ;;  %v8173_v52 = vpop.f32.mrb[119].mxu1  ;;  %v19073_v35 = vld [vmem:[#allocation5 + $0x210] sm:$0xff] }
 0x6e9   : > { %v9045_v45 = vpack.c.bf16 %v6775_v48, %v6772_v46  ;;  %9040 = vmatprep.subr.bf16.mxu1 %v9039_v58  ;;  %v12987_v17 = vpop.permute.xlu1 %12986  ;;  %v12982_v54 = vpop.permute.xlu0 %12981  ;;  %v9043_v15 = vpack.c.bf16 %v6823_v59, %v6820_v38  ;;  %v8174_v3 = vadd.f32 %v8173_v52, %v8172_v43  ;;  %v20067_v38 = vunpack.i.h.bf16 %v18791_v40 }
 0x6ea   : > { %9042 = vmatpush3.bf16.msra.mxu1 %v9041_v7  ;;  %v12989_v23 = vunpack.i.h.bf16 %v12987_v17  ;;  %v12988_v2 = vunpack.i.l.bf16 %v12987_v17  ;;  %v12984_v26 = vunpack.i.h.bf16 %v12982_v54  ;;  %v12983_v6 = vunpack.i.l.bf16 %v12982_v54  ;;  %7003 = vmatmul.mubr.f32.gmra.mrb[2].mxu0 %v19035_v60  ;;  %v19094_v17 = vld [vmem:[#allocation5 + $0x298] sm:$0xff] }
 0x6eb   : > { %9044 = vmatprep.subr.bf16.mxu1 %v9043_v15  ;;  %7008 = vmatprep.mubr.f32.mxu0 %v19052_v50  ;;  %v19059_v0 = vadd.f32 %v8174_v3, %v18549_v51  ;;  %v8175_v39 = vpop.f32.mrb[120].mxu1  ;;  %v20065_v7 = vunpack.i.h.bf16 %v18767_v9  ;;  %v20068_v52 = vunpack.i.h.bf16 %v18989_v22 }
 0x6ec   : > { %v6778_v13 = vsel %vm6739_vm1, %v20064_v63, %v12988_v2  ;;  %v6826_v11 = vsel %vm6739_vm1, %v12919_v53, %v12983_v6  ;;  %v6829_v18 = vsel %vm6739_vm1, %v12924_v19, %v12984_v26  ;;  %v8176_v51 = vpop.f32.mrb[121].mxu1  ;;  %v20066_v19 = vunpack.i.h.bf16 %v18785_v42  ;;  %v19106_v2 = vld [vmem:[#allocation5 + $0x290] sm:$0xff] }
 0x6ed   : > { %v6781_v30 = vsel %vm6739_vm1, %v20065_v7, %v12989_v23  ;;  %v12997_v47 = vpop.permute.xlu1 %12996  ;;  %v12992_v57 = vpop.permute.xlu0 %12991  ;;  %v9047_v58 = vpack.c.bf16 %v6829_v18, %v6826_v11  ;;  %v8177_v43 = vadd.f32 %v8176_v51, %v8175_v39 }
 0x6ee   : > { %v9049_v33 = vpack.c.bf16 %v6781_v30, %v6778_v13  ;;  %9046 = vmatpush3.bf16.msra.mxu1 %v9045_v45  ;;  %v12999_v9 = vunpack.i.h.bf16 %v12997_v47  ;;  %v12998_v21 = vunpack.i.l.bf16 %v12997_v47  ;;  %v12994_v46 = vunpack.i.h.bf16 %v12992_v57  ;;  %7009 = vmatmul.mubr.f32.gmra.mrb[4].mxu0 %v19056_v37  ;;  %v19117_v13 = vld [vmem:[#allocation5 + $0x320] sm:$0xff]  ;;  %v19123_v47 = vld [vmem:[#allocation5 + $0x318] sm:$0xff] }
 0x6ef   : > { %v12993_v29 = vunpack.i.l.bf16 %v12992_v57  ;;  %9048 = vmatprep.subr.bf16.mxu1 %v9047_v58  ;;  %7014 = vmatprep.mubr.f32.mxu0 %v19073_v35  ;;  %v19080_v53 = vadd.f32 %v8177_v43, %v18562_v16  ;;  %v8178_v1 = vpop.f32.mrb[122].mxu1 }
 0x6f0   : > { %v6784_v48 = vsel %vm6739_vm1, %v20066_v19, %v12998_v21  ;;  %v6787_v24 = vsel %vm6739_vm1, %v20067_v38, %v12999_v9  ;;  %v6835_v45 = vsel %vm6739_vm1, %v20068_v52, %v12994_v46  ;;  %v8179_v16 = vpop.f32.mrb[123].mxu1 }
 0x6f1   : > { %v6832_v59 = vsel %vm6739_vm1, %v12944_v56, %v12993_v29  ;;  %v9053_v54 = vpack.c.bf16 %v6787_v24, %v6784_v48  ;;  %v19096_v15 = vpop.permute.xlu1 %13006  ;;  %v19098_v42 = vpop.permute.xlu0 %13001  ;;  %v8180_v40 = vadd.f32 %v8179_v16, %v8178_v1  ;;  %v19132_v29 = vld [vmem:[#allocation5 + $0x3a8] sm:$0xff]  ;;  %v19142_v16 = vld [vmem:[#allocation5 + $0x3a0] sm:$0xff] }
 0x6f2   : > { %v9051_v3 = vpack.c.bf16 %v6835_v45, %v6832_v59  ;;  %9050 = vmatpush3.bf16.msra.mxu1 %v9049_v33  ;;  %v13009_v36 = vunpack.i.h.bf16 %v19096_v15  ;;  %v13008_v56 = vunpack.i.l.bf16 %v19096_v15  ;;  %v13004_v22 = vunpack.i.h.bf16 %v19098_v42  ;;  %7015 = vmatmul.mubr.f32.gmra.mrb[6].mxu0 %v19077_v20 }
 0x6f3   : > { %v13003_v23 = vunpack.i.l.bf16 %v19098_v42  ;;  %7020 = vmatprep.mubr.f32.mxu0 %v19094_v17  ;;  %v19109_v26 = vadd.f32 %v8180_v40, %v18581_v61  ;;  %v8181_v6 = vpop.f32.mrb[124].mxu1 }
 0x6f4   : > { %9052 = vmatprep.subr.bf16.mxu1 %v9051_v3  ;;  %v7251_v63 = vsel %vm7246_vm3, %v13008_v56, %v13009_v36  ;;  %v8182_v7 = vpop.f32.mrb[125].mxu1 }
 0x6f5   : > { %v7248_v39 = vsel %vm7246_vm3, %v13003_v23, %v13004_v22  ;;  %v19119_v30 = vpop.permute.xlu1 %13016  ;;  %v13012_v11 = vpop.permute.xlu0 %13011  ;;  %v8183_v51 = vadd.f32 %v8182_v7, %v8181_v6 }
 0x6f6   : > { %v9055_v18 = vpack.c.bf16 %v7251_v63, %v7248_v39  ;;  %9054 = vmatpush3.bf16.msra.mxu1 %v9053_v54  ;;  %v13014_v61 = vunpack.i.h.bf16 %v13012_v11  ;;  %v13013_v33 = vunpack.i.l.bf16 %v13012_v11  ;;  %7021 = vmatmul.mubr.f32.gmra.mrb[8].mxu0 %v19106_v2  ;;  %v13019_v43 = vunpack.i.h.bf16 %v19119_v30 }
 0x6f7   : > { %7026 = vmatprep.mubr.f32.mxu0 %v19117_v13  ;;  %v19126_v57 = vadd.f32 %v8183_v51, %v18584_v28  ;;  %v8184_v58 = vpop.f32.mrb[126].mxu1  ;;  %v13018_v9 = vunpack.i.l.bf16 %v19119_v30  ;;  %v7175_v30 = vld [vmem:[#allocation5 + $0x108] sm:$0xff] }
 0x6f8   : > { %9056 = vmatprep.subr.bf16.mxu0 %v9055_v18  ;;  %v7250_v21 = vsel %vm7246_vm3, %v13014_v61, %v13008_v56  ;;  %v7247_v46 = vsel %vm7246_vm3, %v13013_v33, %v13003_v23  ;;  %v8185_v1 = vpop.f32.mrb[127].mxu1  ;;  %v19155_v56 = vld [vmem:[#allocation5 + $0x430] sm:$0xff] }
 0x6f9   : > { %v9057_v19 = vpack.c.bf16 %v7250_v21, %v7247_v46  ;;  %7110 = vmatmul.mubr.f32.vlgmr.msra.gmra.mrb[128].mxu1 %v19014_v32  ;;  %v13027_v48 = vpop.permute.xlu1 %13026  ;;  %v19135_v38 = vpop.permute.xlu0 %13021  ;;  %v8186_v28 = vadd.f32 %v8185_v1, %v8184_v58  ;;  %v7254_v40 = vsel %vm7246_vm3, %v13018_v9, %v13019_v43  ;;  %v13464_v46 = vmov 0.0  }
 0x6fa   : > { %v13029_v24 = vunpack.i.h.bf16 %v13027_v48  ;;  %v13028_v59 = vunpack.i.l.bf16 %v13027_v48  ;;  %v13024_v52 = vunpack.i.h.bf16 %v19135_v38  ;;  %v13023_v45 = vunpack.i.l.bf16 %v19135_v38  ;;  %7114 = vmatprep.mubr.f32.mxu1 %v19028_v12  ;;  %7027 = vmatmul.mubr.f32.gmra.mrb[10].mxu0 %v19123_v47  ;;  %v7176_v38 = vld [vmem:[#allocation5 + $0x190] sm:$0xff] }
 0x6fb   : > { %9058 = vmatpush1.bf16.msra.mxu0 %v9057_v19  ;;  %7032 = vmatprep.mubr.f32.mxu0 %v19132_v29  ;;  %v19145_v32 = vadd.f32 %v8186_v28, %v18590_v49 }
 0x6fc   : > { %v7253_v54 = vsel %vm7246_vm3, %v13028_v59, %v13018_v9  ;;  %v7256_v3 = vsel %vm7246_vm3, %v13029_v24, %v13023_v45  ;;  %v7257_v12 = vsel %vm7246_vm3, %v13023_v45, %v13024_v52 }
 0x6fd   : > { %v9061_v23 = vpack.c.bf16 %v7256_v3, %v7253_v54  ;;  %7115 = vmatmul.mubr.f32.gmra.mrb[130].mxu1 %v19035_v60  ;;  %v19158_v6 = vpop.permute.xlu1 %13036  ;;  %v19160_v49 = vpop.permute.xlu0 %13031  ;;  %v9059_v39 = vpack.c.bf16 %v7257_v12, %v7254_v40  ;;  %v19169_v60 = vld [vmem:[#allocation5 + $0x428] sm:$0xff] }
 0x6fe   : > { %v13039_v63 = vunpack.i.h.bf16 %v19158_v6  ;;  %v13038_v7 = vunpack.i.l.bf16 %v19158_v6  ;;  %v13034_v11 = vunpack.i.h.bf16 %v19160_v49  ;;  %v13033_v18 = vunpack.i.l.bf16 %v19160_v49  ;;  %7119 = vmatprep.mubr.f32.mxu1 %v19052_v50  ;;  %7033 = vmatmul.mubr.f32.gmra.mrb[12].mxu0 %v19142_v16  ;;  %v7178_v6 = vld [vmem:[#allocation5 + $0x2a0] sm:$0xff] }
 0x6ff   : > { %9060 = vmatprep.subr.bf16.mxu0 %v9059_v39  ;;  %7038 = vmatprep.mubr.f32.mxu0 %v19155_v56 }
 0x700   : > { %9062 = vmatpush1.bf16.msra.mxu0 %v9061_v23  ;;  %v7260_v51 = vsel %vm7246_vm3, %v13033_v18, %v13034_v11  ;;  %v7263_v61 = vsel %vm7246_vm3, %v13038_v7, %v13039_v63 }
 0x701   : > { %7120 = vmatmul.mubr.f32.gmra.mrb[132].mxu1 %v19056_v37  ;;  %v19178_v33 = vpop.permute.xlu1 %13046  ;;  %v13042_v50 = vpop.permute.xlu0 %13041  ;;  %v9063_v58 = vpack.c.bf16 %v7263_v61, %v7260_v51 }
 0x702   : > { %v13044_v9 = vunpack.i.h.bf16 %v13042_v50  ;;  %v13043_v21 = vunpack.i.l.bf16 %v13042_v50  ;;  %7124 = vmatprep.mubr.f32.mxu1 %v19073_v35  ;;  %7039 = vmatmul.mubr.f32.gmra.mrb[14].mxu0 %v19169_v60  ;;  %v13049_v1 = vunpack.i.h.bf16 %v19178_v33  ;;  %v13048_v19 = vunpack.i.l.bf16 %v19178_v33 }
 0x703   : > { %9064 = vmatprep.subr.bf16.mxu0 %v9063_v58  ;;  %7384 = vmatprep.mubr.f32.mxu0 %v13464_v46 }
 0x704   : > { %v7262_v37 = vsel %vm7246_vm3, %v13044_v9, %v13038_v7  ;;  %v7259_v48 = vsel %vm7246_vm3, %v13043_v21, %v13033_v18  ;;  %v7266_v23 = vsel %vm7246_vm3, %v13048_v19, %v13049_v1 }
 0x705   : > { %v9065_v28 = vpack.c.bf16 %v7262_v37, %v7259_v48  ;;  %7125 = vmatmul.mubr.f32.gmra.mrb[134].mxu1 %v19077_v20  ;;  %v13057_v24 = vpop.permute.xlu1 %13056  ;;  %v13052_v59 = vpop.permute.xlu0 %13051 }
 0x706   : > { %v13059_v35 = vunpack.i.h.bf16 %v13057_v24  ;;  %v13058_v45 = vunpack.i.l.bf16 %v13057_v24  ;;  %v13054_v54 = vunpack.i.h.bf16 %v13052_v59  ;;  %v13053_v3 = vunpack.i.l.bf16 %v13052_v59  ;;  %7129 = vmatprep.mubr.f32.mxu1 %v19094_v17  ;;  %v7174_v17 = vld [vmem:[#allocation5 + $0x80] sm:$0xff] }
 0x707   : > { %9066 = vmatpush1.bf16.msra.mxu0 %v9065_v28 }
 0x708   : > { %v7265_v40 = vsel %vm7246_vm3, %v13058_v45, %v13048_v19  ;;  %v7268_v12 = vsel %vm7246_vm3, %v13059_v35, %v13053_v3  ;;  %v7269_v39 = vsel %vm7246_vm3, %v13053_v3, %v13054_v54 }
 0x709   : > { %v9069_v7 = vpack.c.bf16 %v7268_v12, %v7265_v40  ;;  %7130 = vmatmul.mubr.f32.gmra.mrb[136].mxu1 %v19106_v2  ;;  %v13067_v20 = vpop.permute.xlu1 %13066  ;;  %v13062_v18 = vpop.permute.xlu0 %13061  ;;  %v9067_v51 = vpack.c.bf16 %v7269_v39, %v7266_v23 }
 0x70a   : > { %v13069_v61 = vunpack.i.h.bf16 %v13067_v20  ;;  %v13068_v33 = vunpack.i.l.bf16 %v13067_v20  ;;  %v13064_v50 = vunpack.i.h.bf16 %v13062_v18  ;;  %v13063_v58 = vunpack.i.l.bf16 %v13062_v18  ;;  %7134 = vmatprep.mubr.f32.mxu1 %v19117_v13 }
 0x70b   : > { %9068 = vmatprep.subr.bf16.mxu0 %v9067_v51 }
 0x70c   : > { %9070 = vmatpush1.bf16.msra.mxu0 %v9069_v7  ;;  %v7249_v9 = vsel %vm7246_vm3, %v13004_v22, %v13063_v58  ;;  %v7252_v2 = vsel %vm7246_vm3, %v13009_v36, %v13064_v50  ;;  %v7255_v21 = vsel %vm7246_vm3, %v13019_v43, %v13068_v33  ;;  %v7258_v13 = vsel %vm7246_vm3, %v13024_v52, %v13069_v61 }
 0x70d   : > { %7135 = vmatmul.mubr.f32.gmra.mrb[138].mxu1 %v19123_v47  ;;  %v13077_v19 = vpop.permute.xlu1 %13076  ;;  %v13072_v37 = vpop.permute.xlu0 %13071  ;;  %v9071_v48 = vpack.c.bf16 %v7252_v2, %v7249_v9  ;;  %v9075_v15 = vpack.c.bf16 %v7258_v13, %v7255_v21 }
 0x70e   : > { %v13074_v42 = vunpack.i.h.bf16 %v13072_v37  ;;  %v13073_v28 = vunpack.i.l.bf16 %v13072_v37  ;;  %7139 = vmatprep.mubr.f32.mxu1 %v19132_v29  ;;  %v13079_v36 = vunpack.i.h.bf16 %v13077_v19  ;;  %v13078_v22 = vunpack.i.l.bf16 %v13077_v19 }
 0x70f   : > { %7776 = vmatmul.mubr.msk.f32.vlgmr.msra.gmra.mrb[0].mxu0 %vm7295_vm4, %v7174_v17  ;;  %9072 = vmatprep.subr.bf16.mxu1 %v9071_v48 }
 0x710   : > { %9074 = vmatpush3.bf16.msra.mxu1 %v9071_v48  ;;  %7390 = vmatprep.mubr.f32.mxu0 %v13464_v46  ;;  %v7261_v47 = vsel %vm7246_vm3, %v13034_v11, %v13073_v28  ;;  %v7264_v43 = vsel %vm7246_vm3, %v13039_v63, %v13074_v42  ;;  %v7267_v52 = vsel %vm7246_vm3, %v13049_v1, %v13078_v22  ;;  %v7179_v63 = vld [vmem:[#allocation5 + $0x328] sm:$0xff]  ;;  %v7180_v11 = vld [vmem:[#allocation5 + $0x3b0] sm:$0xff] }
 0x711   : > { %7140 = vmatmul.mubr.f32.gmra.mrb[140].mxu1 %v19142_v16  ;;  %9076 = vmatprep.subr.bf16.mxu1 %v9075_v15  ;;  %v9079_v29 = vpack.c.bf16 %v7264_v43, %v7261_v47  ;;  %v7270_v49 = vsel %vm7246_vm3, %v13054_v54, %v13079_v36 }
 0x712   : > { %7144 = vmatprep.mubr.f32.mxu1 %v19155_v56  ;;  %v9083_v16 = vpack.c.bf16 %v7270_v49, %v7267_v52  ;;  %v7177_v56 = vld [vmem:[#allocation5 + $0x218] sm:$0xff] }
 0x713   : > { %7777 = vmatmul.mubr.msk.f32.gmra.mrb[2].mxu0 %vm7295_vm4, %v7175_v30 }
 0x714   : > { %9078 = vmatpush3.bf16.msra.mxu1 %v9075_v15  ;;  %7396 = vmatprep.mubr.f32.mxu0 %v13464_v46 }
 0x715   : > { %7145 = vmatmul.mubr.f32.gmra.mrb[142].mxu1 %v19169_v60  ;;  %9080 = vmatprep.subr.bf16.mxu1 %v9079_v29  ;;  %v7181_v60 = vld [vmem:[#allocation5 + $0x438] sm:$0xff] }
 0x716   : > { %8275 = vmatprep.mubr.msk.f32.mxu1 %vm7295_vm4, %v7174_v17 }
 0x717   : > { %7778 = vmatmul.mubr.msk.f32.gmra.mrb[4].mxu0 %vm7295_vm4, %v7176_v38 }
 0x718   : > { %9082 = vmatpush3.bf16.msra.mxu1 %v9079_v29  ;;  %7402 = vmatprep.mubr.f32.mxu0 %v13464_v46 }
 0x719   : > { %9084 = vmatprep.subr.bf16.mxu1 %v9083_v16 }
 0x71b   : > { %7779 = vmatmul.mubr.msk.f32.gmra.mrb[6].mxu0 %vm7295_vm4, %v7177_v56 }
 0x71c   : > { %9086 = vmatpush3.bf16.msra.mxu1 %v9083_v16  ;;  %7408 = vmatprep.mubr.f32.mxu0 %v13464_v46 }
 0x71f   : > { %7780 = vmatmul.mubr.msk.f32.gmra.mrb[8].mxu0 %vm7295_vm4, %v7178_v6  ;;  %8276 = vmatmul.mubr.msk.f32.vlgmr.msra.gmra.mrb[144].mxu1 %vm7295_vm4, %v7175_v30 }
 0x720   : > { %7414 = vmatprep.mubr.f32.mxu0 %v13464_v46  ;;  %8278 = vmatprep.mubr.msk.f32.mxu1 %vm7295_vm4, %v7176_v38 }
 0x723   : > { %7781 = vmatmul.mubr.msk.f32.gmra.mrb[10].mxu0 %vm7295_vm4, %v7179_v63  ;;  %8279 = vmatmul.mubr.msk.f32.gmra.mrb[146].mxu1 %vm7295_vm4, %v7177_v56 }
 0x724   : > { %7420 = vmatprep.mubr.f32.mxu0 %v13464_v46  ;;  %8281 = vmatprep.mubr.msk.f32.mxu1 %vm7295_vm4, %v7178_v6 }
 0x726   : > { %v7573_v2 = vpop.permute.xlu0 %7572 }
 0x727   : > { %7782 = vmatmul.mubr.msk.f32.gmra.mrb[12].mxu0 %vm7295_vm4, %v7180_v11  ;;  %8282 = vmatmul.mubr.msk.f32.gmra.mrb[148].mxu1 %vm7295_vm4, %v7179_v63 }
 0x728   : > { %7426 = vmatprep.mubr.f32.mxu0 %v13464_v46  ;;  %8284 = vmatprep.mubr.msk.f32.mxu1 %vm7295_vm4, %v7180_v11  ;;  %v7578_v37 = vpop.permute.xlu1 %7577 }
 0x72b   : > { %7783 = vmatmul.mubr.msk.f32.gmra.mrb[14].mxu0 %vm7295_vm4, %v7181_v60  ;;  %8285 = vmatmul.mubr.msk.f32.gmra.mrb[150].mxu1 %vm7295_vm4, %v7181_v60 }
 0x72c   : > { %v7583_v52 = vpop.permute.xlu1 %7582 }
 0x7cc   : > { %v8219_v1 = vpop.f32.mrb[128].mxu1 }
 0x7cd   : > { %v8220_v24 = vpop.f32.mrb[129].mxu1 }
 0x7ce   : > { %v8221_v59 = vadd.f32 %v8220_v24, %v8219_v1 }
 0x7d0   : > { %v8222_v35 = vpop.f32.mrb[130].mxu1  ;;  %v19244_v45 = vadd.f32 %v8221_v59, %v19004_v62 }
 0x7d1   : > { %v8223_v54 = vpop.f32.mrb[131].mxu1 }
 0x7d2   : > { %v8224_v3 = vadd.f32 %v8223_v54, %v8222_v35 }
 0x7d4   : > { %v8225_v40 = vpop.f32.mrb[132].mxu1  ;;  %v19247_v46 = vadd.f32 %v8224_v3, %v19017_v14 }
 0x7d5   : > { %v8226_v12 = vpop.f32.mrb[133].mxu1 }
 0x7d6   : > { %v8227_v23 = vadd.f32 %v8226_v12, %v8225_v40  ;;  %v7593_v40 = vpop.permute.xlu1 %7592 }
 0x7d8   : > { %v8228_v39 = vpop.f32.mrb[134].mxu1  ;;  %v19250_v7 = vadd.f32 %v8227_v23, %v19038_v34 }
 0x7d9   : > { %v8229_v20 = vpop.f32.mrb[135].mxu1 }
 0x7da   : > { %v8230_v18 = vadd.f32 %v8229_v20, %v8228_v39 }
 0x7dc   : > { %v8231_v51 = vpop.f32.mrb[136].mxu1  ;;  %v19253_v61 = vadd.f32 %v8230_v18, %v19059_v0 }
 0x7dd   : > { %v8232_v62 = vpop.f32.mrb[137].mxu1 }
 0x7de   : > { %v8233_v33 = vadd.f32 %v8232_v62, %v8231_v51 }
 0x7e0   : > { %v8234_v50 = vpop.f32.mrb[138].mxu1  ;;  %v19257_v58 = vadd.f32 %v8233_v33, %v19080_v53 }
 0x7e1   : > { %v8235_v14 = vpop.f32.mrb[139].mxu1 }
 0x7e2   : > { %v8236_v17 = vadd.f32 %v8235_v14, %v8234_v50  ;;  %v7386_v9 = vpop.f32.mrb[0].mxu0 }
 0x7e3   : > { %v9087_v34 = vadd.f32 %v7386_v9, %v17925_v44  ;;  %v7388_v21 = vpop.f32.mrb[1].mxu0 }
 0x7e4   : > { %v8237_v13 = vpop.f32.mrb[140].mxu1  ;;  %v9088_v19 = vadd.f32 %v7388_v21, %v17931_v10  ;;  %v19262_v0 = vadd.f32 %v8236_v17, %v19109_v26 }
 0x7e5   : > { %v8238_v48 = vpop.f32.mrb[141].mxu1  ;;  %v7610_v42 = vadd.f32 %v9087_v34, %v7573_v2 }
 0x7e6   : > { %v8239_v28 = vadd.f32 %v8238_v48, %v8237_v13  ;;  %v7611_v15 = vadd.f32 %v9088_v19, %v7573_v2  ;;  %v7392_v53 = vpop.f32.mrb[2].mxu0 }
 0x7e7   : > { %7634 = vst [vmem:[%s19264_s11] sm:$0xff] %v7610_v42  ;;  %v9089_v44 = vadd.f32 %v7392_v53, %v17938_v27  ;;  %v7394_v36 = vpop.f32.mrb[3].mxu0 }
 0x7e8   : > { %7635 = vst [vmem:[%s19264_s11 + $0x8] sm:$0xff] %v7611_v15  ;;  %v8240_v10 = vpop.f32.mrb[142].mxu1  ;;  %v9090_v26 = vadd.f32 %v7394_v36, %v17949_v41  ;;  %v19271_v22 = vadd.f32 %v8239_v28, %v19126_v57 }
 0x7e9   : > { %v8241_v30 = vpop.f32.mrb[143].mxu1  ;;  %v7613_v47 = vadd.f32 %v9089_v44, %v7578_v37  ;;  %v7603_v44 = vpop.permute.xlu1 %7602 }
 0x7ea   : > { %v8242_v43 = vadd.f32 %v8241_v30, %v8240_v10  ;;  %v7614_v29 = vadd.f32 %v9090_v26, %v7578_v37  ;;  %v7398_v38 = vpop.f32.mrb[4].mxu0 }
 0x7eb   : > { %7637 = vst [vmem:[%s19264_s11 + $0x18] sm:$0xff] %v7613_v47  ;;  %v9091_v49 = vadd.f32 %v7398_v38, %v17954_v8  ;;  %v7400_v27 = vpop.f32.mrb[5].mxu0  ;;  %v7588_v8 = vpop.permute.xlu0 %7587 }
 0x7ec   : > { %7638 = vst [vmem:[%s19264_s11 + $0x20] sm:$0xff] %v7614_v29  ;;  %v9092_v16 = vadd.f32 %v7400_v27, %v17956_v55  ;;  %v19278_v41 = vadd.f32 %v8242_v43, %v19145_v32 }
 0x7ed   : > { %v7616_v57 = vadd.f32 %v9091_v49, %v7583_v52  ;;  %v20074_v49 = vld [vmem:[#allocation71_spill] sm:$0xff] }
 0x7ee   : > { %v7617_v56 = vadd.f32 %v9092_v16, %v7583_v52  ;;  %v7404_v6 = vpop.f32.mrb[6].mxu0 }
 0x7ef   : > { %7640 = vst [vmem:[%s19264_s11 + $0x30] sm:$0xff] %v7616_v57  ;;  %v9093_v63 = vadd.f32 %v7404_v6, %v17962_v4  ;;  %v7406_v11 = vpop.f32.mrb[7].mxu0  ;;  %v7598_v17 = vpop.permute.xlu0 %7597 }
 0x7f0   : > { %7641 = vst [vmem:[%s19264_s11 + $0x38] sm:$0xff] %v7617_v56  ;;  %v9094_v60 = vadd.f32 %v7406_v11, %v17966_v25 }
 0x7f1   : > { %v7619_v1 = vadd.f32 %v9093_v63, %v7588_v8 }
 0x7f2   : > { %v7620_v24 = vadd.f32 %v9094_v60, %v7588_v8  ;;  %v7410_v59 = vpop.f32.mrb[8].mxu0  ;;  %v8277_v35 = vpop.f32.mrb[144].mxu1 }
 0x7f3   : > { %7643 = vst [vmem:[%s19264_s11 + $0x48] sm:$0xff] %v7619_v1  ;;  %v9095_v55 = vadd.f32 %v7410_v59, %v17971_v31  ;;  %v7543_v32 = vadd.f32 %v8277_v35, %v19247_v46  ;;  %v7412_v54 = vpop.f32.mrb[9].mxu0  ;;  %v7499_v3 = vpop.f32.mrb[145].mxu1  ;;  %v20069_v31 = vld [vmem:[#allocation27_spill] sm:$0xff] }
 0x7f4   : > { %7644 = vst [vmem:[%s19264_s11 + $0x50] sm:$0xff] %v7620_v24  ;;  %v9096_v4 = vadd.f32 %v7412_v54, %v17981_v5  ;;  %v7540_v25 = vadd.f32 %v7499_v3, %v19244_v45  ;;  %v20070_v45 = vld [vmem:[#allocation46_spill] sm:$0xff]  ;;  %v7608_v57 = vpop.permute.xlu0 %7607 }
 0x7f5   : > { %v7615_v12 = vadd.f32 %v7578_v37, %v7543_v32  ;;  %v7622_v23 = vadd.f32 %v9095_v55, %v7593_v40 }
 0x7f6   : > { %v7612_v39 = vadd.f32 %v7573_v2, %v7540_v25  ;;  %v7623_v20 = vadd.f32 %v9096_v4, %v7593_v40  ;;  %v7416_v18 = vpop.f32.mrb[10].mxu0  ;;  %v8280_v51 = vpop.f32.mrb[146].mxu1 }
 0x7f7   : > { %7639 = vst [vmem:[%s19264_s11 + $0x28] sm:$0xff] %v7615_v12  ;;  %7646 = vst [vmem:[%s19264_s11 + $0x60] sm:$0xff] %v7622_v23  ;;  %v9097_v46 = vadd.f32 %v7416_v18, %v20069_v31  ;;  %v7549_v62 = vadd.f32 %v8280_v51, %v19253_v61  ;;  %v7418_v33 = vpop.f32.mrb[11].mxu0  ;;  %v7509_v5 = vpop.f32.mrb[147].mxu1  ;;  %v20071_v61 = vld [vmem:[#allocation47_spill] sm:$0xff] }
 0x7f8   : > { %7636 = vst [vmem:[%s19264_s11 + $0x10] sm:$0xff] %v7612_v39  ;;  %7647 = vst [vmem:[%s19264_s11 + $0x68] sm:$0xff] %v7623_v20  ;;  %v9098_v50 = vadd.f32 %v7418_v33, %v20070_v45  ;;  %v7546_v14 = vadd.f32 %v7509_v5, %v19250_v7  ;;  %v20072_v7 = vld [vmem:[#allocation48_spill] sm:$0xff] }
 0x7f9   : > { %v7621_v9 = vadd.f32 %v7588_v8, %v7549_v62  ;;  %v7625_v2 = vadd.f32 %v9097_v46, %v7598_v17 }
 0x7fa   : > { %v7618_v34 = vadd.f32 %v7583_v52, %v7546_v14  ;;  %v7626_v21 = vadd.f32 %v9098_v50, %v7598_v17  ;;  %v7422_v13 = vpop.f32.mrb[12].mxu0  ;;  %v8283_v19 = vpop.f32.mrb[148].mxu1 }
 0x7fb   : > { %7645 = vst [vmem:[%s19264_s11 + $0x58] sm:$0xff] %v7621_v9  ;;  %7649 = vst [vmem:[%s19264_s11 + $0x78] sm:$0xff] %v7625_v2  ;;  %v9099_v37 = vadd.f32 %v7422_v13, %v20071_v61  ;;  %v7555_v48 = vadd.f32 %v8283_v19, %v19262_v0  ;;  %v7424_v42 = vpop.f32.mrb[13].mxu0  ;;  %v7519_v28 = vpop.f32.mrb[149].mxu1  ;;  %v20073_v0 = vld [vmem:[#allocation49_spill] sm:$0xff] }
 0x7fc   : > { %7642 = vst [vmem:[%s19264_s11 + $0x40] sm:$0xff] %v7618_v34  ;;  %7650 = vst [vmem:[%s19264_s11 + $0x80] sm:$0xff] %v7626_v21  ;;  %v9100_v15 = vadd.f32 %v7424_v42, %v20072_v7  ;;  %v7552_v53 = vadd.f32 %v7519_v28, %v19257_v58 }
 0x7fd   : > { %v7627_v36 = vadd.f32 %v7598_v17, %v7555_v48  ;;  %v7628_v10 = vadd.f32 %v9099_v37, %v7603_v44 }
 0x7fe   : > { %v7624_v26 = vadd.f32 %v7593_v40, %v7552_v53  ;;  %v7629_v30 = vadd.f32 %v9100_v15, %v7603_v44  ;;  %v7428_v47 = vpop.f32.mrb[14].mxu0  ;;  %v8286_v43 = vpop.f32.mrb[150].mxu1 }
 0x7ff   : > { %7651 = vst [vmem:[%s19264_s11 + $0x88] sm:$0xff] %v7627_v36  ;;  %7652 = vst [vmem:[%s19264_s11 + $0x90] sm:$0xff] %v7628_v10  ;;  %v9101_v29 = vadd.f32 %v7428_v47, %v20073_v0  ;;  %v7561_v38 = vadd.f32 %v8286_v43, %v19278_v41  ;;  %v7430_v52 = vpop.f32.mrb[15].mxu0  ;;  %v7529_v58 = vpop.f32.mrb[151].mxu1 }
 0x800   : > { %7648 = vst [vmem:[%s19264_s11 + $0x70] sm:$0xff] %v7624_v26  ;;  %7653 = vst [vmem:[%s19264_s11 + $0x98] sm:$0xff] %v7629_v30  ;;  %v9102_v27 = vadd.f32 %v7430_v52, %v20074_v49  ;;  %v7558_v16 = vadd.f32 %v7529_v58, %v19271_v22 }
 0x801   : > { %v7631_v56 = vadd.f32 %v9101_v29, %v7608_v57  ;;  %v7633_v6 = vadd.f32 %v7608_v57, %v7561_v38 }
 0x802   : > { %v7630_v63 = vadd.f32 %v7603_v44, %v7558_v16  ;;  %v7632_v11 = vadd.f32 %v9102_v27, %v7608_v57 }
 0x803   : > { %7655 = vst [vmem:[%s19264_s11 + $0xa8] sm:$0xff] %v7631_v56  ;;  %7657 = vst [vmem:[%s19264_s11 + $0xb8] sm:$0xff] %v7633_v6 }
 0x804   : > { %7654 = vst [vmem:[%s19264_s11 + $0xa0] sm:$0xff] %v7630_v63  ;;  %7656 = vst [vmem:[%s19264_s11 + $0xb0] sm:$0xff] %v7632_v11 }
 0x805   : > { %13362 = shalt.err (!%p13359_p5)
}
 0x806   : > { %s13363_s20 = scalar_lea.hbm %s19319_s21, 3072  ;;  %s13367_s26 = scalar_lea.hbm %s19378_s3, 6144 }
 0x807   : > { %p13364_p9 = scmp.ne.s32.totalorder %s19319_s21, %s13363_s20  ;;  %p13368_p3 = scmp.lt.u32.totalorder %s19319_s21, %s19378_s3 }
 0x808   : > { %p13369_p7 = scmp.lt.u32.totalorder %s13367_s26, %s13363_s20  ;;  %p13371_p4 = scmp.lt.u32.totalorder %s13363_s20, %s19319_s21 }
 0x809   : > { %p13365_p1 = pnand %p13364_p9, %p13579_p10 }
 0x80a   : > { %p13370_p11 = por %p13369_p7, %p13368_p3 }
 0x80b   : > { %p13366_p2 = pneg %p13365_p1 }
 0x80c   : > { %p13372_p6 = por %p13371_p4, %p13370_p11 }
 0x80e   : > { %p13373_p8 = pnand %p13372_p6, %p13366_p2 }
 0x810   : > { %13376 = shalt.err (!%p13373_p8)
}
 0x811   : > { %s13466_s27 = smov 384  }
 0x812   : > { %9226 = dma.vmem_to_hbm [thread:$0]  (%p13579_p10), %s19321_s6, 3072, %s19319_s21, %s7659_s18, %s13466_s27, %s13466_s27, %s13459_s24  }
 0x813 PF: > { %s7689_s15 = sand.u32 1, %s13415_s12   ;;  %p20075_p12 = scmp.ne.s32.totalorder %s19615_s23, 0 }
 0x814   : > { %p20076_p13 = scmp.ge.s32.totalorder %s13435_s17, 2  ;;  %s7690_s9 = scalar_lea.sflag [#allocation4], %s7689_s15 }
 0x816   : > { %p9237_p0 = pnand %p20076_p13, %p20075_p12 }
 0x818   : > { %13410 = dma.done.wait (!%p9237_p0), %s7690_s9, 3072  }
 0x819   : > { %13412 = vsyncadd (!%p9237_p0), %s7690_s9, 4294964224  ;;  %s20_s17 = sadd.s32 1, %s13435_s17   ;;  %s20077_s12 = smov %s13419_s13 }
 0x81a   : > { %p17_p5 = scmp.ge.s32.totalorder %s20_s17, 4   ;;  %s20078_s13 = smov %s13423_s14 }
 0x81b   : > { %s20079_s14 = smov %s13588_s5  ;;  %s20080_s15 = smov %s13431_s16 }
 0x81c   : > { %s20081_s16 = smov %s20083_s28  ;;  %19 = sbr.rel (!%p17_p5) target bundleno = 7 (0x7), region = 81 }
 0x823   :  { %7695 = vsyncpa [#allocation3], 1 }
 0x824   :  { %7697 = vsyncpa [#allocation3 + $0x1], 1 }
 0x825   :  { %7698 = vsyncpa [#allocation6], 1 }
 0x826   :  { %7699 = vsyncpa [#allocation4], 1 }
 0x827   :  { %7701 = vsyncpa [#allocation4 + $0x1], 1 }

</bundles_post_ra>
